<compile_context>
chip_gen: v5e
topology: v5e:2x2
jax: 0.10.0
libtpu: 0.0.40
codegen_flags: <defaults>
</compile_context>

<pallas_src>
import functools

import jax
import jax.numpy as jnp
from jax.experimental import pallas as pl
from jax.experimental.pallas import tpu as pltpu


# ----------------------------------------------------------------------------
# Small helpers
# ----------------------------------------------------------------------------

def _sigmoid(x):
    # tanh-based sigmoid: single EUP op, robust Mosaic lowering.
    return 0.5 * (jnp.tanh(0.5 * x) + 1.0)


def _round_up(x, m):
    return -(-x // m) * m


# ----------------------------------------------------------------------------
# Generic M-tiled, lane-dense linear kernel:  o = act(a @ w + b)
# Weights are pre-padded to a 128-lane multiple at init; slice back outside.
# ----------------------------------------------------------------------------

def _linear_kernel(a_ref, w_ref, b_ref, o_ref, *, activation):
    a = a_ref[...].astype(jnp.bfloat16)
    y = jnp.dot(a, w_ref[...], preferred_element_type=jnp.float32)
    y = y + b_ref[...]
    if activation == "relu":
        y = jnp.maximum(y, 0.0)
    elif activation == "tanh":
        y = jnp.tanh(y)
    o_ref[...] = y.astype(o_ref.dtype)


def pallas_linear(a, w, b, activation="none", *, out_n=None):
    """a:[M,K] f32, w:[K,Np] bf16 (Np % 128 == 0), b:[1,Np] f32 -> [M,out_n]."""
    M, K = a.shape
    K2, Np = w.shape
    assert K == K2 and Np % 128 == 0
    if out_n is None:
        out_n = Np

    # Tile M so that v7x gets >= 2 grid steps where M allows; keep tiles big
    # on 1-TC chips.
    if M >= 512:
        tm = 256
    elif M >= 256:
        tm = 128
    else:
        tm = _round_up(M, 8)
    Mp = _round_up(M, tm)
    if Mp != M:
        a = jnp.pad(a, ((0, Mp - M), (0, 0)))
    grid_m = Mp // tm

    kern = functools.partial(_linear_kernel, activation=activation)
    out = pl.pallas_call(
        kern,
        grid=(grid_m,),
        in_specs=[
            pl.BlockSpec((tm, K), lambda i: (i, 0)),
            pl.BlockSpec((K, Np), lambda i: (0, 0)),
            pl.BlockSpec((1, Np), lambda i: (0, 0)),
        ],
        out_specs=pl.BlockSpec((tm, Np), lambda i: (i, 0)),
        out_shape=jax.ShapeDtypeStruct((Mp, Np), jnp.float32),
        compiler_params=pltpu.CompilerParams(
            dimension_semantics=("parallel",)),
    )(a, w, b)
    return out[:M, :out_n]


# ----------------------------------------------------------------------------
# Fully fused BiLSTM layer: one kernel per layer (no grid).
#   gx = x @ Wx + bx (both directions fused -> [T*B, 8H]) in the prologue,
#   then T unrolled recurrence steps with a single block-diagonal h-matmul
#   per step; output written as lane-dense [T, B, 2H].
# ----------------------------------------------------------------------------

def _bilstm_kernel(x_ref, wx_ref, bx_ref, whd_ref, out_ref, *,
                   seq_len, batch, hidden):
    T, B, H = seq_len, batch, hidden

    # Hoisted x-side gate projection for both directions: [T*B, 8H].
    gx = jnp.dot(x_ref[...].astype(jnp.bfloat16), wx_ref[...],
                 preferred_element_type=jnp.float32) + bx_ref[...]
    whd = whd_ref[...]                                  # [2H, 8H] block-diag, bf16

    hf = jnp.zeros((B, H), jnp.float32)
    cf = jnp.zeros((B, H), jnp.float32)
    hb = jnp.zeros((B, H), jnp.float32)
    cb = jnp.zeros((B, H), jnp.float32)

    for s in range(T):                                  # statically unrolled
        tf_ = s                                         # forward time index
        tb_ = T - 1 - s                                 # backward time index

        gf_x = gx[tf_ * B:(tf_ + 1) * B, 0:4 * H]       # fwd x-gates  at tf_
        gb_x = gx[tb_ * B:(tb_ + 1) * B, 4 * H:8 * H]   # bwd x-gates  at tb_

        h_cat = jnp.concatenate([hf, hb], axis=-1).astype(jnp.bfloat16)  # [B, 2H]
        g_h = jnp.dot(h_cat, whd, preferred_element_type=jnp.float32)    # [B, 8H]

        gf = gf_x + g_h[:, 0:4 * H]
        gb = gb_x + g_h[:, 4 * H:8 * H]

        # gate order i, f, g, o (PyTorch LSTM convention)
        i = _sigmoid(gf[:, 0 * H:1 * H])
        f = _sigmoid(gf[:, 1 * H:2 * H])
        cc = jnp.tanh(gf[:, 2 * H:3 * H])
        o = _sigmoid(gf[:, 3 * H:4 * H])
        cf = f * cf + i * cc
        hf = o * jnp.tanh(cf)

        i = _sigmoid(gb[:, 0 * H:1 * H])
        f = _sigmoid(gb[:, 1 * H:2 * H])
        cc = jnp.tanh(gb[:, 2 * H:3 * H])
        o = _sigmoid(gb[:, 3 * H:4 * H])
        cb = f * cb + i * cc
        hb = o * jnp.tanh(cb)

        out_ref[tf_, :, 0:H] = hf
        out_ref[tb_, :, H:2 * H] = hb


def bilstm_layer(x2d, p, seq_len, batch):
    """x2d:[T*B, D] (time-major) -> [T, B, 2H]; one pallas_call per layer."""
    H = p["Whd"].shape[0] // 2
    kern = functools.partial(_bilstm_kernel, seq_len=seq_len, batch=batch,
                             hidden=H)
    return pl.pallas_call(
        kern,
        out_shape=jax.ShapeDtypeStruct((seq_len, batch, 2 * H), jnp.float32),
    )(x2d, p["Wx"], p["bx"], p["Whd"])


# ----------------------------------------------------------------------------
# Fully fused greedy attention decoder: one kernel, no grid.
#   Key projection in the prologue; max_len unrolled steps with h/c/token
#   carried as values; per-step logits stored at static indices into the
#   lane-padded (VP=128) output block.
# ----------------------------------------------------------------------------

def _decoder_kernel(enc_ref, emb_ref, wk_ref, bk_ref, wq_ref, bq_ref, v_ref,
                    wl_ref, bl_ref, wo_ref, bo_ref, out_ref, *,
                    max_len, hidden, start_token):
    H = hidden
    B, T, E = enc_ref.shape
    VP = out_ref.shape[-1]

    enc = enc_ref[...]                                   # [B, T, E] f32
    emb_w = emb_ref[...]
    wq = wq_ref[...]
    bq = bq_ref[...]
    v = v_ref[...]                                       # [1, A]
    wl = wl_ref[...]
    bl = bl_ref[...]
    wo = wo_ref[...]
    bo = bo_ref[...]
    wk = wk_ref[...]
    bk = bk_ref[...]
    A = wk.shape[1]

    # Fused attention-key projection (per-batch-row dots avoid 3-D dot_general).
    keys = jnp.concatenate(
        [(jnp.dot(enc_ref[b].astype(jnp.bfloat16), wk,
                  preferred_element_type=jnp.float32) + bk)[None]
         for b in range(B)],
        axis=0)                                          # [B, T, A]

    col = jax.lax.broadcasted_iota(jnp.int32, (B, VP), 1)
    tok = (col == start_token).astype(jnp.float32)       # one-hot start token
    h = jnp.zeros((B, H), jnp.float32)
    c = jnp.zeros((B, H), jnp.float32)

    for t in range(max_len):                             # statically unrolled
        # Embedding lookup as one-hot matmul (VMEM-resident table).
        e_t = jnp.dot(tok.astype(jnp.bfloat16), emb_w,
                      preferred_element_type=jnp.float32)          # [B, emb]

        # Bahdanau attention: score = v . tanh(keys + Wq h); alpha = softmax_T.
        q = jnp.dot(h.astype(jnp.bfloat16), wq,
                    preferred_element_type=jnp.float32) + bq        # [B, A]
        q3 = jax.lax.broadcast_in_dim(q, (B, T, A), (0, 2))
        att = jnp.tanh(keys + q3)                                   # [B, T, A]
        scores = jnp.sum(att * v, axis=-1)                          # [B, T]
        m = jnp.max(scores, axis=-1, keepdims=True)
        ex = jnp.exp(scores - m)
        denom = jnp.sum(ex, axis=-1, keepdims=True)
        alpha = ex * pl.reciprocal(denom, approx=True)              # [B, T]
        alpha3 = jax.lax.broadcast_in_dim(alpha, (B, T, E), (0, 1))
        ctx = jnp.sum(alpha3 * enc, axis=1)                         # [B, E]

        # Decoder LSTM cell: one fused input matmul [emb | ctx | h] @ Wl.
        x_cat = jnp.concatenate([e_t, ctx, h], axis=-1).astype(jnp.bfloat16)
        g = jnp.dot(x_cat, wl, preferred_element_type=jnp.float32) + bl
        i = _sigmoid(g[:, 0 * H:1 * H])
        f = _sigmoid(g[:, 1 * H:2 * H])
        cc = jnp.tanh(g[:, 2 * H:3 * H])
        o = _sigmoid(g[:, 3 * H:4 * H])
        c = f * c + i * cc
        h = o * jnp.tanh(c)

        # Fused output projection [h | ctx] @ Wo (lane-padded to VP=128;
        # padded bias lanes are -1e30 so argmax never picks them).
        hc = jnp.concatenate([h, ctx], axis=-1).astype(jnp.bfloat16)
        logits = jnp.dot(hc, wo, preferred_element_type=jnp.float32) + bo
        out_ref[t] = logits

        # Greedy argmax -> one-hot next-token state (first max on ties).
        mx = jnp.max(logits, axis=-1, keepdims=True)
        sel = jnp.where(logits >= mx, col, jnp.int32(VP))
        nxt = jnp.min(sel, axis=-1, keepdims=True)                  # [B, 1]
        tok = (col == nxt).astype(jnp.float32)


def attention_decoder(enc_bte, p, max_len, vocab):
    """enc:[B, T, E] -> logits [B, max_len, vocab] (greedy, no teacher forcing)."""
    B, T, E = enc_bte.shape
    H = p["W_query"].shape[0]
    VP = p["W_out"].shape[1]

    # TODO(synk): vocab has no explicit <SOS>; use <EOS> (idx 10) as start token.
    kern = functools.partial(_decoder_kernel, max_len=max_len, hidden=H,
                             start_token=10)
    logits_pad = pl.pallas_call(
        kern,
        out_shape=jax.ShapeDtypeStruct((max_len, B, VP), jnp.float32),
    )(enc_bte, p["embedding"], p["W_key"], p["b_key"], p["W_query"],
      p["b_query"], p["v_att"], p["W_lstm"], p["b_lstm"], p["W_out"],
      p["b_out"])

    # [max_len, B, VP] -> [B, max_len, vocab]
    return jnp.transpose(logits_pad[:, :, :vocab], (1, 0, 2))


# ----------------------------------------------------------------------------
# CNN backbone pieces
# ----------------------------------------------------------------------------

def conv3x3(x, w, b, out_c):
    """3x3 same conv via im2col + tiled Pallas matmul.
    x:[B,H,W,Cin], w:[9*Cin, 128] bf16 (tap-major (kh,kw,Cin) flattening)."""
    # TODO(synk): im2col patch gather stays in JAX; real PyTorch OIHW conv
    # weights must be permuted to (kh, kw, Cin, Cout) before flattening, and at
    # production sizes the gather should move in-kernel (pltpu.roll on a
    # VMEM-resident row block) to avoid the 9x HBM blow-up.
    B, H, W, Cin = x.shape
    xp = jnp.pad(x, ((0, 0), (1, 1), (1, 1), (0, 0)))
    patches = jnp.concatenate(
        [xp[:, i:i + H, j:j + W, :] for i in range(3) for j in range(3)],
        axis=-1)                                                  # [B,H,W,9*Cin]
    cols = patches.reshape(B * H * W, 9 * Cin)
    out = pallas_linear(cols, w, b, "relu", out_n=out_c)
    return out.reshape(B, H, W, out_c)


def maxpool2x2(x):
    B, H, W, C = x.shape
    x = x.reshape(B, H // 2, 2, W // 2, 2, C)
    return jnp.max(x, axis=(2, 4))


# ----------------------------------------------------------------------------
# Parameter construction (deterministic, synthetic; scaled-down dims).
# Matmul weights are bf16 and pre-padded to 128-lane multiples.
# ----------------------------------------------------------------------------

def init_params(key, *, c1=32, c2=64, feat=128, enc_h=64, dec_h=64,
                attn=128, emb=64, vocab=13, vocab_pad=128, num_enc_layers=2):
    ks = iter(jax.random.split(key, 64))
    s = 0.1

    def nrm(shape):
        return jax.random.normal(next(ks), shape, jnp.float32) * s

    def nrm_bf(shape):
        return nrm(shape).astype(jnp.bfloat16)

    def pad_cols_bf(w, np_):
        n = w.shape[1]
        return jnp.pad(w, ((0, 0), (0, np_ - n))).astype(jnp.bfloat16)

    params = {
        "conv1_w": pad_cols_bf(nrm((9 * 3, c1)), 128),
        "conv1_b": jnp.zeros((1, 128), jnp.float32),
        "conv2_w": pad_cols_bf(nrm((9 * c1, c2)), 128),
        "conv2_b": jnp.zeros((1, 128), jnp.float32),
        # feature projection applied after collapsing height (Hs=4 after 2 pools)
        "proj_w": nrm_bf((4 * c2, feat)),
        "proj_b": jnp.zeros((1, feat), jnp.float32),
    }

    # BiLSTM encoder: x-side weights for both directions fused -> [D, 8H];
    # h-side weights as a block-diagonal [2H, 8H] so both directions are one
    # MXU push per step.
    enc_layers = []
    in_dim = feat
    for _ in range(num_enc_layers):
        whf = nrm((enc_h, 4 * enc_h))
        whb = nrm((enc_h, 4 * enc_h))
        whd = jnp.zeros((2 * enc_h, 8 * enc_h), jnp.float32)
        whd = whd.at[:enc_h, :4 * enc_h].set(whf)
        whd = whd.at[enc_h:, 4 * enc_h:].set(whb)
        enc_layers.append({
            "Wx": nrm_bf((in_dim, 8 * enc_h)),
            "bx": jnp.zeros((1, 8 * enc_h), jnp.float32),
            "Whd": whd.astype(jnp.bfloat16),
        })
        in_dim = 2 * enc_h
    params["encoder"] = enc_layers

    E = 2 * enc_h
    emb_tbl = jnp.zeros((vocab_pad, emb), jnp.float32).at[:vocab].set(
        nrm((vocab, emb)))
    b_out = jnp.full((1, vocab_pad), -1e30, jnp.float32).at[0, :vocab].set(0.0)
    w_out = jnp.zeros((dec_h + E, vocab_pad), jnp.float32).at[:, :vocab].set(
        nrm((dec_h + E, vocab)))

    params["decoder"] = {
        "embedding": emb_tbl.astype(jnp.bfloat16),       # [vocab_pad, emb]
        "W_key": nrm_bf((E, attn)),
        "b_key": jnp.zeros((1, attn), jnp.float32),
        "W_query": nrm_bf((dec_h, attn)),
        "b_query": jnp.zeros((1, attn), jnp.float32),
        "v_att": nrm((1, attn)),
        # fused decoder-LSTM input weight: rows [embedding | context | h]
        "W_lstm": nrm_bf((emb + E + dec_h, 4 * dec_h)),
        "b_lstm": jnp.zeros((1, 4 * dec_h), jnp.float32),
        # fused output projection: rows [h | context], cols padded to 128
        "W_out": w_out.astype(jnp.bfloat16),
        "b_out": b_out,
    }
    return params


# ----------------------------------------------------------------------------
# Full forward pass: images NCHW -> predictions [B, max_seq_len, vocab]
# ----------------------------------------------------------------------------

def khmer_ocr_forward(images_nchw, params, *, max_seq_len=8, vocab=13):
    # NCHW -> NHWC
    x = jnp.transpose(images_nchw, (0, 2, 3, 1)).astype(jnp.float32)

    # --- CNN backbone (small synthetic resnet-ish stack) ---
    x = conv3x3(x, params["conv1_w"], params["conv1_b"], out_c=32)
    x = maxpool2x2(x)
    x = conv3x3(x, params["conv2_w"], params["conv2_b"], out_c=64)
    x = maxpool2x2(x)                                             # [B, H/4, W/4, c2]
    B, Hs, Ws, C = x.shape
    T = Ws
    # collapse height, keep width as the (time-major) sequence axis
    x = jnp.transpose(x, (2, 0, 1, 3)).reshape(T * B, Hs * C)     # [T*B, Hs*C]
    feats = pallas_linear(x, params["proj_w"], params["proj_b"], "relu")
    # feats: [T*B, feat]  (time-major rows: t*B + b)

    # TODO(synk): dropout layers are inference no-ops and are omitted.

    # --- BiLSTM encoder (one fused kernel per layer) ---
    seq2d = feats
    for layer_p in params["encoder"]:
        h3d = bilstm_layer(seq2d, layer_p, T, B)                  # [T, B, 2H]
        seq2d = h3d.reshape(T * B, h3d.shape[-1])
    enc_tbe = h3d                                                 # [T, B, E]

    # --- Fused greedy attention decoder (one kernel) ---
    enc_bte = jnp.transpose(enc_tbe, (1, 0, 2))                   # [B, T, E]
    preds = attention_decoder(enc_bte, params["decoder"], max_seq_len, vocab)
    return preds                                                  # [B, max_seq_len, vocab]


# ----------------------------------------------------------------------------
# Main
# ----------------------------------------------------------------------------

if __name__ == "__main__":
    key = jax.random.PRNGKey(0)
    k_img, k_par = jax.random.split(key)

    B, C, H, W = 2, 3, 16, 32          # small NCHW image batch
    images = jax.random.normal(k_img, (B, C, H, W), jnp.float32)

    params = init_params(k_par)

    fwd = jax.jit(functools.partial(khmer_ocr_forward, max_seq_len=8, vocab=13))
    preds = fwd(images, params)
    jax.block_until_ready(preds)

    assert preds.shape == (B, 8, 13), preds.shape
    assert bool(jnp.all(jnp.isfinite(preds)))
    print("KERNEL_OK")
</pallas_src>

<mosaic_0001>
module attributes {stable_mosaic.version = 11 : i64} {
  func.func @_linear_kernel(%arg0: i32, %arg1: memref<256x27xf32, #tpu.memory_space<vmem>>, %arg2: memref<27x128xbf16, #tpu.memory_space<vmem>>, %arg3: memref<1x128xf32, #tpu.memory_space<vmem>>, %arg4: memref<256x128xf32, #tpu.memory_space<vmem>>) attributes {dimension_semantics = [#tpu.dimension_semantics<parallel>], iteration_bounds = array<i64: 4>, scalar_prefetch = 0 : i64, scratch_operands = 0 : i64, tpu.core_type = #tpu.core_type<tc>, window_params = [{transform_indices = @transform_0, window_bounds = array<i64: 256, 27>}, {pipeline_mode = #tpu.pipeline_mode<synchronous>, transform_indices = @transform_1, window_bounds = array<i64: 27, 128>}, {pipeline_mode = #tpu.pipeline_mode<synchronous>, transform_indices = @transform_2, window_bounds = array<i64: 1, 128>}, {transform_indices = @transform_3, window_bounds = array<i64: 256, 128>}]} {
    %c0 = arith.constant 0 : index
    %c0_0 = arith.constant 0 : index
    %0 = vector.load %arg1[%c0, %c0_0] : memref<256x27xf32, #tpu.memory_space<vmem>>, vector<256x27xf32>
    %1 = arith.truncf %0 : vector<256x27xf32> to vector<256x27xbf16>
    %c0_1 = arith.constant 0 : index
    %c0_2 = arith.constant 0 : index
    %2 = vector.load %arg2[%c0_1, %c0_2] : memref<27x128xbf16, #tpu.memory_space<vmem>>, vector<27x128xbf16>
    %cst = arith.constant dense<0.000000e+00> : vector<256x128xf32>
    %3 = tpu.matmul %1, %2, %cst {dimension_numbers = #tpu.dot_dimension_numbers<[1], [0], [0], [1], [0, 0, 1, 1], [], []>} : vector<256x27xbf16>, vector<27x128xbf16>, vector<256x128xf32> -> vector<256x128xf32>
    %c0_3 = arith.constant 0 : index
    %c0_4 = arith.constant 0 : index
    %4 = vector.load %arg3[%c0_3, %c0_4] : memref<1x128xf32, #tpu.memory_space<vmem>>, vector<1x128xf32>
    %5 = vector.broadcast %4 : vector<1x128xf32> to vector<256x128xf32>
    %6 = arith.addf %3, %5 : vector<256x128xf32>
    %cst_5 = arith.constant 0.000000e+00 : f32
    %7 = vector.broadcast %cst_5 : f32 to vector<256x128xf32>
    %8 = arith.maximumf %6, %7 : vector<256x128xf32>
    %c0_6 = arith.constant 0 : index
    %c0_7 = arith.constant 0 : index
    %9 = vector.load %arg4[%c0_6, %c0_7] : memref<256x128xf32, #tpu.memory_space<vmem>>, vector<256x128xf32>
    tpu.vector_store %arg4[%c0_6, %c0_7], %8 {strides = array<i32>} : memref<256x128xf32, #tpu.memory_space<vmem>>, vector<256x128xf32>,
    return
  }
  func.func @transform_0(%arg0: i32) -> (i32, i32) {
    %c0_i32 = arith.constant 0 : i32
    %c0_i32_0 = arith.constant 0 : i32
    return %arg0, %c0_i32 : i32, i32
  }
  func.func @transform_1(%arg0: i32) -> (i32, i32) {
    %c0_i32 = arith.constant 0 : i32
    %c0_i32_0 = arith.constant 0 : i32
    %c0_i32_1 = arith.constant 0 : i32
    return %c0_i32, %c0_i32_0 : i32, i32
  }
  func.func @transform_2(%arg0: i32) -> (i32, i32) {
    %c0_i32 = arith.constant 0 : i32
    %c0_i32_0 = arith.constant 0 : i32
    %c0_i32_1 = arith.constant 0 : i32
    return %c0_i32, %c0_i32_0 : i32, i32
  }
  func.func @transform_3(%arg0: i32) -> (i32, i32) {
    %c0_i32 = arith.constant 0 : i32
    %c0_i32_0 = arith.constant 0 : i32
    return %arg0, %c0_i32 : i32, i32
  }
}

module attributes {stable_mosaic.version = 11 : i64} {
  func.func @_linear_kernel(%arg0: i32, %arg1: memref<128x288xf32, #tpu.memory_space<vmem>>, %arg2: memref<288x128xbf16, #tpu.memory_space<vmem>>, %arg3: memref<1x128xf32, #tpu.memory_space<vmem>>, %arg4: memref<128x128xf32, #tpu.memory_space<vmem>>) attributes {dimension_semantics = [#tpu.dimension_semantics<parallel>], iteration_bounds = array<i64: 2>, scalar_prefetch = 0 : i64, scratch_operands = 0 : i64, tpu.core_type = #tpu.core_type<tc>, window_params = [{transform_indices = @transform_0, window_bounds = array<i64: 128, 288>}, {pipeline_mode = #tpu.pipeline_mode<synchronous>, transform_indices = @transform_1, window_bounds = array<i64: 288, 128>}, {pipeline_mode = #tpu.pipeline_mode<synchronous>, transform_indices = @transform_2, window_bounds = array<i64: 1, 128>}, {transform_indices = @transform_3, window_bounds = array<i64: 128, 128>}]} {
    %c0 = arith.constant 0 : index
    %c0_0 = arith.constant 0 : index
    %0 = vector.load %arg1[%c0, %c0_0] : memref<128x288xf32, #tpu.memory_space<vmem>>, vector<128x288xf32>
    %1 = arith.truncf %0 : vector<128x288xf32> to vector<128x288xbf16>
    %c0_1 = arith.constant 0 : index
    %c0_2 = arith.constant 0 : index
    %2 = vector.load %arg2[%c0_1, %c0_2] : memref<288x128xbf16, #tpu.memory_space<vmem>>, vector<288x128xbf16>
    %cst = arith.constant dense<0.000000e+00> : vector<128x128xf32>
    %3 = tpu.matmul %1, %2, %cst {dimension_numbers = #tpu.dot_dimension_numbers<[1], [0], [0], [1], [0, 0, 1, 1], [], []>} : vector<128x288xbf16>, vector<288x128xbf16>, vector<128x128xf32> -> vector<128x128xf32>
    %c0_3 = arith.constant 0 : index
    %c0_4 = arith.constant 0 : index
    %4 = vector.load %arg3[%c0_3, %c0_4] : memref<1x128xf32, #tpu.memory_space<vmem>>, vector<1x128xf32>
    %5 = vector.broadcast %4 : vector<1x128xf32> to vector<128x128xf32>
    %6 = arith.addf %3, %5 : vector<128x128xf32>
    %cst_5 = arith.constant 0.000000e+00 : f32
    %7 = vector.broadcast %cst_5 : f32 to vector<128x128xf32>
    %8 = arith.maximumf %6, %7 : vector<128x128xf32>
    %c0_6 = arith.constant 0 : index
    %c0_7 = arith.constant 0 : index
    %9 = vector.load %arg4[%c0_6, %c0_7] : memref<128x128xf32, #tpu.memory_space<vmem>>, vector<128x128xf32>
    tpu.vector_store %arg4[%c0_6, %c0_7], %8 {strides = array<i32>} : memref<128x128xf32, #tpu.memory_space<vmem>>, vector<128x128xf32>,
    return
  }
  func.func @transform_0(%arg0: i32) -> (i32, i32) {
    %c0_i32 = arith.constant 0 : i32
    %c0_i32_0 = arith.constant 0 : i32
    return %arg0, %c0_i32 : i32, i32
  }
  func.func @transform_1(%arg0: i32) -> (i32, i32) {
    %c0_i32 = arith.constant 0 : i32
    %c0_i32_0 = arith.constant 0 : i32
    %c0_i32_1 = arith.constant 0 : i32
    return %c0_i32, %c0_i32_0 : i32, i32
  }
  func.func @transform_2(%arg0: i32) -> (i32, i32) {
    %c0_i32 = arith.constant 0 : i32
    %c0_i32_0 = arith.constant 0 : i32
    %c0_i32_1 = arith.constant 0 : i32
    return %c0_i32, %c0_i32_0 : i32, i32
  }
  func.func @transform_3(%arg0: i32) -> (i32, i32) {
    %c0_i32 = arith.constant 0 : i32
    %c0_i32_0 = arith.constant 0 : i32
    return %arg0, %c0_i32 : i32, i32
  }
}

module attributes {stable_mosaic.version = 11 : i64} {
  func.func @_linear_kernel(%arg0: i32, %arg1: memref<16x256xf32, #tpu.memory_space<vmem>>, %arg2: memref<256x128xbf16, #tpu.memory_space<vmem>>, %arg3: memref<1x128xf32, #tpu.memory_space<vmem>>, %arg4: memref<16x128xf32, #tpu.memory_space<vmem>>) attributes {dimension_semantics = [#tpu.dimension_semantics<parallel>], iteration_bounds = array<i64: 1>, scalar_prefetch = 0 : i64, scratch_operands = 0 : i64, tpu.core_type = #tpu.core_type<tc>, window_params = [{transform_indices = @transform_0, window_bounds = array<i64: 16, 256>}, {pipeline_mode = #tpu.pipeline_mode<synchronous>, transform_indices = @transform_1, window_bounds = array<i64: 256, 128>}, {pipeline_mode = #tpu.pipeline_mode<synchronous>, transform_indices = @transform_2, window_bounds = array<i64: 1, 128>}, {transform_indices = @transform_3, window_bounds = array<i64: 16, 128>}]} {
    %c0 = arith.constant 0 : index
    %c0_0 = arith.constant 0 : index
    %0 = vector.load %arg1[%c0, %c0_0] : memref<16x256xf32, #tpu.memory_space<vmem>>, vector<16x256xf32>
    %1 = arith.truncf %0 : vector<16x256xf32> to vector<16x256xbf16>
    %c0_1 = arith.constant 0 : index
    %c0_2 = arith.constant 0 : index
    %2 = vector.load %arg2[%c0_1, %c0_2] : memref<256x128xbf16, #tpu.memory_space<vmem>>, vector<256x128xbf16>
    %cst = arith.constant dense<0.000000e+00> : vector<16x128xf32>
    %3 = tpu.matmul %1, %2, %cst {dimension_numbers = #tpu.dot_dimension_numbers<[1], [0], [0], [1], [0, 0, 1, 1], [], []>} : vector<16x256xbf16>, vector<256x128xbf16>, vector<16x128xf32> -> vector<16x128xf32>
    %c0_3 = arith.constant 0 : index
    %c0_4 = arith.constant 0 : index
    %4 = vector.load %arg3[%c0_3, %c0_4] : memref<1x128xf32, #tpu.memory_space<vmem>>, vector<1x128xf32>
    %5 = vector.broadcast %4 : vector<1x128xf32> to vector<16x128xf32>
    %6 = arith.addf %3, %5 : vector<16x128xf32>
    %cst_5 = arith.constant 0.000000e+00 : f32
    %7 = vector.broadcast %cst_5 : f32 to vector<16x128xf32>
    %8 = arith.maximumf %6, %7 : vector<16x128xf32>
    %c0_6 = arith.constant 0 : index
    %c0_7 = arith.constant 0 : index
    %9 = vector.load %arg4[%c0_6, %c0_7] : memref<16x128xf32, #tpu.memory_space<vmem>>, vector<16x128xf32>
    tpu.vector_store %arg4[%c0_6, %c0_7], %8 {strides = array<i32>} : memref<16x128xf32, #tpu.memory_space<vmem>>, vector<16x128xf32>,
    return
  }
  func.func @transform_0(%arg0: i32) -> (i32, i32) {
    %c0_i32 = arith.constant 0 : i32
    %c0_i32_0 = arith.constant 0 : i32
    return %arg0, %c0_i32 : i32, i32
  }
  func.func @transform_1(%arg0: i32) -> (i32, i32) {
    %c0_i32 = arith.constant 0 : i32
    %c0_i32_0 = arith.constant 0 : i32
    %c0_i32_1 = arith.constant 0 : i32
    return %c0_i32, %c0_i32_0 : i32, i32
  }
  func.func @transform_2(%arg0: i32) -> (i32, i32) {
    %c0_i32 = arith.constant 0 : i32
    %c0_i32_0 = arith.constant 0 : i32
    %c0_i32_1 = arith.constant 0 : i32
    return %c0_i32, %c0_i32_0 : i32, i32
  }
  func.func @transform_3(%arg0: i32) -> (i32, i32) {
    %c0_i32 = arith.constant 0 : i32
    %c0_i32_0 = arith.constant 0 : i32
    return %arg0, %c0_i32 : i32, i32
  }
}

module attributes {stable_mosaic.version = 11 : i64} {
  func.func @_bilstm_kernel(%arg0: memref<16x128xf32, #tpu.memory_space<vmem>>, %arg1: memref<128x512xbf16, #tpu.memory_space<vmem>>, %arg2: memref<1x512xf32, #tpu.memory_space<vmem>>, %arg3: memref<128x512xbf16, #tpu.memory_space<vmem>>, %arg4: memref<8x2x128xf32, #tpu.memory_space<vmem>>) attributes {dimension_semantics = [], scalar_prefetch = 0 : i64, scratch_operands = 0 : i64, tpu.core_type = #tpu.core_type<tc>} {
    %c0 = arith.constant 0 : index
    %c0_0 = arith.constant 0 : index
    %0 = vector.load %arg0[%c0, %c0_0] : memref<16x128xf32, #tpu.memory_space<vmem>>, vector<16x128xf32>
    %1 = arith.truncf %0 : vector<16x128xf32> to vector<16x128xbf16>
    %c0_1 = arith.constant 0 : index
    %c0_2 = arith.constant 0 : index
    %2 = vector.load %arg1[%c0_1, %c0_2] : memref<128x512xbf16, #tpu.memory_space<vmem>>, vector<128x512xbf16>
    %cst = arith.constant dense<0.000000e+00> : vector<16x512xf32>
    %3 = tpu.matmul %1, %2, %cst {dimension_numbers = #tpu.dot_dimension_numbers<[1], [0], [0], [1], [0, 0, 1, 1], [], []>} : vector<16x128xbf16>, vector<128x512xbf16>, vector<16x512xf32> -> vector<16x512xf32>
    %c0_3 = arith.constant 0 : index
    %c0_4 = arith.constant 0 : index
    %4 = vector.load %arg2[%c0_3, %c0_4] : memref<1x512xf32, #tpu.memory_space<vmem>>, vector<1x512xf32>
    %5 = vector.broadcast %4 : vector<1x512xf32> to vector<16x512xf32>
    %6 = arith.addf %3, %5 : vector<16x512xf32>
    %c0_5 = arith.constant 0 : index
    %c0_6 = arith.constant 0 : index
    %7 = vector.load %arg3[%c0_5, %c0_6] : memref<128x512xbf16, #tpu.memory_space<vmem>>, vector<128x512xbf16>
    %cst_7 = arith.constant 0.000000e+00 : f32
    %8 = vector.broadcast %cst_7 : f32 to vector<2x64xf32>
    %cst_8 = arith.constant 0.000000e+00 : f32
    %9 = vector.broadcast %cst_8 : f32 to vector<2x64xf32>
    %cst_9 = arith.constant 0.000000e+00 : f32
    %10 = vector.broadcast %cst_9 : f32 to vector<2x64xf32>
    %cst_10 = arith.constant 0.000000e+00 : f32
    %11 = vector.broadcast %cst_10 : f32 to vector<2x64xf32>
    %12 = vector.extract_strided_slice %6 {offsets = [0, 0], sizes = [2, 256], strides = [1, 1]} : vector<16x512xf32> to vector<2x256xf32>
    %13 = vector.extract_strided_slice %6 {offsets = [14, 256], sizes = [2, 256], strides = [1, 1]} : vector<16x512xf32> to vector<2x256xf32>
    %14 = tpu.concatenate %8, %10 in 1 : vector<2x64xf32>, vector<2x64xf32> -> vector<2x128xf32>
    %15 = arith.truncf %14 : vector<2x128xf32> to vector<2x128xbf16>
    %cst_11 = arith.constant dense<0.000000e+00> : vector<2x512xf32>
    %16 = tpu.matmul %15, %7, %cst_11 {dimension_numbers = #tpu.dot_dimension_numbers<[1], [0], [0], [1], [0, 0, 1, 1], [], []>} : vector<2x128xbf16>, vector<128x512xbf16>, vector<2x512xf32> -> vector<2x512xf32>
    %17 = vector.extract_strided_slice %16 {offsets = [0, 0], sizes = [2, 256], strides = [1, 1]} : vector<2x512xf32> to vector<2x256xf32>
    %18 = arith.addf %12, %17 : vector<2x256xf32>
    %19 = vector.extract_strided_slice %16 {offsets = [0, 256], sizes = [2, 256], strides = [1, 1]} : vector<2x512xf32> to vector<2x256xf32>
    %20 = arith.addf %13, %19 : vector<2x256xf32>
    %21 = vector.extract_strided_slice %18 {offsets = [0, 0], sizes = [2, 64], strides = [1, 1]} : vector<2x256xf32> to vector<2x64xf32>
    %cst_12 = arith.constant 5.000000e-01 : f32
    %22 = vector.broadcast %cst_12 : f32 to vector<2x64xf32>
    %23 = arith.mulf %22, %21 : vector<2x64xf32>
    %24 = math.tanh %23 : vector<2x64xf32>
    %cst_13 = arith.constant 1.000000e+00 : f32
    %25 = vector.broadcast %cst_13 : f32 to vector<2x64xf32>
    %26 = arith.addf %24, %25 : vector<2x64xf32>
    %cst_14 = arith.constant 5.000000e-01 : f32
    %27 = vector.broadcast %cst_14 : f32 to vector<2x64xf32>
    %28 = arith.mulf %27, %26 : vector<2x64xf32>
    %29 = vector.extract_strided_slice %18 {offsets = [0, 64], sizes = [2, 64], strides = [1, 1]} : vector<2x256xf32> to vector<2x64xf32>
    %cst_15 = arith.constant 5.000000e-01 : f32
    %30 = vector.broadcast %cst_15 : f32 to vector<2x64xf32>
    %31 = arith.mulf %30, %29 : vector<2x64xf32>
    %32 = math.tanh %31 : vector<2x64xf32>
    %cst_16 = arith.constant 1.000000e+00 : f32
    %33 = vector.broadcast %cst_16 : f32 to vector<2x64xf32>
    %34 = arith.addf %32, %33 : vector<2x64xf32>
    %cst_17 = arith.constant 5.000000e-01 : f32
    %35 = vector.broadcast %cst_17 : f32 to vector<2x64xf32>
    %36 = arith.mulf %35, %34 : vector<2x64xf32>
    %37 = vector.extract_strided_slice %18 {offsets = [0, 128], sizes = [2, 64], strides = [1, 1]} : vector<2x256xf32> to vector<2x64xf32>
    %38 = math.tanh %37 : vector<2x64xf32>
    %39 = vector.extract_strided_slice %18 {offsets = [0, 192], sizes = [2, 64], strides = [1, 1]} : vector<2x256xf32> to vector<2x64xf32>
    %cst_18 = arith.constant 5.000000e-01 : f32
    %40 = vector.broadcast %cst_18 : f32 to vector<2x64xf32>
    %41 = arith.mulf %40, %39 : vector<2x64xf32>
    %42 = math.tanh %41 : vector<2x64xf32>
    %cst_19 = arith.constant 1.000000e+00 : f32
    %43 = vector.broadcast %cst_19 : f32 to vector<2x64xf32>
    %44 = arith.addf %42, %43 : vector<2x64xf32>
    %cst_20 = arith.constant 5.000000e-01 : f32
    %45 = vector.broadcast %cst_20 : f32 to vector<2x64xf32>
    %46 = arith.mulf %45, %44 : vector<2x64xf32>
    %47 = arith.mulf %36, %9 : vector<2x64xf32>
    %48 = arith.mulf %28, %38 : vector<2x64xf32>
    %49 = arith.addf %47, %48 : vector<2x64xf32>
    %50 = math.tanh %49 : vector<2x64xf32>
    %51 = arith.mulf %46, %50 : vector<2x64xf32>
    %52 = vector.extract_strided_slice %20 {offsets = [0, 0], sizes = [2, 64], strides = [1, 1]} : vector<2x256xf32> to vector<2x64xf32>
    %cst_21 = arith.constant 5.000000e-01 : f32
    %53 = vector.broadcast %cst_21 : f32 to vector<2x64xf32>
    %54 = arith.mulf %53, %52 : vector<2x64xf32>
    %55 = math.tanh %54 : vector<2x64xf32>
    %cst_22 = arith.constant 1.000000e+00 : f32
    %56 = vector.broadcast %cst_22 : f32 to vector<2x64xf32>
    %57 = arith.addf %55, %56 : vector<2x64xf32>
    %cst_23 = arith.constant 5.000000e-01 : f32
    %58 = vector.broadcast %cst_23 : f32 to vector<2x64xf32>
    %59 = arith.mulf %58, %57 : vector<2x64xf32>
    %60 = vector.extract_strided_slice %20 {offsets = [0, 64], sizes = [2, 64], strides = [1, 1]} : vector<2x256xf32> to vector<2x64xf32>
    %cst_24 = arith.constant 5.000000e-01 : f32
    %61 = vector.broadcast %cst_24 : f32 to vector<2x64xf32>
    %62 = arith.mulf %61, %60 : vector<2x64xf32>
    %63 = math.tanh %62 : vector<2x64xf32>
    %cst_25 = arith.constant 1.000000e+00 : f32
    %64 = vector.broadcast %cst_25 : f32 to vector<2x64xf32>
    %65 = arith.addf %63, %64 : vector<2x64xf32>
    %cst_26 = arith.constant 5.000000e-01 : f32
    %66 = vector.broadcast %cst_26 : f32 to vector<2x64xf32>
    %67 = arith.mulf %66, %65 : vector<2x64xf32>
    %68 = vector.extract_strided_slice %20 {offsets = [0, 128], sizes = [2, 64], strides = [1, 1]} : vector<2x256xf32> to vector<2x64xf32>
    %69 = math.tanh %68 : vector<2x64xf32>
    %70 = vector.extract_strided_slice %20 {offsets = [0, 192], sizes = [2, 64], strides = [1, 1]} : vector<2x256xf32> to vector<2x64xf32>
    %cst_27 = arith.constant 5.000000e-01 : f32
    %71 = vector.broadcast %cst_27 : f32 to vector<2x64xf32>
    %72 = arith.mulf %71, %70 : vector<2x64xf32>
    %73 = math.tanh %72 : vector<2x64xf32>
    %cst_28 = arith.constant 1.000000e+00 : f32
    %74 = vector.broadcast %cst_28 : f32 to vector<2x64xf32>
    %75 = arith.addf %73, %74 : vector<2x64xf32>
    %cst_29 = arith.constant 5.000000e-01 : f32
    %76 = vector.broadcast %cst_29 : f32 to vector<2x64xf32>
    %77 = arith.mulf %76, %75 : vector<2x64xf32>
    %78 = arith.mulf %67, %11 : vector<2x64xf32>
    %79 = arith.mulf %59, %69 : vector<2x64xf32>
    %80 = arith.addf %78, %79 : vector<2x64xf32>
    %81 = math.tanh %80 : vector<2x64xf32>
    %82 = arith.mulf %77, %81 : vector<2x64xf32>
    %c0_30 = arith.constant 0 : index
    %c0_31 = arith.constant 0 : index
    %c0_32 = arith.constant 0 : index
    %83 = vector.load %arg4[%c0_30, %c0_31, %c0_32] : memref<8x2x128xf32, #tpu.memory_space<vmem>>, vector<1x2x64xf32>
    %84 = vector.shape_cast %83 : vector<1x2x64xf32> to vector<2x64xf32>
    %85 = vector.shape_cast %51 : vector<2x64xf32> to vector<1x2x64xf32>
    tpu.vector_store %arg4[%c0_30, %c0_31, %c0_32], %85 {strides = array<i32>} : memref<8x2x128xf32, #tpu.memory_space<vmem>>, vector<1x2x64xf32>,
    %c7 = arith.constant 7 : index
    %c0_33 = arith.constant 0 : index
    %c64 = arith.constant 64 : index
    %86 = vector.load %arg4[%c7, %c0_33, %c64] : memref<8x2x128xf32, #tpu.memory_space<vmem>>, vector<1x2x64xf32>
    %87 = vector.shape_cast %86 : vector<1x2x64xf32> to vector<2x64xf32>
    %88 = vector.shape_cast %82 : vector<2x64xf32> to vector<1x2x64xf32>
    tpu.vector_store %arg4[%c7, %c0_33, %c64], %88 {strides = array<i32>} : memref<8x2x128xf32, #tpu.memory_space<vmem>>, vector<1x2x64xf32>,
    %89 = vector.extract_strided_slice %6 {offsets = [2, 0], sizes = [2, 256], strides = [1, 1]} : vector<16x512xf32> to vector<2x256xf32>
    %90 = vector.extract_strided_slice %6 {offsets = [12, 256], sizes = [2, 256], strides = [1, 1]} : vector<16x512xf32> to vector<2x256xf32>
    %91 = tpu.concatenate %51, %82 in 1 : vector<2x64xf32>, vector<2x64xf32> -> vector<2x128xf32>
    %92 = arith.truncf %91 : vector<2x128xf32> to vector<2x128xbf16>
    %cst_34 = arith.constant dense<0.000000e+00> : vector<2x512xf32>
    %93 = tpu.matmul %92, %7, %cst_34 {dimension_numbers = #tpu.dot_dimension_numbers<[1], [0], [0], [1], [0, 0, 1, 1], [], []>} : vector<2x128xbf16>, vector<128x512xbf16>, vector<2x512xf32> -> vector<2x512xf32>
    %94 = vector.extract_strided_slice %93 {offsets = [0, 0], sizes = [2, 256], strides = [1, 1]} : vector<2x512xf32> to vector<2x256xf32>
    %95 = arith.addf %89, %94 : vector<2x256xf32>
    %96 = vector.extract_strided_slice %93 {offsets = [0, 256], sizes = [2, 256], strides = [1, 1]} : vector<2x512xf32> to vector<2x256xf32>
    %97 = arith.addf %90, %96 : vector<2x256xf32>
    %98 = vector.extract_strided_slice %95 {offsets = [0, 0], sizes = [2, 64], strides = [1, 1]} : vector<2x256xf32> to vector<2x64xf32>
    %cst_35 = arith.constant 5.000000e-01 : f32
    %99 = vector.broadcast %cst_35 : f32 to vector<2x64xf32>
    %100 = arith.mulf %99, %98 : vector<2x64xf32>
    %101 = math.tanh %100 : vector<2x64xf32>
    %cst_36 = arith.constant 1.000000e+00 : f32
    %102 = vector.broadcast %cst_36 : f32 to vector<2x64xf32>
    %103 = arith.addf %101, %102 : vector<2x64xf32>
    %cst_37 = arith.constant 5.000000e-01 : f32
    %104 = vector.broadcast %cst_37 : f32 to vector<2x64xf32>
    %105 = arith.mulf %104, %103 : vector<2x64xf32>
    %106 = vector.extract_strided_slice %95 {offsets = [0, 64], sizes = [2, 64], strides = [1, 1]} : vector<2x256xf32> to vector<2x64xf32>
    %cst_38 = arith.constant 5.000000e-01 : f32
    %107 = vector.broadcast %cst_38 : f32 to vector<2x64xf32>
    %108 = arith.mulf %107, %106 : vector<2x64xf32>
    %109 = math.tanh %108 : vector<2x64xf32>
    %cst_39 = arith.constant 1.000000e+00 : f32
    %110 = vector.broadcast %cst_39 : f32 to vector<2x64xf32>
    %111 = arith.addf %109, %110 : vector<2x64xf32>
    %cst_40 = arith.constant 5.000000e-01 : f32
    %112 = vector.broadcast %cst_40 : f32 to vector<2x64xf32>
    %113 = arith.mulf %112, %111 : vector<2x64xf32>
    %114 = vector.extract_strided_slice %95 {offsets = [0, 128], sizes = [2, 64], strides = [1, 1]} : vector<2x256xf32> to vector<2x64xf32>
    %115 = math.tanh %114 : vector<2x64xf32>
    %116 = vector.extract_strided_slice %95 {offsets = [0, 192], sizes = [2, 64], strides = [1, 1]} : vector<2x256xf32> to vector<2x64xf32>
    %cst_41 = arith.constant 5.000000e-01 : f32
    %117 = vector.broadcast %cst_41 : f32 to vector<2x64xf32>
    %118 = arith.mulf %117, %116 : vector<2x64xf32>
    %119 = math.tanh %118 : vector<2x64xf32>
    %cst_42 = arith.constant 1.000000e+00 : f32
    %120 = vector.broadcast %cst_42 : f32 to vector<2x64xf32>
    %121 = arith.addf %119, %120 : vector<2x64xf32>
    %cst_43 = arith.constant 5.000000e-01 : f32
    %122 = vector.broadcast %cst_43 : f32 to vector<2x64xf32>
    %123 = arith.mulf %122, %121 : vector<2x64xf32>
    %124 = arith.mulf %113, %49 : vector<2x64xf32>
    %125 = arith.mulf %105, %115 : vector<2x64xf32>
    %126 = arith.addf %124, %125 : vector<2x64xf32>
    %127 = math.tanh %126 : vector<2x64xf32>
    %128 = arith.mulf %123, %127 : vector<2x64xf32>
    %129 = vector.extract_strided_slice %97 {offsets = [0, 0], sizes = [2, 64], strides = [1, 1]} : vector<2x256xf32> to vector<2x64xf32>
    %cst_44 = arith.constant 5.000000e-01 : f32
    %130 = vector.broadcast %cst_44 : f32 to vector<2x64xf32>
    %131 = arith.mulf %130, %129 : vector<2x64xf32>
    %132 = math.tanh %131 : vector<2x64xf32>
    %cst_45 = arith.constant 1.000000e+00 : f32
    %133 = vector.broadcast %cst_45 : f32 to vector<2x64xf32>
    %134 = arith.addf %132, %133 : vector<2x64xf32>
    %cst_46 = arith.constant 5.000000e-01 : f32
    %135 = vector.broadcast %cst_46 : f32 to vector<2x64xf32>
    %136 = arith.mulf %135, %134 : vector<2x64xf32>
    %137 = vector.extract_strided_slice %97 {offsets = [0, 64], sizes = [2, 64], strides = [1, 1]} : vector<2x256xf32> to vector<2x64xf32>
    %cst_47 = arith.constant 5.000000e-01 : f32
    %138 = vector.broadcast %cst_47 : f32 to vector<2x64xf32>
    %139 = arith.mulf %138, %137 : vector<2x64xf32>
    %140 = math.tanh %139 : vector<2x64xf32>
    %cst_48 = arith.constant 1.000000e+00 : f32
    %141 = vector.broadcast %cst_48 : f32 to vector<2x64xf32>
    %142 = arith.addf %140, %141 : vector<2x64xf32>
    %cst_49 = arith.constant 5.000000e-01 : f32
    %143 = vector.broadcast %cst_49 : f32 to vector<2x64xf32>
    %144 = arith.mulf %143, %142 : vector<2x64xf32>
    %145 = vector.extract_strided_slice %97 {offsets = [0, 128], sizes = [2, 64], strides = [1, 1]} : vector<2x256xf32> to vector<2x64xf32>
    %146 = math.tanh %145 : vector<2x64xf32>
    %147 = vector.extract_strided_slice %97 {offsets = [0, 192], sizes = [2, 64], strides = [1, 1]} : vector<2x256xf32> to vector<2x64xf32>
    %cst_50 = arith.constant 5.000000e-01 : f32
    %148 = vector.broadcast %cst_50 : f32 to vector<2x64xf32>
    %149 = arith.mulf %148, %147 : vector<2x64xf32>
    %150 = math.tanh %149 : vector<2x64xf32>
    %cst_51 = arith.constant 1.000000e+00 : f32
    %151 = vector.broadcast %cst_51 : f32 to vector<2x64xf32>
    %152 = arith.addf %150, %151 : vector<2x64xf32>
    %cst_52 = arith.constant 5.000000e-01 : f32
    %153 = vector.broadcast %cst_52 : f32 to vector<2x64xf32>
    %154 = arith.mulf %153, %152 : vector<2x64xf32>
    %155 = arith.mulf %144, %80 : vector<2x64xf32>
    %156 = arith.mulf %136, %146 : vector<2x64xf32>
    %157 = arith.addf %155, %156 : vector<2x64xf32>
    %158 = math.tanh %157 : vector<2x64xf32>
    %159 = arith.mulf %154, %158 : vector<2x64xf32>
    %c1 = arith.constant 1 : index
    %c0_53 = arith.constant 0 : index
    %c0_54 = arith.constant 0 : index
    %160 = vector.load %arg4[%c1, %c0_53, %c0_54] : memref<8x2x128xf32, #tpu.memory_space<vmem>>, vector<1x2x64xf32>
    %161 = vector.shape_cast %160 : vector<1x2x64xf32> to vector<2x64xf32>
    %162 = vector.shape_cast %128 : vector<2x64xf32> to vector<1x2x64xf32>
    tpu.vector_store %arg4[%c1, %c0_53, %c0_54], %162 {strides = array<i32>} : memref<8x2x128xf32, #tpu.memory_space<vmem>>, vector<1x2x64xf32>,
    %c6 = arith.constant 6 : index
    %c0_55 = arith.constant 0 : index
    %c64_56 = arith.constant 64 : index
    %163 = vector.load %arg4[%c6, %c0_55, %c64_56] : memref<8x2x128xf32, #tpu.memory_space<vmem>>, vector<1x2x64xf32>
    %164 = vector.shape_cast %163 : vector<1x2x64xf32> to vector<2x64xf32>
    %165 = vector.shape_cast %159 : vector<2x64xf32> to vector<1x2x64xf32>
    tpu.vector_store %arg4[%c6, %c0_55, %c64_56], %165 {strides = array<i32>} : memref<8x2x128xf32, #tpu.memory_space<vmem>>, vector<1x2x64xf32>,
    %166 = vector.extract_strided_slice %6 {offsets = [4, 0], sizes = [2, 256], strides = [1, 1]} : vector<16x512xf32> to vector<2x256xf32>
    %167 = vector.extract_strided_slice %6 {offsets = [10, 256], sizes = [2, 256], strides = [1, 1]} : vector<16x512xf32> to vector<2x256xf32>
    %168 = tpu.concatenate %128, %159 in 1 : vector<2x64xf32>, vector<2x64xf32> -> vector<2x128xf32>
    %169 = arith.truncf %168 : vector<2x128xf32> to vector<2x128xbf16>
    %cst_57 = arith.constant dense<0.000000e+00> : vector<2x512xf32>
    %170 = tpu.matmul %169, %7, %cst_57 {dimension_numbers = #tpu.dot_dimension_numbers<[1], [0], [0], [1], [0, 0, 1, 1], [], []>} : vector<2x128xbf16>, vector<128x512xbf16>, vector<2x512xf32> -> vector<2x512xf32>
    %171 = vector.extract_strided_slice %170 {offsets = [0, 0], sizes = [2, 256], strides = [1, 1]} : vector<2x512xf32> to vector<2x256xf32>
    %172 = arith.addf %166, %171 : vector<2x256xf32>
    %173 = vector.extract_strided_slice %170 {offsets = [0, 256], sizes = [2, 256], strides = [1, 1]} : vector<2x512xf32> to vector<2x256xf32>
    %174 = arith.addf %167, %173 : vector<2x256xf32>
    %175 = vector.extract_strided_slice %172 {offsets = [0, 0], sizes = [2, 64], strides = [1, 1]} : vector<2x256xf32> to vector<2x64xf32>
    %cst_58 = arith.constant 5.000000e-01 : f32
    %176 = vector.broadcast %cst_58 : f32 to vector<2x64xf32>
    %177 = arith.mulf %176, %175 : vector<2x64xf32>
    %178 = math.tanh %177 : vector<2x64xf32>
    %cst_59 = arith.constant 1.000000e+00 : f32
    %179 = vector.broadcast %cst_59 : f32 to vector<2x64xf32>
    %180 = arith.addf %178, %179 : vector<2x64xf32>
    %cst_60 = arith.constant 5.000000e-01 : f32
    %181 = vector.broadcast %cst_60 : f32 to vector<2x64xf32>
    %182 = arith.mulf %181, %180 : vector<2x64xf32>
    %183 = vector.extract_strided_slice %172 {offsets = [0, 64], sizes = [2, 64], strides = [1, 1]} : vector<2x256xf32> to vector<2x64xf32>
    %cst_61 = arith.constant 5.000000e-01 : f32
    %184 = vector.broadcast %cst_61 : f32 to vector<2x64xf32>
    %185 = arith.mulf %184, %183 : vector<2x64xf32>
    %186 = math.tanh %185 : vector<2x64xf32>
    %cst_62 = arith.constant 1.000000e+00 : f32
    %187 = vector.broadcast %cst_62 : f32 to vector<2x64xf32>
    %188 = arith.addf %186, %187 : vector<2x64xf32>
    %cst_63 = arith.constant 5.000000e-01 : f32
    %189 = vector.broadcast %cst_63 : f32 to vector<2x64xf32>
    %190 = arith.mulf %189, %188 : vector<2x64xf32>
    %191 = vector.extract_strided_slice %172 {offsets = [0, 128], sizes = [2, 64], strides = [1, 1]} : vector<2x256xf32> to vector<2x64xf32>
    %192 = math.tanh %191 : vector<2x64xf32>
    %193 = vector.extract_strided_slice %172 {offsets = [0, 192], sizes = [2, 64], strides = [1, 1]} : vector<2x256xf32> to vector<2x64xf32>
    %cst_64 = arith.constant 5.000000e-01 : f32
    %194 = vector.broadcast %cst_64 : f32 to vector<2x64xf32>
    %195 = arith.mulf %194, %193 : vector<2x64xf32>
    %196 = math.tanh %195 : vector<2x64xf32>
    %cst_65 = arith.constant 1.000000e+00 : f32
    %197 = vector.broadcast %cst_65 : f32 to vector<2x64xf32>
    %198 = arith.addf %196, %197 : vector<2x64xf32>
    %cst_66 = arith.constant 5.000000e-01 : f32
    %199 = vector.broadcast %cst_66 : f32 to vector<2x64xf32>
    %200 = arith.mulf %199, %198 : vector<2x64xf32>
    %201 = arith.mulf %190, %126 : vector<2x64xf32>
    %202 = arith.mulf %182, %192 : vector<2x64xf32>
    %203 = arith.addf %201, %202 : vector<2x64xf32>
    %204 = math.tanh %203 : vector<2x64xf32>
    %205 = arith.mulf %200, %204 : vector<2x64xf32>
    %206 = vector.extract_strided_slice %174 {offsets = [0, 0], sizes = [2, 64], strides = [1, 1]} : vector<2x256xf32> to vector<2x64xf32>
    %cst_67 = arith.constant 5.000000e-01 : f32
    %207 = vector.broadcast %cst_67 : f32 to vector<2x64xf32>
    %208 = arith.mulf %207, %206 : vector<2x64xf32>
    %209 = math.tanh %208 : vector<2x64xf32>
    %cst_68 = arith.constant 1.000000e+00 : f32
    %210 = vector.broadcast %cst_68 : f32 to vector<2x64xf32>
    %211 = arith.addf %209, %210 : vector<2x64xf32>
    %cst_69 = arith.constant 5.000000e-01 : f32
    %212 = vector.broadcast %cst_69 : f32 to vector<2x64xf32>
    %213 = arith.mulf %212, %211 : vector<2x64xf32>
    %214 = vector.extract_strided_slice %174 {offsets = [0, 64], sizes = [2, 64], strides = [1, 1]} : vector<2x256xf32> to vector<2x64xf32>
    %cst_70 = arith.constant 5.000000e-01 : f32
    %215 = vector.broadcast %cst_70 : f32 to vector<2x64xf32>
    %216 = arith.mulf %215, %214 : vector<2x64xf32>
    %217 = math.tanh %216 : vector<2x64xf32>
    %cst_71 = arith.constant 1.000000e+00 : f32
    %218 = vector.broadcast %cst_71 : f32 to vector<2x64xf32>
    %219 = arith.addf %217, %218 : vector<2x64xf32>
    %cst_72 = arith.constant 5.000000e-01 : f32
    %220 = vector.broadcast %cst_72 : f32 to vector<2x64xf32>
    %221 = arith.mulf %220, %219 : vector<2x64xf32>
    %222 = vector.extract_strided_slice %174 {offsets = [0, 128], sizes = [2, 64], strides = [1, 1]} : vector<2x256xf32> to vector<2x64xf32>
    %223 = math.tanh %222 : vector<2x64xf32>
    %224 = vector.extract_strided_slice %174 {offsets = [0, 192], sizes = [2, 64], strides = [1, 1]} : vector<2x256xf32> to vector<2x64xf32>
    %cst_73 = arith.constant 5.000000e-01 : f32
    %225 = vector.broadcast %cst_73 : f32 to vector<2x64xf32>
    %226 = arith.mulf %225, %224 : vector<2x64xf32>
    %227 = math.tanh %226 : vector<2x64xf32>
    %cst_74 = arith.constant 1.000000e+00 : f32
    %228 = vector.broadcast %cst_74 : f32 to vector<2x64xf32>
    %229 = arith.addf %227, %228 : vector<2x64xf32>
    %cst_75 = arith.constant 5.000000e-01 : f32
    %230 = vector.broadcast %cst_75 : f32 to vector<2x64xf32>
    %231 = arith.mulf %230, %229 : vector<2x64xf32>
    %232 = arith.mulf %221, %157 : vector<2x64xf32>
    %233 = arith.mulf %213, %223 : vector<2x64xf32>
    %234 = arith.addf %232, %233 : vector<2x64xf32>
    %235 = math.tanh %234 : vector<2x64xf32>
    %236 = arith.mulf %231, %235 : vector<2x64xf32>
    %c2 = arith.constant 2 : index
    %c0_76 = arith.constant 0 : index
    %c0_77 = arith.constant 0 : index
    %237 = vector.load %arg4[%c2, %c0_76, %c0_77] : memref<8x2x128xf32, #tpu.memory_space<vmem>>, vector<1x2x64xf32>
    %238 = vector.shape_cast %237 : vector<1x2x64xf32> to vector<2x64xf32>
    %239 = vector.shape_cast %205 : vector<2x64xf32> to vector<1x2x64xf32>
    tpu.vector_store %arg4[%c2, %c0_76, %c0_77], %239 {strides = array<i32>} : memref<8x2x128xf32, #tpu.memory_space<vmem>>, vector<1x2x64xf32>,
    %c5 = arith.constant 5 : index
    %c0_78 = arith.constant 0 : index
    %c64_79 = arith.constant 64 : index
    %240 = vector.load %arg4[%c5, %c0_78, %c64_79] : memref<8x2x128xf32, #tpu.memory_space<vmem>>, vector<1x2x64xf32>
    %241 = vector.shape_cast %240 : vector<1x2x64xf32> to vector<2x64xf32>
    %242 = vector.shape_cast %236 : vector<2x64xf32> to vector<1x2x64xf32>
    tpu.vector_store %arg4[%c5, %c0_78, %c64_79], %242 {strides = array<i32>} : memref<8x2x128xf32, #tpu.memory_space<vmem>>, vector<1x2x64xf32>,
    %243 = vector.extract_strided_slice %6 {offsets = [6, 0], sizes = [2, 256], strides = [1, 1]} : vector<16x512xf32> to vector<2x256xf32>
    %244 = vector.extract_strided_slice %6 {offsets = [8, 256], sizes = [2, 256], strides = [1, 1]} : vector<16x512xf32> to vector<2x256xf32>
    %245 = tpu.concatenate %205, %236 in 1 : vector<2x64xf32>, vector<2x64xf32> -> vector<2x128xf32>
    %246 = arith.truncf %245 : vector<2x128xf32> to vector<2x128xbf16>
    %cst_80 = arith.constant dense<0.000000e+00> : vector<2x512xf32>
    %247 = tpu.matmul %246, %7, %cst_80 {dimension_numbers = #tpu.dot_dimension_numbers<[1], [0], [0], [1], [0, 0, 1, 1], [], []>} : vector<2x128xbf16>, vector<128x512xbf16>, vector<2x512xf32> -> vector<2x512xf32>
    %248 = vector.extract_strided_slice %247 {offsets = [0, 0], sizes = [2, 256], strides = [1, 1]} : vector<2x512xf32> to vector<2x256xf32>
    %249 = arith.addf %243, %248 : vector<2x256xf32>
    %250 = vector.extract_strided_slice %247 {offsets = [0, 256], sizes = [2, 256], strides = [1, 1]} : vector<2x512xf32> to vector<2x256xf32>
    %251 = arith.addf %244, %250 : vector<2x256xf32>
    %252 = vector.extract_strided_slice %249 {offsets = [0, 0], sizes = [2, 64], strides = [1, 1]} : vector<2x256xf32> to vector<2x64xf32>
    %cst_81 = arith.constant 5.000000e-01 : f32
    %253 = vector.broadcast %cst_81 : f32 to vector<2x64xf32>
    %254 = arith.mulf %253, %252 : vector<2x64xf32>
    %255 = math.tanh %254 : vector<2x64xf32>
    %cst_82 = arith.constant 1.000000e+00 : f32
    %256 = vector.broadcast %cst_82 : f32 to vector<2x64xf32>
    %257 = arith.addf %255, %256 : vector<2x64xf32>
    %cst_83 = arith.constant 5.000000e-01 : f32
    %258 = vector.broadcast %cst_83 : f32 to vector<2x64xf32>
    %259 = arith.mulf %258, %257 : vector<2x64xf32>
    %260 = vector.extract_strided_slice %249 {offsets = [0, 64], sizes = [2, 64], strides = [1, 1]} : vector<2x256xf32> to vector<2x64xf32>
    %cst_84 = arith.constant 5.000000e-01 : f32
    %261 = vector.broadcast %cst_84 : f32 to vector<2x64xf32>
    %262 = arith.mulf %261, %260 : vector<2x64xf32>
    %263 = math.tanh %262 : vector<2x64xf32>
    %cst_85 = arith.constant 1.000000e+00 : f32
    %264 = vector.broadcast %cst_85 : f32 to vector<2x64xf32>
    %265 = arith.addf %263, %264 : vector<2x64xf32>
    %cst_86 = arith.constant 5.000000e-01 : f32
    %266 = vector.broadcast %cst_86 : f32 to vector<2x64xf32>
    %267 = arith.mulf %266, %265 : vector<2x64xf32>
    %268 = vector.extract_strided_slice %249 {offsets = [0, 128], sizes = [2, 64], strides = [1, 1]} : vector<2x256xf32> to vector<2x64xf32>
    %269 = math.tanh %268 : vector<2x64xf32>
    %270 = vector.extract_strided_slice %249 {offsets = [0, 192], sizes = [2, 64], strides = [1, 1]} : vector<2x256xf32> to vector<2x64xf32>
    %cst_87 = arith.constant 5.000000e-01 : f32
    %271 = vector.broadcast %cst_87 : f32 to vector<2x64xf32>
    %272 = arith.mulf %271, %270 : vector<2x64xf32>
    %273 = math.tanh %272 : vector<2x64xf32>
    %cst_88 = arith.constant 1.000000e+00 : f32
    %274 = vector.broadcast %cst_88 : f32 to vector<2x64xf32>
    %275 = arith.addf %273, %274 : vector<2x64xf32>
    %cst_89 = arith.constant 5.000000e-01 : f32
    %276 = vector.broadcast %cst_89 : f32 to vector<2x64xf32>
    %277 = arith.mulf %276, %275 : vector<2x64xf32>
    %278 = arith.mulf %267, %203 : vector<2x64xf32>
    %279 = arith.mulf %259, %269 : vector<2x64xf32>
    %280 = arith.addf %278, %279 : vector<2x64xf32>
    %281 = math.tanh %280 : vector<2x64xf32>
    %282 = arith.mulf %277, %281 : vector<2x64xf32>
    %283 = vector.extract_strided_slice %251 {offsets = [0, 0], sizes = [2, 64], strides = [1, 1]} : vector<2x256xf32> to vector<2x64xf32>
    %cst_90 = arith.constant 5.000000e-01 : f32
    %284 = vector.broadcast %cst_90 : f32 to vector<2x64xf32>
    %285 = arith.mulf %284, %283 : vector<2x64xf32>
    %286 = math.tanh %285 : vector<2x64xf32>
    %cst_91 = arith.constant 1.000000e+00 : f32
    %287 = vector.broadcast %cst_91 : f32 to vector<2x64xf32>
    %288 = arith.addf %286, %287 : vector<2x64xf32>
    %cst_92 = arith.constant 5.000000e-01 : f32
    %289 = vector.broadcast %cst_92 : f32 to vector<2x64xf32>
    %290 = arith.mulf %289, %288 : vector<2x64xf32>
    %291 = vector.extract_strided_slice %251 {offsets = [0, 64], sizes = [2, 64], strides = [1, 1]} : vector<2x256xf32> to vector<2x64xf32>
    %cst_93 = arith.constant 5.000000e-01 : f32
    %292 = vector.broadcast %cst_93 : f32 to vector<2x64xf32>
    %293 = arith.mulf %292, %291 : vector<2x64xf32>
    %294 = math.tanh %293 : vector<2x64xf32>
    %cst_94 = arith.constant 1.000000e+00 : f32
    %295 = vector.broadcast %cst_94 : f32 to vector<2x64xf32>
    %296 = arith.addf %294, %295 : vector<2x64xf32>
    %cst_95 = arith.constant 5.000000e-01 : f32
    %297 = vector.broadcast %cst_95 : f32 to vector<2x64xf32>
    %298 = arith.mulf %297, %296 : vector<2x64xf32>
    %299 = vector.extract_strided_slice %251 {offsets = [0, 128], sizes = [2, 64], strides = [1, 1]} : vector<2x256xf32> to vector<2x64xf32>
    %300 = math.tanh %299 : vector<2x64xf32>
    %301 = vector.extract_strided_slice %251 {offsets = [0, 192], sizes = [2, 64], strides = [1, 1]} : vector<2x256xf32> to vector<2x64xf32>
    %cst_96 = arith.constant 5.000000e-01 : f32
    %302 = vector.broadcast %cst_96 : f32 to vector<2x64xf32>
    %303 = arith.mulf %302, %301 : vector<2x64xf32>
    %304 = math.tanh %303 : vector<2x64xf32>
    %cst_97 = arith.constant 1.000000e+00 : f32
    %305 = vector.broadcast %cst_97 : f32 to vector<2x64xf32>
    %306 = arith.addf %304, %305 : vector<2x64xf32>
    %cst_98 = arith.constant 5.000000e-01 : f32
    %307 = vector.broadcast %cst_98 : f32 to vector<2x64xf32>
    %308 = arith.mulf %307, %306 : vector<2x64xf32>
    %309 = arith.mulf %298, %234 : vector<2x64xf32>
    %310 = arith.mulf %290, %300 : vector<2x64xf32>
    %311 = arith.addf %309, %310 : vector<2x64xf32>
    %312 = math.tanh %311 : vector<2x64xf32>
    %313 = arith.mulf %308, %312 : vector<2x64xf32>
    %c3 = arith.constant 3 : index
    %c0_99 = arith.constant 0 : index
    %c0_100 = arith.constant 0 : index
    %314 = vector.load %arg4[%c3, %c0_99, %c0_100] : memref<8x2x128xf32, #tpu.memory_space<vmem>>, vector<1x2x64xf32>
    %315 = vector.shape_cast %314 : vector<1x2x64xf32> to vector<2x64xf32>
    %316 = vector.shape_cast %282 : vector<2x64xf32> to vector<1x2x64xf32>
    tpu.vector_store %arg4[%c3, %c0_99, %c0_100], %316 {strides = array<i32>} : memref<8x2x128xf32, #tpu.memory_space<vmem>>, vector<1x2x64xf32>,
    %c4 = arith.constant 4 : index
    %c0_101 = arith.constant 0 : index
    %c64_102 = arith.constant 64 : index
    %317 = vector.load %arg4[%c4, %c0_101, %c64_102] : memref<8x2x128xf32, #tpu.memory_space<vmem>>, vector<1x2x64xf32>
    %318 = vector.shape_cast %317 : vector<1x2x64xf32> to vector<2x64xf32>
    %319 = vector.shape_cast %313 : vector<2x64xf32> to vector<1x2x64xf32>
    tpu.vector_store %arg4[%c4, %c0_101, %c64_102], %319 {strides = array<i32>} : memref<8x2x128xf32, #tpu.memory_space<vmem>>, vector<1x2x64xf32>,
    %320 = vector.extract_strided_slice %6 {offsets = [8, 0], sizes = [2, 256], strides = [1, 1]} : vector<16x512xf32> to vector<2x256xf32>
    %321 = vector.extract_strided_slice %6 {offsets = [6, 256], sizes = [2, 256], strides = [1, 1]} : vector<16x512xf32> to vector<2x256xf32>
    %322 = tpu.concatenate %282, %313 in 1 : vector<2x64xf32>, vector<2x64xf32> -> vector<2x128xf32>
    %323 = arith.truncf %322 : vector<2x128xf32> to vector<2x128xbf16>
    %cst_103 = arith.constant dense<0.000000e+00> : vector<2x512xf32>
    %324 = tpu.matmul %323, %7, %cst_103 {dimension_numbers = #tpu.dot_dimension_numbers<[1], [0], [0], [1], [0, 0, 1, 1], [], []>} : vector<2x128xbf16>, vector<128x512xbf16>, vector<2x512xf32> -> vector<2x512xf32>
    %325 = vector.extract_strided_slice %324 {offsets = [0, 0], sizes = [2, 256], strides = [1, 1]} : vector<2x512xf32> to vector<2x256xf32>
    %326 = arith.addf %320, %325 : vector<2x256xf32>
    %327 = vector.extract_strided_slice %324 {offsets = [0, 256], sizes = [2, 256], strides = [1, 1]} : vector<2x512xf32> to vector<2x256xf32>
    %328 = arith.addf %321, %327 : vector<2x256xf32>
    %329 = vector.extract_strided_slice %326 {offsets = [0, 0], sizes = [2, 64], strides = [1, 1]} : vector<2x256xf32> to vector<2x64xf32>
    %cst_104 = arith.constant 5.000000e-01 : f32
    %330 = vector.broadcast %cst_104 : f32 to vector<2x64xf32>
    %331 = arith.mulf %330, %329 : vector<2x64xf32>
    %332 = math.tanh %331 : vector<2x64xf32>
    %cst_105 = arith.constant 1.000000e+00 : f32
    %333 = vector.broadcast %cst_105 : f32 to vector<2x64xf32>
    %334 = arith.addf %332, %333 : vector<2x64xf32>
    %cst_106 = arith.constant 5.000000e-01 : f32
    %335 = vector.broadcast %cst_106 : f32 to vector<2x64xf32>
    %336 = arith.mulf %335, %334 : vector<2x64xf32>
    %337 = vector.extract_strided_slice %326 {offsets = [0, 64], sizes = [2, 64], strides = [1, 1]} : vector<2x256xf32> to vector<2x64xf32>
    %cst_107 = arith.constant 5.000000e-01 : f32
    %338 = vector.broadcast %cst_107 : f32 to vector<2x64xf32>
    %339 = arith.mulf %338, %337 : vector<2x64xf32>
    %340 = math.tanh %339 : vector<2x64xf32>
    %cst_108 = arith.constant 1.000000e+00 : f32
    %341 = vector.broadcast %cst_108 : f32 to vector<2x64xf32>
    %342 = arith.addf %340, %341 : vector<2x64xf32>
    %cst_109 = arith.constant 5.000000e-01 : f32
    %343 = vector.broadcast %cst_109 : f32 to vector<2x64xf32>
    %344 = arith.mulf %343, %342 : vector<2x64xf32>
    %345 = vector.extract_strided_slice %326 {offsets = [0, 128], sizes = [2, 64], strides = [1, 1]} : vector<2x256xf32> to vector<2x64xf32>
    %346 = math.tanh %345 : vector<2x64xf32>
    %347 = vector.extract_strided_slice %326 {offsets = [0, 192], sizes = [2, 64], strides = [1, 1]} : vector<2x256xf32> to vector<2x64xf32>
    %cst_110 = arith.constant 5.000000e-01 : f32
    %348 = vector.broadcast %cst_110 : f32 to vector<2x64xf32>
    %349 = arith.mulf %348, %347 : vector<2x64xf32>
    %350 = math.tanh %349 : vector<2x64xf32>
    %cst_111 = arith.constant 1.000000e+00 : f32
    %351 = vector.broadcast %cst_111 : f32 to vector<2x64xf32>
    %352 = arith.addf %350, %351 : vector<2x64xf32>
    %cst_112 = arith.constant 5.000000e-01 : f32
    %353 = vector.broadcast %cst_112 : f32 to vector<2x64xf32>
    %354 = arith.mulf %353, %352 : vector<2x64xf32>
    %355 = arith.mulf %344, %280 : vector<2x64xf32>
    %356 = arith.mulf %336, %346 : vector<2x64xf32>
    %357 = arith.addf %355, %356 : vector<2x64xf32>
    %358 = math.tanh %357 : vector<2x64xf32>
    %359 = arith.mulf %354, %358 : vector<2x64xf32>
    %360 = vector.extract_strided_slice %328 {offsets = [0, 0], sizes = [2, 64], strides = [1, 1]} : vector<2x256xf32> to vector<2x64xf32>
    %cst_113 = arith.constant 5.000000e-01 : f32
    %361 = vector.broadcast %cst_113 : f32 to vector<2x64xf32>
    %362 = arith.mulf %361, %360 : vector<2x64xf32>
    %363 = math.tanh %362 : vector<2x64xf32>
    %cst_114 = arith.constant 1.000000e+00 : f32
    %364 = vector.broadcast %cst_114 : f32 to vector<2x64xf32>
    %365 = arith.addf %363, %364 : vector<2x64xf32>
    %cst_115 = arith.constant 5.000000e-01 : f32
    %366 = vector.broadcast %cst_115 : f32 to vector<2x64xf32>
    %367 = arith.mulf %366, %365 : vector<2x64xf32>
    %368 = vector.extract_strided_slice %328 {offsets = [0, 64], sizes = [2, 64], strides = [1, 1]} : vector<2x256xf32> to vector<2x64xf32>
    %cst_116 = arith.constant 5.000000e-01 : f32
    %369 = vector.broadcast %cst_116 : f32 to vector<2x64xf32>
    %370 = arith.mulf %369, %368 : vector<2x64xf32>
    %371 = math.tanh %370 : vector<2x64xf32>
    %cst_117 = arith.constant 1.000000e+00 : f32
    %372 = vector.broadcast %cst_117 : f32 to vector<2x64xf32>
    %373 = arith.addf %371, %372 : vector<2x64xf32>
    %cst_118 = arith.constant 5.000000e-01 : f32
    %374 = vector.broadcast %cst_118 : f32 to vector<2x64xf32>
    %375 = arith.mulf %374, %373 : vector<2x64xf32>
    %376 = vector.extract_strided_slice %328 {offsets = [0, 128], sizes = [2, 64], strides = [1, 1]} : vector<2x256xf32> to vector<2x64xf32>
    %377 = math.tanh %376 : vector<2x64xf32>
    %378 = vector.extract_strided_slice %328 {offsets = [0, 192], sizes = [2, 64], strides = [1, 1]} : vector<2x256xf32> to vector<2x64xf32>
    %cst_119 = arith.constant 5.000000e-01 : f32
    %379 = vector.broadcast %cst_119 : f32 to vector<2x64xf32>
    %380 = arith.mulf %379, %378 : vector<2x64xf32>
    %381 = math.tanh %380 : vector<2x64xf32>
    %cst_120 = arith.constant 1.000000e+00 : f32
    %382 = vector.broadcast %cst_120 : f32 to vector<2x64xf32>
    %383 = arith.addf %381, %382 : vector<2x64xf32>
    %cst_121 = arith.constant 5.000000e-01 : f32
    %384 = vector.broadcast %cst_121 : f32 to vector<2x64xf32>
    %385 = arith.mulf %384, %383 : vector<2x64xf32>
    %386 = arith.mulf %375, %311 : vector<2x64xf32>
    %387 = arith.mulf %367, %377 : vector<2x64xf32>
    %388 = arith.addf %386, %387 : vector<2x64xf32>
    %389 = math.tanh %388 : vector<2x64xf32>
    %390 = arith.mulf %385, %389 : vector<2x64xf32>
    %c4_122 = arith.constant 4 : index
    %c0_123 = arith.constant 0 : index
    %c0_124 = arith.constant 0 : index
    %391 = vector.load %arg4[%c4_122, %c0_123, %c0_124] : memref<8x2x128xf32, #tpu.memory_space<vmem>>, vector<1x2x64xf32>
    %392 = vector.shape_cast %391 : vector<1x2x64xf32> to vector<2x64xf32>
    %393 = vector.shape_cast %359 : vector<2x64xf32> to vector<1x2x64xf32>
    tpu.vector_store %arg4[%c4_122, %c0_123, %c0_124], %393 {strides = array<i32>} : memref<8x2x128xf32, #tpu.memory_space<vmem>>, vector<1x2x64xf32>,
    %c3_125 = arith.constant 3 : index
    %c0_126 = arith.constant 0 : index
    %c64_127 = arith.constant 64 : index
    %394 = vector.load %arg4[%c3_125, %c0_126, %c64_127] : memref<8x2x128xf32, #tpu.memory_space<vmem>>, vector<1x2x64xf32>
    %395 = vector.shape_cast %394 : vector<1x2x64xf32> to vector<2x64xf32>
    %396 = vector.shape_cast %390 : vector<2x64xf32> to vector<1x2x64xf32>
    tpu.vector_store %arg4[%c3_125, %c0_126, %c64_127], %396 {strides = array<i32>} : memref<8x2x128xf32, #tpu.memory_space<vmem>>, vector<1x2x64xf32>,
    %397 = vector.extract_strided_slice %6 {offsets = [10, 0], sizes = [2, 256], strides = [1, 1]} : vector<16x512xf32> to vector<2x256xf32>
    %398 = vector.extract_strided_slice %6 {offsets = [4, 256], sizes = [2, 256], strides = [1, 1]} : vector<16x512xf32> to vector<2x256xf32>
    %399 = tpu.concatenate %359, %390 in 1 : vector<2x64xf32>, vector<2x64xf32> -> vector<2x128xf32>
    %400 = arith.truncf %399 : vector<2x128xf32> to vector<2x128xbf16>
    %cst_128 = arith.constant dense<0.000000e+00> : vector<2x512xf32>
    %401 = tpu.matmul %400, %7, %cst_128 {dimension_numbers = #tpu.dot_dimension_numbers<[1], [0], [0], [1], [0, 0, 1, 1], [], []>} : vector<2x128xbf16>, vector<128x512xbf16>, vector<2x512xf32> -> vector<2x512xf32>
    %402 = vector.extract_strided_slice %401 {offsets = [0, 0], sizes = [2, 256], strides = [1, 1]} : vector<2x512xf32> to vector<2x256xf32>
    %403 = arith.addf %397, %402 : vector<2x256xf32>
    %404 = vector.extract_strided_slice %401 {offsets = [0, 256], sizes = [2, 256], strides = [1, 1]} : vector<2x512xf32> to vector<2x256xf32>
    %405 = arith.addf %398, %404 : vector<2x256xf32>
    %406 = vector.extract_strided_slice %403 {offsets = [0, 0], sizes = [2, 64], strides = [1, 1]} : vector<2x256xf32> to vector<2x64xf32>
    %cst_129 = arith.constant 5.000000e-01 : f32
    %407 = vector.broadcast %cst_129 : f32 to vector<2x64xf32>
    %408 = arith.mulf %407, %406 : vector<2x64xf32>
    %409 = math.tanh %408 : vector<2x64xf32>
    %cst_130 = arith.constant 1.000000e+00 : f32
    %410 = vector.broadcast %cst_130 : f32 to vector<2x64xf32>
    %411 = arith.addf %409, %410 : vector<2x64xf32>
    %cst_131 = arith.constant 5.000000e-01 : f32
    %412 = vector.broadcast %cst_131 : f32 to vector<2x64xf32>
    %413 = arith.mulf %412, %411 : vector<2x64xf32>
    %414 = vector.extract_strided_slice %403 {offsets = [0, 64], sizes = [2, 64], strides = [1, 1]} : vector<2x256xf32> to vector<2x64xf32>
    %cst_132 = arith.constant 5.000000e-01 : f32
    %415 = vector.broadcast %cst_132 : f32 to vector<2x64xf32>
    %416 = arith.mulf %415, %414 : vector<2x64xf32>
    %417 = math.tanh %416 : vector<2x64xf32>
    %cst_133 = arith.constant 1.000000e+00 : f32
    %418 = vector.broadcast %cst_133 : f32 to vector<2x64xf32>
    %419 = arith.addf %417, %418 : vector<2x64xf32>
    %cst_134 = arith.constant 5.000000e-01 : f32
    %420 = vector.broadcast %cst_134 : f32 to vector<2x64xf32>
    %421 = arith.mulf %420, %419 : vector<2x64xf32>
    %422 = vector.extract_strided_slice %403 {offsets = [0, 128], sizes = [2, 64], strides = [1, 1]} : vector<2x256xf32> to vector<2x64xf32>
    %423 = math.tanh %422 : vector<2x64xf32>
    %424 = vector.extract_strided_slice %403 {offsets = [0, 192], sizes = [2, 64], strides = [1, 1]} : vector<2x256xf32> to vector<2x64xf32>
    %cst_135 = arith.constant 5.000000e-01 : f32
    %425 = vector.broadcast %cst_135 : f32 to vector<2x64xf32>
    %426 = arith.mulf %425, %424 : vector<2x64xf32>
    %427 = math.tanh %426 : vector<2x64xf32>
    %cst_136 = arith.constant 1.000000e+00 : f32
    %428 = vector.broadcast %cst_136 : f32 to vector<2x64xf32>
    %429 = arith.addf %427, %428 : vector<2x64xf32>
    %cst_137 = arith.constant 5.000000e-01 : f32
    %430 = vector.broadcast %cst_137 : f32 to vector<2x64xf32>
    %431 = arith.mulf %430, %429 : vector<2x64xf32>
    %432 = arith.mulf %421, %357 : vector<2x64xf32>
    %433 = arith.mulf %413, %423 : vector<2x64xf32>
    %434 = arith.addf %432, %433 : vector<2x64xf32>
    %435 = math.tanh %434 : vector<2x64xf32>
    %436 = arith.mulf %431, %435 : vector<2x64xf32>
    %437 = vector.extract_strided_slice %405 {offsets = [0, 0], sizes = [2, 64], strides = [1, 1]} : vector<2x256xf32> to vector<2x64xf32>
    %cst_138 = arith.constant 5.000000e-01 : f32
    %438 = vector.broadcast %cst_138 : f32 to vector<2x64xf32>
    %439 = arith.mulf %438, %437 : vector<2x64xf32>
    %440 = math.tanh %439 : vector<2x64xf32>
    %cst_139 = arith.constant 1.000000e+00 : f32
    %441 = vector.broadcast %cst_139 : f32 to vector<2x64xf32>
    %442 = arith.addf %440, %441 : vector<2x64xf32>
    %cst_140 = arith.constant 5.000000e-01 : f32
    %443 = vector.broadcast %cst_140 : f32 to vector<2x64xf32>
    %444 = arith.mulf %443, %442 : vector<2x64xf32>
    %445 = vector.extract_strided_slice %405 {offsets = [0, 64], sizes = [2, 64], strides = [1, 1]} : vector<2x256xf32> to vector<2x64xf32>
    %cst_141 = arith.constant 5.000000e-01 : f32
    %446 = vector.broadcast %cst_141 : f32 to vector<2x64xf32>
    %447 = arith.mulf %446, %445 : vector<2x64xf32>
    %448 = math.tanh %447 : vector<2x64xf32>
    %cst_142 = arith.constant 1.000000e+00 : f32
    %449 = vector.broadcast %cst_142 : f32 to vector<2x64xf32>
    %450 = arith.addf %448, %449 : vector<2x64xf32>
    %cst_143 = arith.constant 5.000000e-01 : f32
    %451 = vector.broadcast %cst_143 : f32 to vector<2x64xf32>
    %452 = arith.mulf %451, %450 : vector<2x64xf32>
    %453 = vector.extract_strided_slice %405 {offsets = [0, 128], sizes = [2, 64], strides = [1, 1]} : vector<2x256xf32> to vector<2x64xf32>
    %454 = math.tanh %453 : vector<2x64xf32>
    %455 = vector.extract_strided_slice %405 {offsets = [0, 192], sizes = [2, 64], strides = [1, 1]} : vector<2x256xf32> to vector<2x64xf32>
    %cst_144 = arith.constant 5.000000e-01 : f32
    %456 = vector.broadcast %cst_144 : f32 to vector<2x64xf32>
    %457 = arith.mulf %456, %455 : vector<2x64xf32>
    %458 = math.tanh %457 : vector<2x64xf32>
    %cst_145 = arith.constant 1.000000e+00 : f32
    %459 = vector.broadcast %cst_145 : f32 to vector<2x64xf32>
    %460 = arith.addf %458, %459 : vector<2x64xf32>
    %cst_146 = arith.constant 5.000000e-01 : f32
    %461 = vector.broadcast %cst_146 : f32 to vector<2x64xf32>
    %462 = arith.mulf %461, %460 : vector<2x64xf32>
    %463 = arith.mulf %452, %388 : vector<2x64xf32>
    %464 = arith.mulf %444, %454 : vector<2x64xf32>
    %465 = arith.addf %463, %464 : vector<2x64xf32>
    %466 = math.tanh %465 : vector<2x64xf32>
    %467 = arith.mulf %462, %466 : vector<2x64xf32>
    %c5_147 = arith.constant 5 : index
    %c0_148 = arith.constant 0 : index
    %c0_149 = arith.constant 0 : index
    %468 = vector.load %arg4[%c5_147, %c0_148, %c0_149] : memref<8x2x128xf32, #tpu.memory_space<vmem>>, vector<1x2x64xf32>
    %469 = vector.shape_cast %468 : vector<1x2x64xf32> to vector<2x64xf32>
    %470 = vector.shape_cast %436 : vector<2x64xf32> to vector<1x2x64xf32>
    tpu.vector_store %arg4[%c5_147, %c0_148, %c0_149], %470 {strides = array<i32>} : memref<8x2x128xf32, #tpu.memory_space<vmem>>, vector<1x2x64xf32>,
    %c2_150 = arith.constant 2 : index
    %c0_151 = arith.constant 0 : index
    %c64_152 = arith.constant 64 : index
    %471 = vector.load %arg4[%c2_150, %c0_151, %c64_152] : memref<8x2x128xf32, #tpu.memory_space<vmem>>, vector<1x2x64xf32>
    %472 = vector.shape_cast %471 : vector<1x2x64xf32> to vector<2x64xf32>
    %473 = vector.shape_cast %467 : vector<2x64xf32> to vector<1x2x64xf32>
    tpu.vector_store %arg4[%c2_150, %c0_151, %c64_152], %473 {strides = array<i32>} : memref<8x2x128xf32, #tpu.memory_space<vmem>>, vector<1x2x64xf32>,
    %474 = vector.extract_strided_slice %6 {offsets = [12, 0], sizes = [2, 256], strides = [1, 1]} : vector<16x512xf32> to vector<2x256xf32>
    %475 = vector.extract_strided_slice %6 {offsets = [2, 256], sizes = [2, 256], strides = [1, 1]} : vector<16x512xf32> to vector<2x256xf32>
    %476 = tpu.concatenate %436, %467 in 1 : vector<2x64xf32>, vector<2x64xf32> -> vector<2x128xf32>
    %477 = arith.truncf %476 : vector<2x128xf32> to vector<2x128xbf16>
    %cst_153 = arith.constant dense<0.000000e+00> : vector<2x512xf32>
    %478 = tpu.matmul %477, %7, %cst_153 {dimension_numbers = #tpu.dot_dimension_numbers<[1], [0], [0], [1], [0, 0, 1, 1], [], []>} : vector<2x128xbf16>, vector<128x512xbf16>, vector<2x512xf32> -> vector<2x512xf32>
    %479 = vector.extract_strided_slice %478 {offsets = [0, 0], sizes = [2, 256], strides = [1, 1]} : vector<2x512xf32> to vector<2x256xf32>
    %480 = arith.addf %474, %479 : vector<2x256xf32>
    %481 = vector.extract_strided_slice %478 {offsets = [0, 256], sizes = [2, 256], strides = [1, 1]} : vector<2x512xf32> to vector<2x256xf32>
    %482 = arith.addf %475, %481 : vector<2x256xf32>
    %483 = vector.extract_strided_slice %480 {offsets = [0, 0], sizes = [2, 64], strides = [1, 1]} : vector<2x256xf32> to vector<2x64xf32>
    %cst_154 = arith.constant 5.000000e-01 : f32
    %484 = vector.broadcast %cst_154 : f32 to vector<2x64xf32>
    %485 = arith.mulf %484, %483 : vector<2x64xf32>
    %486 = math.tanh %485 : vector<2x64xf32>
    %cst_155 = arith.constant 1.000000e+00 : f32
    %487 = vector.broadcast %cst_155 : f32 to vector<2x64xf32>
    %488 = arith.addf %486, %487 : vector<2x64xf32>
    %cst_156 = arith.constant 5.000000e-01 : f32
    %489 = vector.broadcast %cst_156 : f32 to vector<2x64xf32>
    %490 = arith.mulf %489, %488 : vector<2x64xf32>
    %491 = vector.extract_strided_slice %480 {offsets = [0, 64], sizes = [2, 64], strides = [1, 1]} : vector<2x256xf32> to vector<2x64xf32>
    %cst_157 = arith.constant 5.000000e-01 : f32
    %492 = vector.broadcast %cst_157 : f32 to vector<2x64xf32>
    %493 = arith.mulf %492, %491 : vector<2x64xf32>
    %494 = math.tanh %493 : vector<2x64xf32>
    %cst_158 = arith.constant 1.000000e+00 : f32
    %495 = vector.broadcast %cst_158 : f32 to vector<2x64xf32>
    %496 = arith.addf %494, %495 : vector<2x64xf32>
    %cst_159 = arith.constant 5.000000e-01 : f32
    %497 = vector.broadcast %cst_159 : f32 to vector<2x64xf32>
    %498 = arith.mulf %497, %496 : vector<2x64xf32>
    %499 = vector.extract_strided_slice %480 {offsets = [0, 128], sizes = [2, 64], strides = [1, 1]} : vector<2x256xf32> to vector<2x64xf32>
    %500 = math.tanh %499 : vector<2x64xf32>
    %501 = vector.extract_strided_slice %480 {offsets = [0, 192], sizes = [2, 64], strides = [1, 1]} : vector<2x256xf32> to vector<2x64xf32>
    %cst_160 = arith.constant 5.000000e-01 : f32
    %502 = vector.broadcast %cst_160 : f32 to vector<2x64xf32>
    %503 = arith.mulf %502, %501 : vector<2x64xf32>
    %504 = math.tanh %503 : vector<2x64xf32>
    %cst_161 = arith.constant 1.000000e+00 : f32
    %505 = vector.broadcast %cst_161 : f32 to vector<2x64xf32>
    %506 = arith.addf %504, %505 : vector<2x64xf32>
    %cst_162 = arith.constant 5.000000e-01 : f32
    %507 = vector.broadcast %cst_162 : f32 to vector<2x64xf32>
    %508 = arith.mulf %507, %506 : vector<2x64xf32>
    %509 = arith.mulf %498, %434 : vector<2x64xf32>
    %510 = arith.mulf %490, %500 : vector<2x64xf32>
    %511 = arith.addf %509, %510 : vector<2x64xf32>
    %512 = math.tanh %511 : vector<2x64xf32>
    %513 = arith.mulf %508, %512 : vector<2x64xf32>
    %514 = vector.extract_strided_slice %482 {offsets = [0, 0], sizes = [2, 64], strides = [1, 1]} : vector<2x256xf32> to vector<2x64xf32>
    %cst_163 = arith.constant 5.000000e-01 : f32
    %515 = vector.broadcast %cst_163 : f32 to vector<2x64xf32>
    %516 = arith.mulf %515, %514 : vector<2x64xf32>
    %517 = math.tanh %516 : vector<2x64xf32>
    %cst_164 = arith.constant 1.000000e+00 : f32
    %518 = vector.broadcast %cst_164 : f32 to vector<2x64xf32>
    %519 = arith.addf %517, %518 : vector<2x64xf32>
    %cst_165 = arith.constant 5.000000e-01 : f32
    %520 = vector.broadcast %cst_165 : f32 to vector<2x64xf32>
    %521 = arith.mulf %520, %519 : vector<2x64xf32>
    %522 = vector.extract_strided_slice %482 {offsets = [0, 64], sizes = [2, 64], strides = [1, 1]} : vector<2x256xf32> to vector<2x64xf32>
    %cst_166 = arith.constant 5.000000e-01 : f32
    %523 = vector.broadcast %cst_166 : f32 to vector<2x64xf32>
    %524 = arith.mulf %523, %522 : vector<2x64xf32>
    %525 = math.tanh %524 : vector<2x64xf32>
    %cst_167 = arith.constant 1.000000e+00 : f32
    %526 = vector.broadcast %cst_167 : f32 to vector<2x64xf32>
    %527 = arith.addf %525, %526 : vector<2x64xf32>
    %cst_168 = arith.constant 5.000000e-01 : f32
    %528 = vector.broadcast %cst_168 : f32 to vector<2x64xf32>
    %529 = arith.mulf %528, %527 : vector<2x64xf32>
    %530 = vector.extract_strided_slice %482 {offsets = [0, 128], sizes = [2, 64], strides = [1, 1]} : vector<2x256xf32> to vector<2x64xf32>
    %531 = math.tanh %530 : vector<2x64xf32>
    %532 = vector.extract_strided_slice %482 {offsets = [0, 192], sizes = [2, 64], strides = [1, 1]} : vector<2x256xf32> to vector<2x64xf32>
    %cst_169 = arith.constant 5.000000e-01 : f32
    %533 = vector.broadcast %cst_169 : f32 to vector<2x64xf32>
    %534 = arith.mulf %533, %532 : vector<2x64xf32>
    %535 = math.tanh %534 : vector<2x64xf32>
    %cst_170 = arith.constant 1.000000e+00 : f32
    %536 = vector.broadcast %cst_170 : f32 to vector<2x64xf32>
    %537 = arith.addf %535, %536 : vector<2x64xf32>
    %cst_171 = arith.constant 5.000000e-01 : f32
    %538 = vector.broadcast %cst_171 : f32 to vector<2x64xf32>
    %539 = arith.mulf %538, %537 : vector<2x64xf32>
    %540 = arith.mulf %529, %465 : vector<2x64xf32>
    %541 = arith.mulf %521, %531 : vector<2x64xf32>
    %542 = arith.addf %540, %541 : vector<2x64xf32>
    %543 = math.tanh %542 : vector<2x64xf32>
    %544 = arith.mulf %539, %543 : vector<2x64xf32>
    %c6_172 = arith.constant 6 : index
    %c0_173 = arith.constant 0 : index
    %c0_174 = arith.constant 0 : index
    %545 = vector.load %arg4[%c6_172, %c0_173, %c0_174] : memref<8x2x128xf32, #tpu.memory_space<vmem>>, vector<1x2x64xf32>
    %546 = vector.shape_cast %545 : vector<1x2x64xf32> to vector<2x64xf32>
    %547 = vector.shape_cast %513 : vector<2x64xf32> to vector<1x2x64xf32>
    tpu.vector_store %arg4[%c6_172, %c0_173, %c0_174], %547 {strides = array<i32>} : memref<8x2x128xf32, #tpu.memory_space<vmem>>, vector<1x2x64xf32>,
    %c1_175 = arith.constant 1 : index
    %c0_176 = arith.constant 0 : index
    %c64_177 = arith.constant 64 : index
    %548 = vector.load %arg4[%c1_175, %c0_176, %c64_177] : memref<8x2x128xf32, #tpu.memory_space<vmem>>, vector<1x2x64xf32>
    %549 = vector.shape_cast %548 : vector<1x2x64xf32> to vector<2x64xf32>
    %550 = vector.shape_cast %544 : vector<2x64xf32> to vector<1x2x64xf32>
    tpu.vector_store %arg4[%c1_175, %c0_176, %c64_177], %550 {strides = array<i32>} : memref<8x2x128xf32, #tpu.memory_space<vmem>>, vector<1x2x64xf32>,
    %551 = vector.extract_strided_slice %6 {offsets = [14, 0], sizes = [2, 256], strides = [1, 1]} : vector<16x512xf32> to vector<2x256xf32>
    %552 = vector.extract_strided_slice %6 {offsets = [0, 256], sizes = [2, 256], strides = [1, 1]} : vector<16x512xf32> to vector<2x256xf32>
    %553 = tpu.concatenate %513, %544 in 1 : vector<2x64xf32>, vector<2x64xf32> -> vector<2x128xf32>
    %554 = arith.truncf %553 : vector<2x128xf32> to vector<2x128xbf16>
    %cst_178 = arith.constant dense<0.000000e+00> : vector<2x512xf32>
    %555 = tpu.matmul %554, %7, %cst_178 {dimension_numbers = #tpu.dot_dimension_numbers<[1], [0], [0], [1], [0, 0, 1, 1], [], []>} : vector<2x128xbf16>, vector<128x512xbf16>, vector<2x512xf32> -> vector<2x512xf32>
    %556 = vector.extract_strided_slice %555 {offsets = [0, 0], sizes = [2, 256], strides = [1, 1]} : vector<2x512xf32> to vector<2x256xf32>
    %557 = arith.addf %551, %556 : vector<2x256xf32>
    %558 = vector.extract_strided_slice %555 {offsets = [0, 256], sizes = [2, 256], strides = [1, 1]} : vector<2x512xf32> to vector<2x256xf32>
    %559 = arith.addf %552, %558 : vector<2x256xf32>
    %560 = vector.extract_strided_slice %557 {offsets = [0, 0], sizes = [2, 64], strides = [1, 1]} : vector<2x256xf32> to vector<2x64xf32>
    %cst_179 = arith.constant 5.000000e-01 : f32
    %561 = vector.broadcast %cst_179 : f32 to vector<2x64xf32>
    %562 = arith.mulf %561, %560 : vector<2x64xf32>
    %563 = math.tanh %562 : vector<2x64xf32>
    %cst_180 = arith.constant 1.000000e+00 : f32
    %564 = vector.broadcast %cst_180 : f32 to vector<2x64xf32>
    %565 = arith.addf %563, %564 : vector<2x64xf32>
    %cst_181 = arith.constant 5.000000e-01 : f32
    %566 = vector.broadcast %cst_181 : f32 to vector<2x64xf32>
    %567 = arith.mulf %566, %565 : vector<2x64xf32>
    %568 = vector.extract_strided_slice %557 {offsets = [0, 64], sizes = [2, 64], strides = [1, 1]} : vector<2x256xf32> to vector<2x64xf32>
    %cst_182 = arith.constant 5.000000e-01 : f32
    %569 = vector.broadcast %cst_182 : f32 to vector<2x64xf32>
    %570 = arith.mulf %569, %568 : vector<2x64xf32>
    %571 = math.tanh %570 : vector<2x64xf32>
    %cst_183 = arith.constant 1.000000e+00 : f32
    %572 = vector.broadcast %cst_183 : f32 to vector<2x64xf32>
    %573 = arith.addf %571, %572 : vector<2x64xf32>
    %cst_184 = arith.constant 5.000000e-01 : f32
    %574 = vector.broadcast %cst_184 : f32 to vector<2x64xf32>
    %575 = arith.mulf %574, %573 : vector<2x64xf32>
    %576 = vector.extract_strided_slice %557 {offsets = [0, 128], sizes = [2, 64], strides = [1, 1]} : vector<2x256xf32> to vector<2x64xf32>
    %577 = math.tanh %576 : vector<2x64xf32>
    %578 = vector.extract_strided_slice %557 {offsets = [0, 192], sizes = [2, 64], strides = [1, 1]} : vector<2x256xf32> to vector<2x64xf32>
    %cst_185 = arith.constant 5.000000e-01 : f32
    %579 = vector.broadcast %cst_185 : f32 to vector<2x64xf32>
    %580 = arith.mulf %579, %578 : vector<2x64xf32>
    %581 = math.tanh %580 : vector<2x64xf32>
    %cst_186 = arith.constant 1.000000e+00 : f32
    %582 = vector.broadcast %cst_186 : f32 to vector<2x64xf32>
    %583 = arith.addf %581, %582 : vector<2x64xf32>
    %cst_187 = arith.constant 5.000000e-01 : f32
    %584 = vector.broadcast %cst_187 : f32 to vector<2x64xf32>
    %585 = arith.mulf %584, %583 : vector<2x64xf32>
    %586 = arith.mulf %575, %511 : vector<2x64xf32>
    %587 = arith.mulf %567, %577 : vector<2x64xf32>
    %588 = arith.addf %586, %587 : vector<2x64xf32>
    %589 = math.tanh %588 : vector<2x64xf32>
    %590 = arith.mulf %585, %589 : vector<2x64xf32>
    %591 = vector.extract_strided_slice %559 {offsets = [0, 0], sizes = [2, 64], strides = [1, 1]} : vector<2x256xf32> to vector<2x64xf32>
    %cst_188 = arith.constant 5.000000e-01 : f32
    %592 = vector.broadcast %cst_188 : f32 to vector<2x64xf32>
    %593 = arith.mulf %592, %591 : vector<2x64xf32>
    %594 = math.tanh %593 : vector<2x64xf32>
    %cst_189 = arith.constant 1.000000e+00 : f32
    %595 = vector.broadcast %cst_189 : f32 to vector<2x64xf32>
    %596 = arith.addf %594, %595 : vector<2x64xf32>
    %cst_190 = arith.constant 5.000000e-01 : f32
    %597 = vector.broadcast %cst_190 : f32 to vector<2x64xf32>
    %598 = arith.mulf %597, %596 : vector<2x64xf32>
    %599 = vector.extract_strided_slice %559 {offsets = [0, 64], sizes = [2, 64], strides = [1, 1]} : vector<2x256xf32> to vector<2x64xf32>
    %cst_191 = arith.constant 5.000000e-01 : f32
    %600 = vector.broadcast %cst_191 : f32 to vector<2x64xf32>
    %601 = arith.mulf %600, %599 : vector<2x64xf32>
    %602 = math.tanh %601 : vector<2x64xf32>
    %cst_192 = arith.constant 1.000000e+00 : f32
    %603 = vector.broadcast %cst_192 : f32 to vector<2x64xf32>
    %604 = arith.addf %602, %603 : vector<2x64xf32>
    %cst_193 = arith.constant 5.000000e-01 : f32
    %605 = vector.broadcast %cst_193 : f32 to vector<2x64xf32>
    %606 = arith.mulf %605, %604 : vector<2x64xf32>
    %607 = vector.extract_strided_slice %559 {offsets = [0, 128], sizes = [2, 64], strides = [1, 1]} : vector<2x256xf32> to vector<2x64xf32>
    %608 = math.tanh %607 : vector<2x64xf32>
    %609 = vector.extract_strided_slice %559 {offsets = [0, 192], sizes = [2, 64], strides = [1, 1]} : vector<2x256xf32> to vector<2x64xf32>
    %cst_194 = arith.constant 5.000000e-01 : f32
    %610 = vector.broadcast %cst_194 : f32 to vector<2x64xf32>
    %611 = arith.mulf %610, %609 : vector<2x64xf32>
    %612 = math.tanh %611 : vector<2x64xf32>
    %cst_195 = arith.constant 1.000000e+00 : f32
    %613 = vector.broadcast %cst_195 : f32 to vector<2x64xf32>
    %614 = arith.addf %612, %613 : vector<2x64xf32>
    %cst_196 = arith.constant 5.000000e-01 : f32
    %615 = vector.broadcast %cst_196 : f32 to vector<2x64xf32>
    %616 = arith.mulf %615, %614 : vector<2x64xf32>
    %617 = arith.mulf %606, %542 : vector<2x64xf32>
    %618 = arith.mulf %598, %608 : vector<2x64xf32>
    %619 = arith.addf %617, %618 : vector<2x64xf32>
    %620 = math.tanh %619 : vector<2x64xf32>
    %621 = arith.mulf %616, %620 : vector<2x64xf32>
    %c7_197 = arith.constant 7 : index
    %c0_198 = arith.constant 0 : index
    %c0_199 = arith.constant 0 : index
    %622 = vector.load %arg4[%c7_197, %c0_198, %c0_199] : memref<8x2x128xf32, #tpu.memory_space<vmem>>, vector<1x2x64xf32>
    %623 = vector.shape_cast %622 : vector<1x2x64xf32> to vector<2x64xf32>
    %624 = vector.shape_cast %590 : vector<2x64xf32> to vector<1x2x64xf32>
    tpu.vector_store %arg4[%c7_197, %c0_198, %c0_199], %624 {strides = array<i32>} : memref<8x2x128xf32, #tpu.memory_space<vmem>>, vector<1x2x64xf32>,
    %c0_200 = arith.constant 0 : index
    %c0_201 = arith.constant 0 : index
    %c64_202 = arith.constant 64 : index
    %625 = vector.load %arg4[%c0_200, %c0_201, %c64_202] : memref<8x2x128xf32, #tpu.memory_space<vmem>>, vector<1x2x64xf32>
    %626 = vector.shape_cast %625 : vector<1x2x64xf32> to vector<2x64xf32>
    %627 = vector.shape_cast %621 : vector<2x64xf32> to vector<1x2x64xf32>
    tpu.vector_store %arg4[%c0_200, %c0_201, %c64_202], %627 {strides = array<i32>} : memref<8x2x128xf32, #tpu.memory_space<vmem>>, vector<1x2x64xf32>,
    return
  }
}

module attributes {stable_mosaic.version = 11 : i64} {
  func.func @_decoder_kernel(%arg0: memref<2x8x128xf32, #tpu.memory_space<vmem>>, %arg1: memref<128x64xbf16, #tpu.memory_space<vmem>>, %arg2: memref<128x128xbf16, #tpu.memory_space<vmem>>, %arg3: memref<1x128xf32, #tpu.memory_space<vmem>>, %arg4: memref<64x128xbf16, #tpu.memory_space<vmem>>, %arg5: memref<1x128xf32, #tpu.memory_space<vmem>>, %arg6: memref<1x128xf32, #tpu.memory_space<vmem>>, %arg7: memref<256x256xbf16, #tpu.memory_space<vmem>>, %arg8: memref<1x256xf32, #tpu.memory_space<vmem>>, %arg9: memref<192x128xbf16, #tpu.memory_space<vmem>>, %arg10: memref<1x128xf32, #tpu.memory_space<vmem>>, %arg11: memref<8x2x128xf32, #tpu.memory_space<vmem>>) attributes {dimension_semantics = [], scalar_prefetch = 0 : i64, scratch_operands = 0 : i64, tpu.core_type = #tpu.core_type<tc>} {
    %c0 = arith.constant 0 : index
    %c0_0 = arith.constant 0 : index
    %c0_1 = arith.constant 0 : index
    %0 = vector.load %arg0[%c0, %c0_0, %c0_1] : memref<2x8x128xf32, #tpu.memory_space<vmem>>, vector<2x8x128xf32>
    %c0_2 = arith.constant 0 : index
    %c0_3 = arith.constant 0 : index
    %1 = vector.load %arg1[%c0_2, %c0_3] : memref<128x64xbf16, #tpu.memory_space<vmem>>, vector<128x64xbf16>
    %c0_4 = arith.constant 0 : index
    %c0_5 = arith.constant 0 : index
    %2 = vector.load %arg4[%c0_4, %c0_5] : memref<64x128xbf16, #tpu.memory_space<vmem>>, vector<64x128xbf16>
    %c0_6 = arith.constant 0 : index
    %c0_7 = arith.constant 0 : index
    %3 = vector.load %arg5[%c0_6, %c0_7] : memref<1x128xf32, #tpu.memory_space<vmem>>, vector<1x128xf32>
    %c0_8 = arith.constant 0 : index
    %c0_9 = arith.constant 0 : index
    %4 = vector.load %arg6[%c0_8, %c0_9] : memref<1x128xf32, #tpu.memory_space<vmem>>, vector<1x128xf32>
    %c0_10 = arith.constant 0 : index
    %c0_11 = arith.constant 0 : index
    %5 = vector.load %arg7[%c0_10, %c0_11] : memref<256x256xbf16, #tpu.memory_space<vmem>>, vector<256x256xbf16>
    %c0_12 = arith.constant 0 : index
    %c0_13 = arith.constant 0 : index
    %6 = vector.load %arg8[%c0_12, %c0_13] : memref<1x256xf32, #tpu.memory_space<vmem>>, vector<1x256xf32>
    %c0_14 = arith.constant 0 : index
    %c0_15 = arith.constant 0 : index
    %7 = vector.load %arg9[%c0_14, %c0_15] : memref<192x128xbf16, #tpu.memory_space<vmem>>, vector<192x128xbf16>
    %c0_16 = arith.constant 0 : index
    %c0_17 = arith.constant 0 : index
    %8 = vector.load %arg10[%c0_16, %c0_17] : memref<1x128xf32, #tpu.memory_space<vmem>>, vector<1x128xf32>
    %c0_18 = arith.constant 0 : index
    %c0_19 = arith.constant 0 : index
    %9 = vector.load %arg2[%c0_18, %c0_19] : memref<128x128xbf16, #tpu.memory_space<vmem>>, vector<128x128xbf16>
    %c0_20 = arith.constant 0 : index
    %c0_21 = arith.constant 0 : index
    %10 = vector.load %arg3[%c0_20, %c0_21] : memref<1x128xf32, #tpu.memory_space<vmem>>, vector<1x128xf32>
    %c0_22 = arith.constant 0 : index
    %c0_23 = arith.constant 0 : index
    %c0_24 = arith.constant 0 : index
    %11 = vector.load %arg0[%c0_22, %c0_23, %c0_24] : memref<2x8x128xf32, #tpu.memory_space<vmem>>, vector<1x8x128xf32>
    %12 = vector.shape_cast %11 : vector<1x8x128xf32> to vector<8x128xf32>
    %13 = arith.truncf %12 : vector<8x128xf32> to vector<8x128xbf16>
    %cst = arith.constant dense<0.000000e+00> : vector<8x128xf32>
    %14 = tpu.matmul %13, %9, %cst {dimension_numbers = #tpu.dot_dimension_numbers<[1], [0], [0], [1], [0, 0, 1, 1], [], []>} : vector<8x128xbf16>, vector<128x128xbf16>, vector<8x128xf32> -> vector<8x128xf32>
    %15 = vector.broadcast %10 : vector<1x128xf32> to vector<8x128xf32>
    %16 = arith.addf %14, %15 : vector<8x128xf32>
    %17 = vector.shape_cast %16 : vector<8x128xf32> to vector<1x8x128xf32>
    %c1 = arith.constant 1 : index
    %c0_25 = arith.constant 0 : index
    %c0_26 = arith.constant 0 : index
    %18 = vector.load %arg0[%c1, %c0_25, %c0_26] : memref<2x8x128xf32, #tpu.memory_space<vmem>>, vector<1x8x128xf32>
    %19 = vector.shape_cast %18 : vector<1x8x128xf32> to vector<8x128xf32>
    %20 = arith.truncf %19 : vector<8x128xf32> to vector<8x128xbf16>
    %cst_27 = arith.constant dense<0.000000e+00> : vector<8x128xf32>
    %21 = tpu.matmul %20, %9, %cst_27 {dimension_numbers = #tpu.dot_dimension_numbers<[1], [0], [0], [1], [0, 0, 1, 1], [], []>} : vector<8x128xbf16>, vector<128x128xbf16>, vector<8x128xf32> -> vector<8x128xf32>
    %22 = vector.broadcast %10 : vector<1x128xf32> to vector<8x128xf32>
    %23 = arith.addf %21, %22 : vector<8x128xf32>
    %24 = vector.shape_cast %23 : vector<8x128xf32> to vector<1x8x128xf32>
    %25 = tpu.concatenate %17, %24 in 0 : vector<1x8x128xf32>, vector<1x8x128xf32> -> vector<2x8x128xf32>
    %26 = tpu.iota {dimensions = array<i32: 1>} : vector<2x128xi32>
    %c10_i32 = arith.constant 10 : i32
    %27 = vector.broadcast %c10_i32 : i32 to vector<2x128xi32>
    %28 = arith.cmpi eq, %26, %27 : vector<2x128xi32>
    %29 = arith.extui %28 : vector<2x128xi1> to vector<2x128xi32>
    %30 = arith.sitofp %29 : vector<2x128xi32> to vector<2x128xf32>
    %cst_28 = arith.constant 0.000000e+00 : f32
    %31 = vector.broadcast %cst_28 : f32 to vector<2x64xf32>
    %cst_29 = arith.constant 0.000000e+00 : f32
    %32 = vector.broadcast %cst_29 : f32 to vector<2x64xf32>
    %33 = arith.truncf %30 : vector<2x128xf32> to vector<2x128xbf16>
    %cst_30 = arith.constant dense<0.000000e+00> : vector<2x64xf32>
    %34 = tpu.matmul %33, %1, %cst_30 {dimension_numbers = #tpu.dot_dimension_numbers<[1], [0], [0], [1], [0, 0, 1, 1], [], []>} : vector<2x128xbf16>, vector<128x64xbf16>, vector<2x64xf32> -> vector<2x64xf32>
    %35 = arith.truncf %31 : vector<2x64xf32> to vector<2x64xbf16>
    %cst_31 = arith.constant dense<0.000000e+00> : vector<2x128xf32>
    %36 = tpu.matmul %35, %2, %cst_31 {dimension_numbers = #tpu.dot_dimension_numbers<[1], [0], [0], [1], [0, 0, 1, 1], [], []>} : vector<2x64xbf16>, vector<64x128xbf16>, vector<2x128xf32> -> vector<2x128xf32>
    %37 = vector.broadcast %3 : vector<1x128xf32> to vector<2x128xf32>
    %38 = arith.addf %36, %37 : vector<2x128xf32>
    %39 = vector.shape_cast %38 : vector<2x128xf32> to vector<2x1x128xf32>
    %40 = vector.broadcast %39 : vector<2x1x128xf32> to vector<2x8x128xf32>
    %41 = arith.addf %25, %40 : vector<2x8x128xf32>
    %42 = math.tanh %41 : vector<2x8x128xf32>
    %43 = vector.shape_cast %4 : vector<1x128xf32> to vector<1x1x128xf32>
    %44 = vector.broadcast %43 : vector<1x1x128xf32> to vector<2x8x128xf32>
    %45 = arith.mulf %42, %44 : vector<2x8x128xf32>
    %cst_32 = arith.constant dense<0.000000e+00> : vector<2x8xf32>
    %46 = vector.multi_reduction <add>, %45, %cst_32 [2] : vector<2x8x128xf32> to vector<2x8xf32>
    %cst_33 = arith.constant dense<0xFF800000> : vector<2xf32>
    %47 = vector.multi_reduction <maximumf>, %46, %cst_33 [1] : vector<2x8xf32> to vector<2xf32>
    %48 = vector.shape_cast %47 : vector<2xf32> to vector<2x1xf32>
    %49 = vector.broadcast %48 : vector<2x1xf32> to vector<2x8xf32>
    %50 = arith.subf %46, %49 : vector<2x8xf32>
    %51 = math.exp %50 : vector<2x8xf32>
    %cst_34 = arith.constant dense<0.000000e+00> : vector<2xf32>
    %52 = vector.multi_reduction <add>, %51, %cst_34 [1] : vector<2x8xf32> to vector<2xf32>
    %53 = vector.shape_cast %52 : vector<2xf32> to vector<2x1xf32>
    %54 = tpu.reciprocal %53 {approx = true} : vector<2x1xf32> -> vector<2x1xf32>
    %55 = vector.broadcast %54 : vector<2x1xf32> to vector<2x8xf32>
    %56 = arith.mulf %51, %55 : vector<2x8xf32>
    %57 = vector.shape_cast %56 : vector<2x8xf32> to vector<2x8x1xf32>
    %58 = vector.broadcast %57 : vector<2x8x1xf32> to vector<2x8x128xf32>
    %59 = arith.mulf %58, %0 : vector<2x8x128xf32>
    %cst_35 = arith.constant dense<0.000000e+00> : vector<2x128xf32>
    %60 = vector.multi_reduction <add>, %59, %cst_35 [1] : vector<2x8x128xf32> to vector<2x128xf32>
    %61 = tpu.concatenate %34, %60, %31 in 1 : vector<2x64xf32>, vector<2x128xf32>, vector<2x64xf32> -> vector<2x256xf32>
    %62 = arith.truncf %61 : vector<2x256xf32> to vector<2x256xbf16>
    %cst_36 = arith.constant dense<0.000000e+00> : vector<2x256xf32>
    %63 = tpu.matmul %62, %5, %cst_36 {dimension_numbers = #tpu.dot_dimension_numbers<[1], [0], [0], [1], [0, 0, 1, 1], [], []>} : vector<2x256xbf16>, vector<256x256xbf16>, vector<2x256xf32> -> vector<2x256xf32>
    %64 = vector.broadcast %6 : vector<1x256xf32> to vector<2x256xf32>
    %65 = arith.addf %63, %64 : vector<2x256xf32>
    %66 = vector.extract_strided_slice %65 {offsets = [0, 0], sizes = [2, 64], strides = [1, 1]} : vector<2x256xf32> to vector<2x64xf32>
    %cst_37 = arith.constant 5.000000e-01 : f32
    %67 = vector.broadcast %cst_37 : f32 to vector<2x64xf32>
    %68 = arith.mulf %67, %66 : vector<2x64xf32>
    %69 = math.tanh %68 : vector<2x64xf32>
    %cst_38 = arith.constant 1.000000e+00 : f32
    %70 = vector.broadcast %cst_38 : f32 to vector<2x64xf32>
    %71 = arith.addf %69, %70 : vector<2x64xf32>
    %cst_39 = arith.constant 5.000000e-01 : f32
    %72 = vector.broadcast %cst_39 : f32 to vector<2x64xf32>
    %73 = arith.mulf %72, %71 : vector<2x64xf32>
    %74 = vector.extract_strided_slice %65 {offsets = [0, 64], sizes = [2, 64], strides = [1, 1]} : vector<2x256xf32> to vector<2x64xf32>
    %cst_40 = arith.constant 5.000000e-01 : f32
    %75 = vector.broadcast %cst_40 : f32 to vector<2x64xf32>
    %76 = arith.mulf %75, %74 : vector<2x64xf32>
    %77 = math.tanh %76 : vector<2x64xf32>
    %cst_41 = arith.constant 1.000000e+00 : f32
    %78 = vector.broadcast %cst_41 : f32 to vector<2x64xf32>
    %79 = arith.addf %77, %78 : vector<2x64xf32>
    %cst_42 = arith.constant 5.000000e-01 : f32
    %80 = vector.broadcast %cst_42 : f32 to vector<2x64xf32>
    %81 = arith.mulf %80, %79 : vector<2x64xf32>
    %82 = vector.extract_strided_slice %65 {offsets = [0, 128], sizes = [2, 64], strides = [1, 1]} : vector<2x256xf32> to vector<2x64xf32>
    %83 = math.tanh %82 : vector<2x64xf32>
    %84 = vector.extract_strided_slice %65 {offsets = [0, 192], sizes = [2, 64], strides = [1, 1]} : vector<2x256xf32> to vector<2x64xf32>
    %cst_43 = arith.constant 5.000000e-01 : f32
    %85 = vector.broadcast %cst_43 : f32 to vector<2x64xf32>
    %86 = arith.mulf %85, %84 : vector<2x64xf32>
    %87 = math.tanh %86 : vector<2x64xf32>
    %cst_44 = arith.constant 1.000000e+00 : f32
    %88 = vector.broadcast %cst_44 : f32 to vector<2x64xf32>
    %89 = arith.addf %87, %88 : vector<2x64xf32>
    %cst_45 = arith.constant 5.000000e-01 : f32
    %90 = vector.broadcast %cst_45 : f32 to vector<2x64xf32>
    %91 = arith.mulf %90, %89 : vector<2x64xf32>
    %92 = arith.mulf %81, %32 : vector<2x64xf32>
    %93 = arith.mulf %73, %83 : vector<2x64xf32>
    %94 = arith.addf %92, %93 : vector<2x64xf32>
    %95 = math.tanh %94 : vector<2x64xf32>
    %96 = arith.mulf %91, %95 : vector<2x64xf32>
    %97 = tpu.concatenate %96, %60 in 1 : vector<2x64xf32>, vector<2x128xf32> -> vector<2x192xf32>
    %98 = arith.truncf %97 : vector<2x192xf32> to vector<2x192xbf16>
    %cst_46 = arith.constant dense<0.000000e+00> : vector<2x128xf32>
    %99 = tpu.matmul %98, %7, %cst_46 {dimension_numbers = #tpu.dot_dimension_numbers<[1], [0], [0], [1], [0, 0, 1, 1], [], []>} : vector<2x192xbf16>, vector<192x128xbf16>, vector<2x128xf32> -> vector<2x128xf32>
    %100 = vector.broadcast %8 : vector<1x128xf32> to vector<2x128xf32>
    %101 = arith.addf %99, %100 : vector<2x128xf32>
    %c0_47 = arith.constant 0 : index
    %c0_48 = arith.constant 0 : index
    %c0_49 = arith.constant 0 : index
    %102 = vector.load %arg11[%c0_47, %c0_48, %c0_49] : memref<8x2x128xf32, #tpu.memory_space<vmem>>, vector<1x2x128xf32>
    %103 = vector.shape_cast %102 : vector<1x2x128xf32> to vector<2x128xf32>
    %104 = vector.shape_cast %101 : vector<2x128xf32> to vector<1x2x128xf32>
    tpu.vector_store %arg11[%c0_47, %c0_48, %c0_49], %104 {strides = array<i32>} : memref<8x2x128xf32, #tpu.memory_space<vmem>>, vector<1x2x128xf32>,
    %cst_50 = arith.constant dense<0xFF800000> : vector<2xf32>
    %105 = vector.multi_reduction <maximumf>, %101, %cst_50 [1] : vector<2x128xf32> to vector<2xf32>
    %106 = vector.shape_cast %105 : vector<2xf32> to vector<2x1xf32>
    %107 = vector.broadcast %106 : vector<2x1xf32> to vector<2x128xf32>
    %108 = arith.cmpf oge, %101, %107 : vector<2x128xf32>
    %c128_i32 = arith.constant 128 : i32
    %109 = vector.broadcast %c128_i32 : i32 to vector<2x128xi32>
    %110 = arith.select %108, %26, %109 : vector<2x128xi1>, vector<2x128xi32>
    %cst_51 = arith.constant dense<2147483647> : vector<2xi32>
    %111 = vector.multi_reduction <minsi>, %110, %cst_51 [1] : vector<2x128xi32> to vector<2xi32>
    %112 = vector.shape_cast %111 : vector<2xi32> to vector<2x1xi32>
    %113 = vector.broadcast %112 : vector<2x1xi32> to vector<2x128xi32>
    %114 = arith.cmpi eq, %26, %113 : vector<2x128xi32>
    %115 = arith.extui %114 : vector<2x128xi1> to vector<2x128xi32>
    %116 = arith.sitofp %115 : vector<2x128xi32> to vector<2x128xf32>
    %117 = arith.truncf %116 : vector<2x128xf32> to vector<2x128xbf16>
    %cst_52 = arith.constant dense<0.000000e+00> : vector<2x64xf32>
    %118 = tpu.matmul %117, %1, %cst_52 {dimension_numbers = #tpu.dot_dimension_numbers<[1], [0], [0], [1], [0, 0, 1, 1], [], []>} : vector<2x128xbf16>, vector<128x64xbf16>, vector<2x64xf32> -> vector<2x64xf32>
    %119 = arith.truncf %96 : vector<2x64xf32> to vector<2x64xbf16>
    %cst_53 = arith.constant dense<0.000000e+00> : vector<2x128xf32>
    %120 = tpu.matmul %119, %2, %cst_53 {dimension_numbers = #tpu.dot_dimension_numbers<[1], [0], [0], [1], [0, 0, 1, 1], [], []>} : vector<2x64xbf16>, vector<64x128xbf16>, vector<2x128xf32> -> vector<2x128xf32>
    %121 = vector.broadcast %3 : vector<1x128xf32> to vector<2x128xf32>
    %122 = arith.addf %120, %121 : vector<2x128xf32>
    %123 = vector.shape_cast %122 : vector<2x128xf32> to vector<2x1x128xf32>
    %124 = vector.broadcast %123 : vector<2x1x128xf32> to vector<2x8x128xf32>
    %125 = arith.addf %25, %124 : vector<2x8x128xf32>
    %126 = math.tanh %125 : vector<2x8x128xf32>
    %127 = vector.shape_cast %4 : vector<1x128xf32> to vector<1x1x128xf32>
    %128 = vector.broadcast %127 : vector<1x1x128xf32> to vector<2x8x128xf32>
    %129 = arith.mulf %126, %128 : vector<2x8x128xf32>
    %cst_54 = arith.constant dense<0.000000e+00> : vector<2x8xf32>
    %130 = vector.multi_reduction <add>, %129, %cst_54 [2] : vector<2x8x128xf32> to vector<2x8xf32>
    %cst_55 = arith.constant dense<0xFF800000> : vector<2xf32>
    %131 = vector.multi_reduction <maximumf>, %130, %cst_55 [1] : vector<2x8xf32> to vector<2xf32>
    %132 = vector.shape_cast %131 : vector<2xf32> to vector<2x1xf32>
    %133 = vector.broadcast %132 : vector<2x1xf32> to vector<2x8xf32>
    %134 = arith.subf %130, %133 : vector<2x8xf32>
    %135 = math.exp %134 : vector<2x8xf32>
    %cst_56 = arith.constant dense<0.000000e+00> : vector<2xf32>
    %136 = vector.multi_reduction <add>, %135, %cst_56 [1] : vector<2x8xf32> to vector<2xf32>
    %137 = vector.shape_cast %136 : vector<2xf32> to vector<2x1xf32>
    %138 = tpu.reciprocal %137 {approx = true} : vector<2x1xf32> -> vector<2x1xf32>
    %139 = vector.broadcast %138 : vector<2x1xf32> to vector<2x8xf32>
    %140 = arith.mulf %135, %139 : vector<2x8xf32>
    %141 = vector.shape_cast %140 : vector<2x8xf32> to vector<2x8x1xf32>
    %142 = vector.broadcast %141 : vector<2x8x1xf32> to vector<2x8x128xf32>
    %143 = arith.mulf %142, %0 : vector<2x8x128xf32>
    %cst_57 = arith.constant dense<0.000000e+00> : vector<2x128xf32>
    %144 = vector.multi_reduction <add>, %143, %cst_57 [1] : vector<2x8x128xf32> to vector<2x128xf32>
    %145 = tpu.concatenate %118, %144, %96 in 1 : vector<2x64xf32>, vector<2x128xf32>, vector<2x64xf32> -> vector<2x256xf32>
    %146 = arith.truncf %145 : vector<2x256xf32> to vector<2x256xbf16>
    %cst_58 = arith.constant dense<0.000000e+00> : vector<2x256xf32>
    %147 = tpu.matmul %146, %5, %cst_58 {dimension_numbers = #tpu.dot_dimension_numbers<[1], [0], [0], [1], [0, 0, 1, 1], [], []>} : vector<2x256xbf16>, vector<256x256xbf16>, vector<2x256xf32> -> vector<2x256xf32>
    %148 = vector.broadcast %6 : vector<1x256xf32> to vector<2x256xf32>
    %149 = arith.addf %147, %148 : vector<2x256xf32>
    %150 = vector.extract_strided_slice %149 {offsets = [0, 0], sizes = [2, 64], strides = [1, 1]} : vector<2x256xf32> to vector<2x64xf32>
    %cst_59 = arith.constant 5.000000e-01 : f32
    %151 = vector.broadcast %cst_59 : f32 to vector<2x64xf32>
    %152 = arith.mulf %151, %150 : vector<2x64xf32>
    %153 = math.tanh %152 : vector<2x64xf32>
    %cst_60 = arith.constant 1.000000e+00 : f32
    %154 = vector.broadcast %cst_60 : f32 to vector<2x64xf32>
    %155 = arith.addf %153, %154 : vector<2x64xf32>
    %cst_61 = arith.constant 5.000000e-01 : f32
    %156 = vector.broadcast %cst_61 : f32 to vector<2x64xf32>
    %157 = arith.mulf %156, %155 : vector<2x64xf32>
    %158 = vector.extract_strided_slice %149 {offsets = [0, 64], sizes = [2, 64], strides = [1, 1]} : vector<2x256xf32> to vector<2x64xf32>
    %cst_62 = arith.constant 5.000000e-01 : f32
    %159 = vector.broadcast %cst_62 : f32 to vector<2x64xf32>
    %160 = arith.mulf %159, %158 : vector<2x64xf32>
    %161 = math.tanh %160 : vector<2x64xf32>
    %cst_63 = arith.constant 1.000000e+00 : f32
    %162 = vector.broadcast %cst_63 : f32 to vector<2x64xf32>
    %163 = arith.addf %161, %162 : vector<2x64xf32>
    %cst_64 = arith.constant 5.000000e-01 : f32
    %164 = vector.broadcast %cst_64 : f32 to vector<2x64xf32>
    %165 = arith.mulf %164, %163 : vector<2x64xf32>
    %166 = vector.extract_strided_slice %149 {offsets = [0, 128], sizes = [2, 64], strides = [1, 1]} : vector<2x256xf32> to vector<2x64xf32>
    %167 = math.tanh %166 : vector<2x64xf32>
    %168 = vector.extract_strided_slice %149 {offsets = [0, 192], sizes = [2, 64], strides = [1, 1]} : vector<2x256xf32> to vector<2x64xf32>
    %cst_65 = arith.constant 5.000000e-01 : f32
    %169 = vector.broadcast %cst_65 : f32 to vector<2x64xf32>
    %170 = arith.mulf %169, %168 : vector<2x64xf32>
    %171 = math.tanh %170 : vector<2x64xf32>
    %cst_66 = arith.constant 1.000000e+00 : f32
    %172 = vector.broadcast %cst_66 : f32 to vector<2x64xf32>
    %173 = arith.addf %171, %172 : vector<2x64xf32>
    %cst_67 = arith.constant 5.000000e-01 : f32
    %174 = vector.broadcast %cst_67 : f32 to vector<2x64xf32>
    %175 = arith.mulf %174, %173 : vector<2x64xf32>
    %176 = arith.mulf %165, %94 : vector<2x64xf32>
    %177 = arith.mulf %157, %167 : vector<2x64xf32>
    %178 = arith.addf %176, %177 : vector<2x64xf32>
    %179 = math.tanh %178 : vector<2x64xf32>
    %180 = arith.mulf %175, %179 : vector<2x64xf32>
    %181 = tpu.concatenate %180, %144 in 1 : vector<2x64xf32>, vector<2x128xf32> -> vector<2x192xf32>
    %182 = arith.truncf %181 : vector<2x192xf32> to vector<2x192xbf16>
    %cst_68 = arith.constant dense<0.000000e+00> : vector<2x128xf32>
    %183 = tpu.matmul %182, %7, %cst_68 {dimension_numbers = #tpu.dot_dimension_numbers<[1], [0], [0], [1], [0, 0, 1, 1], [], []>} : vector<2x192xbf16>, vector<192x128xbf16>, vector<2x128xf32> -> vector<2x128xf32>
    %184 = vector.broadcast %8 : vector<1x128xf32> to vector<2x128xf32>
    %185 = arith.addf %183, %184 : vector<2x128xf32>
    %c1_69 = arith.constant 1 : index
    %c0_70 = arith.constant 0 : index
    %c0_71 = arith.constant 0 : index
    %186 = vector.load %arg11[%c1_69, %c0_70, %c0_71] : memref<8x2x128xf32, #tpu.memory_space<vmem>>, vector<1x2x128xf32>
    %187 = vector.shape_cast %186 : vector<1x2x128xf32> to vector<2x128xf32>
    %188 = vector.shape_cast %185 : vector<2x128xf32> to vector<1x2x128xf32>
    tpu.vector_store %arg11[%c1_69, %c0_70, %c0_71], %188 {strides = array<i32>} : memref<8x2x128xf32, #tpu.memory_space<vmem>>, vector<1x2x128xf32>,
    %cst_72 = arith.constant dense<0xFF800000> : vector<2xf32>
    %189 = vector.multi_reduction <maximumf>, %185, %cst_72 [1] : vector<2x128xf32> to vector<2xf32>
    %190 = vector.shape_cast %189 : vector<2xf32> to vector<2x1xf32>
    %191 = vector.broadcast %190 : vector<2x1xf32> to vector<2x128xf32>
    %192 = arith.cmpf oge, %185, %191 : vector<2x128xf32>
    %c128_i32_73 = arith.constant 128 : i32
    %193 = vector.broadcast %c128_i32_73 : i32 to vector<2x128xi32>
    %194 = arith.select %192, %26, %193 : vector<2x128xi1>, vector<2x128xi32>
    %cst_74 = arith.constant dense<2147483647> : vector<2xi32>
    %195 = vector.multi_reduction <minsi>, %194, %cst_74 [1] : vector<2x128xi32> to vector<2xi32>
    %196 = vector.shape_cast %195 : vector<2xi32> to vector<2x1xi32>
    %197 = vector.broadcast %196 : vector<2x1xi32> to vector<2x128xi32>
    %198 = arith.cmpi eq, %26, %197 : vector<2x128xi32>
    %199 = arith.extui %198 : vector<2x128xi1> to vector<2x128xi32>
    %200 = arith.sitofp %199 : vector<2x128xi32> to vector<2x128xf32>
    %201 = arith.truncf %200 : vector<2x128xf32> to vector<2x128xbf16>
    %cst_75 = arith.constant dense<0.000000e+00> : vector<2x64xf32>
    %202 = tpu.matmul %201, %1, %cst_75 {dimension_numbers = #tpu.dot_dimension_numbers<[1], [0], [0], [1], [0, 0, 1, 1], [], []>} : vector<2x128xbf16>, vector<128x64xbf16>, vector<2x64xf32> -> vector<2x64xf32>
    %203 = arith.truncf %180 : vector<2x64xf32> to vector<2x64xbf16>
    %cst_76 = arith.constant dense<0.000000e+00> : vector<2x128xf32>
    %204 = tpu.matmul %203, %2, %cst_76 {dimension_numbers = #tpu.dot_dimension_numbers<[1], [0], [0], [1], [0, 0, 1, 1], [], []>} : vector<2x64xbf16>, vector<64x128xbf16>, vector<2x128xf32> -> vector<2x128xf32>
    %205 = vector.broadcast %3 : vector<1x128xf32> to vector<2x128xf32>
    %206 = arith.addf %204, %205 : vector<2x128xf32>
    %207 = vector.shape_cast %206 : vector<2x128xf32> to vector<2x1x128xf32>
    %208 = vector.broadcast %207 : vector<2x1x128xf32> to vector<2x8x128xf32>
    %209 = arith.addf %25, %208 : vector<2x8x128xf32>
    %210 = math.tanh %209 : vector<2x8x128xf32>
    %211 = vector.shape_cast %4 : vector<1x128xf32> to vector<1x1x128xf32>
    %212 = vector.broadcast %211 : vector<1x1x128xf32> to vector<2x8x128xf32>
    %213 = arith.mulf %210, %212 : vector<2x8x128xf32>
    %cst_77 = arith.constant dense<0.000000e+00> : vector<2x8xf32>
    %214 = vector.multi_reduction <add>, %213, %cst_77 [2] : vector<2x8x128xf32> to vector<2x8xf32>
    %cst_78 = arith.constant dense<0xFF800000> : vector<2xf32>
    %215 = vector.multi_reduction <maximumf>, %214, %cst_78 [1] : vector<2x8xf32> to vector<2xf32>
    %216 = vector.shape_cast %215 : vector<2xf32> to vector<2x1xf32>
    %217 = vector.broadcast %216 : vector<2x1xf32> to vector<2x8xf32>
    %218 = arith.subf %214, %217 : vector<2x8xf32>
    %219 = math.exp %218 : vector<2x8xf32>
    %cst_79 = arith.constant dense<0.000000e+00> : vector<2xf32>
    %220 = vector.multi_reduction <add>, %219, %cst_79 [1] : vector<2x8xf32> to vector<2xf32>
    %221 = vector.shape_cast %220 : vector<2xf32> to vector<2x1xf32>
    %222 = tpu.reciprocal %221 {approx = true} : vector<2x1xf32> -> vector<2x1xf32>
    %223 = vector.broadcast %222 : vector<2x1xf32> to vector<2x8xf32>
    %224 = arith.mulf %219, %223 : vector<2x8xf32>
    %225 = vector.shape_cast %224 : vector<2x8xf32> to vector<2x8x1xf32>
    %226 = vector.broadcast %225 : vector<2x8x1xf32> to vector<2x8x128xf32>
    %227 = arith.mulf %226, %0 : vector<2x8x128xf32>
    %cst_80 = arith.constant dense<0.000000e+00> : vector<2x128xf32>
    %228 = vector.multi_reduction <add>, %227, %cst_80 [1] : vector<2x8x128xf32> to vector<2x128xf32>
    %229 = tpu.concatenate %202, %228, %180 in 1 : vector<2x64xf32>, vector<2x128xf32>, vector<2x64xf32> -> vector<2x256xf32>
    %230 = arith.truncf %229 : vector<2x256xf32> to vector<2x256xbf16>
    %cst_81 = arith.constant dense<0.000000e+00> : vector<2x256xf32>
    %231 = tpu.matmul %230, %5, %cst_81 {dimension_numbers = #tpu.dot_dimension_numbers<[1], [0], [0], [1], [0, 0, 1, 1], [], []>} : vector<2x256xbf16>, vector<256x256xbf16>, vector<2x256xf32> -> vector<2x256xf32>
    %232 = vector.broadcast %6 : vector<1x256xf32> to vector<2x256xf32>
    %233 = arith.addf %231, %232 : vector<2x256xf32>
    %234 = vector.extract_strided_slice %233 {offsets = [0, 0], sizes = [2, 64], strides = [1, 1]} : vector<2x256xf32> to vector<2x64xf32>
    %cst_82 = arith.constant 5.000000e-01 : f32
    %235 = vector.broadcast %cst_82 : f32 to vector<2x64xf32>
    %236 = arith.mulf %235, %234 : vector<2x64xf32>
    %237 = math.tanh %236 : vector<2x64xf32>
    %cst_83 = arith.constant 1.000000e+00 : f32
    %238 = vector.broadcast %cst_83 : f32 to vector<2x64xf32>
    %239 = arith.addf %237, %238 : vector<2x64xf32>
    %cst_84 = arith.constant 5.000000e-01 : f32
    %240 = vector.broadcast %cst_84 : f32 to vector<2x64xf32>
    %241 = arith.mulf %240, %239 : vector<2x64xf32>
    %242 = vector.extract_strided_slice %233 {offsets = [0, 64], sizes = [2, 64], strides = [1, 1]} : vector<2x256xf32> to vector<2x64xf32>
    %cst_85 = arith.constant 5.000000e-01 : f32
    %243 = vector.broadcast %cst_85 : f32 to vector<2x64xf32>
    %244 = arith.mulf %243, %242 : vector<2x64xf32>
    %245 = math.tanh %244 : vector<2x64xf32>
    %cst_86 = arith.constant 1.000000e+00 : f32
    %246 = vector.broadcast %cst_86 : f32 to vector<2x64xf32>
    %247 = arith.addf %245, %246 : vector<2x64xf32>
    %cst_87 = arith.constant 5.000000e-01 : f32
    %248 = vector.broadcast %cst_87 : f32 to vector<2x64xf32>
    %249 = arith.mulf %248, %247 : vector<2x64xf32>
    %250 = vector.extract_strided_slice %233 {offsets = [0, 128], sizes = [2, 64], strides = [1, 1]} : vector<2x256xf32> to vector<2x64xf32>
    %251 = math.tanh %250 : vector<2x64xf32>
    %252 = vector.extract_strided_slice %233 {offsets = [0, 192], sizes = [2, 64], strides = [1, 1]} : vector<2x256xf32> to vector<2x64xf32>
    %cst_88 = arith.constant 5.000000e-01 : f32
    %253 = vector.broadcast %cst_88 : f32 to vector<2x64xf32>
    %254 = arith.mulf %253, %252 : vector<2x64xf32>
    %255 = math.tanh %254 : vector<2x64xf32>
    %cst_89 = arith.constant 1.000000e+00 : f32
    %256 = vector.broadcast %cst_89 : f32 to vector<2x64xf32>
    %257 = arith.addf %255, %256 : vector<2x64xf32>
    %cst_90 = arith.constant 5.000000e-01 : f32
    %258 = vector.broadcast %cst_90 : f32 to vector<2x64xf32>
    %259 = arith.mulf %258, %257 : vector<2x64xf32>
    %260 = arith.mulf %249, %178 : vector<2x64xf32>
    %261 = arith.mulf %241, %251 : vector<2x64xf32>
    %262 = arith.addf %260, %261 : vector<2x64xf32>
    %263 = math.tanh %262 : vector<2x64xf32>
    %264 = arith.mulf %259, %263 : vector<2x64xf32>
    %265 = tpu.concatenate %264, %228 in 1 : vector<2x64xf32>, vector<2x128xf32> -> vector<2x192xf32>
    %266 = arith.truncf %265 : vector<2x192xf32> to vector<2x192xbf16>
    %cst_91 = arith.constant dense<0.000000e+00> : vector<2x128xf32>
    %267 = tpu.matmul %266, %7, %cst_91 {dimension_numbers = #tpu.dot_dimension_numbers<[1], [0], [0], [1], [0, 0, 1, 1], [], []>} : vector<2x192xbf16>, vector<192x128xbf16>, vector<2x128xf32> -> vector<2x128xf32>
    %268 = vector.broadcast %8 : vector<1x128xf32> to vector<2x128xf32>
    %269 = arith.addf %267, %268 : vector<2x128xf32>
    %c2 = arith.constant 2 : index
    %c0_92 = arith.constant 0 : index
    %c0_93 = arith.constant 0 : index
    %270 = vector.load %arg11[%c2, %c0_92, %c0_93] : memref<8x2x128xf32, #tpu.memory_space<vmem>>, vector<1x2x128xf32>
    %271 = vector.shape_cast %270 : vector<1x2x128xf32> to vector<2x128xf32>
    %272 = vector.shape_cast %269 : vector<2x128xf32> to vector<1x2x128xf32>
    tpu.vector_store %arg11[%c2, %c0_92, %c0_93], %272 {strides = array<i32>} : memref<8x2x128xf32, #tpu.memory_space<vmem>>, vector<1x2x128xf32>,
    %cst_94 = arith.constant dense<0xFF800000> : vector<2xf32>
    %273 = vector.multi_reduction <maximumf>, %269, %cst_94 [1] : vector<2x128xf32> to vector<2xf32>
    %274 = vector.shape_cast %273 : vector<2xf32> to vector<2x1xf32>
    %275 = vector.broadcast %274 : vector<2x1xf32> to vector<2x128xf32>
    %276 = arith.cmpf oge, %269, %275 : vector<2x128xf32>
    %c128_i32_95 = arith.constant 128 : i32
    %277 = vector.broadcast %c128_i32_95 : i32 to vector<2x128xi32>
    %278 = arith.select %276, %26, %277 : vector<2x128xi1>, vector<2x128xi32>
    %cst_96 = arith.constant dense<2147483647> : vector<2xi32>
    %279 = vector.multi_reduction <minsi>, %278, %cst_96 [1] : vector<2x128xi32> to vector<2xi32>
    %280 = vector.shape_cast %279 : vector<2xi32> to vector<2x1xi32>
    %281 = vector.broadcast %280 : vector<2x1xi32> to vector<2x128xi32>
    %282 = arith.cmpi eq, %26, %281 : vector<2x128xi32>
    %283 = arith.extui %282 : vector<2x128xi1> to vector<2x128xi32>
    %284 = arith.sitofp %283 : vector<2x128xi32> to vector<2x128xf32>
    %285 = arith.truncf %284 : vector<2x128xf32> to vector<2x128xbf16>
    %cst_97 = arith.constant dense<0.000000e+00> : vector<2x64xf32>
    %286 = tpu.matmul %285, %1, %cst_97 {dimension_numbers = #tpu.dot_dimension_numbers<[1], [0], [0], [1], [0, 0, 1, 1], [], []>} : vector<2x128xbf16>, vector<128x64xbf16>, vector<2x64xf32> -> vector<2x64xf32>
    %287 = arith.truncf %264 : vector<2x64xf32> to vector<2x64xbf16>
    %cst_98 = arith.constant dense<0.000000e+00> : vector<2x128xf32>
    %288 = tpu.matmul %287, %2, %cst_98 {dimension_numbers = #tpu.dot_dimension_numbers<[1], [0], [0], [1], [0, 0, 1, 1], [], []>} : vector<2x64xbf16>, vector<64x128xbf16>, vector<2x128xf32> -> vector<2x128xf32>
    %289 = vector.broadcast %3 : vector<1x128xf32> to vector<2x128xf32>
    %290 = arith.addf %288, %289 : vector<2x128xf32>
    %291 = vector.shape_cast %290 : vector<2x128xf32> to vector<2x1x128xf32>
    %292 = vector.broadcast %291 : vector<2x1x128xf32> to vector<2x8x128xf32>
    %293 = arith.addf %25, %292 : vector<2x8x128xf32>
    %294 = math.tanh %293 : vector<2x8x128xf32>
    %295 = vector.shape_cast %4 : vector<1x128xf32> to vector<1x1x128xf32>
    %296 = vector.broadcast %295 : vector<1x1x128xf32> to vector<2x8x128xf32>
    %297 = arith.mulf %294, %296 : vector<2x8x128xf32>
    %cst_99 = arith.constant dense<0.000000e+00> : vector<2x8xf32>
    %298 = vector.multi_reduction <add>, %297, %cst_99 [2] : vector<2x8x128xf32> to vector<2x8xf32>
    %cst_100 = arith.constant dense<0xFF800000> : vector<2xf32>
    %299 = vector.multi_reduction <maximumf>, %298, %cst_100 [1] : vector<2x8xf32> to vector<2xf32>
    %300 = vector.shape_cast %299 : vector<2xf32> to vector<2x1xf32>
    %301 = vector.broadcast %300 : vector<2x1xf32> to vector<2x8xf32>
    %302 = arith.subf %298, %301 : vector<2x8xf32>
    %303 = math.exp %302 : vector<2x8xf32>
    %cst_101 = arith.constant dense<0.000000e+00> : vector<2xf32>
    %304 = vector.multi_reduction <add>, %303, %cst_101 [1] : vector<2x8xf32> to vector<2xf32>
    %305 = vector.shape_cast %304 : vector<2xf32> to vector<2x1xf32>
    %306 = tpu.reciprocal %305 {approx = true} : vector<2x1xf32> -> vector<2x1xf32>
    %307 = vector.broadcast %306 : vector<2x1xf32> to vector<2x8xf32>
    %308 = arith.mulf %303, %307 : vector<2x8xf32>
    %309 = vector.shape_cast %308 : vector<2x8xf32> to vector<2x8x1xf32>
    %310 = vector.broadcast %309 : vector<2x8x1xf32> to vector<2x8x128xf32>
    %311 = arith.mulf %310, %0 : vector<2x8x128xf32>
    %cst_102 = arith.constant dense<0.000000e+00> : vector<2x128xf32>
    %312 = vector.multi_reduction <add>, %311, %cst_102 [1] : vector<2x8x128xf32> to vector<2x128xf32>
    %313 = tpu.concatenate %286, %312, %264 in 1 : vector<2x64xf32>, vector<2x128xf32>, vector<2x64xf32> -> vector<2x256xf32>
    %314 = arith.truncf %313 : vector<2x256xf32> to vector<2x256xbf16>
    %cst_103 = arith.constant dense<0.000000e+00> : vector<2x256xf32>
    %315 = tpu.matmul %314, %5, %cst_103 {dimension_numbers = #tpu.dot_dimension_numbers<[1], [0], [0], [1], [0, 0, 1, 1], [], []>} : vector<2x256xbf16>, vector<256x256xbf16>, vector<2x256xf32> -> vector<2x256xf32>
    %316 = vector.broadcast %6 : vector<1x256xf32> to vector<2x256xf32>
    %317 = arith.addf %315, %316 : vector<2x256xf32>
    %318 = vector.extract_strided_slice %317 {offsets = [0, 0], sizes = [2, 64], strides = [1, 1]} : vector<2x256xf32> to vector<2x64xf32>
    %cst_104 = arith.constant 5.000000e-01 : f32
    %319 = vector.broadcast %cst_104 : f32 to vector<2x64xf32>
    %320 = arith.mulf %319, %318 : vector<2x64xf32>
    %321 = math.tanh %320 : vector<2x64xf32>
    %cst_105 = arith.constant 1.000000e+00 : f32
    %322 = vector.broadcast %cst_105 : f32 to vector<2x64xf32>
    %323 = arith.addf %321, %322 : vector<2x64xf32>
    %cst_106 = arith.constant 5.000000e-01 : f32
    %324 = vector.broadcast %cst_106 : f32 to vector<2x64xf32>
    %325 = arith.mulf %324, %323 : vector<2x64xf32>
    %326 = vector.extract_strided_slice %317 {offsets = [0, 64], sizes = [2, 64], strides = [1, 1]} : vector<2x256xf32> to vector<2x64xf32>
    %cst_107 = arith.constant 5.000000e-01 : f32
    %327 = vector.broadcast %cst_107 : f32 to vector<2x64xf32>
    %328 = arith.mulf %327, %326 : vector<2x64xf32>
    %329 = math.tanh %328 : vector<2x64xf32>
    %cst_108 = arith.constant 1.000000e+00 : f32
    %330 = vector.broadcast %cst_108 : f32 to vector<2x64xf32>
    %331 = arith.addf %329, %330 : vector<2x64xf32>
    %cst_109 = arith.constant 5.000000e-01 : f32
    %332 = vector.broadcast %cst_109 : f32 to vector<2x64xf32>
    %333 = arith.mulf %332, %331 : vector<2x64xf32>
    %334 = vector.extract_strided_slice %317 {offsets = [0, 128], sizes = [2, 64], strides = [1, 1]} : vector<2x256xf32> to vector<2x64xf32>
    %335 = math.tanh %334 : vector<2x64xf32>
    %336 = vector.extract_strided_slice %317 {offsets = [0, 192], sizes = [2, 64], strides = [1, 1]} : vector<2x256xf32> to vector<2x64xf32>
    %cst_110 = arith.constant 5.000000e-01 : f32
    %337 = vector.broadcast %cst_110 : f32 to vector<2x64xf32>
    %338 = arith.mulf %337, %336 : vector<2x64xf32>
    %339 = math.tanh %338 : vector<2x64xf32>
    %cst_111 = arith.constant 1.000000e+00 : f32
    %340 = vector.broadcast %cst_111 : f32 to vector<2x64xf32>
    %341 = arith.addf %339, %340 : vector<2x64xf32>
    %cst_112 = arith.constant 5.000000e-01 : f32
    %342 = vector.broadcast %cst_112 : f32 to vector<2x64xf32>
    %343 = arith.mulf %342, %341 : vector<2x64xf32>
    %344 = arith.mulf %333, %262 : vector<2x64xf32>
    %345 = arith.mulf %325, %335 : vector<2x64xf32>
    %346 = arith.addf %344, %345 : vector<2x64xf32>
    %347 = math.tanh %346 : vector<2x64xf32>
    %348 = arith.mulf %343, %347 : vector<2x64xf32>
    %349 = tpu.concatenate %348, %312 in 1 : vector<2x64xf32>, vector<2x128xf32> -> vector<2x192xf32>
    %350 = arith.truncf %349 : vector<2x192xf32> to vector<2x192xbf16>
    %cst_113 = arith.constant dense<0.000000e+00> : vector<2x128xf32>
    %351 = tpu.matmul %350, %7, %cst_113 {dimension_numbers = #tpu.dot_dimension_numbers<[1], [0], [0], [1], [0, 0, 1, 1], [], []>} : vector<2x192xbf16>, vector<192x128xbf16>, vector<2x128xf32> -> vector<2x128xf32>
    %352 = vector.broadcast %8 : vector<1x128xf32> to vector<2x128xf32>
    %353 = arith.addf %351, %352 : vector<2x128xf32>
    %c3 = arith.constant 3 : index
    %c0_114 = arith.constant 0 : index
    %c0_115 = arith.constant 0 : index
    %354 = vector.load %arg11[%c3, %c0_114, %c0_115] : memref<8x2x128xf32, #tpu.memory_space<vmem>>, vector<1x2x128xf32>
    %355 = vector.shape_cast %354 : vector<1x2x128xf32> to vector<2x128xf32>
    %356 = vector.shape_cast %353 : vector<2x128xf32> to vector<1x2x128xf32>
    tpu.vector_store %arg11[%c3, %c0_114, %c0_115], %356 {strides = array<i32>} : memref<8x2x128xf32, #tpu.memory_space<vmem>>, vector<1x2x128xf32>,
    %cst_116 = arith.constant dense<0xFF800000> : vector<2xf32>
    %357 = vector.multi_reduction <maximumf>, %353, %cst_116 [1] : vector<2x128xf32> to vector<2xf32>
    %358 = vector.shape_cast %357 : vector<2xf32> to vector<2x1xf32>
    %359 = vector.broadcast %358 : vector<2x1xf32> to vector<2x128xf32>
    %360 = arith.cmpf oge, %353, %359 : vector<2x128xf32>
    %c128_i32_117 = arith.constant 128 : i32
    %361 = vector.broadcast %c128_i32_117 : i32 to vector<2x128xi32>
    %362 = arith.select %360, %26, %361 : vector<2x128xi1>, vector<2x128xi32>
    %cst_118 = arith.constant dense<2147483647> : vector<2xi32>
    %363 = vector.multi_reduction <minsi>, %362, %cst_118 [1] : vector<2x128xi32> to vector<2xi32>
    %364 = vector.shape_cast %363 : vector<2xi32> to vector<2x1xi32>
    %365 = vector.broadcast %364 : vector<2x1xi32> to vector<2x128xi32>
    %366 = arith.cmpi eq, %26, %365 : vector<2x128xi32>
    %367 = arith.extui %366 : vector<2x128xi1> to vector<2x128xi32>
    %368 = arith.sitofp %367 : vector<2x128xi32> to vector<2x128xf32>
    %369 = arith.truncf %368 : vector<2x128xf32> to vector<2x128xbf16>
    %cst_119 = arith.constant dense<0.000000e+00> : vector<2x64xf32>
    %370 = tpu.matmul %369, %1, %cst_119 {dimension_numbers = #tpu.dot_dimension_numbers<[1], [0], [0], [1], [0, 0, 1, 1], [], []>} : vector<2x128xbf16>, vector<128x64xbf16>, vector<2x64xf32> -> vector<2x64xf32>
    %371 = arith.truncf %348 : vector<2x64xf32> to vector<2x64xbf16>
    %cst_120 = arith.constant dense<0.000000e+00> : vector<2x128xf32>
    %372 = tpu.matmul %371, %2, %cst_120 {dimension_numbers = #tpu.dot_dimension_numbers<[1], [0], [0], [1], [0, 0, 1, 1], [], []>} : vector<2x64xbf16>, vector<64x128xbf16>, vector<2x128xf32> -> vector<2x128xf32>
    %373 = vector.broadcast %3 : vector<1x128xf32> to vector<2x128xf32>
    %374 = arith.addf %372, %373 : vector<2x128xf32>
    %375 = vector.shape_cast %374 : vector<2x128xf32> to vector<2x1x128xf32>
    %376 = vector.broadcast %375 : vector<2x1x128xf32> to vector<2x8x128xf32>
    %377 = arith.addf %25, %376 : vector<2x8x128xf32>
    %378 = math.tanh %377 : vector<2x8x128xf32>
    %379 = vector.shape_cast %4 : vector<1x128xf32> to vector<1x1x128xf32>
    %380 = vector.broadcast %379 : vector<1x1x128xf32> to vector<2x8x128xf32>
    %381 = arith.mulf %378, %380 : vector<2x8x128xf32>
    %cst_121 = arith.constant dense<0.000000e+00> : vector<2x8xf32>
    %382 = vector.multi_reduction <add>, %381, %cst_121 [2] : vector<2x8x128xf32> to vector<2x8xf32>
    %cst_122 = arith.constant dense<0xFF800000> : vector<2xf32>
    %383 = vector.multi_reduction <maximumf>, %382, %cst_122 [1] : vector<2x8xf32> to vector<2xf32>
    %384 = vector.shape_cast %383 : vector<2xf32> to vector<2x1xf32>
    %385 = vector.broadcast %384 : vector<2x1xf32> to vector<2x8xf32>
    %386 = arith.subf %382, %385 : vector<2x8xf32>
    %387 = math.exp %386 : vector<2x8xf32>
    %cst_123 = arith.constant dense<0.000000e+00> : vector<2xf32>
    %388 = vector.multi_reduction <add>, %387, %cst_123 [1] : vector<2x8xf32> to vector<2xf32>
    %389 = vector.shape_cast %388 : vector<2xf32> to vector<2x1xf32>
    %390 = tpu.reciprocal %389 {approx = true} : vector<2x1xf32> -> vector<2x1xf32>
    %391 = vector.broadcast %390 : vector<2x1xf32> to vector<2x8xf32>
    %392 = arith.mulf %387, %391 : vector<2x8xf32>
    %393 = vector.shape_cast %392 : vector<2x8xf32> to vector<2x8x1xf32>
    %394 = vector.broadcast %393 : vector<2x8x1xf32> to vector<2x8x128xf32>
    %395 = arith.mulf %394, %0 : vector<2x8x128xf32>
    %cst_124 = arith.constant dense<0.000000e+00> : vector<2x128xf32>
    %396 = vector.multi_reduction <add>, %395, %cst_124 [1] : vector<2x8x128xf32> to vector<2x128xf32>
    %397 = tpu.concatenate %370, %396, %348 in 1 : vector<2x64xf32>, vector<2x128xf32>, vector<2x64xf32> -> vector<2x256xf32>
    %398 = arith.truncf %397 : vector<2x256xf32> to vector<2x256xbf16>
    %cst_125 = arith.constant dense<0.000000e+00> : vector<2x256xf32>
    %399 = tpu.matmul %398, %5, %cst_125 {dimension_numbers = #tpu.dot_dimension_numbers<[1], [0], [0], [1], [0, 0, 1, 1], [], []>} : vector<2x256xbf16>, vector<256x256xbf16>, vector<2x256xf32> -> vector<2x256xf32>
    %400 = vector.broadcast %6 : vector<1x256xf32> to vector<2x256xf32>
    %401 = arith.addf %399, %400 : vector<2x256xf32>
    %402 = vector.extract_strided_slice %401 {offsets = [0, 0], sizes = [2, 64], strides = [1, 1]} : vector<2x256xf32> to vector<2x64xf32>
    %cst_126 = arith.constant 5.000000e-01 : f32
    %403 = vector.broadcast %cst_126 : f32 to vector<2x64xf32>
    %404 = arith.mulf %403, %402 : vector<2x64xf32>
    %405 = math.tanh %404 : vector<2x64xf32>
    %cst_127 = arith.constant 1.000000e+00 : f32
    %406 = vector.broadcast %cst_127 : f32 to vector<2x64xf32>
    %407 = arith.addf %405, %406 : vector<2x64xf32>
    %cst_128 = arith.constant 5.000000e-01 : f32
    %408 = vector.broadcast %cst_128 : f32 to vector<2x64xf32>
    %409 = arith.mulf %408, %407 : vector<2x64xf32>
    %410 = vector.extract_strided_slice %401 {offsets = [0, 64], sizes = [2, 64], strides = [1, 1]} : vector<2x256xf32> to vector<2x64xf32>
    %cst_129 = arith.constant 5.000000e-01 : f32
    %411 = vector.broadcast %cst_129 : f32 to vector<2x64xf32>
    %412 = arith.mulf %411, %410 : vector<2x64xf32>
    %413 = math.tanh %412 : vector<2x64xf32>
    %cst_130 = arith.constant 1.000000e+00 : f32
    %414 = vector.broadcast %cst_130 : f32 to vector<2x64xf32>
    %415 = arith.addf %413, %414 : vector<2x64xf32>
    %cst_131 = arith.constant 5.000000e-01 : f32
    %416 = vector.broadcast %cst_131 : f32 to vector<2x64xf32>
    %417 = arith.mulf %416, %415 : vector<2x64xf32>
    %418 = vector.extract_strided_slice %401 {offsets = [0, 128], sizes = [2, 64], strides = [1, 1]} : vector<2x256xf32> to vector<2x64xf32>
    %419 = math.tanh %418 : vector<2x64xf32>
    %420 = vector.extract_strided_slice %401 {offsets = [0, 192], sizes = [2, 64], strides = [1, 1]} : vector<2x256xf32> to vector<2x64xf32>
    %cst_132 = arith.constant 5.000000e-01 : f32
    %421 = vector.broadcast %cst_132 : f32 to vector<2x64xf32>
    %422 = arith.mulf %421, %420 : vector<2x64xf32>
    %423 = math.tanh %422 : vector<2x64xf32>
    %cst_133 = arith.constant 1.000000e+00 : f32
    %424 = vector.broadcast %cst_133 : f32 to vector<2x64xf32>
    %425 = arith.addf %423, %424 : vector<2x64xf32>
    %cst_134 = arith.constant 5.000000e-01 : f32
    %426 = vector.broadcast %cst_134 : f32 to vector<2x64xf32>
    %427 = arith.mulf %426, %425 : vector<2x64xf32>
    %428 = arith.mulf %417, %346 : vector<2x64xf32>
    %429 = arith.mulf %409, %419 : vector<2x64xf32>
    %430 = arith.addf %428, %429 : vector<2x64xf32>
    %431 = math.tanh %430 : vector<2x64xf32>
    %432 = arith.mulf %427, %431 : vector<2x64xf32>
    %433 = tpu.concatenate %432, %396 in 1 : vector<2x64xf32>, vector<2x128xf32> -> vector<2x192xf32>
    %434 = arith.truncf %433 : vector<2x192xf32> to vector<2x192xbf16>
    %cst_135 = arith.constant dense<0.000000e+00> : vector<2x128xf32>
    %435 = tpu.matmul %434, %7, %cst_135 {dimension_numbers = #tpu.dot_dimension_numbers<[1], [0], [0], [1], [0, 0, 1, 1], [], []>} : vector<2x192xbf16>, vector<192x128xbf16>, vector<2x128xf32> -> vector<2x128xf32>
    %436 = vector.broadcast %8 : vector<1x128xf32> to vector<2x128xf32>
    %437 = arith.addf %435, %436 : vector<2x128xf32>
    %c4 = arith.constant 4 : index
    %c0_136 = arith.constant 0 : index
    %c0_137 = arith.constant 0 : index
    %438 = vector.load %arg11[%c4, %c0_136, %c0_137] : memref<8x2x128xf32, #tpu.memory_space<vmem>>, vector<1x2x128xf32>
    %439 = vector.shape_cast %438 : vector<1x2x128xf32> to vector<2x128xf32>
    %440 = vector.shape_cast %437 : vector<2x128xf32> to vector<1x2x128xf32>
    tpu.vector_store %arg11[%c4, %c0_136, %c0_137], %440 {strides = array<i32>} : memref<8x2x128xf32, #tpu.memory_space<vmem>>, vector<1x2x128xf32>,
    %cst_138 = arith.constant dense<0xFF800000> : vector<2xf32>
    %441 = vector.multi_reduction <maximumf>, %437, %cst_138 [1] : vector<2x128xf32> to vector<2xf32>
    %442 = vector.shape_cast %441 : vector<2xf32> to vector<2x1xf32>
    %443 = vector.broadcast %442 : vector<2x1xf32> to vector<2x128xf32>
    %444 = arith.cmpf oge, %437, %443 : vector<2x128xf32>
    %c128_i32_139 = arith.constant 128 : i32
    %445 = vector.broadcast %c128_i32_139 : i32 to vector<2x128xi32>
    %446 = arith.select %444, %26, %445 : vector<2x128xi1>, vector<2x128xi32>
    %cst_140 = arith.constant dense<2147483647> : vector<2xi32>
    %447 = vector.multi_reduction <minsi>, %446, %cst_140 [1] : vector<2x128xi32> to vector<2xi32>
    %448 = vector.shape_cast %447 : vector<2xi32> to vector<2x1xi32>
    %449 = vector.broadcast %448 : vector<2x1xi32> to vector<2x128xi32>
    %450 = arith.cmpi eq, %26, %449 : vector<2x128xi32>
    %451 = arith.extui %450 : vector<2x128xi1> to vector<2x128xi32>
    %452 = arith.sitofp %451 : vector<2x128xi32> to vector<2x128xf32>
    %453 = arith.truncf %452 : vector<2x128xf32> to vector<2x128xbf16>
    %cst_141 = arith.constant dense<0.000000e+00> : vector<2x64xf32>
    %454 = tpu.matmul %453, %1, %cst_141 {dimension_numbers = #tpu.dot_dimension_numbers<[1], [0], [0], [1], [0, 0, 1, 1], [], []>} : vector<2x128xbf16>, vector<128x64xbf16>, vector<2x64xf32> -> vector<2x64xf32>
    %455 = arith.truncf %432 : vector<2x64xf32> to vector<2x64xbf16>
    %cst_142 = arith.constant dense<0.000000e+00> : vector<2x128xf32>
    %456 = tpu.matmul %455, %2, %cst_142 {dimension_numbers = #tpu.dot_dimension_numbers<[1], [0], [0], [1], [0, 0, 1, 1], [], []>} : vector<2x64xbf16>, vector<64x128xbf16>, vector<2x128xf32> -> vector<2x128xf32>
    %457 = vector.broadcast %3 : vector<1x128xf32> to vector<2x128xf32>
    %458 = arith.addf %456, %457 : vector<2x128xf32>
    %459 = vector.shape_cast %458 : vector<2x128xf32> to vector<2x1x128xf32>
    %460 = vector.broadcast %459 : vector<2x1x128xf32> to vector<2x8x128xf32>
    %461 = arith.addf %25, %460 : vector<2x8x128xf32>
    %462 = math.tanh %461 : vector<2x8x128xf32>
    %463 = vector.shape_cast %4 : vector<1x128xf32> to vector<1x1x128xf32>
    %464 = vector.broadcast %463 : vector<1x1x128xf32> to vector<2x8x128xf32>
    %465 = arith.mulf %462, %464 : vector<2x8x128xf32>
    %cst_143 = arith.constant dense<0.000000e+00> : vector<2x8xf32>
    %466 = vector.multi_reduction <add>, %465, %cst_143 [2] : vector<2x8x128xf32> to vector<2x8xf32>
    %cst_144 = arith.constant dense<0xFF800000> : vector<2xf32>
    %467 = vector.multi_reduction <maximumf>, %466, %cst_144 [1] : vector<2x8xf32> to vector<2xf32>
    %468 = vector.shape_cast %467 : vector<2xf32> to vector<2x1xf32>
    %469 = vector.broadcast %468 : vector<2x1xf32> to vector<2x8xf32>
    %470 = arith.subf %466, %469 : vector<2x8xf32>
    %471 = math.exp %470 : vector<2x8xf32>
    %cst_145 = arith.constant dense<0.000000e+00> : vector<2xf32>
    %472 = vector.multi_reduction <add>, %471, %cst_145 [1] : vector<2x8xf32> to vector<2xf32>
    %473 = vector.shape_cast %472 : vector<2xf32> to vector<2x1xf32>
    %474 = tpu.reciprocal %473 {approx = true} : vector<2x1xf32> -> vector<2x1xf32>
    %475 = vector.broadcast %474 : vector<2x1xf32> to vector<2x8xf32>
    %476 = arith.mulf %471, %475 : vector<2x8xf32>
    %477 = vector.shape_cast %476 : vector<2x8xf32> to vector<2x8x1xf32>
    %478 = vector.broadcast %477 : vector<2x8x1xf32> to vector<2x8x128xf32>
    %479 = arith.mulf %478, %0 : vector<2x8x128xf32>
    %cst_146 = arith.constant dense<0.000000e+00> : vector<2x128xf32>
    %480 = vector.multi_reduction <add>, %479, %cst_146 [1] : vector<2x8x128xf32> to vector<2x128xf32>
    %481 = tpu.concatenate %454, %480, %432 in 1 : vector<2x64xf32>, vector<2x128xf32>, vector<2x64xf32> -> vector<2x256xf32>
    %482 = arith.truncf %481 : vector<2x256xf32> to vector<2x256xbf16>
    %cst_147 = arith.constant dense<0.000000e+00> : vector<2x256xf32>
    %483 = tpu.matmul %482, %5, %cst_147 {dimension_numbers = #tpu.dot_dimension_numbers<[1], [0], [0], [1], [0, 0, 1, 1], [], []>} : vector<2x256xbf16>, vector<256x256xbf16>, vector<2x256xf32> -> vector<2x256xf32>
    %484 = vector.broadcast %6 : vector<1x256xf32> to vector<2x256xf32>
    %485 = arith.addf %483, %484 : vector<2x256xf32>
    %486 = vector.extract_strided_slice %485 {offsets = [0, 0], sizes = [2, 64], strides = [1, 1]} : vector<2x256xf32> to vector<2x64xf32>
    %cst_148 = arith.constant 5.000000e-01 : f32
    %487 = vector.broadcast %cst_148 : f32 to vector<2x64xf32>
    %488 = arith.mulf %487, %486 : vector<2x64xf32>
    %489 = math.tanh %488 : vector<2x64xf32>
    %cst_149 = arith.constant 1.000000e+00 : f32
    %490 = vector.broadcast %cst_149 : f32 to vector<2x64xf32>
    %491 = arith.addf %489, %490 : vector<2x64xf32>
    %cst_150 = arith.constant 5.000000e-01 : f32
    %492 = vector.broadcast %cst_150 : f32 to vector<2x64xf32>
    %493 = arith.mulf %492, %491 : vector<2x64xf32>
    %494 = vector.extract_strided_slice %485 {offsets = [0, 64], sizes = [2, 64], strides = [1, 1]} : vector<2x256xf32> to vector<2x64xf32>
    %cst_151 = arith.constant 5.000000e-01 : f32
    %495 = vector.broadcast %cst_151 : f32 to vector<2x64xf32>
    %496 = arith.mulf %495, %494 : vector<2x64xf32>
    %497 = math.tanh %496 : vector<2x64xf32>
    %cst_152 = arith.constant 1.000000e+00 : f32
    %498 = vector.broadcast %cst_152 : f32 to vector<2x64xf32>
    %499 = arith.addf %497, %498 : vector<2x64xf32>
    %cst_153 = arith.constant 5.000000e-01 : f32
    %500 = vector.broadcast %cst_153 : f32 to vector<2x64xf32>
    %501 = arith.mulf %500, %499 : vector<2x64xf32>
    %502 = vector.extract_strided_slice %485 {offsets = [0, 128], sizes = [2, 64], strides = [1, 1]} : vector<2x256xf32> to vector<2x64xf32>
    %503 = math.tanh %502 : vector<2x64xf32>
    %504 = vector.extract_strided_slice %485 {offsets = [0, 192], sizes = [2, 64], strides = [1, 1]} : vector<2x256xf32> to vector<2x64xf32>
    %cst_154 = arith.constant 5.000000e-01 : f32
    %505 = vector.broadcast %cst_154 : f32 to vector<2x64xf32>
    %506 = arith.mulf %505, %504 : vector<2x64xf32>
    %507 = math.tanh %506 : vector<2x64xf32>
    %cst_155 = arith.constant 1.000000e+00 : f32
    %508 = vector.broadcast %cst_155 : f32 to vector<2x64xf32>
    %509 = arith.addf %507, %508 : vector<2x64xf32>
    %cst_156 = arith.constant 5.000000e-01 : f32
    %510 = vector.broadcast %cst_156 : f32 to vector<2x64xf32>
    %511 = arith.mulf %510, %509 : vector<2x64xf32>
    %512 = arith.mulf %501, %430 : vector<2x64xf32>
    %513 = arith.mulf %493, %503 : vector<2x64xf32>
    %514 = arith.addf %512, %513 : vector<2x64xf32>
    %515 = math.tanh %514 : vector<2x64xf32>
    %516 = arith.mulf %511, %515 : vector<2x64xf32>
    %517 = tpu.concatenate %516, %480 in 1 : vector<2x64xf32>, vector<2x128xf32> -> vector<2x192xf32>
    %518 = arith.truncf %517 : vector<2x192xf32> to vector<2x192xbf16>
    %cst_157 = arith.constant dense<0.000000e+00> : vector<2x128xf32>
    %519 = tpu.matmul %518, %7, %cst_157 {dimension_numbers = #tpu.dot_dimension_numbers<[1], [0], [0], [1], [0, 0, 1, 1], [], []>} : vector<2x192xbf16>, vector<192x128xbf16>, vector<2x128xf32> -> vector<2x128xf32>
    %520 = vector.broadcast %8 : vector<1x128xf32> to vector<2x128xf32>
    %521 = arith.addf %519, %520 : vector<2x128xf32>
    %c5 = arith.constant 5 : index
    %c0_158 = arith.constant 0 : index
    %c0_159 = arith.constant 0 : index
    %522 = vector.load %arg11[%c5, %c0_158, %c0_159] : memref<8x2x128xf32, #tpu.memory_space<vmem>>, vector<1x2x128xf32>
    %523 = vector.shape_cast %522 : vector<1x2x128xf32> to vector<2x128xf32>
    %524 = vector.shape_cast %521 : vector<2x128xf32> to vector<1x2x128xf32>
    tpu.vector_store %arg11[%c5, %c0_158, %c0_159], %524 {strides = array<i32>} : memref<8x2x128xf32, #tpu.memory_space<vmem>>, vector<1x2x128xf32>,
    %cst_160 = arith.constant dense<0xFF800000> : vector<2xf32>
    %525 = vector.multi_reduction <maximumf>, %521, %cst_160 [1] : vector<2x128xf32> to vector<2xf32>
    %526 = vector.shape_cast %525 : vector<2xf32> to vector<2x1xf32>
    %527 = vector.broadcast %526 : vector<2x1xf32> to vector<2x128xf32>
    %528 = arith.cmpf oge, %521, %527 : vector<2x128xf32>
    %c128_i32_161 = arith.constant 128 : i32
    %529 = vector.broadcast %c128_i32_161 : i32 to vector<2x128xi32>
    %530 = arith.select %528, %26, %529 : vector<2x128xi1>, vector<2x128xi32>
    %cst_162 = arith.constant dense<2147483647> : vector<2xi32>
    %531 = vector.multi_reduction <minsi>, %530, %cst_162 [1] : vector<2x128xi32> to vector<2xi32>
    %532 = vector.shape_cast %531 : vector<2xi32> to vector<2x1xi32>
    %533 = vector.broadcast %532 : vector<2x1xi32> to vector<2x128xi32>
    %534 = arith.cmpi eq, %26, %533 : vector<2x128xi32>
    %535 = arith.extui %534 : vector<2x128xi1> to vector<2x128xi32>
    %536 = arith.sitofp %535 : vector<2x128xi32> to vector<2x128xf32>
    %537 = arith.truncf %536 : vector<2x128xf32> to vector<2x128xbf16>
    %cst_163 = arith.constant dense<0.000000e+00> : vector<2x64xf32>
    %538 = tpu.matmul %537, %1, %cst_163 {dimension_numbers = #tpu.dot_dimension_numbers<[1], [0], [0], [1], [0, 0, 1, 1], [], []>} : vector<2x128xbf16>, vector<128x64xbf16>, vector<2x64xf32> -> vector<2x64xf32>
    %539 = arith.truncf %516 : vector<2x64xf32> to vector<2x64xbf16>
    %cst_164 = arith.constant dense<0.000000e+00> : vector<2x128xf32>
    %540 = tpu.matmul %539, %2, %cst_164 {dimension_numbers = #tpu.dot_dimension_numbers<[1], [0], [0], [1], [0, 0, 1, 1], [], []>} : vector<2x64xbf16>, vector<64x128xbf16>, vector<2x128xf32> -> vector<2x128xf32>
    %541 = vector.broadcast %3 : vector<1x128xf32> to vector<2x128xf32>
    %542 = arith.addf %540, %541 : vector<2x128xf32>
    %543 = vector.shape_cast %542 : vector<2x128xf32> to vector<2x1x128xf32>
    %544 = vector.broadcast %543 : vector<2x1x128xf32> to vector<2x8x128xf32>
    %545 = arith.addf %25, %544 : vector<2x8x128xf32>
    %546 = math.tanh %545 : vector<2x8x128xf32>
    %547 = vector.shape_cast %4 : vector<1x128xf32> to vector<1x1x128xf32>
    %548 = vector.broadcast %547 : vector<1x1x128xf32> to vector<2x8x128xf32>
    %549 = arith.mulf %546, %548 : vector<2x8x128xf32>
    %cst_165 = arith.constant dense<0.000000e+00> : vector<2x8xf32>
    %550 = vector.multi_reduction <add>, %549, %cst_165 [2] : vector<2x8x128xf32> to vector<2x8xf32>
    %cst_166 = arith.constant dense<0xFF800000> : vector<2xf32>
    %551 = vector.multi_reduction <maximumf>, %550, %cst_166 [1] : vector<2x8xf32> to vector<2xf32>
    %552 = vector.shape_cast %551 : vector<2xf32> to vector<2x1xf32>
    %553 = vector.broadcast %552 : vector<2x1xf32> to vector<2x8xf32>
    %554 = arith.subf %550, %553 : vector<2x8xf32>
    %555 = math.exp %554 : vector<2x8xf32>
    %cst_167 = arith.constant dense<0.000000e+00> : vector<2xf32>
    %556 = vector.multi_reduction <add>, %555, %cst_167 [1] : vector<2x8xf32> to vector<2xf32>
    %557 = vector.shape_cast %556 : vector<2xf32> to vector<2x1xf32>
    %558 = tpu.reciprocal %557 {approx = true} : vector<2x1xf32> -> vector<2x1xf32>
    %559 = vector.broadcast %558 : vector<2x1xf32> to vector<2x8xf32>
    %560 = arith.mulf %555, %559 : vector<2x8xf32>
    %561 = vector.shape_cast %560 : vector<2x8xf32> to vector<2x8x1xf32>
    %562 = vector.broadcast %561 : vector<2x8x1xf32> to vector<2x8x128xf32>
    %563 = arith.mulf %562, %0 : vector<2x8x128xf32>
    %cst_168 = arith.constant dense<0.000000e+00> : vector<2x128xf32>
    %564 = vector.multi_reduction <add>, %563, %cst_168 [1] : vector<2x8x128xf32> to vector<2x128xf32>
    %565 = tpu.concatenate %538, %564, %516 in 1 : vector<2x64xf32>, vector<2x128xf32>, vector<2x64xf32> -> vector<2x256xf32>
    %566 = arith.truncf %565 : vector<2x256xf32> to vector<2x256xbf16>
    %cst_169 = arith.constant dense<0.000000e+00> : vector<2x256xf32>
    %567 = tpu.matmul %566, %5, %cst_169 {dimension_numbers = #tpu.dot_dimension_numbers<[1], [0], [0], [1], [0, 0, 1, 1], [], []>} : vector<2x256xbf16>, vector<256x256xbf16>, vector<2x256xf32> -> vector<2x256xf32>
    %568 = vector.broadcast %6 : vector<1x256xf32> to vector<2x256xf32>
    %569 = arith.addf %567, %568 : vector<2x256xf32>
    %570 = vector.extract_strided_slice %569 {offsets = [0, 0], sizes = [2, 64], strides = [1, 1]} : vector<2x256xf32> to vector<2x64xf32>
    %cst_170 = arith.constant 5.000000e-01 : f32
    %571 = vector.broadcast %cst_170 : f32 to vector<2x64xf32>
    %572 = arith.mulf %571, %570 : vector<2x64xf32>
    %573 = math.tanh %572 : vector<2x64xf32>
    %cst_171 = arith.constant 1.000000e+00 : f32
    %574 = vector.broadcast %cst_171 : f32 to vector<2x64xf32>
    %575 = arith.addf %573, %574 : vector<2x64xf32>
    %cst_172 = arith.constant 5.000000e-01 : f32
    %576 = vector.broadcast %cst_172 : f32 to vector<2x64xf32>
    %577 = arith.mulf %576, %575 : vector<2x64xf32>
    %578 = vector.extract_strided_slice %569 {offsets = [0, 64], sizes = [2, 64], strides = [1, 1]} : vector<2x256xf32> to vector<2x64xf32>
    %cst_173 = arith.constant 5.000000e-01 : f32
    %579 = vector.broadcast %cst_173 : f32 to vector<2x64xf32>
    %580 = arith.mulf %579, %578 : vector<2x64xf32>
    %581 = math.tanh %580 : vector<2x64xf32>
    %cst_174 = arith.constant 1.000000e+00 : f32
    %582 = vector.broadcast %cst_174 : f32 to vector<2x64xf32>
    %583 = arith.addf %581, %582 : vector<2x64xf32>
    %cst_175 = arith.constant 5.000000e-01 : f32
    %584 = vector.broadcast %cst_175 : f32 to vector<2x64xf32>
    %585 = arith.mulf %584, %583 : vector<2x64xf32>
    %586 = vector.extract_strided_slice %569 {offsets = [0, 128], sizes = [2, 64], strides = [1, 1]} : vector<2x256xf32> to vector<2x64xf32>
    %587 = math.tanh %586 : vector<2x64xf32>
    %588 = vector.extract_strided_slice %569 {offsets = [0, 192], sizes = [2, 64], strides = [1, 1]} : vector<2x256xf32> to vector<2x64xf32>
    %cst_176 = arith.constant 5.000000e-01 : f32
    %589 = vector.broadcast %cst_176 : f32 to vector<2x64xf32>
    %590 = arith.mulf %589, %588 : vector<2x64xf32>
    %591 = math.tanh %590 : vector<2x64xf32>
    %cst_177 = arith.constant 1.000000e+00 : f32
    %592 = vector.broadcast %cst_177 : f32 to vector<2x64xf32>
    %593 = arith.addf %591, %592 : vector<2x64xf32>
    %cst_178 = arith.constant 5.000000e-01 : f32
    %594 = vector.broadcast %cst_178 : f32 to vector<2x64xf32>
    %595 = arith.mulf %594, %593 : vector<2x64xf32>
    %596 = arith.mulf %585, %514 : vector<2x64xf32>
    %597 = arith.mulf %577, %587 : vector<2x64xf32>
    %598 = arith.addf %596, %597 : vector<2x64xf32>
    %599 = math.tanh %598 : vector<2x64xf32>
    %600 = arith.mulf %595, %599 : vector<2x64xf32>
    %601 = tpu.concatenate %600, %564 in 1 : vector<2x64xf32>, vector<2x128xf32> -> vector<2x192xf32>
    %602 = arith.truncf %601 : vector<2x192xf32> to vector<2x192xbf16>
    %cst_179 = arith.constant dense<0.000000e+00> : vector<2x128xf32>
    %603 = tpu.matmul %602, %7, %cst_179 {dimension_numbers = #tpu.dot_dimension_numbers<[1], [0], [0], [1], [0, 0, 1, 1], [], []>} : vector<2x192xbf16>, vector<192x128xbf16>, vector<2x128xf32> -> vector<2x128xf32>
    %604 = vector.broadcast %8 : vector<1x128xf32> to vector<2x128xf32>
    %605 = arith.addf %603, %604 : vector<2x128xf32>
    %c6 = arith.constant 6 : index
    %c0_180 = arith.constant 0 : index
    %c0_181 = arith.constant 0 : index
    %606 = vector.load %arg11[%c6, %c0_180, %c0_181] : memref<8x2x128xf32, #tpu.memory_space<vmem>>, vector<1x2x128xf32>
    %607 = vector.shape_cast %606 : vector<1x2x128xf32> to vector<2x128xf32>
    %608 = vector.shape_cast %605 : vector<2x128xf32> to vector<1x2x128xf32>
    tpu.vector_store %arg11[%c6, %c0_180, %c0_181], %608 {strides = array<i32>} : memref<8x2x128xf32, #tpu.memory_space<vmem>>, vector<1x2x128xf32>,
    %cst_182 = arith.constant dense<0xFF800000> : vector<2xf32>
    %609 = vector.multi_reduction <maximumf>, %605, %cst_182 [1] : vector<2x128xf32> to vector<2xf32>
    %610 = vector.shape_cast %609 : vector<2xf32> to vector<2x1xf32>
    %611 = vector.broadcast %610 : vector<2x1xf32> to vector<2x128xf32>
    %612 = arith.cmpf oge, %605, %611 : vector<2x128xf32>
    %c128_i32_183 = arith.constant 128 : i32
    %613 = vector.broadcast %c128_i32_183 : i32 to vector<2x128xi32>
    %614 = arith.select %612, %26, %613 : vector<2x128xi1>, vector<2x128xi32>
    %cst_184 = arith.constant dense<2147483647> : vector<2xi32>
    %615 = vector.multi_reduction <minsi>, %614, %cst_184 [1] : vector<2x128xi32> to vector<2xi32>
    %616 = vector.shape_cast %615 : vector<2xi32> to vector<2x1xi32>
    %617 = vector.broadcast %616 : vector<2x1xi32> to vector<2x128xi32>
    %618 = arith.cmpi eq, %26, %617 : vector<2x128xi32>
    %619 = arith.extui %618 : vector<2x128xi1> to vector<2x128xi32>
    %620 = arith.sitofp %619 : vector<2x128xi32> to vector<2x128xf32>
    %621 = arith.truncf %620 : vector<2x128xf32> to vector<2x128xbf16>
    %cst_185 = arith.constant dense<0.000000e+00> : vector<2x64xf32>
    %622 = tpu.matmul %621, %1, %cst_185 {dimension_numbers = #tpu.dot_dimension_numbers<[1], [0], [0], [1], [0, 0, 1, 1], [], []>} : vector<2x128xbf16>, vector<128x64xbf16>, vector<2x64xf32> -> vector<2x64xf32>
    %623 = arith.truncf %600 : vector<2x64xf32> to vector<2x64xbf16>
    %cst_186 = arith.constant dense<0.000000e+00> : vector<2x128xf32>
    %624 = tpu.matmul %623, %2, %cst_186 {dimension_numbers = #tpu.dot_dimension_numbers<[1], [0], [0], [1], [0, 0, 1, 1], [], []>} : vector<2x64xbf16>, vector<64x128xbf16>, vector<2x128xf32> -> vector<2x128xf32>
    %625 = vector.broadcast %3 : vector<1x128xf32> to vector<2x128xf32>
    %626 = arith.addf %624, %625 : vector<2x128xf32>
    %627 = vector.shape_cast %626 : vector<2x128xf32> to vector<2x1x128xf32>
    %628 = vector.broadcast %627 : vector<2x1x128xf32> to vector<2x8x128xf32>
    %629 = arith.addf %25, %628 : vector<2x8x128xf32>
    %630 = math.tanh %629 : vector<2x8x128xf32>
    %631 = vector.shape_cast %4 : vector<1x128xf32> to vector<1x1x128xf32>
    %632 = vector.broadcast %631 : vector<1x1x128xf32> to vector<2x8x128xf32>
    %633 = arith.mulf %630, %632 : vector<2x8x128xf32>
    %cst_187 = arith.constant dense<0.000000e+00> : vector<2x8xf32>
    %634 = vector.multi_reduction <add>, %633, %cst_187 [2] : vector<2x8x128xf32> to vector<2x8xf32>
    %cst_188 = arith.constant dense<0xFF800000> : vector<2xf32>
    %635 = vector.multi_reduction <maximumf>, %634, %cst_188 [1] : vector<2x8xf32> to vector<2xf32>
    %636 = vector.shape_cast %635 : vector<2xf32> to vector<2x1xf32>
    %637 = vector.broadcast %636 : vector<2x1xf32> to vector<2x8xf32>
    %638 = arith.subf %634, %637 : vector<2x8xf32>
    %639 = math.exp %638 : vector<2x8xf32>
    %cst_189 = arith.constant dense<0.000000e+00> : vector<2xf32>
    %640 = vector.multi_reduction <add>, %639, %cst_189 [1] : vector<2x8xf32> to vector<2xf32>
    %641 = vector.shape_cast %640 : vector<2xf32> to vector<2x1xf32>
    %642 = tpu.reciprocal %641 {approx = true} : vector<2x1xf32> -> vector<2x1xf32>
    %643 = vector.broadcast %642 : vector<2x1xf32> to vector<2x8xf32>
    %644 = arith.mulf %639, %643 : vector<2x8xf32>
    %645 = vector.shape_cast %644 : vector<2x8xf32> to vector<2x8x1xf32>
    %646 = vector.broadcast %645 : vector<2x8x1xf32> to vector<2x8x128xf32>
    %647 = arith.mulf %646, %0 : vector<2x8x128xf32>
    %cst_190 = arith.constant dense<0.000000e+00> : vector<2x128xf32>
    %648 = vector.multi_reduction <add>, %647, %cst_190 [1] : vector<2x8x128xf32> to vector<2x128xf32>
    %649 = tpu.concatenate %622, %648, %600 in 1 : vector<2x64xf32>, vector<2x128xf32>, vector<2x64xf32> -> vector<2x256xf32>
    %650 = arith.truncf %649 : vector<2x256xf32> to vector<2x256xbf16>
    %cst_191 = arith.constant dense<0.000000e+00> : vector<2x256xf32>
    %651 = tpu.matmul %650, %5, %cst_191 {dimension_numbers = #tpu.dot_dimension_numbers<[1], [0], [0], [1], [0, 0, 1, 1], [], []>} : vector<2x256xbf16>, vector<256x256xbf16>, vector<2x256xf32> -> vector<2x256xf32>
    %652 = vector.broadcast %6 : vector<1x256xf32> to vector<2x256xf32>
    %653 = arith.addf %651, %652 : vector<2x256xf32>
    %654 = vector.extract_strided_slice %653 {offsets = [0, 0], sizes = [2, 64], strides = [1, 1]} : vector<2x256xf32> to vector<2x64xf32>
    %cst_192 = arith.constant 5.000000e-01 : f32
    %655 = vector.broadcast %cst_192 : f32 to vector<2x64xf32>
    %656 = arith.mulf %655, %654 : vector<2x64xf32>
    %657 = math.tanh %656 : vector<2x64xf32>
    %cst_193 = arith.constant 1.000000e+00 : f32
    %658 = vector.broadcast %cst_193 : f32 to vector<2x64xf32>
    %659 = arith.addf %657, %658 : vector<2x64xf32>
    %cst_194 = arith.constant 5.000000e-01 : f32
    %660 = vector.broadcast %cst_194 : f32 to vector<2x64xf32>
    %661 = arith.mulf %660, %659 : vector<2x64xf32>
    %662 = vector.extract_strided_slice %653 {offsets = [0, 64], sizes = [2, 64], strides = [1, 1]} : vector<2x256xf32> to vector<2x64xf32>
    %cst_195 = arith.constant 5.000000e-01 : f32
    %663 = vector.broadcast %cst_195 : f32 to vector<2x64xf32>
    %664 = arith.mulf %663, %662 : vector<2x64xf32>
    %665 = math.tanh %664 : vector<2x64xf32>
    %cst_196 = arith.constant 1.000000e+00 : f32
    %666 = vector.broadcast %cst_196 : f32 to vector<2x64xf32>
    %667 = arith.addf %665, %666 : vector<2x64xf32>
    %cst_197 = arith.constant 5.000000e-01 : f32
    %668 = vector.broadcast %cst_197 : f32 to vector<2x64xf32>
    %669 = arith.mulf %668, %667 : vector<2x64xf32>
    %670 = vector.extract_strided_slice %653 {offsets = [0, 128], sizes = [2, 64], strides = [1, 1]} : vector<2x256xf32> to vector<2x64xf32>
    %671 = math.tanh %670 : vector<2x64xf32>
    %672 = vector.extract_strided_slice %653 {offsets = [0, 192], sizes = [2, 64], strides = [1, 1]} : vector<2x256xf32> to vector<2x64xf32>
    %cst_198 = arith.constant 5.000000e-01 : f32
    %673 = vector.broadcast %cst_198 : f32 to vector<2x64xf32>
    %674 = arith.mulf %673, %672 : vector<2x64xf32>
    %675 = math.tanh %674 : vector<2x64xf32>
    %cst_199 = arith.constant 1.000000e+00 : f32
    %676 = vector.broadcast %cst_199 : f32 to vector<2x64xf32>
    %677 = arith.addf %675, %676 : vector<2x64xf32>
    %cst_200 = arith.constant 5.000000e-01 : f32
    %678 = vector.broadcast %cst_200 : f32 to vector<2x64xf32>
    %679 = arith.mulf %678, %677 : vector<2x64xf32>
    %680 = arith.mulf %669, %598 : vector<2x64xf32>
    %681 = arith.mulf %661, %671 : vector<2x64xf32>
    %682 = arith.addf %680, %681 : vector<2x64xf32>
    %683 = math.tanh %682 : vector<2x64xf32>
    %684 = arith.mulf %679, %683 : vector<2x64xf32>
    %685 = tpu.concatenate %684, %648 in 1 : vector<2x64xf32>, vector<2x128xf32> -> vector<2x192xf32>
    %686 = arith.truncf %685 : vector<2x192xf32> to vector<2x192xbf16>
    %cst_201 = arith.constant dense<0.000000e+00> : vector<2x128xf32>
    %687 = tpu.matmul %686, %7, %cst_201 {dimension_numbers = #tpu.dot_dimension_numbers<[1], [0], [0], [1], [0, 0, 1, 1], [], []>} : vector<2x192xbf16>, vector<192x128xbf16>, vector<2x128xf32> -> vector<2x128xf32>
    %688 = vector.broadcast %8 : vector<1x128xf32> to vector<2x128xf32>
    %689 = arith.addf %687, %688 : vector<2x128xf32>
    %c7 = arith.constant 7 : index
    %c0_202 = arith.constant 0 : index
    %c0_203 = arith.constant 0 : index
    %690 = vector.load %arg11[%c7, %c0_202, %c0_203] : memref<8x2x128xf32, #tpu.memory_space<vmem>>, vector<1x2x128xf32>
    %691 = vector.shape_cast %690 : vector<1x2x128xf32> to vector<2x128xf32>
    %692 = vector.shape_cast %689 : vector<2x128xf32> to vector<1x2x128xf32>
    tpu.vector_store %arg11[%c7, %c0_202, %c0_203], %692 {strides = array<i32>} : memref<8x2x128xf32, #tpu.memory_space<vmem>>, vector<1x2x128xf32>,
    return
  }
}

</mosaic_0001>

<bundles_post_ra>
// kernel: khmer_ocr_forward.6
= control target key start
LH: loop header
LB: loop body
LE: loop exit
PB: predicated region body
PF: predicated region fallthrough
CT: control target
= control target key end

     0   :  { %s589_s12 = smov 0   ;;  %s743_s0 = inlined_call_operand.vmem [shape: f32[1024,27], index: 0, kind: input, shape index: {}]   ;;  %s744_s1 = inlined_call_operand.vmem [shape: bf16[27,128], index: 1, kind: input, shape index: {}]   ;;  %s745_s2 = inlined_call_operand.vmem [shape: f32[1,128], index: 2, kind: input, shape index: {}]   ;;  %s746_s3 = inlined_call_operand.vmem [shape: f32[1024,128], index: 3, kind: output, shape index: {}]  }
   0x1 LB: > { %s507_s13 = sadd.s32 4294967295, %s566_s12   ;;  %p511_p0 = scmp.ge.s32.totalorder %s566_s12, 1  ;;  %s566_s12 = sphi %s589_s12, %s13_s12  }
   0x2   : > { %p138_p1 = scmp.lt.s32.totalorder %s566_s12, 5 }
   0x4   : > { %p139_p2 = pnand %p511_p0, %p138_p1 }
   0x5   : > { %s512_s18 = sshll.u32 (!%p139_p2), %s507_s13, 5 }
   0x6   : > { %142 = sbr.rel (%p139_p2) target bundleno = 219 (0xdb), region = 32  ;;  %p163_p3 = scmp.lt.s32.totalorder (!%p139_p2), %s512_s18, 127 }
   0xb   : > { %v522_v0 = vld [vmem:[%s744_s1 + $0x8] sm:$0xf]  ;;  %v543_v1 = vld [vmem:[%s744_s1 + $0x8] sm:$0x30]  ;;  %vm291_vm0 = vcmask 1044480   ;;  %vm292_vm1 = vcmask 1045504  }
   0xc   : > { %v523_v2 = vor.u32 %v543_v1, %v522_v0  ;;  %v568_v3 = vmov 65535   ;;  %s748_s18 = smov (!%p163_p3, %s512_s18), 127  ;;  %v542_v7 = vld [vmem:[%s744_s1] sm:$0xff]  ;;  %vm242_vm2 = vcmask 220160  }
   0xd   : > { %v293_v4 = vsel %vm291_vm0, 4294967295, %v568_v3  ;;  %s513_s21 = sshll.u32 %s748_s18, 3  ;;  %v667_v56 = vld [vmem:[%s745_s2] ss:$0 sm:$0xff] }
   0xe   : > { %v294_v5 = vsel %vm292_vm1, %v293_v4, 0  ;;  %s614_s24 = scalar_lea.vmem %s743_s0, %s513_s21  ;;  %s676_s29 = scalar_lea.vmem %s746_s3, %s513_s21 }
   0xf   : > { %v296_v6 = vand.u32 %v523_v2, %v294_v5  ;;  %v175_v8 = vld [vmem:[%s614_s24] sm:$0xff]  ;;  %v176_v9 = vld [vmem:[%s614_s24 + $0x8] sm:$0xff]  ;;  %v177_v20 = vld [vmem:[%s614_s24 + $0x10] sm:$0xff] }
  0x10   : > { %v183_v10 = vld [vmem:[%s614_s24 + $0x40] sm:$0xff]  ;;  %v207_v11 = vpack.c.bf16 %v176_v9, %v175_v8  ;;  %v184_v12 = vld [vmem:[%s614_s24 + $0x48] sm:$0xff]  ;;  %v178_v21 = vld [vmem:[%s614_s24 + $0x18] sm:$0xff] }
  0x11   : > { %304 = vmatpush.bf16.msra.mxu0 %v296_v6  ;;  %544 = vmatpush.bf16.msra.mxu1 %v296_v6  ;;  %v191_v13 = vld [vmem:[%s614_s24 + $0x80] sm:$0xff]  ;;  %v192_v14 = vld [vmem:[%s614_s24 + $0x88] sm:$0xff]  ;;  %v211_v15 = vpack.c.bf16 %v184_v12, %v183_v10  ;;  %v185_v22 = vld [vmem:[%s614_s24 + $0x50] sm:$0xff]  ;;  %v208_v28 = vpack.c.bf16 %v178_v21, %v177_v20 }
  0x12   : > { %545 = vmatpush.bf16.msra.mxu2 %v296_v6  ;;  %546 = vmatpush.bf16.msra.mxu3 %v296_v6  ;;  %v215_v16 = vpack.c.bf16 %v192_v14, %v191_v13  ;;  %v199_v17 = vld [vmem:[%s614_s24 + $0xc0] sm:$0xff]  ;;  %v200_v18 = vld [vmem:[%s614_s24 + $0xc8] sm:$0xff]  ;;  %v186_v23 = vld [vmem:[%s614_s24 + $0x58] sm:$0xff] }
  0x13   : > { %v219_v19 = vpack.c.bf16 %v200_v18, %v199_v17  ;;  %v193_v24 = vld [vmem:[%s614_s24 + $0x90] sm:$0xff]  ;;  %v194_v25 = vld [vmem:[%s614_s24 + $0x98] sm:$0xff]  ;;  %v212_v29 = vpack.c.bf16 %v186_v23, %v185_v22  ;;  %v179_v32 = vld [vmem:[%s614_s24 + $0x20] sm:$0xff] }
  0x14   : > { %v201_v26 = vld [vmem:[%s614_s24 + $0xd0] sm:$0xff]  ;;  %v202_v27 = vld [vmem:[%s614_s24 + $0xd8] sm:$0xff]  ;;  %v216_v30 = vpack.c.bf16 %v194_v25, %v193_v24  ;;  %v180_v33 = vld [vmem:[%s614_s24 + $0x28] sm:$0xff] }
  0x15   : > { %305 = vmatpush.bf16.msra.mxu0 %v542_v7  ;;  %547 = vmatpush.bf16.msra.mxu1 %v542_v7  ;;  %v220_v31 = vpack.c.bf16 %v202_v27, %v201_v26  ;;  %v187_v34 = vld [vmem:[%s614_s24 + $0x60] sm:$0xff]  ;;  %v188_v35 = vld [vmem:[%s614_s24 + $0x68] sm:$0xff]  ;;  %v209_v40 = vpack.c.bf16 %v180_v33, %v179_v32  ;;  %v181_v44 = vld [vmem:[%s614_s24 + $0x30] sm:$0xff] }
  0x16   : > { %548 = vmatpush.bf16.msra.mxu2 %v542_v7  ;;  %549 = vmatpush.bf16.msra.mxu3 %v542_v7  ;;  %v195_v36 = vld [vmem:[%s614_s24 + $0xa0] sm:$0xff]  ;;  %v196_v37 = vld [vmem:[%s614_s24 + $0xa8] sm:$0xff]  ;;  %v213_v41 = vpack.c.bf16 %v188_v35, %v187_v34  ;;  %v182_v45 = vld [vmem:[%s614_s24 + $0x38] sm:$0xff] }
  0x17   : > { %v203_v38 = vld [vmem:[%s614_s24 + $0xe0] sm:$0xff]  ;;  %v204_v39 = vld [vmem:[%s614_s24 + $0xe8] sm:$0xff]  ;;  %v217_v42 = vpack.c.bf16 %v196_v37, %v195_v36  ;;  %v189_v46 = vld [vmem:[%s614_s24 + $0x70] sm:$0xff]  ;;  %v210_v52 = vpack.c.bf16 %v182_v45, %v181_v44 }
  0x18   : > { %524 = vmatmul.msk.bf16.vlgmr.msra.gmra.mxu0 %vm242_vm2, %v207_v11  ;;  %528 = vmatmul.msk.bf16.vlgmr.msra.gmra.mxu1 %vm242_vm2, %v211_v15  ;;  %v221_v43 = vpack.c.bf16 %v204_v39, %v203_v38  ;;  %v190_v47 = vld [vmem:[%s614_s24 + $0x78] sm:$0xff]  ;;  %v197_v48 = vld [vmem:[%s614_s24 + $0xb0] sm:$0xff] }
  0x19   : > { %532 = vmatmul.msk.bf16.vlgmr.msra.gmra.mxu2 %vm242_vm2, %v215_v16  ;;  %536 = vmatmul.msk.bf16.vlgmr.msra.gmra.mxu3 %vm242_vm2, %v219_v19  ;;  %v198_v49 = vld [vmem:[%s614_s24 + $0xb8] sm:$0xff]  ;;  %v205_v50 = vld [vmem:[%s614_s24 + $0xf0] sm:$0xff]  ;;  %v214_v53 = vpack.c.bf16 %v190_v47, %v189_v46 }
  0x1a   : > { %v206_v51 = vld [vmem:[%s614_s24 + $0xf8] sm:$0xff]  ;;  %v218_v54 = vpack.c.bf16 %v198_v49, %v197_v48 }
  0x1b   : > { %v222_v55 = vpack.c.bf16 %v206_v51, %v205_v50 }
  0x28   : > { %525 = vmatmul.msk.bf16.gmra.mxu0 %vm242_vm2, %v208_v28  ;;  %529 = vmatmul.msk.bf16.gmra.mxu1 %vm242_vm2, %v212_v29 }
  0x29   : > { %533 = vmatmul.msk.bf16.gmra.mxu2 %vm242_vm2, %v216_v30  ;;  %537 = vmatmul.msk.bf16.gmra.mxu3 %vm242_vm2, %v220_v31 }
  0x38   : > { %526 = vmatmul.msk.bf16.gmra.mxu0 %vm242_vm2, %v209_v40  ;;  %530 = vmatmul.msk.bf16.gmra.mxu1 %vm242_vm2, %v213_v41 }
  0x39   : > { %534 = vmatmul.msk.bf16.gmra.mxu2 %vm242_vm2, %v217_v42  ;;  %538 = vmatmul.msk.bf16.gmra.mxu3 %vm242_vm2, %v221_v43 }
  0x48   : > { %527 = vmatmul.msk.bf16.gmra.mxu0 %vm242_vm2, %v210_v52  ;;  %531 = vmatmul.msk.bf16.gmra.mxu1 %vm242_vm2, %v214_v53 }
  0x49   : > { %535 = vmatmul.msk.bf16.gmra.mxu2 %vm242_vm2, %v218_v54  ;;  %539 = vmatmul.msk.bf16.gmra.mxu3 %vm242_vm2, %v222_v55 }
  0x95   : > { %v307_v57 = vpop.f32.mrf.mxu0  ;;  %v327_v58 = vpop.f32.mrf.mxu1 }
  0x96   : > { %v308_v59 = vadd.f32 %v667_v56, %v307_v57  ;;  %v328_v60 = vadd.f32 %v667_v56, %v327_v58 }
  0x98   : > { %v387_v61 = vmax.f32 %v308_v59, 0.0  ;;  %v395_v62 = vmax.f32 %v328_v60, 0.0 }
  0x9a   : > { %419 = vst [vmem:[%s676_s29] sm:$0xff] %v387_v61 }
  0x9b   : > { %427 = vst [vmem:[%s676_s29 + $0x40] sm:$0xff] %v395_v62 }
  0x9c   : > { %v347_v63 = vpop.f32.mrf.mxu2  ;;  %v367_v0 = vpop.f32.mrf.mxu3 }
  0x9d   : > { %v348_v1 = vadd.f32 %v667_v56, %v347_v63  ;;  %v368_v2 = vadd.f32 %v667_v56, %v367_v0  ;;  %v309_v3 = vpop.f32.mrf.mxu0  ;;  %v329_v4 = vpop.f32.mrf.mxu1 }
  0x9e   : > { %v310_v5 = vadd.f32 %v667_v56, %v309_v3  ;;  %v330_v6 = vadd.f32 %v667_v56, %v329_v4 }
  0x9f   : > { %v403_v7 = vmax.f32 %v348_v1, 0.0  ;;  %v411_v8 = vmax.f32 %v368_v2, 0.0 }
  0xa0   : > { %v388_v9 = vmax.f32 %v310_v5, 0.0  ;;  %v396_v10 = vmax.f32 %v330_v6, 0.0 }
  0xa1   : > { %435 = vst [vmem:[%s676_s29 + $0x80] sm:$0xff] %v403_v7 }
  0xa2   : > { %443 = vst [vmem:[%s676_s29 + $0xc0] sm:$0xff] %v411_v8 }
  0xa3   : > { %420 = vst [vmem:[%s676_s29 + $0x8] sm:$0xff] %v388_v9 }
  0xa4   : > { %428 = vst [vmem:[%s676_s29 + $0x48] sm:$0xff] %v396_v10  ;;  %v349_v11 = vpop.f32.mrf.mxu2  ;;  %v369_v12 = vpop.f32.mrf.mxu3 }
  0xa5   : > { %v350_v13 = vadd.f32 %v667_v56, %v349_v11  ;;  %v370_v14 = vadd.f32 %v667_v56, %v369_v12  ;;  %v312_v15 = vpop.f32.mrf.mxu0  ;;  %v332_v16 = vpop.f32.mrf.mxu1 }
  0xa6   : > { %v313_v17 = vadd.f32 %v667_v56, %v312_v15  ;;  %v333_v18 = vadd.f32 %v667_v56, %v332_v16 }
  0xa7   : > { %v404_v19 = vmax.f32 %v350_v13, 0.0  ;;  %v412_v20 = vmax.f32 %v370_v14, 0.0 }
  0xa8   : > { %v389_v21 = vmax.f32 %v313_v17, 0.0  ;;  %v397_v22 = vmax.f32 %v333_v18, 0.0 }
  0xa9   : > { %436 = vst [vmem:[%s676_s29 + $0x88] sm:$0xff] %v404_v19 }
  0xaa   : > { %444 = vst [vmem:[%s676_s29 + $0xc8] sm:$0xff] %v412_v20 }
  0xab   : > { %421 = vst [vmem:[%s676_s29 + $0x10] sm:$0xff] %v389_v21 }
  0xac   : > { %429 = vst [vmem:[%s676_s29 + $0x50] sm:$0xff] %v397_v22  ;;  %v352_v23 = vpop.f32.mrf.mxu2  ;;  %v372_v24 = vpop.f32.mrf.mxu3 }
  0xad   : > { %v353_v25 = vadd.f32 %v667_v56, %v352_v23  ;;  %v373_v26 = vadd.f32 %v667_v56, %v372_v24  ;;  %v314_v27 = vpop.f32.mrf.mxu0  ;;  %v334_v28 = vpop.f32.mrf.mxu1 }
  0xae   : > { %v315_v29 = vadd.f32 %v667_v56, %v314_v27  ;;  %v335_v30 = vadd.f32 %v667_v56, %v334_v28 }
  0xaf   : > { %v405_v31 = vmax.f32 %v353_v25, 0.0  ;;  %v413_v32 = vmax.f32 %v373_v26, 0.0 }
  0xb0   : > { %v390_v33 = vmax.f32 %v315_v29, 0.0  ;;  %v398_v34 = vmax.f32 %v335_v30, 0.0 }
  0xb1   : > { %437 = vst [vmem:[%s676_s29 + $0x90] sm:$0xff] %v405_v31 }
  0xb2   : > { %445 = vst [vmem:[%s676_s29 + $0xd0] sm:$0xff] %v413_v32 }
  0xb3   : > { %422 = vst [vmem:[%s676_s29 + $0x18] sm:$0xff] %v390_v33 }
  0xb4   : > { %430 = vst [vmem:[%s676_s29 + $0x58] sm:$0xff] %v398_v34  ;;  %v354_v35 = vpop.f32.mrf.mxu2  ;;  %v374_v36 = vpop.f32.mrf.mxu3 }
  0xb5   : > { %v355_v37 = vadd.f32 %v667_v56, %v354_v35  ;;  %v375_v38 = vadd.f32 %v667_v56, %v374_v36  ;;  %v317_v39 = vpop.f32.mrf.mxu0  ;;  %v337_v40 = vpop.f32.mrf.mxu1 }
  0xb6   : > { %v318_v41 = vadd.f32 %v667_v56, %v317_v39  ;;  %v338_v42 = vadd.f32 %v667_v56, %v337_v40 }
  0xb7   : > { %v406_v43 = vmax.f32 %v355_v37, 0.0  ;;  %v414_v44 = vmax.f32 %v375_v38, 0.0 }
  0xb8   : > { %v391_v45 = vmax.f32 %v318_v41, 0.0  ;;  %v399_v46 = vmax.f32 %v338_v42, 0.0 }
  0xb9   : > { %438 = vst [vmem:[%s676_s29 + $0x98] sm:$0xff] %v406_v43 }
  0xba   : > { %446 = vst [vmem:[%s676_s29 + $0xd8] sm:$0xff] %v414_v44 }
  0xbb   : > { %423 = vst [vmem:[%s676_s29 + $0x20] sm:$0xff] %v391_v45 }
  0xbc   : > { %431 = vst [vmem:[%s676_s29 + $0x60] sm:$0xff] %v399_v46  ;;  %v357_v47 = vpop.f32.mrf.mxu2  ;;  %v377_v48 = vpop.f32.mrf.mxu3 }
  0xbd   : > { %v358_v49 = vadd.f32 %v667_v56, %v357_v47  ;;  %v378_v50 = vadd.f32 %v667_v56, %v377_v48  ;;  %v319_v51 = vpop.f32.mrf.mxu0  ;;  %v339_v52 = vpop.f32.mrf.mxu1 }
  0xbe   : > { %v320_v53 = vadd.f32 %v667_v56, %v319_v51  ;;  %v340_v54 = vadd.f32 %v667_v56, %v339_v52 }
  0xbf   : > { %v407_v55 = vmax.f32 %v358_v49, 0.0  ;;  %v415_v57 = vmax.f32 %v378_v50, 0.0 }
  0xc0   : > { %v392_v58 = vmax.f32 %v320_v53, 0.0  ;;  %v400_v59 = vmax.f32 %v340_v54, 0.0 }
  0xc1   : > { %439 = vst [vmem:[%s676_s29 + $0xa0] sm:$0xff] %v407_v55 }
  0xc2   : > { %447 = vst [vmem:[%s676_s29 + $0xe0] sm:$0xff] %v415_v57 }
  0xc3   : > { %424 = vst [vmem:[%s676_s29 + $0x28] sm:$0xff] %v392_v58 }
  0xc4   : > { %432 = vst [vmem:[%s676_s29 + $0x68] sm:$0xff] %v400_v59  ;;  %v359_v60 = vpop.f32.mrf.mxu2  ;;  %v379_v61 = vpop.f32.mrf.mxu3 }
  0xc5   : > { %v360_v62 = vadd.f32 %v667_v56, %v359_v60  ;;  %v380_v63 = vadd.f32 %v667_v56, %v379_v61  ;;  %v322_v0 = vpop.f32.mrf.mxu0  ;;  %v342_v1 = vpop.f32.mrf.mxu1 }
  0xc6   : > { %v323_v2 = vadd.f32 %v667_v56, %v322_v0  ;;  %v343_v3 = vadd.f32 %v667_v56, %v342_v1 }
  0xc7   : > { %v408_v4 = vmax.f32 %v360_v62, 0.0  ;;  %v416_v5 = vmax.f32 %v380_v63, 0.0 }
  0xc8   : > { %v393_v6 = vmax.f32 %v323_v2, 0.0  ;;  %v401_v7 = vmax.f32 %v343_v3, 0.0 }
  0xc9   : > { %440 = vst [vmem:[%s676_s29 + $0xa8] sm:$0xff] %v408_v4 }
  0xca   : > { %448 = vst [vmem:[%s676_s29 + $0xe8] sm:$0xff] %v416_v5 }
  0xcb   : > { %425 = vst [vmem:[%s676_s29 + $0x30] sm:$0xff] %v393_v6 }
  0xcc   : > { %433 = vst [vmem:[%s676_s29 + $0x70] sm:$0xff] %v401_v7  ;;  %v362_v8 = vpop.f32.mrf.mxu2  ;;  %v382_v9 = vpop.f32.mrf.mxu3 }
  0xcd   : > { %v363_v10 = vadd.f32 %v667_v56, %v362_v8  ;;  %v383_v11 = vadd.f32 %v667_v56, %v382_v9  ;;  %v324_v12 = vpop.f32.mrf.mxu0  ;;  %v344_v13 = vpop.f32.mrf.mxu1 }
  0xce   : > { %v325_v14 = vadd.f32 %v667_v56, %v324_v12  ;;  %v345_v15 = vadd.f32 %v667_v56, %v344_v13 }
  0xcf   : > { %v409_v16 = vmax.f32 %v363_v10, 0.0  ;;  %v417_v17 = vmax.f32 %v383_v11, 0.0 }
  0xd0   : > { %v394_v18 = vmax.f32 %v325_v14, 0.0  ;;  %v402_v19 = vmax.f32 %v345_v15, 0.0 }
  0xd1   : > { %441 = vst [vmem:[%s676_s29 + $0xb0] sm:$0xff] %v409_v16 }
  0xd2   : > { %449 = vst [vmem:[%s676_s29 + $0xf0] sm:$0xff] %v417_v17 }
  0xd3   : > { %426 = vst [vmem:[%s676_s29 + $0x38] sm:$0xff] %v394_v18 }
  0xd4   : > { %434 = vst [vmem:[%s676_s29 + $0x78] sm:$0xff] %v402_v19  ;;  %v364_v20 = vpop.f32.mrf.mxu2  ;;  %v384_v21 = vpop.f32.mrf.mxu3 }
  0xd5   : > { %v365_v22 = vadd.f32 %v667_v56, %v364_v20  ;;  %v385_v23 = vadd.f32 %v667_v56, %v384_v21 }
  0xd7   : > { %v410_v24 = vmax.f32 %v365_v22, 0.0  ;;  %v418_v25 = vmax.f32 %v385_v23, 0.0 }
  0xd9   : > { %442 = vst [vmem:[%s676_s29 + $0xb8] sm:$0xff] %v410_v24 }
  0xda   : > { %450 = vst [vmem:[%s676_s29 + $0xf8] sm:$0xff] %v418_v25 }
  0xdb PF: > { %s13_s12 = sadd.s32 1, %s566_s12  }
  0xdc   : > { %p10_p4 = scmp.ge.s32.totalorder %s13_s12, 6  }
  0xde   :  { %12 = sbr.rel (!%p10_p4) target bundleno = 1 (0x1), region = 62 }

// kernel: khmer_ocr_forward.7
= control target key start
LH: loop header
LB: loop body
LE: loop exit
PB: predicated region body
PF: predicated region fallthrough
CT: control target
= control target key end

     0   :  { %s821_s12 = smov 0   ;;  %s997_s0 = inlined_call_operand.vmem [shape: f32[256,288], index: 0, kind: input, shape index: {}]   ;;  %s998_s1 = inlined_call_operand.vmem [shape: bf16[288,128], index: 1, kind: input, shape index: {}]   ;;  %s999_s2 = inlined_call_operand.vmem [shape: f32[1,128], index: 2, kind: input, shape index: {}]   ;;  %s1000_s3 = inlined_call_operand.vmem [shape: f32[256,128], index: 3, kind: output, shape index: {}]  }
   0x1 LB: > { %s658_s13 = sadd.s32 4294967295, %s799_s12   ;;  %p662_p0 = scmp.ge.s32.totalorder %s799_s12, 1  ;;  %s799_s12 = sphi %s821_s12, %s13_s12  }
   0x2   : > { %p139_p1 = scmp.lt.s32.totalorder %s799_s12, 3 }
   0x4   : > { %p140_p2 = pnand %p662_p0, %p139_p1 }
   0x5   : > { %s663_s20 = sshll.u32 (!%p140_p2), %s658_s13, 4 }
   0x6   : > { %143 = sbr.rel (%p140_p2) target bundleno = 278 (0x116), region = 32  ;;  %p165_p3 = scmp.lt.s32.totalorder (!%p140_p2), %s663_s20, 31 }
   0xb   : > { %v756_v0 = vld [vmem:[%s998_s1 + $0x38] sm:$0xff]  ;;  %v766_v1 = vld [vmem:[%s998_s1 + $0x88] sm:$0xff]  ;;  %v755_v3 = vld [vmem:[%s998_s1 + $0x30] sm:$0xff]  ;;  %s1002_s20 = smov (!%p165_p3, %s663_s20), 31  ;;  %vm398_vm0 = vcmask 261120  }
   0xc   : > { %v838_v2 = vld [vmem:[%s998_s1 + $0x78] sm:$0xff]  ;;  %423 = vmatpush.bf16.msra.mxu0 %v756_v0  ;;  %767 = vmatpush.bf16.msra.mxu3 %v756_v0  ;;  %v765_v4 = vld [vmem:[%s998_s1 + $0x80] sm:$0xff]  ;;  %v763_v5 = vld [vmem:[%s998_s1 + $0x70] sm:$0xff]  ;;  %s783_s27 = smul.u32 24, %s1002_s20  ;;  %s666_s6 = sshll.u32 %s1002_s20, 3 }
   0xd   : > { %527 = vmatpush.bf16.msra.mxu2 %v766_v1  ;;  %472 = vmatpush.bf16.msra.mxu1 %v838_v2  ;;  %v754_v6 = vld [vmem:[%s998_s1 + $0x28] sm:$0xff]  ;;  %v753_v11 = vld [vmem:[%s998_s1 + $0x20] sm:$0xff]  ;;  %v752_v13 = vld [vmem:[%s998_s1 + $0x18] sm:$0xff]  ;;  %s961_s8 = scalar_lea.vmem %s1000_s3, %s666_s6 }
   0xe   : > { %s859_s5 = scalar_lea.vmem %s997_s0, %s783_s27  ;;  %v762_v7 = vld [vmem:[%s998_s1 + $0x68] sm:$0xff]  ;;  %v761_v12 = vld [vmem:[%s998_s1 + $0x60] sm:$0xff]  ;;  %v760_v14 = vld [vmem:[%s998_s1 + $0x58] sm:$0xff] }
   0xf   : > { %v180_v8 = vld [vmem:[%s859_s5 + $0x10] sm:$0xff]  ;;  %v183_v9 = vld [vmem:[%s859_s5 + $0x28] sm:$0xff]  ;;  %v186_v17 = vld [vmem:[%s859_s5 + $0x40] sm:$0xff] }
  0x10   : > { %424 = vmatpush.bf16.msra.mxu0 %v755_v3  ;;  %768 = vmatpush.bf16.msra.mxu3 %v755_v3  ;;  %v228_v10 = vpack.c.bf16 %v183_v9, %v180_v8  ;;  %v751_v15 = vld [vmem:[%s998_s1 + $0x10] sm:$0xff]  ;;  %v189_v18 = vld [vmem:[%s859_s5 + $0x58] sm:$0xff]  ;;  %v750_v19 = vld [vmem:[%s998_s1 + $0x8] sm:$0xff] }
  0x11   : > { %528 = vmatpush.bf16.msra.mxu2 %v765_v4  ;;  %473 = vmatpush.bf16.msra.mxu1 %v763_v5  ;;  %v759_v16 = vld [vmem:[%s998_s1 + $0x50] sm:$0xff]  ;;  %v231_v20 = vpack.c.bf16 %v189_v18, %v186_v17  ;;  %v758_v21 = vld [vmem:[%s998_s1 + $0x48] sm:$0xff]  ;;  %v749_v22 = vld [vmem:[%s998_s1] sm:$0xff] }
  0x12   : > { %v178_v23 = vld [vmem:[%s859_s5] sm:$0xff]  ;;  %v181_v24 = vld [vmem:[%s859_s5 + $0x18] sm:$0xff]  ;;  %v179_v28 = vld [vmem:[%s859_s5 + $0x8] sm:$0xff] }
  0x13   : > { %v214_v25 = vld [vmem:[%s859_s5 + $0x120] sm:$0xff]  ;;  %v217_v26 = vld [vmem:[%s859_s5 + $0x138] sm:$0xff]  ;;  %v226_v30 = vpack.c.bf16 %v181_v24, %v178_v23  ;;  %v192_v33 = vld [vmem:[%s859_s5 + $0x70] sm:$0xff] }
  0x14   : > { %425 = vmatpush.bf16.msra.mxu0 %v754_v6  ;;  %769 = vmatpush.bf16.msra.mxu3 %v754_v6  ;;  %v757_v27 = vld [vmem:[%s998_s1 + $0x40] sm:$0xff]  ;;  %v244_v31 = vpack.c.bf16 %v217_v26, %v214_v25  ;;  %v195_v34 = vld [vmem:[%s859_s5 + $0x88] sm:$0xff]  ;;  %v184_v36 = vld [vmem:[%s859_s5 + $0x30] sm:$0xff] }
  0x15   : > { %739 = vmatmul.msk.bf16.vlgmr.msra.gmra.mxu2 %vm398_vm0, %v228_v10  ;;  %474 = vmatpush.bf16.msra.mxu1 %v762_v7  ;;  %v182_v29 = vld [vmem:[%s859_s5 + $0x20] sm:$0xff]  ;;  %v234_v35 = vpack.c.bf16 %v195_v34, %v192_v33  ;;  %v187_v37 = vld [vmem:[%s859_s5 + $0x48] sm:$0xff]  ;;  %v220_v38 = vld [vmem:[%s859_s5 + $0x150] sm:$0xff] }
  0x16   : > { %v227_v32 = vpack.c.bf16 %v182_v29, %v179_v28  ;;  %v223_v39 = vld [vmem:[%s859_s5 + $0x168] sm:$0xff]  ;;  %v185_v40 = vld [vmem:[%s859_s5 + $0x38] sm:$0xff]  ;;  %v188_v41 = vld [vmem:[%s859_s5 + $0x50] sm:$0xff]  ;;  %v229_v42 = vpack.c.bf16 %v187_v37, %v184_v36 }
  0x17   : > { %v247_v43 = vpack.c.bf16 %v223_v39, %v220_v38  ;;  %v230_v44 = vpack.c.bf16 %v188_v41, %v185_v40  ;;  %v198_v45 = vld [vmem:[%s859_s5 + $0xa0] sm:$0xff]  ;;  %v201_v46 = vld [vmem:[%s859_s5 + $0xb8] sm:$0xff]  ;;  %v215_v50 = vld [vmem:[%s859_s5 + $0x128] sm:$0xff] }
  0x18   : > { %426 = vmatpush.bf16.msra.mxu0 %v753_v11  ;;  %770 = vmatpush.bf16.msra.mxu3 %v753_v11  ;;  %v237_v47 = vpack.c.bf16 %v201_v46, %v198_v45  ;;  %v190_v48 = vld [vmem:[%s859_s5 + $0x60] sm:$0xff]  ;;  %v193_v49 = vld [vmem:[%s859_s5 + $0x78] sm:$0xff]  ;;  %v191_v52 = vld [vmem:[%s859_s5 + $0x68] sm:$0xff] }
  0x19   : > { %475 = vmatpush.bf16.msra.mxu1 %v761_v12  ;;  %v218_v51 = vld [vmem:[%s859_s5 + $0x140] sm:$0xff]  ;;  %v232_v54 = vpack.c.bf16 %v193_v49, %v190_v48  ;;  %v204_v57 = vld [vmem:[%s859_s5 + $0xd0] sm:$0xff]  ;;  %v207_v58 = vld [vmem:[%s859_s5 + $0xe8] sm:$0xff] }
  0x1a   : > { %v194_v53 = vld [vmem:[%s859_s5 + $0x80] sm:$0xff]  ;;  %v245_v55 = vpack.c.bf16 %v218_v51, %v215_v50  ;;  %v240_v59 = vpack.c.bf16 %v207_v58, %v204_v57  ;;  %v196_v60 = vld [vmem:[%s859_s5 + $0x90] sm:$0xff]  ;;  %v199_v61 = vld [vmem:[%s859_s5 + $0xa8] sm:$0xff] }
  0x1b   : > { %v233_v56 = vpack.c.bf16 %v194_v53, %v191_v52  ;;  %v221_v62 = vld [vmem:[%s859_s5 + $0x158] sm:$0xff]  ;;  %v224_v63 = vld [vmem:[%s859_s5 + $0x170] sm:$0xff]  ;;  %v202_v8 = vld [vmem:[%s859_s5 + $0xc0] sm:$0xff] }
  0x1c   : > { %427 = vmatpush.bf16.msra.mxu0 %v752_v13  ;;  %771 = vmatpush.bf16.msra.mxu3 %v752_v13  ;;  %v197_v0 = vld [vmem:[%s859_s5 + $0x98] sm:$0xff]  ;;  %v200_v1 = vld [vmem:[%s859_s5 + $0xb0] sm:$0xff]  ;;  %v248_v3 = vpack.c.bf16 %v224_v63, %v221_v62  ;;  %v203_v10 = vld [vmem:[%s859_s5 + $0xc8] sm:$0xff] }
  0x1d   : > { %476 = vmatpush.bf16.msra.mxu1 %v760_v14  ;;  %v236_v4 = vpack.c.bf16 %v200_v1, %v197_v0  ;;  %v213_v6 = vld [vmem:[%s859_s5 + $0x118] sm:$0xff]  ;;  %v206_v11 = vld [vmem:[%s859_s5 + $0xe0] sm:$0xff]  ;;  %v208_v17 = vld [vmem:[%s859_s5 + $0xf0] sm:$0xff] }
  0x1e   : > { %v205_v9 = vld [vmem:[%s859_s5 + $0xd8] sm:$0xff]  ;;  %v239_v13 = vpack.c.bf16 %v206_v11, %v203_v10  ;;  %v211_v18 = vld [vmem:[%s859_s5 + $0x108] sm:$0xff]  ;;  %v222_v23 = vld [vmem:[%s859_s5 + $0x160] sm:$0xff] }
  0x1f   : > { %v225_v24 = vld [vmem:[%s859_s5 + $0x178] sm:$0xff]  ;;  %v954_v28 = vld [vmem:[%s999_s2] ss:$0 sm:$0xff] }
  0x20   : > { %428 = vmatpush.bf16.msra.mxu0 %v751_v15  ;;  %772 = vmatpush.bf16.msra.mxu3 %v751_v15  ;;  %v219_v15 = vld [vmem:[%s859_s5 + $0x148] sm:$0xff]  ;;  %v249_v25 = vpack.c.bf16 %v225_v24, %v222_v23 }
  0x21   : > { %477 = vmatpush.bf16.msra.mxu1 %v759_v16 }
  0x24   : > { %429 = vmatpush.bf16.msra.mxu0 %v750_v19  ;;  %773 = vmatpush.bf16.msra.mxu3 %v750_v19  ;;  %v209_v19 = vld [vmem:[%s859_s5 + $0xf8] sm:$0xff] }
  0x25   : > { %740 = vmatmul.msk.bf16.gmra.mxu2 %vm398_vm0, %v231_v20  ;;  %478 = vmatpush.bf16.msra.mxu1 %v758_v21  ;;  %v212_v20 = vld [vmem:[%s859_s5 + $0x110] sm:$0xff] }
  0x28   : > { %430 = vmatpush.bf16.msra.mxu0 %v749_v22  ;;  %774 = vmatpush.bf16.msra.mxu3 %v749_v22  ;;  %v242_v22 = vpack.c.bf16 %v212_v20, %v209_v19 }
  0x29   : > { %479 = vmatpush.bf16.msra.mxu1 %v757_v27 }
  0x2b   : > { %431 = vmatmul.bf16.vlgmr.msra.gmra.mxu0 %v226_v30  ;;  %461 = vmatmul.bf16.vlgmr.msra.gmra.mxu3 %v244_v31 }
  0x2c   : > { %775 = vmatpush.bf16.msrb.mxu3 %v838_v2  ;;  %480 = vmatmul.bf16.vlgmr.msra.gmra.mxu1 %v227_v32  ;;  %v235_v2 = vpack.c.bf16 %v199_v61, %v196_v60 }
  0x30   : > { %776 = vmatpush.bf16.msrb.mxu3 %v763_v5  ;;  %v210_v5 = vld [vmem:[%s859_s5 + $0x100] sm:$0xff] }
  0x34   : > { %777 = vmatpush.bf16.msrb.mxu3 %v762_v7  ;;  %v243_v7 = vpack.c.bf16 %v213_v6, %v210_v5 }
  0x35   : > { %741 = vmatmul.msk.bf16.gmra.mxu2 %vm398_vm0, %v234_v35 }
  0x38   : > { %778 = vmatpush.bf16.msrb.mxu3 %v761_v12  ;;  %v238_v12 = vpack.c.bf16 %v205_v9, %v202_v8 }
  0x3b   : > { %436 = vmatmul.bf16.gmra.mxu0 %v229_v42  ;;  %466 = vmatmul.bf16.gmra.mxu3 %v247_v43 }
  0x3c   : > { %779 = vmatpush.bf16.msrb.mxu3 %v760_v14  ;;  %485 = vmatmul.bf16.gmra.mxu1 %v230_v44  ;;  %v216_v14 = vld [vmem:[%s859_s5 + $0x130] sm:$0xff] }
  0x40   : > { %780 = vmatpush.bf16.msrb.mxu3 %v759_v16  ;;  %v246_v16 = vpack.c.bf16 %v219_v15, %v216_v14 }
  0x44   : > { %781 = vmatpush.bf16.msrb.mxu3 %v758_v21  ;;  %v241_v21 = vpack.c.bf16 %v211_v18, %v208_v17 }
  0x45   : > { %742 = vmatmul.msk.bf16.gmra.mxu2 %vm398_vm0, %v237_v47 }
  0x48   : > { %782 = vmatpush.bf16.msrb.mxu3 %v757_v27 }
  0x4b   : > { %441 = vmatmul.bf16.gmra.mxu0 %v232_v54  ;;  %510 = vmatmul.bf16.vlgmr.msrb.gmra.mxu3 %v245_v55 }
  0x4c   : > { %490 = vmatmul.bf16.gmra.mxu1 %v233_v56 }
  0x55   : > { %743 = vmatmul.msk.bf16.gmra.mxu2 %vm398_vm0, %v240_v59 }
  0x5b   : > { %446 = vmatmul.bf16.gmra.mxu0 %v235_v2  ;;  %515 = vmatmul.bf16.gmra.mxu3 %v248_v3 }
  0x5c   : > { %495 = vmatmul.bf16.gmra.mxu1 %v236_v4 }
  0x65   : > { %744 = vmatmul.msk.bf16.gmra.mxu2 %vm398_vm0, %v243_v7 }
  0x6b   : > { %451 = vmatmul.bf16.gmra.mxu0 %v238_v12 }
  0x6c   : > { %500 = vmatmul.bf16.gmra.mxu1 %v239_v13 }
  0x75   : > { %745 = vmatmul.msk.bf16.gmra.mxu2 %vm398_vm0, %v246_v16 }
  0x7b   : > { %456 = vmatmul.bf16.gmra.mxu0 %v241_v21 }
  0x7c   : > { %505 = vmatmul.bf16.gmra.mxu1 %v242_v22 }
  0x85   : > { %746 = vmatmul.msk.bf16.gmra.mxu2 %vm398_vm0, %v249_v25 }
  0x98   : > { %v530_v26 = vpop.f32.mrf.mxu2 }
  0xa0   : > { %v532_v27 = vpop.f32.mrf.mxu2 }
  0xa8   : > { %v535_v29 = vpop.f32.mrf.mxu2  ;;  %v432_v30 = vpop.f32.mrf.mxu0 }
  0xa9   : > { %v433_v31 = vadd.f32 %v954_v28, %v432_v30  ;;  %v481_v32 = vpop.f32.mrf.mxu1 }
  0xab   : > { %v482_v33 = vadd.f32 %v481_v32, %v433_v31 }
  0xad   : > { %v531_v34 = vadd.f32 %v530_v26, %v482_v33 }
  0xae   : > { %v462_v55 = vpop.f32.mrf.mxu3 }
  0xaf   : > { %v570_v35 = vmax.f32 %v531_v34, 0.0 }
  0xb0   : > { %v537_v36 = vpop.f32.mrf.mxu2  ;;  %v434_v37 = vpop.f32.mrf.mxu0 }
  0xb1   : > { %586 = vst [vmem:[%s961_s8] sm:$0xff] %v570_v35  ;;  %v435_v38 = vadd.f32 %v954_v28, %v434_v37  ;;  %v483_v39 = vpop.f32.mrf.mxu1 }
  0xb3   : > { %v484_v40 = vadd.f32 %v483_v39, %v435_v38  ;;  %v463_v38 = vadd.f32 %v954_v28, %v462_v55 }
  0xb5   : > { %v533_v41 = vadd.f32 %v532_v27, %v484_v40 }
  0xb6   : > { %v464_v0 = vpop.f32.mrf.mxu3 }
  0xb7   : > { %v571_v42 = vmax.f32 %v533_v41, 0.0 }
  0xb8   : > { %v540_v43 = vpop.f32.mrf.mxu2  ;;  %v437_v44 = vpop.f32.mrf.mxu0 }
  0xb9   : > { %587 = vst [vmem:[%s961_s8 + $0x8] sm:$0xff] %v571_v42  ;;  %v438_v45 = vadd.f32 %v954_v28, %v437_v44  ;;  %v486_v46 = vpop.f32.mrf.mxu1 }
  0xbb   : > { %v487_v47 = vadd.f32 %v486_v46, %v438_v45 }
  0xbd   : > { %v536_v48 = vadd.f32 %v535_v29, %v487_v47 }
  0xbe   : > { %v467_v11 = vpop.f32.mrf.mxu3 }
  0xbf   : > { %v572_v49 = vmax.f32 %v536_v48, 0.0 }
  0xc0   : > { %v542_v50 = vpop.f32.mrf.mxu2  ;;  %v439_v51 = vpop.f32.mrf.mxu0 }
  0xc1   : > { %588 = vst [vmem:[%s961_s8 + $0x10] sm:$0xff] %v572_v49  ;;  %v440_v52 = vadd.f32 %v954_v28, %v439_v51  ;;  %v488_v53 = vpop.f32.mrf.mxu1  ;;  %v465_v49 = vadd.f32 %v954_v28, %v464_v0 }
  0xc3   : > { %v489_v54 = vadd.f32 %v488_v53, %v440_v52 }
  0xc5   : > { %v538_v56 = vadd.f32 %v537_v36, %v489_v54 }
  0xc6   : > { %v469_v21 = vpop.f32.mrf.mxu3 }
  0xc7   : > { %v573_v57 = vmax.f32 %v538_v56, 0.0 }
  0xc8   : > { %v545_v58 = vpop.f32.mrf.mxu2  ;;  %v442_v59 = vpop.f32.mrf.mxu0 }
  0xc9   : > { %589 = vst [vmem:[%s961_s8 + $0x18] sm:$0xff] %v573_v57  ;;  %v443_v60 = vadd.f32 %v954_v28, %v442_v59  ;;  %v491_v61 = vpop.f32.mrf.mxu1 }
  0xcb   : > { %v492_v62 = vadd.f32 %v491_v61, %v443_v60  ;;  %v468_v61 = vadd.f32 %v954_v28, %v467_v11 }
  0xcd   : > { %v541_v63 = vadd.f32 %v540_v43, %v492_v62 }
  0xce   : > { %v511_v31 = vpop.f32.mrf.mxu3 }
  0xcf   : > { %v574_v1 = vmax.f32 %v541_v63, 0.0  ;;  %v512_v41 = vadd.f32 %v511_v31, %v463_v38 }
  0xd0   : > { %v547_v2 = vpop.f32.mrf.mxu2  ;;  %v444_v3 = vpop.f32.mrf.mxu0 }
  0xd1   : > { %590 = vst [vmem:[%s961_s8 + $0x20] sm:$0xff] %v574_v1  ;;  %v445_v4 = vadd.f32 %v954_v28, %v444_v3  ;;  %v493_v5 = vpop.f32.mrf.mxu1 }
  0xd3   : > { %v494_v6 = vadd.f32 %v493_v5, %v445_v4  ;;  %v470_v5 = vadd.f32 %v954_v28, %v469_v21 }
  0xd5   : > { %v543_v7 = vadd.f32 %v542_v50, %v494_v6 }
  0xd6   : > { %v513_v42 = vpop.f32.mrf.mxu3 }
  0xd7   : > { %v575_v8 = vmax.f32 %v543_v7, 0.0  ;;  %v514_v53 = vadd.f32 %v513_v42, %v465_v49 }
  0xd8   : > { %v550_v9 = vpop.f32.mrf.mxu2  ;;  %v447_v10 = vpop.f32.mrf.mxu0 }
  0xd9   : > { %591 = vst [vmem:[%s961_s8 + $0x28] sm:$0xff] %v575_v8  ;;  %v448_v12 = vadd.f32 %v954_v28, %v447_v10  ;;  %v496_v13 = vpop.f32.mrf.mxu1 }
  0xdb   : > { %v497_v14 = vadd.f32 %v496_v13, %v448_v12 }
  0xdd   : > { %v546_v15 = vadd.f32 %v545_v58, %v497_v14 }
  0xde   : > { %v516_v60 = vpop.f32.mrf.mxu3 }
  0xdf   : > { %v576_v16 = vmax.f32 %v546_v15, 0.0  ;;  %v517_v1 = vadd.f32 %v516_v60, %v468_v61 }
  0xe0   : > { %v552_v17 = vpop.f32.mrf.mxu2  ;;  %v449_v18 = vpop.f32.mrf.mxu0 }
  0xe1   : > { %592 = vst [vmem:[%s961_s8 + $0x30] sm:$0xff] %v576_v16  ;;  %v450_v19 = vadd.f32 %v954_v28, %v449_v18  ;;  %v498_v20 = vpop.f32.mrf.mxu1 }
  0xe3   : > { %v499_v22 = vadd.f32 %v498_v20, %v450_v19 }
  0xe5   : > { %v548_v23 = vadd.f32 %v547_v2, %v499_v22 }
  0xe6   : > { %v518_v7 = vpop.f32.mrf.mxu3 }
  0xe7   : > { %v577_v24 = vmax.f32 %v548_v23, 0.0  ;;  %v519_v8 = vadd.f32 %v518_v7, %v470_v5 }
  0xe8   : > { %v555_v25 = vpop.f32.mrf.mxu2  ;;  %v452_v26 = vpop.f32.mrf.mxu0 }
  0xe9   : > { %593 = vst [vmem:[%s961_s8 + $0x38] sm:$0xff] %v577_v24  ;;  %v453_v27 = vadd.f32 %v954_v28, %v452_v26  ;;  %v501_v29 = vpop.f32.mrf.mxu1 }
  0xeb   : > { %v502_v30 = vadd.f32 %v501_v29, %v453_v27 }
  0xed   : > { %v551_v32 = vadd.f32 %v550_v9, %v502_v30 }
  0xef   : > { %v578_v33 = vmax.f32 %v551_v32, 0.0 }
  0xf0   : > { %v557_v34 = vpop.f32.mrf.mxu2  ;;  %v454_v35 = vpop.f32.mrf.mxu0 }
  0xf1   : > { %594 = vst [vmem:[%s961_s8 + $0x40] sm:$0xff] %v578_v33  ;;  %v455_v36 = vadd.f32 %v954_v28, %v454_v35  ;;  %v503_v37 = vpop.f32.mrf.mxu1 }
  0xf3   : > { %v504_v39 = vadd.f32 %v503_v37, %v455_v36 }
  0xf5   : > { %v553_v40 = vadd.f32 %v552_v17, %v504_v39 }
  0xf7   : > { %v579_v43 = vmax.f32 %v553_v40, 0.0 }
  0xf8   : > { %v560_v44 = vpop.f32.mrf.mxu2  ;;  %v457_v45 = vpop.f32.mrf.mxu0 }
  0xf9   : > { %595 = vst [vmem:[%s961_s8 + $0x48] sm:$0xff] %v579_v43  ;;  %v561_v46 = vadd.f32 %v560_v44, %v512_v41  ;;  %v458_v47 = vadd.f32 %v954_v28, %v457_v45  ;;  %v506_v48 = vpop.f32.mrf.mxu1 }
  0xfb   : > { %v582_v50 = vmax.f32 %v561_v46, 0.0  ;;  %v507_v51 = vadd.f32 %v506_v48, %v458_v47 }
  0xfd   : > { %598 = vst [vmem:[%s961_s8 + $0x60] sm:$0xff] %v582_v50  ;;  %v556_v52 = vadd.f32 %v555_v25, %v507_v51 }
  0xff   : > { %v580_v54 = vmax.f32 %v556_v52, 0.0 }
 0x100   : > { %v562_v55 = vpop.f32.mrf.mxu2  ;;  %v459_v56 = vpop.f32.mrf.mxu0 }
 0x101   : > { %596 = vst [vmem:[%s961_s8 + $0x50] sm:$0xff] %v580_v54  ;;  %v563_v57 = vadd.f32 %v562_v55, %v514_v53  ;;  %v460_v58 = vadd.f32 %v954_v28, %v459_v56  ;;  %v508_v59 = vpop.f32.mrf.mxu1 }
 0x103   : > { %v583_v62 = vmax.f32 %v563_v57, 0.0  ;;  %v509_v63 = vadd.f32 %v508_v59, %v460_v58 }
 0x105   : > { %599 = vst [vmem:[%s961_s8 + $0x68] sm:$0xff] %v583_v62  ;;  %v558_v0 = vadd.f32 %v557_v34, %v509_v63 }
 0x107   : > { %v581_v2 = vmax.f32 %v558_v0, 0.0 }
 0x108   : > { %v565_v3 = vpop.f32.mrf.mxu2 }
 0x109   : > { %597 = vst [vmem:[%s961_s8 + $0x58] sm:$0xff] %v581_v2  ;;  %v566_v4 = vadd.f32 %v565_v3, %v517_v1 }
 0x10b   : > { %v584_v6 = vmax.f32 %v566_v4, 0.0 }
 0x10d   : > { %600 = vst [vmem:[%s961_s8 + $0x70] sm:$0xff] %v584_v6 }
 0x110   : > { %v567_v9 = vpop.f32.mrf.mxu2 }
 0x111   : > { %v568_v10 = vadd.f32 %v567_v9, %v519_v8 }
 0x113   : > { %v585_v12 = vmax.f32 %v568_v10, 0.0 }
 0x115   : > { %601 = vst [vmem:[%s961_s8 + $0x78] sm:$0xff] %v585_v12 }
 0x116 PF: > { %s13_s12 = sadd.s32 1, %s799_s12  }
 0x117   : > { %p10_p4 = scmp.ge.s32.totalorder %s13_s12, 4  }
 0x119   :  { %12 = sbr.rel (!%p10_p4) target bundleno = 1 (0x1), region = 62 }

// kernel: khmer_ocr_forward.8
= control target key start
LH: loop header
LB: loop body
LE: loop exit
PB: predicated region body
PF: predicated region fallthrough
CT: control target
= control target key end

     0   :  { %s358_s1 = inlined_call_operand.vmem [shape: bf16[256,128], index: 1, kind: input, shape index: {}]   ;;  %s359_s2 = inlined_call_operand.vmem [shape: f32[1,128], index: 2, kind: input, shape index: {}]   ;;  %s360_s0 = inlined_call_operand.vmem [shape: f32[16,256], index: 0, kind: input, shape index: {}]   ;;  %s361_s3 = inlined_call_operand.vmem [shape: f32[16,128], index: 3, kind: output, shape index: {}]  }
   0x1   :  { %v259_v0 = vld [vmem:[%s358_s1 + $0x38] sm:$0xff]  ;;  %v258_v2 = vld [vmem:[%s358_s1 + $0x30] sm:$0xff]  ;;  %v257_v4 = vld [vmem:[%s358_s1 + $0x28] sm:$0xff] }
   0x2   :  { %v267_v1 = vld [vmem:[%s358_s1 + $0x78] sm:$0xff]  ;;  %152 = vmatpush.bf16.msra.mxu0 %v259_v0  ;;  %v266_v3 = vld [vmem:[%s358_s1 + $0x70] sm:$0xff]  ;;  %v265_v5 = vld [vmem:[%s358_s1 + $0x68] sm:$0xff] }
   0x3   :  { %166 = vmatpush.bf16.msra.mxu1 %v267_v1  ;;  %v256_v6 = vld [vmem:[%s358_s1 + $0x20] sm:$0xff]  ;;  %v255_v8 = vld [vmem:[%s358_s1 + $0x18] sm:$0xff]  ;;  %v254_v10 = vld [vmem:[%s358_s1 + $0x10] sm:$0xff] }
   0x4   :  { %v264_v7 = vld [vmem:[%s358_s1 + $0x60] sm:$0xff]  ;;  %v263_v9 = vld [vmem:[%s358_s1 + $0x58] sm:$0xff]  ;;  %v262_v11 = vld [vmem:[%s358_s1 + $0x50] sm:$0xff] }
   0x5   :  { %v253_v12 = vld [vmem:[%s358_s1 + $0x8] sm:$0xff]  ;;  %v252_v14 = vld [vmem:[%s358_s1] sm:$0xff]  ;;  %v16_v17 = vld [vmem:[%s360_s0 + $0x10] sm:$0xff] }
   0x6   :  { %153 = vmatpush.bf16.msra.mxu0 %v258_v2  ;;  %v261_v13 = vld [vmem:[%s358_s1 + $0x48] sm:$0xff]  ;;  %v260_v15 = vld [vmem:[%s358_s1 + $0x40] sm:$0xff]  ;;  %v17_v19 = vld [vmem:[%s360_s0 + $0x18] sm:$0xff] }
   0x7   :  { %167 = vmatpush.bf16.msra.mxu1 %v266_v3  ;;  %v14_v16 = vld [vmem:[%s360_s0] sm:$0xff]  ;;  %v15_v18 = vld [vmem:[%s360_s0 + $0x8] sm:$0xff] }
   0x8   :  { %v18_v20 = vpack.c.bf16 %v16_v17, %v14_v16  ;;  %v19_v21 = vpack.c.bf16 %v17_v19, %v15_v18  ;;  %v268_v22 = vld [vmem:[%s359_s2] ss:$0 sm:$0xff] }
   0xa   :  { %154 = vmatpush.bf16.msra.mxu0 %v257_v4 }
   0xb   :  { %168 = vmatpush.bf16.msra.mxu1 %v265_v5 }
   0xe   :  { %155 = vmatpush.bf16.msra.mxu0 %v256_v6 }
   0xf   :  { %169 = vmatpush.bf16.msra.mxu1 %v264_v7 }
  0x12   :  { %156 = vmatpush.bf16.msra.mxu0 %v255_v8 }
  0x13   :  { %170 = vmatpush.bf16.msra.mxu1 %v263_v9 }
  0x16   :  { %157 = vmatpush.bf16.msra.mxu0 %v254_v10 }
  0x17   :  { %171 = vmatpush.bf16.msra.mxu1 %v262_v11 }
  0x1a   :  { %158 = vmatpush.bf16.msra.mxu0 %v253_v12 }
  0x1b   :  { %172 = vmatpush.bf16.msra.mxu1 %v261_v13 }
  0x1e   :  { %159 = vmatpush.bf16.msra.mxu0 %v252_v14 }
  0x1f   :  { %173 = vmatpush.bf16.msra.mxu1 %v260_v15 }
  0x21   :  { %160 = vmatmul.bf16.vlgmr.msra.gmra.mxu0 %v18_v20 }
  0x22   :  { %174 = vmatmul.bf16.vlgmr.msra.gmra.mxu1 %v19_v21 }
  0x9e   :  { %v161_v23 = vpop.f32.mrf.mxu0 }
  0x9f   :  { %v175_v24 = vpop.f32.mrf.mxu1  ;;  %v162_v25 = vadd.f32 %v268_v22, %v161_v23 }
  0xa1   :  { %v176_v26 = vadd.f32 %v175_v24, %v162_v25 }
  0xa3   :  { %v180_v27 = vmax.f32 %v176_v26, 0.0 }
  0xa5   :  { %182 = vst [vmem:[%s361_s3] sm:$0xff] %v180_v27 }
  0xa6   :  { %v163_v28 = vpop.f32.mrf.mxu0 }
  0xa7   :  { %v164_v29 = vadd.f32 %v268_v22, %v163_v28  ;;  %v177_v30 = vpop.f32.mrf.mxu1 }
  0xa9   :  { %v178_v31 = vadd.f32 %v177_v30, %v164_v29 }
  0xab   :  { %v181_v32 = vmax.f32 %v178_v31, 0.0 }
  0xad   :  { %183 = vst [vmem:[%s361_s3 + $0x8] sm:$0xff] %v181_v32 }

// kernel: khmer_ocr_forward.9
= control target key start
LH: loop header
LB: loop body
LE: loop exit
PB: predicated region body
PF: predicated region fallthrough
CT: control target
= control target key end

     0   :  { %vm576_vm0 = vcmask 1048070   ;;  %vm573_vm1 = vcmask 517120   ;;  %vm581_vm2 = vcmask 523264   ;;  %vm702_vm3 = vcmask 1046020   ;;  %s2826_s1 = inlined_call_operand.vmem [shape: bf16[128,512], index: 1, kind: input, shape index: {}]   ;;  %s2827_s3 = inlined_call_operand.vmem [shape: bf16[128,512], index: 3, kind: input, shape index: {}]   ;;  %s2828_s0 = inlined_call_operand.vmem [shape: f32[16,128], index: 0, kind: input, shape index: {}]   ;;  %s2829_s2 = inlined_call_operand.vmem [shape: f32[1,512], index: 2, kind: input, shape index: {}]   ;;  %s2830_s4 = inlined_call_operand.vmem [shape: f32[8,2,128], index: 4, kind: output, shape index: {}]  }
   0x1   :  { %v1553_v0 = vld [vmem:[%s2826_s1 + $0xe0] sm:$0xf]  ;;  %v1739_v1 = vld [vmem:[%s2826_s1 + $0xec] sm:$0xf0]  ;;  %v1737_v2 = vld [vmem:[%s2826_s1 + $0xe4] sm:$0xf] }
   0x2   :  { %v1554_v3 = vor.u32 %v1739_v1, %v1553_v0  ;;  %v1555_v4 = vld [vmem:[%s2826_s1 + $0xf0] sm:$0xf0]  ;;  %v1561_v5 = vld [vmem:[%s2826_s1 + $0xe8] sm:$0xf]  ;;  %v1740_v6 = vld [vmem:[%s2826_s1 + $0xf4] sm:$0xf0] }
   0x3   :  { %v1558_v7 = vor.u32 %v1737_v2, %v1555_v4  ;;  %v1562_v8 = vor.u32 %v1740_v6, %v1561_v5  ;;  %v1537_v9 = vld [vmem:[%s2826_s1 + $0xc0] sm:$0xf]  ;;  %v1735_v10 = vld [vmem:[%s2826_s1 + $0xcc] sm:$0xf0]  ;;  %v1733_v11 = vld [vmem:[%s2826_s1 + $0xc4] sm:$0xf] }
   0x4   :  { %222 = vmatpush.bf16.msra.mxu0 %v1554_v3  ;;  %v1538_v12 = vor.u32 %v1735_v10, %v1537_v9  ;;  %v1539_v13 = vld [vmem:[%s2826_s1 + $0xd0] sm:$0xf0]  ;;  %v1545_v14 = vld [vmem:[%s2826_s1 + $0xc8] sm:$0xf]  ;;  %v1736_v15 = vld [vmem:[%s2826_s1 + $0xd4] sm:$0xf0] }
   0x5   :  { %236 = vmatpush.bf16.msra.mxu1 %v1558_v7  ;;  %250 = vmatpush.bf16.msra.mxu2 %v1562_v8  ;;  %v1542_v16 = vor.u32 %v1733_v11, %v1539_v13  ;;  %v1546_v17 = vor.u32 %v1736_v15, %v1545_v14  ;;  %v1738_v18 = vld [vmem:[%s2826_s1 + $0xec] sm:$0xf]  ;;  %v1563_v19 = vld [vmem:[%s2826_s1 + $0xf8] sm:$0xf0]  ;;  %v1521_v20 = vld [vmem:[%s2826_s1 + $0xa0] sm:$0xf] }
   0x6   :  { %v1566_v21 = vor.u32 %v1738_v18, %v1563_v19  ;;  %v1731_v22 = vld [vmem:[%s2826_s1 + $0xac] sm:$0xf0]  ;;  %v1729_v23 = vld [vmem:[%s2826_s1 + $0xa4] sm:$0xf]  ;;  %v1523_v24 = vld [vmem:[%s2826_s1 + $0xb0] sm:$0xf0] }
   0x7   :  { %v1529_v25 = vld [vmem:[%s2826_s1 + $0xa8] sm:$0xf]  ;;  %v1732_v26 = vld [vmem:[%s2826_s1 + $0xb4] sm:$0xf0]  ;;  %v1734_v27 = vld [vmem:[%s2826_s1 + $0xcc] sm:$0xf]  ;;  %v1522_v28 = vor.u32 %v1731_v22, %v1521_v20  ;;  %v1526_v32 = vor.u32 %v1729_v23, %v1523_v24 }
   0x8   :  { %223 = vmatpush.bf16.msra.mxu0 %v1538_v12  ;;  %264 = vmatpush.bf16.msra.mxu3 %v1566_v21  ;;  %v1547_v29 = vld [vmem:[%s2826_s1 + $0xd8] sm:$0xf0]  ;;  %v1505_v30 = vld [vmem:[%s2826_s1 + $0x80] sm:$0xf]  ;;  %v1727_v31 = vld [vmem:[%s2826_s1 + $0x8c] sm:$0xf0]  ;;  %v1530_v33 = vor.u32 %v1732_v26, %v1529_v25 }
   0x9   :  { %237 = vmatpush.bf16.msra.mxu1 %v1542_v16  ;;  %251 = vmatpush.bf16.msra.mxu2 %v1546_v17  ;;  %v1550_v34 = vor.u32 %v1734_v27, %v1547_v29  ;;  %v1725_v35 = vld [vmem:[%s2826_s1 + $0x84] sm:$0xf]  ;;  %v1507_v36 = vld [vmem:[%s2826_s1 + $0x90] sm:$0xf0]  ;;  %v1513_v37 = vld [vmem:[%s2826_s1 + $0x88] sm:$0xf]  ;;  %v1506_v41 = vor.u32 %v1727_v31, %v1505_v30 }
   0xa   :  { %v1728_v38 = vld [vmem:[%s2826_s1 + $0x94] sm:$0xf0]  ;;  %v1730_v39 = vld [vmem:[%s2826_s1 + $0xac] sm:$0xf]  ;;  %v1531_v40 = vld [vmem:[%s2826_s1 + $0xb8] sm:$0xf0]  ;;  %v1510_v45 = vor.u32 %v1725_v35, %v1507_v36 }
   0xb   :  { %v1534_v42 = vor.u32 %v1730_v39, %v1531_v40  ;;  %v1489_v43 = vld [vmem:[%s2826_s1 + $0x60] sm:$0xf]  ;;  %v1723_v44 = vld [vmem:[%s2826_s1 + $0x6c] sm:$0xf0]  ;;  %v1514_v46 = vor.u32 %v1728_v38, %v1513_v37  ;;  %v1721_v47 = vld [vmem:[%s2826_s1 + $0x64] sm:$0xf] }
   0xc   :  { %224 = vmatpush.bf16.msra.mxu0 %v1522_v28  ;;  %265 = vmatpush.bf16.msra.mxu3 %v1550_v34  ;;  %v1726_v48 = vld [vmem:[%s2826_s1 + $0x8c] sm:$0xf]  ;;  %v1515_v49 = vld [vmem:[%s2826_s1 + $0x98] sm:$0xf0]  ;;  %v1491_v50 = vld [vmem:[%s2826_s1 + $0x70] sm:$0xf0]  ;;  %v1490_v53 = vor.u32 %v1723_v44, %v1489_v43 }
   0xd   :  { %238 = vmatpush.bf16.msra.mxu1 %v1526_v32  ;;  %252 = vmatpush.bf16.msra.mxu2 %v1530_v33  ;;  %v1497_v51 = vld [vmem:[%s2826_s1 + $0x68] sm:$0xf]  ;;  %v1724_v52 = vld [vmem:[%s2826_s1 + $0x74] sm:$0xf0]  ;;  %v1518_v54 = vor.u32 %v1726_v48, %v1515_v49  ;;  %v1473_v55 = vld [vmem:[%s2826_s1 + $0x40] sm:$0xf]  ;;  %v1494_v57 = vor.u32 %v1721_v47, %v1491_v50 }
   0xe   :  { %v1719_v56 = vld [vmem:[%s2826_s1 + $0x4c] sm:$0xf0]  ;;  %v1498_v58 = vor.u32 %v1724_v52, %v1497_v51  ;;  %v1717_v59 = vld [vmem:[%s2826_s1 + $0x44] sm:$0xf]  ;;  %v1722_v60 = vld [vmem:[%s2826_s1 + $0x6c] sm:$0xf] }
   0xf   :  { %v1499_v61 = vld [vmem:[%s2826_s1 + $0x78] sm:$0xf0]  ;;  %v1475_v62 = vld [vmem:[%s2826_s1 + $0x50] sm:$0xf0]  ;;  %v1481_v63 = vld [vmem:[%s2826_s1 + $0x48] sm:$0xf]  ;;  %v1474_v1 = vor.u32 %v1719_v56, %v1473_v55 }
  0x10   :  { %225 = vmatpush.bf16.msra.mxu0 %v1506_v41  ;;  %266 = vmatpush.bf16.msra.mxu3 %v1534_v42  ;;  %v1720_v0 = vld [vmem:[%s2826_s1 + $0x54] sm:$0xf0]  ;;  %v1502_v2 = vor.u32 %v1722_v60, %v1499_v61  ;;  %v1457_v3 = vld [vmem:[%s2826_s1 + $0x20] sm:$0xf]  ;;  %v1715_v4 = vld [vmem:[%s2826_s1 + $0x2c] sm:$0xf0]  ;;  %v1478_v5 = vor.u32 %v1717_v59, %v1475_v62 }
  0x11   :  { %239 = vmatpush.bf16.msra.mxu1 %v1510_v45  ;;  %253 = vmatpush.bf16.msra.mxu2 %v1514_v46  ;;  %v1482_v6 = vor.u32 %v1720_v0, %v1481_v63  ;;  %v1713_v7 = vld [vmem:[%s2826_s1 + $0x24] sm:$0xf]  ;;  %v1718_v8 = vld [vmem:[%s2826_s1 + $0x4c] sm:$0xf]  ;;  %v1483_v9 = vld [vmem:[%s2826_s1 + $0x58] sm:$0xf0]  ;;  %v1458_v14 = vor.u32 %v1715_v4, %v1457_v3 }
  0x12   :  { %v1459_v10 = vld [vmem:[%s2826_s1 + $0x30] sm:$0xf0]  ;;  %v1465_v11 = vld [vmem:[%s2826_s1 + $0x28] sm:$0xf]  ;;  %v1716_v12 = vld [vmem:[%s2826_s1 + $0x34] sm:$0xf0]  ;;  %v1486_v15 = vor.u32 %v1718_v8, %v1483_v9 }
  0x13   :  { %v1441_v13 = vld [vmem:[%s2826_s1] sm:$0xf]  ;;  %v1711_v16 = vld [vmem:[%s2826_s1 + $0xc] sm:$0xf0]  ;;  %v1709_v17 = vld [vmem:[%s2826_s1 + $0x4] sm:$0xf]  ;;  %v1462_v19 = vor.u32 %v1713_v7, %v1459_v10  ;;  %v1466_v20 = vor.u32 %v1716_v12, %v1465_v11 }
  0x14   :  { %226 = vmatpush.bf16.msra.mxu0 %v1490_v53  ;;  %267 = vmatpush.bf16.msra.mxu3 %v1518_v54  ;;  %v1443_v18 = vld [vmem:[%s2826_s1 + $0x10] sm:$0xf0]  ;;  %v1449_v21 = vld [vmem:[%s2826_s1 + $0x8] sm:$0xf]  ;;  %v1714_v22 = vld [vmem:[%s2826_s1 + $0x2c] sm:$0xf]  ;;  %v1442_v30 = vor.u32 %v1711_v16, %v1441_v13 }
  0x15   :  { %240 = vmatpush.bf16.msra.mxu1 %v1494_v57  ;;  %254 = vmatpush.bf16.msra.mxu2 %v1498_v58  ;;  %v1467_v23 = vld [vmem:[%s2826_s1 + $0x38] sm:$0xf0]  ;;  %v1712_v24 = vld [vmem:[%s2826_s1 + $0x14] sm:$0xf0]  ;;  %v1681_v25 = vld [vmem:[%s2827_s3 + $0xe0] sm:$0xf]  ;;  %v1446_v35 = vor.u32 %v1709_v17, %v1443_v18 }
  0x16   :  { %v1771_v26 = vld [vmem:[%s2827_s3 + $0xec] sm:$0xf0]  ;;  %v1769_v27 = vld [vmem:[%s2827_s3 + $0xe4] sm:$0xf]  ;;  %v1683_v28 = vld [vmem:[%s2827_s3 + $0xf0] sm:$0xf0]  ;;  %v1470_v32 = vor.u32 %v1714_v22, %v1467_v23  ;;  %v1450_v36 = vor.u32 %v1712_v24, %v1449_v21 }
  0x17   :  { %v1689_v29 = vld [vmem:[%s2827_s3 + $0xe8] sm:$0xf]  ;;  %v1772_v31 = vld [vmem:[%s2827_s3 + $0xf4] sm:$0xf0]  ;;  %v17_v33 = vld [vmem:[%s2828_s0] sm:$0xff]  ;;  %v2146_v39 = vor.u32 %v1771_v26, %v1681_v25  ;;  %v2148_v40 = vor.u32 %v1769_v27, %v1683_v28  ;;  %vm699_vm4 = vcmask 519170  }
  0x18   :  { %227 = vmatpush.bf16.msra.mxu0 %v1474_v1  ;;  %268 = vmatpush.bf16.msra.mxu3 %v1502_v2  ;;  %v18_v34 = vld [vmem:[%s2828_s0 + $0x8] sm:$0xff]  ;;  %v1451_v38 = vld [vmem:[%s2826_s1 + $0x18] sm:$0xf0]  ;;  %v1665_v41 = vld [vmem:[%s2827_s3 + $0xc0] sm:$0xf]  ;;  %v2159_v44 = vor.u32 %v1772_v31, %v1689_v29  ;;  %vm830_vm5 = vcmask 1043970  }
  0x19   :  { %241 = vmatpush.bf16.msra.mxu1 %v1478_v5  ;;  %255 = vmatpush.bf16.msra.mxu2 %v1482_v6  ;;  %v1710_v37 = vld [vmem:[%s2826_s1 + $0xc] sm:$0xf]  ;;  %v1691_v43 = vld [vmem:[%s2827_s3 + $0xf8] sm:$0xf0]  ;;  %v1767_v45 = vld [vmem:[%s2827_s3 + $0xcc] sm:$0xf0]  ;;  %v19_v48 = vpack.c.bf16 %v18_v34, %v17_v33 }
  0x1a   :  { %v1770_v42 = vld [vmem:[%s2827_s3 + $0xec] sm:$0xf]  ;;  %v1765_v46 = vld [vmem:[%s2827_s3 + $0xc4] sm:$0xf]  ;;  %v1667_v47 = vld [vmem:[%s2827_s3 + $0xd0] sm:$0xf0]  ;;  %v1454_v51 = vor.u32 %v1710_v37, %v1451_v38  ;;  %v2180_v53 = vor.u32 %v1767_v45, %v1665_v41 }
  0x1b   :  { %v1673_v49 = vld [vmem:[%s2827_s3 + $0xc8] sm:$0xf]  ;;  %v1768_v50 = vld [vmem:[%s2827_s3 + $0xd4] sm:$0xf0]  ;;  %v2176_v52 = vor.u32 %v1770_v42, %v1691_v43  ;;  %v2182_v54 = vor.u32 %v1765_v46, %v1667_v47  ;;  %v1649_v55 = vld [vmem:[%s2827_s3 + $0xa0] sm:$0xf] }
  0x1c   :  { %228 = vmatpush.bf16.msra.mxu0 %v1458_v14  ;;  %269 = vmatpush.bf16.msra.mxu3 %v1486_v15  ;;  %v1766_v56 = vld [vmem:[%s2827_s3 + $0xcc] sm:$0xf]  ;;  %v1675_v57 = vld [vmem:[%s2827_s3 + $0xd8] sm:$0xf0]  ;;  %v2194_v58 = vor.u32 %v1768_v50, %v1673_v49  ;;  %v1763_v59 = vld [vmem:[%s2827_s3 + $0xac] sm:$0xf0] }
  0x1d   :  { %242 = vmatpush.bf16.msra.mxu1 %v1462_v19  ;;  %256 = vmatpush.bf16.msra.mxu2 %v1466_v20  ;;  %v1761_v60 = vld [vmem:[%s2827_s3 + $0xa4] sm:$0xf]  ;;  %v1651_v61 = vld [vmem:[%s2827_s3 + $0xb0] sm:$0xf0]  ;;  %v1657_v62 = vld [vmem:[%s2827_s3 + $0xa8] sm:$0xf]  ;;  %v2212_v0 = vor.u32 %v1766_v56, %v1675_v57  ;;  %v2216_v1 = vor.u32 %v1763_v59, %v1649_v55 }
  0x1e   :  { %v1764_v63 = vld [vmem:[%s2827_s3 + $0xb4] sm:$0xf0]  ;;  %v2218_v2 = vor.u32 %v1761_v60, %v1651_v61  ;;  %v1633_v3 = vld [vmem:[%s2827_s3 + $0x80] sm:$0xf]  ;;  %v1762_v4 = vld [vmem:[%s2827_s3 + $0xac] sm:$0xf] }
  0x1f   :  { %v1659_v5 = vld [vmem:[%s2827_s3 + $0xb8] sm:$0xf0]  ;;  %v2230_v6 = vor.u32 %v1764_v63, %v1657_v62  ;;  %v1759_v7 = vld [vmem:[%s2827_s3 + $0x8c] sm:$0xf0]  ;;  %v1757_v8 = vld [vmem:[%s2827_s3 + $0x84] sm:$0xf] }
  0x20   :  { %229 = vmatpush.bf16.msra.mxu0 %v1442_v30  ;;  %270 = vmatpush.bf16.msra.mxu3 %v1470_v32  ;;  %v1635_v9 = vld [vmem:[%s2827_s3 + $0x90] sm:$0xf0]  ;;  %v1641_v10 = vld [vmem:[%s2827_s3 + $0x88] sm:$0xf]  ;;  %v1760_v11 = vld [vmem:[%s2827_s3 + $0x94] sm:$0xf0]  ;;  %v2248_v12 = vor.u32 %v1762_v4, %v1659_v5  ;;  %v2252_v13 = vor.u32 %v1759_v7, %v1633_v3 }
  0x21   :  { %243 = vmatpush.bf16.msra.mxu1 %v1446_v35  ;;  %257 = vmatpush.bf16.msra.mxu2 %v1450_v36  ;;  %v2254_v14 = vor.u32 %v1757_v8, %v1635_v9  ;;  %v1617_v15 = vld [vmem:[%s2827_s3 + $0x60] sm:$0xf]  ;;  %v1758_v16 = vld [vmem:[%s2827_s3 + $0x8c] sm:$0xf]  ;;  %v1643_v17 = vld [vmem:[%s2827_s3 + $0x98] sm:$0xf0]  ;;  %v2266_v18 = vor.u32 %v1760_v11, %v1641_v10 }
  0x22   :  { %v1755_v19 = vld [vmem:[%s2827_s3 + $0x6c] sm:$0xf0]  ;;  %v1753_v20 = vld [vmem:[%s2827_s3 + $0x64] sm:$0xf]  ;;  %v1619_v21 = vld [vmem:[%s2827_s3 + $0x70] sm:$0xf0]  ;;  %v2284_v24 = vor.u32 %v1758_v16, %v1643_v17 }
  0x23   :  { %230 = vmatmul.bf16.vlgmr.msra.gmra.mxu0 %v19_v48  ;;  %v1625_v22 = vld [vmem:[%s2827_s3 + $0x68] sm:$0xf]  ;;  %v1756_v23 = vld [vmem:[%s2827_s3 + $0x74] sm:$0xf0]  ;;  %v2288_v25 = vor.u32 %v1755_v19, %v1617_v15  ;;  %v2290_v26 = vor.u32 %v1753_v20, %v1619_v21  ;;  %v1601_v27 = vld [vmem:[%s2827_s3 + $0x40] sm:$0xf] }
  0x24   :  { %471 = vmatpush.bf16.msrb.mxu0 %v2146_v39  ;;  %271 = vmatpush.bf16.msra.mxu3 %v1454_v51  ;;  %v1754_v28 = vld [vmem:[%s2827_s3 + $0x6c] sm:$0xf]  ;;  %v1627_v29 = vld [vmem:[%s2827_s3 + $0x78] sm:$0xf0]  ;;  %v2302_v30 = vor.u32 %v1756_v23, %v1625_v22  ;;  %v1751_v31 = vld [vmem:[%s2827_s3 + $0x4c] sm:$0xf0] }
  0x25   :  { %484 = vmatpush.bf16.msrb.mxu1 %v2148_v40  ;;  %497 = vmatpush.bf16.msrb.mxu2 %v2159_v44  ;;  %v1749_v32 = vld [vmem:[%s2827_s3 + $0x44] sm:$0xf]  ;;  %v1603_v33 = vld [vmem:[%s2827_s3 + $0x50] sm:$0xf0]  ;;  %v1609_v34 = vld [vmem:[%s2827_s3 + $0x48] sm:$0xf]  ;;  %v2320_v36 = vor.u32 %v1754_v28, %v1627_v29  ;;  %v2324_v37 = vor.u32 %v1751_v31, %v1601_v27 }
  0x26   :  { %244 = vmatmul.bf16.vlgmr.msra.gmra.mxu1 %v19_v48  ;;  %258 = vmatmul.bf16.vlgmr.msra.gmra.mxu2 %v19_v48  ;;  %v1752_v35 = vld [vmem:[%s2827_s3 + $0x54] sm:$0xf0]  ;;  %v2326_v38 = vor.u32 %v1749_v32, %v1603_v33  ;;  %v1585_v41 = vld [vmem:[%s2827_s3 + $0x20] sm:$0xf]  ;;  %v1750_v42 = vld [vmem:[%s2827_s3 + $0x4c] sm:$0xf] }
  0x27   :  { %272 = vmatmul.bf16.vlgmr.msra.gmra.mxu3 %v19_v48  ;;  %v1611_v43 = vld [vmem:[%s2827_s3 + $0x58] sm:$0xf0]  ;;  %v2338_v45 = vor.u32 %v1752_v35, %v1609_v34  ;;  %v1747_v46 = vld [vmem:[%s2827_s3 + $0x2c] sm:$0xf0]  ;;  %v1745_v47 = vld [vmem:[%s2827_s3 + $0x24] sm:$0xf] }
  0x28   :  { %510 = vmatpush.bf16.msrb.mxu3 %v2176_v52  ;;  %472 = vmatpush.bf16.msrb.mxu0 %v2180_v53  ;;  %v1587_v48 = vld [vmem:[%s2827_s3 + $0x30] sm:$0xf0]  ;;  %v1593_v49 = vld [vmem:[%s2827_s3 + $0x28] sm:$0xf]  ;;  %v1748_v50 = vld [vmem:[%s2827_s3 + $0x34] sm:$0xf0]  ;;  %v2356_v51 = vor.u32 %v1750_v42, %v1611_v43  ;;  %v2360_v55 = vor.u32 %v1747_v46, %v1585_v41 }
  0x29   :  { %485 = vmatpush.bf16.msrb.mxu1 %v2182_v54  ;;  %498 = vmatpush.bf16.msrb.mxu2 %v2194_v58  ;;  %v2362_v56 = vor.u32 %v1745_v47, %v1587_v48  ;;  %v1569_v57 = vld [vmem:[%s2827_s3] sm:$0xf]  ;;  %v1746_v59 = vld [vmem:[%s2827_s3 + $0x2c] sm:$0xf]  ;;  %v1595_v60 = vld [vmem:[%s2827_s3 + $0x38] sm:$0xf0]  ;;  %v2374_v61 = vor.u32 %v1748_v50, %v1593_v49 }
  0x2a   :  { %v1743_v62 = vld [vmem:[%s2827_s3 + $0xc] sm:$0xf0]  ;;  %v1741_v63 = vld [vmem:[%s2827_s3 + $0x4] sm:$0xf]  ;;  %v1571_v3 = vld [vmem:[%s2827_s3 + $0x10] sm:$0xf0]  ;;  %v2392_v7 = vor.u32 %v1746_v59, %v1595_v60 }
  0x2b   :  { %v1577_v4 = vld [vmem:[%s2827_s3 + $0x8] sm:$0xf]  ;;  %v1744_v5 = vld [vmem:[%s2827_s3 + $0x14] sm:$0xf0]  ;;  %v2396_v8 = vor.u32 %v1743_v62, %v1569_v57  ;;  %v2398_v9 = vor.u32 %v1741_v63, %v1571_v3  ;;  %v1742_v11 = vld [vmem:[%s2827_s3 + $0xc] sm:$0xf] }
  0x2c   :  { %511 = vmatpush.bf16.msrb.mxu3 %v2212_v0  ;;  %473 = vmatpush.bf16.msrb.mxu0 %v2216_v1  ;;  %v2401_v10 = vor.u32 %v1744_v5, %v1577_v4  ;;  %v1579_v15 = vld [vmem:[%s2827_s3 + $0x18] sm:$0xf0]  ;;  %v1903_v17 = vmov 0.0|0.0   ;;  %v52_v21 = vld [vmem:[%s2829_s2] sm:$0xf]  ;;  %s1904_s2 = smov 64  }
  0x2d   :  { %486 = vmatpush.bf16.msrb.mxu1 %v2218_v2  ;;  %499 = vmatpush.bf16.msrb.mxu2 %v2230_v6  ;;  %v2412_v16 = vor.u32 %v1742_v11, %v1579_v15  ;;  %v54_v22 = vperm.slane %v52_v21, 0  ;;  %v55_v23 = vperm.slane %v52_v21, 1  ;;  %v56_v27 = vperm.slane %v52_v21, 2 }
  0x2e   :  { %v57_v34 = vperm.slane %v52_v21, 3  ;;  %vm827_vm6 = vcmask 521220   ;;  %vm952_vm7 = vcmask 1041920   ;;  %vm949_vm8 = vcmask 523270  }
  0x30   :  { %512 = vmatpush.bf16.msrb.mxu3 %v2248_v12  ;;  %474 = vmatpush.bf16.msrb.mxu0 %v2252_v13 }
  0x31   :  { %487 = vmatpush.bf16.msrb.mxu1 %v2254_v14  ;;  %500 = vmatpush.bf16.msrb.mxu2 %v2266_v18 }
  0x34   :  { %513 = vmatpush.bf16.msrb.mxu3 %v2284_v24  ;;  %475 = vmatpush.bf16.msrb.mxu0 %v2288_v25 }
  0x35   :  { %488 = vmatpush.bf16.msrb.mxu1 %v2290_v26  ;;  %501 = vmatpush.bf16.msrb.mxu2 %v2302_v30 }
  0x38   :  { %514 = vmatpush.bf16.msrb.mxu3 %v2320_v36  ;;  %476 = vmatpush.bf16.msrb.mxu0 %v2324_v37 }
  0x39   :  { %489 = vmatpush.bf16.msrb.mxu1 %v2326_v38  ;;  %502 = vmatpush.bf16.msrb.mxu2 %v2338_v45 }
  0x3c   :  { %515 = vmatpush.bf16.msrb.mxu3 %v2356_v51  ;;  %477 = vmatpush.bf16.msrb.mxu0 %v2360_v55 }
  0x3d   :  { %490 = vmatpush.bf16.msrb.mxu1 %v2362_v56  ;;  %503 = vmatpush.bf16.msrb.mxu2 %v2374_v61 }
  0x40   :  { %516 = vmatpush.bf16.msrb.mxu3 %v2392_v7  ;;  %478 = vmatpush.bf16.msrb.mxu0 %v2396_v8 }
  0x41   :  { %491 = vmatpush.bf16.msrb.mxu1 %v2398_v9  ;;  %504 = vmatpush.bf16.msrb.mxu2 %v2401_v10 }
  0x43   :  { %479 = vmatmul.bf16.vlgmr.msrb.gmra.mxu0 %v1903_v17 }
  0x44   :  { %584 = vmatpush.bf16.msra.mxu0 %v2146_v39  ;;  %492 = vmatmul.bf16.vlgmr.msrb.gmra.mxu1 %v1903_v17 }
  0x45   :  { %597 = vmatpush.bf16.msra.mxu1 %v2148_v40  ;;  %610 = vmatpush.bf16.msra.mxu2 %v2159_v44 }
  0x46   :  { %505 = vmatmul.bf16.vlgmr.msrb.gmra.mxu2 %v1903_v17  ;;  %517 = vmatpush.bf16.msrb.mxu3 %v2412_v16 }
  0x48   :  { %585 = vmatpush.bf16.msra.mxu0 %v2180_v53 }
  0x49   :  { %598 = vmatpush.bf16.msra.mxu1 %v2182_v54  ;;  %611 = vmatpush.bf16.msra.mxu2 %v2194_v58 }
  0x4a   :  { %623 = vmatpush.bf16.msra.mxu3 %v2176_v52 }
  0x4b   :  { %518 = vmatmul.bf16.vlgmr.msrb.gmra.mxu3 %v1903_v17 }
  0x4c   :  { %586 = vmatpush.bf16.msra.mxu0 %v2216_v1 }
  0x4d   :  { %599 = vmatpush.bf16.msra.mxu1 %v2218_v2  ;;  %612 = vmatpush.bf16.msra.mxu2 %v2230_v6 }
  0x4e   :  { %624 = vmatpush.bf16.msra.mxu3 %v2212_v0 }
  0x50   :  { %587 = vmatpush.bf16.msra.mxu0 %v2252_v13 }
  0x51   :  { %600 = vmatpush.bf16.msra.mxu1 %v2254_v14  ;;  %613 = vmatpush.bf16.msra.mxu2 %v2266_v18 }
  0x52   :  { %625 = vmatpush.bf16.msra.mxu3 %v2248_v12 }
  0x54   :  { %588 = vmatpush.bf16.msra.mxu0 %v2288_v25 }
  0x55   :  { %601 = vmatpush.bf16.msra.mxu1 %v2290_v26  ;;  %614 = vmatpush.bf16.msra.mxu2 %v2302_v30 }
  0x56   :  { %626 = vmatpush.bf16.msra.mxu3 %v2284_v24 }
  0x58   :  { %589 = vmatpush.bf16.msra.mxu0 %v2324_v37 }
  0x59   :  { %602 = vmatpush.bf16.msra.mxu1 %v2326_v38  ;;  %615 = vmatpush.bf16.msra.mxu2 %v2338_v45 }
  0x5a   :  { %627 = vmatpush.bf16.msra.mxu3 %v2320_v36 }
  0x5c   :  { %590 = vmatpush.bf16.msra.mxu0 %v2360_v55 }
  0x5d   :  { %603 = vmatpush.bf16.msra.mxu1 %v2362_v56  ;;  %616 = vmatpush.bf16.msra.mxu2 %v2374_v61 }
  0x5e   :  { %628 = vmatpush.bf16.msra.mxu3 %v2356_v51 }
  0x60   :  { %591 = vmatpush.bf16.msra.mxu0 %v2396_v8 }
  0x61   :  { %604 = vmatpush.bf16.msra.mxu1 %v2398_v9  ;;  %617 = vmatpush.bf16.msra.mxu2 %v2401_v10 }
  0x62   :  { %629 = vmatpush.bf16.msra.mxu3 %v2392_v7 }
  0x64   :  { %712 = vmatpush.bf16.msrb.mxu0 %v2146_v39 }
  0x65   :  { %725 = vmatpush.bf16.msrb.mxu1 %v2148_v40  ;;  %738 = vmatpush.bf16.msrb.mxu2 %v2159_v44 }
  0x66   :  { %630 = vmatpush.bf16.msra.mxu3 %v2412_v16 }
  0x68   :  { %713 = vmatpush.bf16.msrb.mxu0 %v2180_v53 }
  0x69   :  { %726 = vmatpush.bf16.msrb.mxu1 %v2182_v54  ;;  %739 = vmatpush.bf16.msrb.mxu2 %v2194_v58 }
  0x6a   :  { %751 = vmatpush.bf16.msrb.mxu3 %v2176_v52 }
  0x6c   :  { %714 = vmatpush.bf16.msrb.mxu0 %v2216_v1 }
  0x6d   :  { %727 = vmatpush.bf16.msrb.mxu1 %v2218_v2  ;;  %740 = vmatpush.bf16.msrb.mxu2 %v2230_v6 }
  0x6e   :  { %752 = vmatpush.bf16.msrb.mxu3 %v2212_v0 }
  0x70   :  { %715 = vmatpush.bf16.msrb.mxu0 %v2252_v13 }
  0x71   :  { %728 = vmatpush.bf16.msrb.mxu1 %v2254_v14  ;;  %741 = vmatpush.bf16.msrb.mxu2 %v2266_v18 }
  0x72   :  { %753 = vmatpush.bf16.msrb.mxu3 %v2248_v12 }
  0x74   :  { %716 = vmatpush.bf16.msrb.mxu0 %v2288_v25 }
  0x75   :  { %729 = vmatpush.bf16.msrb.mxu1 %v2290_v26  ;;  %742 = vmatpush.bf16.msrb.mxu2 %v2302_v30 }
  0x76   :  { %754 = vmatpush.bf16.msrb.mxu3 %v2284_v24 }
  0x78   :  { %717 = vmatpush.bf16.msrb.mxu0 %v2324_v37 }
  0x79   :  { %730 = vmatpush.bf16.msrb.mxu1 %v2326_v38  ;;  %743 = vmatpush.bf16.msrb.mxu2 %v2338_v45 }
  0x7a   :  { %755 = vmatpush.bf16.msrb.mxu3 %v2320_v36 }
  0x7c   :  { %718 = vmatpush.bf16.msrb.mxu0 %v2360_v55 }
  0x7d   :  { %731 = vmatpush.bf16.msrb.mxu1 %v2362_v56  ;;  %744 = vmatpush.bf16.msrb.mxu2 %v2374_v61 }
  0x7e   :  { %756 = vmatpush.bf16.msrb.mxu3 %v2356_v51 }
  0x80   :  { %719 = vmatpush.bf16.msrb.mxu0 %v2396_v8 }
  0x81   :  { %732 = vmatpush.bf16.msrb.mxu1 %v2398_v9  ;;  %745 = vmatpush.bf16.msrb.mxu2 %v2401_v10 }
  0x82   :  { %757 = vmatpush.bf16.msrb.mxu3 %v2392_v7 }
  0x86   :  { %758 = vmatpush.bf16.msrb.mxu3 %v2412_v16 }
  0xa0   :  { %v231_v19 = vpop.f32.mrf.mxu0 }
  0xa1   :  { %v2491_v46 = vadd.f32 %v231_v19, %v54_v22 }
  0xa3   :  { %v245_v20 = vpop.f32.mrf.mxu1 }
  0xa4   :  { %v2494_v57 = vadd.f32 %v245_v20, %v55_v23 }
  0xa8   :  { %v233_v28 = vpop.f32.mrf.mxu0 }
  0xa9   :  { %v259_v29 = vpop.f32.mrf.mxu2  ;;  %v2483_v31 = vadd.f32 %v233_v28, %v54_v22 }
  0xaa   :  { %v2485_v33 = vadd.f32 %v259_v29, %v56_v27  ;;  %v273_v41 = vpop.f32.mrf.mxu3 }
  0xab   :  { %v247_v32 = vpop.f32.mrf.mxu1  ;;  %v2489_v42 = vadd.f32 %v273_v41, %v57_v34 }
  0xac   :  { %v2487_v35 = vadd.f32 %v247_v32, %v55_v23 }
  0xb1   :  { %v261_v43 = vpop.f32.mrf.mxu2 }
  0xb2   :  { %v275_v47 = vpop.f32.mrf.mxu3  ;;  %v2497_v62 = vadd.f32 %v261_v43, %v56_v27 }
  0xb3   :  { %v2499_v11 = vadd.f32 %v275_v47, %v57_v34 }
  0xc0   :  { %v480_v48 = vpop.f32.mrf.mxu0 }
  0xc1   :  { %v493_v49 = vpop.f32.mrf.mxu1  ;;  %v523_v50 = vadd.f32 %v480_v48, %v2491_v46 }
  0xc2   :  { %v524_v60 = vadd.f32 %v493_v49, %v2494_v57 }
  0xc3   :  { %v533_v59 = vmul.f32 0.5, %v523_v50 }
  0xc4   :  { %v538_v50 = vmul.f32 0.5, %v524_v60 }
  0xc5   :  { %1775 = vtanh.f32 %v533_v59 }
  0xc6   :  { %1777 = vtanh.f32 %v524_v60 }
  0xc8   :  { %v482_v4 = vpop.f32.mrf.mxu0 }
  0xc9   :  { %v506_v63 = vpop.f32.mrf.mxu2  ;;  %v495_v5 = vpop.f32.mrf.mxu1 }
  0xca   :  { %v527_v3 = vrot.slane %v506_v63, 2 }
  0xcb   :  { %v1776_v19 = vpop.eup %1775 }
  0xcc   :  { %v531_v15 = vadd.f32 %v527_v3, %v2497_v62  ;;  %v535_v20 = vadd.f32 1.0, %v1776_v19  ;;  %v1778_v27 = vpop.eup %1777 }
  0xce   :  { %v519_v17 = vpop.f32.mrf.mxu3  ;;  %v551_v22 = vmul.f32 0.5, %v531_v15  ;;  %v536_v28 = vmul.f32 0.5, %v535_v20 }
  0xcf   :  { %v528_v21 = vrot.slane %v519_v17, 2 }
  0xd0   :  { %1779 = vtanh.f32 %v551_v22  ;;  %v543_v32 = vmul.f32 %v1778_v27, %v536_v28  ;;  %v542_v59 = vmul.f32 0.0, %v536_v28 }
  0xd1   :  { %v532_v23 = vadd.f32 %v528_v21, %v2499_v11  ;;  %v508_v29 = vpop.f32.mrf.mxu2 }
  0xd2   :  { %545 = vrot.lane.b32.xlu0 %v543_v32, %s1904_s2 }
  0xd3   :  { %1781 = vtanh.f32 %v532_v23  ;;  %v556_v63 = vmul.f32 0.5, %v532_v23 }
  0xd4   :  { %1783 = vtanh.f32 %v538_v50 }
  0xd6   :  { %v521_v34 = vpop.f32.mrf.mxu3  ;;  %v1780_v41 = vpop.eup %1779 }
  0xd7   :  { %v553_v43 = vadd.f32 1.0, %v1780_v41 }
  0xd9   :  { %v1782_v47 = vpop.eup %1781  ;;  %v554_v48 = vmul.f32 0.5, %v553_v43 }
  0xda   :  { %v1784_v4 = vpop.eup %1783 }
  0xdb   :  { %v561_v49 = vmul.f32 %v1782_v47, %v554_v48  ;;  %v540_v15 = vadd.f32 1.0, %v1784_v4  ;;  %v560_v17 = vmul.f32 0.0, %v554_v48 }
  0xdd   :  { %563 = vrot.lane.b32.xlu0 %v561_v49, %s1904_s2  ;;  %v541_v19 = vmul.f32 0.5, %v540_v15 }
 0x144   :  { %v546_v3 = vpop.permute.xlu0 %545 }
 0x145   :  { %v2505_v5 = vadd.f32 %v546_v3, %v542_v59 }
 0x147   :  { %1785 = vtanh.f32 %v2505_v5 }
 0x148   :  { %1787 = vtanh.f32 %v556_v63 }
 0x14d   :  { %v1786_v21 = vpop.eup %1785 }
 0x14e   :  { %v1788_v22 = vpop.eup %1787  ;;  %v550_v29 = vmul.f32 %v1786_v21, %v541_v19 }
 0x14f   :  { %v564_v20 = vpop.permute.xlu0 %563  ;;  %v558_v60 = vadd.f32 1.0, %v1788_v22 }
 0x150   :  { %v2508_v27 = vadd.f32 %v564_v20, %v560_v17  ;;  %570 = vrot.lane.b32.xlu1 %v550_v29, %s1904_s2 }
 0x151   :  { %v559_v23 = vmul.f32 0.5, %v558_v60 }
 0x152   :  { %1789 = vtanh.f32 %v2508_v27 }
 0x158   :  { %v1790_v28 = vpop.eup %1789 }
 0x159   :  { %v568_v32 = vmul.f32 %v1790_v28, %v559_v23 }
 0x15b   :  { %1695 = vst.msk [vmem:[%s2830_s4 + $0x8] sm:$0xc0] %vm576_vm0, %v568_v32  ;;  %v579_v34 = vrot.slane %v568_v32, 6 }
 0x1c2   :  { %v571_v41 = vpop.permute.xlu1 %570 }
 0x1c3   :  { %574 = vst.msk [vmem:[%s2830_s4] sm:$0x3] %vm573_vm1, %v571_v41  ;;  %v582_v43 = vsel %vm581_vm2, %v571_v41, %v579_v34 }
 0x1c4   :  { %v583_v47 = vpack.c.bf16 %v582_v43, %v582_v43  ;;  %v662_v43 = vrot.slane %v2505_v5, 6 }
 0x1c6   :  { %592 = vmatmul.bf16.vlgmr.msra.gmra.mxu0 %v583_v47  ;;  %605 = vmatmul.bf16.vlgmr.msra.gmra.mxu1 %v583_v47 }
 0x1c7   :  { %618 = vmatmul.bf16.vlgmr.msra.gmra.mxu2 %v583_v47  ;;  %631 = vmatmul.bf16.vlgmr.msra.gmra.mxu3 %v583_v47 }
 0x1c8   :  { %840 = vmatpush.bf16.msra.mxu0 %v2146_v39  ;;  %853 = vmatpush.bf16.msra.mxu1 %v2148_v40 }
 0x1c9   :  { %866 = vmatpush.bf16.msra.mxu2 %v2159_v44  ;;  %879 = vmatpush.bf16.msra.mxu3 %v2176_v52 }
 0x1cc   :  { %841 = vmatpush.bf16.msra.mxu0 %v2180_v53  ;;  %854 = vmatpush.bf16.msra.mxu1 %v2182_v54 }
 0x1cd   :  { %867 = vmatpush.bf16.msra.mxu2 %v2194_v58  ;;  %880 = vmatpush.bf16.msra.mxu3 %v2212_v0 }
 0x1d0   :  { %842 = vmatpush.bf16.msra.mxu0 %v2216_v1  ;;  %855 = vmatpush.bf16.msra.mxu1 %v2218_v2 }
 0x1d1   :  { %868 = vmatpush.bf16.msra.mxu2 %v2230_v6  ;;  %881 = vmatpush.bf16.msra.mxu3 %v2248_v12 }
 0x1d4   :  { %843 = vmatpush.bf16.msra.mxu0 %v2252_v13  ;;  %856 = vmatpush.bf16.msra.mxu1 %v2254_v14 }
 0x1d5   :  { %869 = vmatpush.bf16.msra.mxu2 %v2266_v18  ;;  %882 = vmatpush.bf16.msra.mxu3 %v2284_v24 }
 0x1d8   :  { %844 = vmatpush.bf16.msra.mxu0 %v2288_v25  ;;  %857 = vmatpush.bf16.msra.mxu1 %v2290_v26 }
 0x1d9   :  { %870 = vmatpush.bf16.msra.mxu2 %v2302_v30  ;;  %883 = vmatpush.bf16.msra.mxu3 %v2320_v36 }
 0x1dc   :  { %845 = vmatpush.bf16.msra.mxu0 %v2324_v37  ;;  %858 = vmatpush.bf16.msra.mxu1 %v2326_v38 }
 0x1dd   :  { %871 = vmatpush.bf16.msra.mxu2 %v2338_v45  ;;  %884 = vmatpush.bf16.msra.mxu3 %v2356_v51 }
 0x1e0   :  { %846 = vmatpush.bf16.msra.mxu0 %v2360_v55  ;;  %859 = vmatpush.bf16.msra.mxu1 %v2362_v56 }
 0x1e1   :  { %872 = vmatpush.bf16.msra.mxu2 %v2374_v61  ;;  %885 = vmatpush.bf16.msra.mxu3 %v2392_v7 }
 0x1e4   :  { %847 = vmatpush.bf16.msra.mxu0 %v2396_v8  ;;  %860 = vmatpush.bf16.msra.mxu1 %v2398_v9 }
 0x1e5   :  { %873 = vmatpush.bf16.msra.mxu2 %v2401_v10  ;;  %886 = vmatpush.bf16.msra.mxu3 %v2412_v16 }
 0x243   :  { %v593_v48 = vpop.f32.mrf.mxu0  ;;  %v606_v49 = vpop.f32.mrf.mxu1 }
 0x244   :  { %v638_v50 = vrot.slane %v593_v48, 6  ;;  %v639_v63 = vrot.slane %v606_v49, 6 }
 0x246   :  { %v642_v59 = vadd.f32 %v638_v50, %v2491_v46  ;;  %v643_v4 = vadd.f32 %v639_v63, %v2494_v57 }
 0x248   :  { %v652_v3 = vmul.f32 0.5, %v642_v59 }
 0x24a   :  { %1791 = vtanh.f32 %v652_v3  ;;  %v619_v15 = vpop.f32.mrf.mxu2  ;;  %v632_v17 = vpop.f32.mrf.mxu3  ;;  %v683_v3 = vrot.slane %v2508_v27, 2 }
 0x24b   :  { %v646_v19 = vrot.slane %v619_v15, 4  ;;  %v595_v21 = vpop.f32.mrf.mxu0  ;;  %v608_v20 = vpop.f32.mrf.mxu1  ;;  %v647_v29 = vrot.slane %v632_v17, 4  ;;  %1793 = vtanh.f32 %v643_v4 }
 0x24d   :  { %v650_v22 = vadd.f32 %v646_v19, %v2497_v62  ;;  %v651_v32 = vadd.f32 %v647_v29, %v2499_v11 }
 0x24f   :  { %v673_v60 = vmul.f32 0.5, %v650_v22  ;;  %v678_v20 = vmul.f32 0.5, %v651_v32 }
 0x250   :  { %v1792_v23 = vpop.eup %1791 }
 0x251   :  { %v654_v28 = vadd.f32 1.0, %v1792_v23  ;;  %1795 = vtanh.f32 %v673_v60  ;;  %v1794_v48 = vpop.eup %1793  ;;  %v657_v23 = vmul.f32 0.5, %v643_v4 }
 0x252   :  { %v621_v34 = vpop.f32.mrf.mxu2  ;;  %v634_v41 = vpop.f32.mrf.mxu3  ;;  %1797 = vtanh.f32 %v651_v32 }
 0x253   :  { %v655_v47 = vmul.f32 0.5, %v654_v28  ;;  %1799 = vtanh.f32 %v678_v20 }
 0x255   :  { %v665_v49 = vmul.f32 %v1794_v48, %v655_v47  ;;  %v664_v50 = vmul.f32 %v662_v43, %v655_v47 }
 0x257   :  { %v1796_v59 = vpop.eup %1795  ;;  %667 = vrot.lane.b32.xlu1 %v665_v49, %s1904_s2 }
 0x258   :  { %v675_v63 = vadd.f32 1.0, %v1796_v59  ;;  %v1798_v17 = vpop.eup %1797 }
 0x259   :  { %v1800_v22 = vpop.eup %1799 }
 0x25a   :  { %v676_v15 = vmul.f32 0.5, %v675_v63  ;;  %v680_v60 = vadd.f32 1.0, %v1800_v22 }
 0x25c   :  { %v686_v19 = vmul.f32 %v1798_v17, %v676_v15  ;;  %v685_v21 = vmul.f32 %v683_v3, %v676_v15  ;;  %v681_v28 = vmul.f32 0.5, %v680_v60 }
 0x25e   :  { %688 = vrot.lane.b32.xlu2 %v686_v19, %s1904_s2 }
 0x2b8   :  { %v689_v5 = vpop.permute.xlu2 %688 }
 0x2b9   :  { %v2561_v29 = vadd.f32 %v689_v5, %v685_v21 }
 0x2bb   :  { %1801 = vtanh.f32 %v2561_v29 }
 0x2bc   :  { %1803 = vtanh.f32 %v657_v23 }
 0x2c1   :  { %v1802_v34 = vpop.eup %1801 }
 0x2c2   :  { %v693_v27 = vmul.f32 %v1802_v34, %v681_v28  ;;  %v1804_v41 = vpop.eup %1803 }
 0x2c3   :  { %v659_v47 = vadd.f32 1.0, %v1804_v41 }
 0x2c4   :  { %1697 = vst.msk [vmem:[%s2830_s4 + $0x8] sm:$0x30] %vm702_vm3, %v693_v27  ;;  %v705_v59 = vrot.slane %v693_v27, 2 }
 0x2c5   :  { %v660_v48 = vmul.f32 0.5, %v659_v47 }
 0x2c9   :  { %v668_v32 = vpop.permute.xlu1 %667 }
 0x2ca   :  { %v2568_v43 = vadd.f32 %v668_v32, %v664_v50 }
 0x2cc   :  { %1805 = vtanh.f32 %v2568_v43 }
 0x2d2   :  { %v1806_v49 = vpop.eup %1805 }
 0x2d3   :  { %v672_v4 = vmul.f32 %v1806_v49, %v660_v48 }
 0x2d5   :  { %695 = vrot.lane.b32.xlu2 %v672_v4, %s1904_s2 }
 0x32f   :  { %v696_v63 = vpop.permute.xlu2 %695 }
 0x330   :  { %1696 = vst.msk [vmem:[%s2830_s4] sm:$0xc] %vm699_vm4, %v696_v63  ;;  %v707_v3 = vsel %vm581_vm2, %v696_v63, %v705_v59 }
 0x331   :  { %v708_v50 = vpack.c.bf16 %v707_v3, %v707_v3 }
 0x333   :  { %v710_v15 = vrot.slane %v708_v50, 1  ;;  %v790_v50 = vrot.slane %v2568_v43, 6 }
 0x335   :  { %720 = vmatmul.bf16.vlgmr.msrb.gmra.mxu0 %v710_v15  ;;  %733 = vmatmul.bf16.vlgmr.msrb.gmra.mxu1 %v710_v15 }
 0x336   :  { %746 = vmatmul.bf16.vlgmr.msrb.gmra.mxu2 %v710_v15  ;;  %759 = vmatmul.bf16.vlgmr.msrb.gmra.mxu3 %v710_v15 }
 0x337   :  { %962 = vmatpush.bf16.msrb.mxu0 %v2146_v39  ;;  %975 = vmatpush.bf16.msrb.mxu1 %v2148_v40 }
 0x338   :  { %988 = vmatpush.bf16.msrb.mxu2 %v2159_v44  ;;  %1001 = vmatpush.bf16.msrb.mxu3 %v2176_v52 }
 0x33b   :  { %963 = vmatpush.bf16.msrb.mxu0 %v2180_v53  ;;  %976 = vmatpush.bf16.msrb.mxu1 %v2182_v54 }
 0x33c   :  { %989 = vmatpush.bf16.msrb.mxu2 %v2194_v58  ;;  %1002 = vmatpush.bf16.msrb.mxu3 %v2212_v0 }
 0x33f   :  { %964 = vmatpush.bf16.msrb.mxu0 %v2216_v1  ;;  %977 = vmatpush.bf16.msrb.mxu1 %v2218_v2 }
 0x340   :  { %990 = vmatpush.bf16.msrb.mxu2 %v2230_v6  ;;  %1003 = vmatpush.bf16.msrb.mxu3 %v2248_v12 }
 0x343   :  { %965 = vmatpush.bf16.msrb.mxu0 %v2252_v13  ;;  %978 = vmatpush.bf16.msrb.mxu1 %v2254_v14 }
 0x344   :  { %991 = vmatpush.bf16.msrb.mxu2 %v2266_v18  ;;  %1004 = vmatpush.bf16.msrb.mxu3 %v2284_v24 }
 0x347   :  { %966 = vmatpush.bf16.msrb.mxu0 %v2288_v25  ;;  %979 = vmatpush.bf16.msrb.mxu1 %v2290_v26 }
 0x348   :  { %992 = vmatpush.bf16.msrb.mxu2 %v2302_v30  ;;  %1005 = vmatpush.bf16.msrb.mxu3 %v2320_v36 }
 0x34b   :  { %967 = vmatpush.bf16.msrb.mxu0 %v2324_v37  ;;  %980 = vmatpush.bf16.msrb.mxu1 %v2326_v38 }
 0x34c   :  { %993 = vmatpush.bf16.msrb.mxu2 %v2338_v45  ;;  %1006 = vmatpush.bf16.msrb.mxu3 %v2356_v51 }
 0x34f   :  { %968 = vmatpush.bf16.msrb.mxu0 %v2360_v55  ;;  %981 = vmatpush.bf16.msrb.mxu1 %v2362_v56 }
 0x350   :  { %994 = vmatpush.bf16.msrb.mxu2 %v2374_v61  ;;  %1007 = vmatpush.bf16.msrb.mxu3 %v2392_v7 }
 0x353   :  { %969 = vmatpush.bf16.msrb.mxu0 %v2396_v8  ;;  %982 = vmatpush.bf16.msrb.mxu1 %v2398_v9 }
 0x354   :  { %995 = vmatpush.bf16.msrb.mxu2 %v2401_v10  ;;  %1008 = vmatpush.bf16.msrb.mxu3 %v2412_v16 }
 0x3b2   :  { %v721_v17 = vpop.f32.mrf.mxu0  ;;  %v734_v19 = vpop.f32.mrf.mxu1 }
 0x3b3   :  { %v766_v21 = vrot.slane %v721_v17, 4  ;;  %v767_v5 = vrot.slane %v734_v19, 4 }
 0x3b5   :  { %v770_v20 = vadd.f32 %v766_v21, %v2491_v46  ;;  %v771_v60 = vadd.f32 %v767_v5, %v2494_v57 }
 0x3b7   :  { %v780_v22 = vmul.f32 0.5, %v770_v20 }
 0x3b9   :  { %1807 = vtanh.f32 %v780_v22  ;;  %v747_v23 = vpop.f32.mrf.mxu2  ;;  %v760_v28 = vpop.f32.mrf.mxu3  ;;  %v811_v22 = vrot.slane %v2561_v29, 2 }
 0x3ba   :  { %v774_v34 = vrot.slane %v747_v23, 6  ;;  %v723_v27 = vpop.f32.mrf.mxu0  ;;  %v736_v32 = vpop.f32.mrf.mxu1  ;;  %v775_v47 = vrot.slane %v760_v28, 6  ;;  %1809 = vtanh.f32 %v771_v60 }
 0x3bb   :  { %v785_v32 = vmul.f32 0.5, %v771_v60 }
 0x3bc   :  { %v778_v41 = vadd.f32 %v774_v34, %v2497_v62  ;;  %v779_v59 = vadd.f32 %v775_v47, %v2499_v11 }
 0x3be   :  { %v801_v48 = vmul.f32 0.5, %v778_v41  ;;  %v806_v43 = vmul.f32 0.5, %v779_v59 }
 0x3bf   :  { %v1808_v49 = vpop.eup %1807 }
 0x3c0   :  { %v782_v4 = vadd.f32 1.0, %v1808_v49  ;;  %1811 = vtanh.f32 %v801_v48  ;;  %v1810_v17 = vpop.eup %1809 }
 0x3c1   :  { %v749_v63 = vpop.f32.mrf.mxu2  ;;  %v762_v3 = vpop.f32.mrf.mxu3  ;;  %1813 = vtanh.f32 %v779_v59 }
 0x3c2   :  { %v783_v15 = vmul.f32 0.5, %v782_v4  ;;  %1815 = vtanh.f32 %v785_v32 }
 0x3c3   :  { %1817 = vtanh.f32 %v806_v43 }
 0x3c4   :  { %v793_v19 = vmul.f32 %v1810_v17, %v783_v15  ;;  %v792_v21 = vmul.f32 %v790_v50, %v783_v15 }
 0x3c6   :  { %v1812_v20 = vpop.eup %1811  ;;  %795 = vrot.lane.b32.xlu0 %v793_v19, %s1904_s2 }
 0x3c7   :  { %v803_v5 = vadd.f32 1.0, %v1812_v20  ;;  %v1814_v28 = vpop.eup %1813 }
 0x3c8   :  { %v1816_v47 = vpop.eup %1815 }
 0x3c9   :  { %v804_v23 = vmul.f32 0.5, %v803_v5  ;;  %v787_v49 = vadd.f32 1.0, %v1816_v47  ;;  %v1818_v63 = vpop.eup %1817 }
 0x3ca   :  { %v808_v60 = vadd.f32 1.0, %v1818_v63 }
 0x3cb   :  { %v814_v34 = vmul.f32 %v1814_v28, %v804_v23  ;;  %v813_v27 = vmul.f32 %v811_v22, %v804_v23  ;;  %v788_v3 = vmul.f32 0.5, %v787_v49 }
 0x3cc   :  { %v809_v59 = vmul.f32 0.5, %v808_v60 }
 0x3cd   :  { %816 = vrot.lane.b32.xlu1 %v814_v34, %s1904_s2 }
 0x438   :  { %v796_v41 = vpop.permute.xlu0 %795 }
 0x439   :  { %v2617_v48 = vadd.f32 %v796_v41, %v792_v21 }
 0x43b   :  { %1819 = vtanh.f32 %v2617_v48 }
 0x43f   :  { %v817_v4 = vpop.permute.xlu1 %816 }
 0x440   :  { %v2620_v29 = vadd.f32 %v817_v4, %v813_v27 }
 0x441   :  { %v1820_v50 = vpop.eup %1819 }
 0x442   :  { %1821 = vtanh.f32 %v2620_v29  ;;  %v800_v15 = vmul.f32 %v1820_v50, %v788_v3 }
 0x444   :  { %823 = vrot.lane.b32.xlu2 %v800_v15, %s1904_s2 }
 0x448   :  { %v1822_v17 = vpop.eup %1821 }
 0x449   :  { %v821_v19 = vmul.f32 %v1822_v17, %v809_v59 }
 0x44b   :  { %1699 = vst.msk [vmem:[%s2830_s4 + $0x8] sm:$0xc] %vm830_vm5, %v821_v19  ;;  %v833_v21 = vrot.slane %v821_v19, 6 }
 0x49e   :  { %v824_v20 = vpop.permute.xlu2 %823 }
 0x49f   :  { %1698 = vst.msk [vmem:[%s2830_s4] sm:$0x30] %vm827_vm6, %v824_v20  ;;  %v835_v5 = vsel %vm581_vm2, %v824_v20, %v833_v21  ;;  %v912_v21 = vrot.slane %v2617_v48, 6 }
 0x4a0   :  { %v836_v22 = vpack.c.bf16 %v835_v5, %v835_v5 }
 0x4a2   :  { %v838_v23 = vrot.slane %v836_v22, 2 }
 0x4a4   :  { %848 = vmatmul.bf16.vlgmr.msra.gmra.mxu0 %v838_v23  ;;  %861 = vmatmul.bf16.vlgmr.msra.gmra.mxu1 %v838_v23 }
 0x4a5   :  { %874 = vmatmul.bf16.vlgmr.msra.gmra.mxu2 %v838_v23  ;;  %887 = vmatmul.bf16.vlgmr.msra.gmra.mxu3 %v838_v23 }
 0x4a6   :  { %1077 = vmatpush.bf16.msra.mxu0 %v2146_v39  ;;  %1090 = vmatpush.bf16.msra.mxu1 %v2148_v40 }
 0x4a7   :  { %1103 = vmatpush.bf16.msra.mxu2 %v2159_v44  ;;  %1116 = vmatpush.bf16.msra.mxu3 %v2176_v52 }
 0x4aa   :  { %1078 = vmatpush.bf16.msra.mxu0 %v2180_v53  ;;  %1091 = vmatpush.bf16.msra.mxu1 %v2182_v54 }
 0x4ab   :  { %1104 = vmatpush.bf16.msra.mxu2 %v2194_v58  ;;  %1117 = vmatpush.bf16.msra.mxu3 %v2212_v0 }
 0x4ae   :  { %1079 = vmatpush.bf16.msra.mxu0 %v2216_v1  ;;  %1092 = vmatpush.bf16.msra.mxu1 %v2218_v2 }
 0x4af   :  { %1105 = vmatpush.bf16.msra.mxu2 %v2230_v6  ;;  %1118 = vmatpush.bf16.msra.mxu3 %v2248_v12 }
 0x4b2   :  { %1080 = vmatpush.bf16.msra.mxu0 %v2252_v13  ;;  %1093 = vmatpush.bf16.msra.mxu1 %v2254_v14 }
 0x4b3   :  { %1106 = vmatpush.bf16.msra.mxu2 %v2266_v18  ;;  %1119 = vmatpush.bf16.msra.mxu3 %v2284_v24 }
 0x4b6   :  { %1081 = vmatpush.bf16.msra.mxu0 %v2288_v25  ;;  %1094 = vmatpush.bf16.msra.mxu1 %v2290_v26 }
 0x4b7   :  { %1107 = vmatpush.bf16.msra.mxu2 %v2302_v30  ;;  %1120 = vmatpush.bf16.msra.mxu3 %v2320_v36 }
 0x4ba   :  { %1082 = vmatpush.bf16.msra.mxu0 %v2324_v37  ;;  %1095 = vmatpush.bf16.msra.mxu1 %v2326_v38 }
 0x4bb   :  { %1108 = vmatpush.bf16.msra.mxu2 %v2338_v45  ;;  %1121 = vmatpush.bf16.msra.mxu3 %v2356_v51 }
 0x4be   :  { %1083 = vmatpush.bf16.msra.mxu0 %v2360_v55  ;;  %1096 = vmatpush.bf16.msra.mxu1 %v2362_v56 }
 0x4bf   :  { %1109 = vmatpush.bf16.msra.mxu2 %v2374_v61  ;;  %1122 = vmatpush.bf16.msra.mxu3 %v2392_v7 }
 0x4c2   :  { %1084 = vmatpush.bf16.msra.mxu0 %v2396_v8  ;;  %1097 = vmatpush.bf16.msra.mxu1 %v2398_v9 }
 0x4c3   :  { %1110 = vmatpush.bf16.msra.mxu2 %v2401_v10  ;;  %1123 = vmatpush.bf16.msra.mxu3 %v2412_v16 }
 0x521   :  { %v849_v28 = vpop.f32.mrf.mxu0  ;;  %v862_v34 = vpop.f32.mrf.mxu1 }
 0x522   :  { %v894_v27 = vrot.slane %v849_v28, 2  ;;  %v895_v43 = vrot.slane %v862_v34, 2  ;;  %v933_v28 = vrot.slane %v2620_v29, 2 }
 0x524   :  { %v898_v32 = vadd.f32 %v894_v27, %v2491_v46  ;;  %v899_v47 = vadd.f32 %v895_v43, %v2494_v57 }
 0x526   :  { %v902_v41 = vmul.f32 0.5, %v898_v32  ;;  %v907_v43 = vmul.f32 0.5, %v899_v47 }
 0x528   :  { %1823 = vtanh.f32 %v902_v41  ;;  %v875_v49 = vpop.f32.mrf.mxu2  ;;  %v888_v4 = vpop.f32.mrf.mxu3 }
 0x529   :  { %v900_v63 = vadd.f32 %v875_v49, %v2497_v62  ;;  %v851_v3 = vpop.f32.mrf.mxu0  ;;  %v864_v50 = vpop.f32.mrf.mxu1  ;;  %1825 = vtanh.f32 %v899_v47  ;;  %v901_v60 = vadd.f32 %v888_v4, %v2499_v11 }
 0x52b   :  { %v923_v15 = vmul.f32 0.5, %v900_v63  ;;  %v928_v48 = vmul.f32 0.5, %v901_v60 }
 0x52d   :  { %1827 = vtanh.f32 %v923_v15 }
 0x52e   :  { %v1824_v59 = vpop.eup %1823  ;;  %1829 = vtanh.f32 %v901_v60 }
 0x52f   :  { %v904_v17 = vadd.f32 1.0, %v1824_v59  ;;  %v1826_v57 = vpop.eup %1825  ;;  %1831 = vtanh.f32 %v907_v43 }
 0x530   :  { %v877_v19 = vpop.f32.mrf.mxu2  ;;  %v890_v46 = vpop.f32.mrf.mxu3  ;;  %1833 = vtanh.f32 %v928_v48 }
 0x531   :  { %v905_v20 = vmul.f32 0.5, %v904_v17 }
 0x533   :  { %v1828_v5 = vpop.eup %1827  ;;  %v915_v22 = vmul.f32 %v1826_v57, %v905_v20  ;;  %v914_v23 = vmul.f32 %v912_v21, %v905_v20 }
 0x534   :  { %v925_v62 = vadd.f32 1.0, %v1828_v5  ;;  %v1830_v27 = vpop.eup %1829 }
 0x535   :  { %917 = vrot.lane.b32.xlu0 %v915_v22, %s1904_s2  ;;  %v1832_v49 = vpop.eup %1831 }
 0x536   :  { %v926_v34 = vmul.f32 0.5, %v925_v62  ;;  %v909_v63 = vadd.f32 1.0, %v1832_v49  ;;  %v1834_v50 = vpop.eup %1833 }
 0x537   :  { %v930_v17 = vadd.f32 1.0, %v1834_v50 }
 0x538   :  { %v936_v11 = vmul.f32 %v1830_v27, %v926_v34  ;;  %v935_v32 = vmul.f32 %v933_v28, %v926_v34  ;;  %v910_v15 = vmul.f32 0.5, %v909_v63 }
 0x539   :  { %v931_v60 = vmul.f32 0.5, %v930_v17 }
 0x53a   :  { %938 = vrot.lane.b32.xlu1 %v936_v11, %s1904_s2 }
 0x5a7   :  { %v918_v41 = vpop.permute.xlu0 %917 }
 0x5a8   :  { %v2673_v4 = vadd.f32 %v918_v41, %v914_v23 }
 0x5aa   :  { %1835 = vtanh.f32 %v2673_v4 }
 0x5ac   :  { %v939_v3 = vpop.permute.xlu1 %938 }
 0x5ad   :  { %v2676_v29 = vadd.f32 %v939_v3, %v935_v32 }
 0x5af   :  { %1837 = vtanh.f32 %v2676_v29 }
 0x5b0   :  { %v1836_v59 = vpop.eup %1835 }
 0x5b1   :  { %v922_v47 = vmul.f32 %v1836_v59, %v910_v15  ;;  %v1034_v59 = vrot.slane %v2673_v4, 6 }
 0x5b3   :  { %945 = vrot.lane.b32.xlu2 %v922_v47, %s1904_s2 }
 0x5b5   :  { %v1838_v19 = vpop.eup %1837 }
 0x5b6   :  { %v943_v46 = vmul.f32 %v1838_v19, %v931_v60 }
 0x5b8   :  { %1701 = vst.msk [vmem:[%s2830_s4 + $0x8] sm:$0x3] %vm952_vm7, %v943_v46  ;;  %v955_v21 = vrot.slane %v943_v46, 2 }
 0x60d   :  { %v946_v20 = vpop.permute.xlu2 %945 }
 0x60e   :  { %1700 = vst.msk [vmem:[%s2830_s4] sm:$0xc0] %vm949_vm8, %v946_v20  ;;  %v957_v57 = vsel %vm581_vm2, %v946_v20, %v955_v21 }
 0x60f   :  { %v958_v5 = vpack.c.bf16 %v957_v57, %v957_v57 }
 0x611   :  { %v960_v22 = vrot.slane %v958_v5, 3 }
 0x613   :  { %970 = vmatmul.bf16.vlgmr.msrb.gmra.mxu0 %v960_v22  ;;  %983 = vmatmul.bf16.vlgmr.msrb.gmra.mxu1 %v960_v22 }
 0x614   :  { %996 = vmatmul.bf16.vlgmr.msrb.gmra.mxu2 %v960_v22  ;;  %1009 = vmatmul.bf16.vlgmr.msrb.gmra.mxu3 %v960_v22  ;;  %v1055_v22 = vrot.slane %v2676_v29, 2 }
 0x615   :  { %1201 = vmatpush.bf16.msrb.mxu0 %v2146_v39  ;;  %1214 = vmatpush.bf16.msrb.mxu1 %v2148_v40 }
 0x616   :  { %1227 = vmatpush.bf16.msrb.mxu2 %v2159_v44  ;;  %1240 = vmatpush.bf16.msrb.mxu3 %v2176_v52 }
 0x619   :  { %1202 = vmatpush.bf16.msrb.mxu0 %v2180_v53  ;;  %1215 = vmatpush.bf16.msrb.mxu1 %v2182_v54 }
 0x61a   :  { %1228 = vmatpush.bf16.msrb.mxu2 %v2194_v58  ;;  %1241 = vmatpush.bf16.msrb.mxu3 %v2212_v0 }
 0x61d   :  { %1203 = vmatpush.bf16.msrb.mxu0 %v2216_v1  ;;  %1216 = vmatpush.bf16.msrb.mxu1 %v2218_v2 }
 0x61e   :  { %1229 = vmatpush.bf16.msrb.mxu2 %v2230_v6  ;;  %1242 = vmatpush.bf16.msrb.mxu3 %v2248_v12 }
 0x621   :  { %1204 = vmatpush.bf16.msrb.mxu0 %v2252_v13  ;;  %1217 = vmatpush.bf16.msrb.mxu1 %v2254_v14 }
 0x622   :  { %1230 = vmatpush.bf16.msrb.mxu2 %v2266_v18  ;;  %1243 = vmatpush.bf16.msrb.mxu3 %v2284_v24 }
 0x625   :  { %1205 = vmatpush.bf16.msrb.mxu0 %v2288_v25  ;;  %1218 = vmatpush.bf16.msrb.mxu1 %v2290_v26 }
 0x626   :  { %1231 = vmatpush.bf16.msrb.mxu2 %v2302_v30  ;;  %1244 = vmatpush.bf16.msrb.mxu3 %v2320_v36 }
 0x629   :  { %1206 = vmatpush.bf16.msrb.mxu0 %v2324_v37  ;;  %1219 = vmatpush.bf16.msrb.mxu1 %v2326_v38 }
 0x62a   :  { %1232 = vmatpush.bf16.msrb.mxu2 %v2338_v45  ;;  %1245 = vmatpush.bf16.msrb.mxu3 %v2356_v51 }
 0x62d   :  { %1207 = vmatpush.bf16.msrb.mxu0 %v2360_v55  ;;  %1220 = vmatpush.bf16.msrb.mxu1 %v2362_v56 }
 0x62e   :  { %1233 = vmatpush.bf16.msrb.mxu2 %v2374_v61  ;;  %1246 = vmatpush.bf16.msrb.mxu3 %v2392_v7 }
 0x631   :  { %1208 = vmatpush.bf16.msrb.mxu0 %v2396_v8  ;;  %1221 = vmatpush.bf16.msrb.mxu1 %v2398_v9 }
 0x632   :  { %1234 = vmatpush.bf16.msrb.mxu2 %v2401_v10  ;;  %1247 = vmatpush.bf16.msrb.mxu3 %v2412_v16 }
 0x690   :  { %v971_v23 = vpop.f32.mrf.mxu0  ;;  %v984_v62 = vpop.f32.mrf.mxu1 }
 0x691   :  { %v1014_v28 = vadd.f32 %v971_v23, %v2483_v31  ;;  %v1015_v27 = vadd.f32 %v984_v62, %v2487_v35 }
 0x693   :  { %v1024_v34 = vmul.f32 0.5, %v1014_v28 }
 0x695   :  { %1839 = vtanh.f32 %v1024_v34  ;;  %v1029_v34 = vmul.f32 0.5, %v1015_v27 }
 0x696   :  { %1841 = vtanh.f32 %v1015_v27 }
 0x697   :  { %v997_v11 = vpop.f32.mrf.mxu2  ;;  %v1010_v32 = vpop.f32.mrf.mxu3 }
 0x698   :  { %v1018_v43 = vrot.slane %v997_v11, 2  ;;  %v973_v48 = vpop.f32.mrf.mxu0  ;;  %v986_v41 = vpop.f32.mrf.mxu1  ;;  %v1019_v63 = vrot.slane %v1010_v32, 2 }
 0x69a   :  { %v1022_v49 = vadd.f32 %v1018_v43, %v2485_v33  ;;  %v1023_v47 = vadd.f32 %v1019_v63, %v2489_v42 }
 0x69b   :  { %v1840_v3 = vpop.eup %1839 }
 0x69c   :  { %v1026_v50 = vadd.f32 1.0, %v1840_v3  ;;  %v1045_v15 = vmul.f32 0.5, %v1022_v49  ;;  %v1842_v60 = vpop.eup %1841  ;;  %v1050_v11 = vmul.f32 0.5, %v1023_v47 }
 0x69e   :  { %v1027_v17 = vmul.f32 0.5, %v1026_v50  ;;  %1843 = vtanh.f32 %v1045_v15 }
 0x69f   :  { %v999_v19 = vpop.f32.mrf.mxu2  ;;  %v1012_v46 = vpop.f32.mrf.mxu3  ;;  %1845 = vtanh.f32 %v1023_v47 }
 0x6a0   :  { %v1037_v21 = vmul.f32 %v1842_v60, %v1027_v17  ;;  %v1036_v20 = vmul.f32 %v1034_v59, %v1027_v17  ;;  %1847 = vtanh.f32 %v1029_v34 }
 0x6a2   :  { %1039 = vrot.lane.b32.xlu0 %v1037_v21, %s1904_s2 }
 0x6a4   :  { %v1844_v57 = vpop.eup %1843 }
 0x6a5   :  { %v1047_v5 = vadd.f32 1.0, %v1844_v57  ;;  %v1846_v62 = vpop.eup %1845 }
 0x6a6   :  { %v1848_v43 = vpop.eup %1847 }
 0x6a7   :  { %v1048_v23 = vmul.f32 0.5, %v1047_v5  ;;  %v1031_v41 = vadd.f32 1.0, %v1848_v43 }
 0x6a9   :  { %v1058_v28 = vmul.f32 %v1846_v62, %v1048_v23  ;;  %v1057_v4 = vmul.f32 %v1055_v22, %v1048_v23  ;;  %v1032_v49 = vmul.f32 0.5, %v1031_v41 }
 0x6ab   :  { %1060 = vrot.lane.b32.xlu1 %v1058_v28, %s1904_s2 }
 0x714   :  { %v1040_v32 = vpop.permute.xlu0 %1039 }
 0x715   :  { %v2729_v48 = vadd.f32 %v1040_v32, %v1036_v20 }
 0x717   :  { %1849 = vtanh.f32 %v2729_v48 }
 0x718   :  { %1851 = vtanh.f32 %v1050_v11 }
 0x71d   :  { %v1850_v63 = vpop.eup %1849  ;;  %v1061_v29 = vpop.permute.xlu1 %1060 }
 0x71e   :  { %v1852_v3 = vpop.eup %1851  ;;  %v2732_v50 = vadd.f32 %v1061_v29, %v1057_v4  ;;  %v1044_v15 = vmul.f32 %v1850_v63, %v1032_v49 }
 0x71f   :  { %v1052_v27 = vadd.f32 1.0, %v1852_v3 }
 0x720   :  { %1853 = vtanh.f32 %v2732_v50  ;;  %1067 = vrot.lane.b32.xlu2 %v1044_v15, %s1904_s2 }
 0x721   :  { %v1053_v59 = vmul.f32 0.5, %v1052_v27 }
 0x726   :  { %v1854_v17 = vpop.eup %1853 }
 0x727   :  { %v1065_v47 = vmul.f32 %v1854_v17, %v1053_v59 }
 0x729   :  { %1703 = vst.msk [vmem:[%s2830_s4] sm:$0xc0] %vm576_vm0, %v1065_v47  ;;  %v1073_v60 = vrot.slane %v1065_v47, 6 }
 0x77a   :  { %v1068_v19 = vpop.permute.xlu2 %1067 }
 0x77b   :  { %1702 = vst.msk [vmem:[%s2830_s4 + $0x8] sm:$0x3] %vm573_vm1, %v1068_v19  ;;  %v1075_v46 = vsel %vm581_vm2, %v1068_v19, %v1073_v60 }
 0x77c   :  { %v1076_v21 = vpack.c.bf16 %v1075_v46, %v1075_v46 }
 0x77e   :  { %1085 = vmatmul.bf16.vlgmr.msra.gmra.mxu0 %v1076_v21  ;;  %1098 = vmatmul.bf16.vlgmr.msra.gmra.mxu1 %v1076_v21 }
 0x77f   :  { %1111 = vmatmul.bf16.vlgmr.msra.gmra.mxu2 %v1076_v21  ;;  %1124 = vmatmul.bf16.vlgmr.msra.gmra.mxu3 %v1076_v21 }
 0x780   :  { %1325 = vmatpush.bf16.msra.mxu0 %v2146_v39  ;;  %1338 = vmatpush.bf16.msra.mxu1 %v2148_v40 }
 0x781   :  { %1351 = vmatpush.bf16.msra.mxu2 %v2159_v44  ;;  %1364 = vmatpush.bf16.msra.mxu3 %v2176_v52 }
 0x784   :  { %1326 = vmatpush.bf16.msra.mxu0 %v2180_v53  ;;  %1339 = vmatpush.bf16.msra.mxu1 %v2182_v54 }
 0x785   :  { %1352 = vmatpush.bf16.msra.mxu2 %v2194_v58  ;;  %1365 = vmatpush.bf16.msra.mxu3 %v2212_v0 }
 0x788   :  { %1327 = vmatpush.bf16.msra.mxu0 %v2216_v1  ;;  %1340 = vmatpush.bf16.msra.mxu1 %v2218_v2 }
 0x789   :  { %1353 = vmatpush.bf16.msra.mxu2 %v2230_v6  ;;  %1366 = vmatpush.bf16.msra.mxu3 %v2248_v12 }
 0x78c   :  { %1328 = vmatpush.bf16.msra.mxu0 %v2252_v13  ;;  %1341 = vmatpush.bf16.msra.mxu1 %v2254_v14 }
 0x78d   :  { %1354 = vmatpush.bf16.msra.mxu2 %v2266_v18  ;;  %1367 = vmatpush.bf16.msra.mxu3 %v2284_v24 }
 0x790   :  { %1329 = vmatpush.bf16.msra.mxu0 %v2288_v25  ;;  %1342 = vmatpush.bf16.msra.mxu1 %v2290_v26 }
 0x791   :  { %1355 = vmatpush.bf16.msra.mxu2 %v2302_v30  ;;  %1368 = vmatpush.bf16.msra.mxu3 %v2320_v36 }
 0x794   :  { %1330 = vmatpush.bf16.msra.mxu0 %v2324_v37  ;;  %1343 = vmatpush.bf16.msra.mxu1 %v2326_v38  ;;  %v1155_v37 = vrot.slane %v2729_v48, 6 }
 0x795   :  { %1356 = vmatpush.bf16.msra.mxu2 %v2338_v45  ;;  %1369 = vmatpush.bf16.msra.mxu3 %v2356_v51 }
 0x798   :  { %1331 = vmatpush.bf16.msra.mxu0 %v2360_v55  ;;  %1344 = vmatpush.bf16.msra.mxu1 %v2362_v56 }
 0x799   :  { %1357 = vmatpush.bf16.msra.mxu2 %v2374_v61  ;;  %1370 = vmatpush.bf16.msra.mxu3 %v2392_v7  ;;  %v1176_v7 = vrot.slane %v2732_v50, 2 }
 0x79c   :  { %1332 = vmatpush.bf16.msra.mxu0 %v2396_v8  ;;  %1345 = vmatpush.bf16.msra.mxu1 %v2398_v9 }
 0x79d   :  { %1358 = vmatpush.bf16.msra.mxu2 %v2401_v10  ;;  %1371 = vmatpush.bf16.msra.mxu3 %v2412_v16 }
 0x7fb   :  { %v1086_v39 = vpop.f32.mrf.mxu0  ;;  %v1099_v40 = vpop.f32.mrf.mxu1 }
 0x7fc   :  { %v1131_v44 = vrot.slane %v1086_v39, 6  ;;  %v1132_v53 = vrot.slane %v1099_v40, 6 }
 0x7fe   :  { %v1135_v52 = vadd.f32 %v1131_v44, %v2483_v31  ;;  %v1136_v58 = vadd.f32 %v1132_v53, %v2487_v35 }
 0x800   :  { %v1145_v54 = vmul.f32 0.5, %v1135_v52  ;;  %v1150_v20 = vmul.f32 0.5, %v1136_v58 }
 0x802   :  { %1855 = vtanh.f32 %v1145_v54  ;;  %v1112_v0 = vpop.f32.mrf.mxu2  ;;  %v1125_v1 = vpop.f32.mrf.mxu3 }
 0x803   :  { %v1139_v2 = vrot.slane %v1112_v0, 4  ;;  %v1088_v6 = vpop.f32.mrf.mxu0  ;;  %v1101_v12 = vpop.f32.mrf.mxu1  ;;  %v1140_v14 = vrot.slane %v1125_v1, 4  ;;  %1857 = vtanh.f32 %v1136_v58 }
 0x805   :  { %v1143_v13 = vadd.f32 %v1139_v2, %v2485_v33  ;;  %v1144_v26 = vadd.f32 %v1140_v14, %v2489_v42 }
 0x807   :  { %v1166_v18 = vmul.f32 0.5, %v1143_v13  ;;  %v1171_v57 = vmul.f32 0.5, %v1144_v26 }
 0x808   :  { %v1856_v24 = vpop.eup %1855 }
 0x809   :  { %v1147_v25 = vadd.f32 1.0, %v1856_v24  ;;  %1859 = vtanh.f32 %v1166_v18  ;;  %v1858_v45 = vpop.eup %1857 }
 0x80a   :  { %v1114_v30 = vpop.f32.mrf.mxu2  ;;  %v1127_v36 = vpop.f32.mrf.mxu3  ;;  %1861 = vtanh.f32 %v1144_v26 }
 0x80b   :  { %v1148_v38 = vmul.f32 0.5, %v1147_v25  ;;  %1863 = vtanh.f32 %v1150_v20 }
 0x80c   :  { %1865 = vtanh.f32 %v1171_v57 }
 0x80d   :  { %v1158_v51 = vmul.f32 %v1858_v45, %v1148_v38  ;;  %v1157_v55 = vmul.f32 %v1155_v37, %v1148_v38 }
 0x80f   :  { %v1860_v56 = vpop.eup %1859  ;;  %1160 = vrot.lane.b32.xlu0 %v1158_v51, %s1904_s2 }
 0x810   :  { %v1168_v61 = vadd.f32 1.0, %v1860_v56  ;;  %v1862_v9 = vpop.eup %1861 }
 0x811   :  { %v1864_v22 = vpop.eup %1863 }
 0x812   :  { %v1169_v8 = vmul.f32 0.5, %v1168_v61  ;;  %v1152_v62 = vadd.f32 1.0, %v1864_v22  ;;  %v1866_v4 = vpop.eup %1865 }
 0x813   :  { %v1173_v48 = vadd.f32 1.0, %v1866_v4 }
 0x814   :  { %v1179_v10 = vmul.f32 %v1862_v9, %v1169_v8  ;;  %v1178_v16 = vmul.f32 %v1176_v7, %v1169_v8  ;;  %v1153_v11 = vmul.f32 0.5, %v1152_v62 }
 0x815   :  { %v1174_v41 = vmul.f32 0.5, %v1173_v48 }
 0x816   :  { %1181 = vrot.lane.b32.xlu1 %v1179_v10, %s1904_s2 }
 0x881   :  { %v1161_v5 = vpop.permute.xlu0 %1160 }
 0x882   :  { %v1163_v23 = vadd.f32 %v1161_v5, %v1157_v55 }
 0x884   :  { %1867 = vtanh.f32 %v1163_v23  ;;  %v1279_v14 = vrot.slane %v1163_v23, 6 }
 0x888   :  { %v1182_v28 = vpop.permute.xlu1 %1181 }
 0x889   :  { %v1184_v34 = vadd.f32 %v1182_v28, %v1178_v16 }
 0x88a   :  { %v1868_v32 = vpop.eup %1867 }
 0x88b   :  { %1869 = vtanh.f32 %v1184_v34  ;;  %v1165_v43 = vmul.f32 %v1868_v32, %v1153_v11  ;;  %v1300_v37 = vrot.slane %v1184_v34, 2 }
 0x88d   :  { %1188 = vrot.lane.b32.xlu2 %v1165_v43, %s1904_s2 }
 0x891   :  { %v1870_v49 = vpop.eup %1869 }
 0x892   :  { %v1186_v63 = vmul.f32 %v1870_v49, %v1174_v41 }
 0x894   :  { %1705 = vst.msk [vmem:[%s2830_s4] sm:$0x30] %vm702_vm3, %v1186_v63  ;;  %v1194_v29 = vrot.slane %v1186_v63, 2 }
 0x8e7   :  { %v1189_v3 = vpop.permute.xlu2 %1188 }
 0x8e8   :  { %1704 = vst.msk [vmem:[%s2830_s4 + $0x8] sm:$0xc] %vm699_vm4, %v1189_v3  ;;  %v1196_v50 = vsel %vm581_vm2, %v1189_v3, %v1194_v29 }
 0x8e9   :  { %v1197_v15 = vpack.c.bf16 %v1196_v50, %v1196_v50 }
 0x8eb   :  { %v1199_v27 = vrot.slane %v1197_v15, 1 }
 0x8ed   :  { %1209 = vmatmul.bf16.vlgmr.msrb.gmra.mxu0 %v1199_v27  ;;  %1222 = vmatmul.bf16.vlgmr.msrb.gmra.mxu1 %v1199_v27 }
 0x8ee   :  { %1235 = vmatmul.bf16.vlgmr.msrb.gmra.mxu2 %v1199_v27  ;;  %1248 = vmatmul.bf16.vlgmr.msrb.gmra.mxu3 %v1199_v27 }
 0x96a   :  { %v1210_v59 = vpop.f32.mrf.mxu0  ;;  %v1223_v17 = vpop.f32.mrf.mxu1 }
 0x96b   :  { %v1255_v47 = vrot.slane %v1210_v59, 4  ;;  %v1256_v19 = vrot.slane %v1223_v17, 4 }
 0x96d   :  { %v1259_v60 = vadd.f32 %v1255_v47, %v2483_v31  ;;  %v1260_v21 = vadd.f32 %v1256_v19, %v2487_v35 }
 0x96f   :  { %v1269_v46 = vmul.f32 0.5, %v1259_v60  ;;  %v1274_v56 = vmul.f32 0.5, %v1260_v21 }
 0x971   :  { %1871 = vtanh.f32 %v1269_v46  ;;  %v1236_v39 = vpop.f32.mrf.mxu2  ;;  %v1249_v40 = vpop.f32.mrf.mxu3 }
 0x972   :  { %v1263_v44 = vrot.slane %v1236_v39, 6  ;;  %v1212_v52 = vpop.f32.mrf.mxu0  ;;  %v1225_v53 = vpop.f32.mrf.mxu1  ;;  %v1264_v58 = vrot.slane %v1249_v40, 6  ;;  %1873 = vtanh.f32 %v1260_v21 }
 0x974   :  { %v1267_v54 = vadd.f32 %v1263_v44, %v2485_v33  ;;  %v1268_v6 = vadd.f32 %v1264_v58, %v2489_v42 }
 0x976   :  { %v1290_v0 = vmul.f32 0.5, %v1267_v54  ;;  %v1295_v61 = vmul.f32 0.5, %v1268_v6 }
 0x977   :  { %v1872_v1 = vpop.eup %1871 }
 0x978   :  { %v1271_v2 = vadd.f32 1.0, %v1872_v1  ;;  %1875 = vtanh.f32 %v1290_v0  ;;  %v1874_v24 = vpop.eup %1873 }
 0x979   :  { %v1238_v12 = vpop.f32.mrf.mxu2  ;;  %v1251_v13 = vpop.f32.mrf.mxu3  ;;  %1877 = vtanh.f32 %v1268_v6 }
 0x97a   :  { %v1272_v18 = vmul.f32 0.5, %v1271_v2  ;;  %1879 = vtanh.f32 %v1274_v56 }
 0x97b   :  { %1881 = vtanh.f32 %v1295_v61 }
 0x97c   :  { %v1282_v25 = vmul.f32 %v1874_v24, %v1272_v18  ;;  %v1281_v26 = vmul.f32 %v1279_v14, %v1272_v18 }
 0x97e   :  { %v1876_v30 = vpop.eup %1875  ;;  %1284 = vrot.lane.b32.xlu0 %v1282_v25, %s1904_s2 }
 0x97f   :  { %v1292_v36 = vadd.f32 1.0, %v1876_v30  ;;  %v1878_v45 = vpop.eup %1877 }
 0x980   :  { %v1880_v8 = vpop.eup %1879 }
 0x981   :  { %v1293_v38 = vmul.f32 0.5, %v1292_v36  ;;  %v1276_v10 = vadd.f32 1.0, %v1880_v8  ;;  %v1882_v20 = vpop.eup %1881 }
 0x982   :  { %v1297_v62 = vadd.f32 1.0, %v1882_v20 }
 0x983   :  { %v1303_v51 = vmul.f32 %v1878_v45, %v1293_v38  ;;  %v1302_v55 = vmul.f32 %v1300_v37, %v1293_v38  ;;  %v1277_v5 = vmul.f32 0.5, %v1276_v10 }
 0x984   :  { %v1298_v28 = vmul.f32 0.5, %v1297_v62 }
 0x985   :  { %1305 = vrot.lane.b32.xlu1 %v1303_v51, %s1904_s2 }
 0x9f0   :  { %v1285_v7 = vpop.permute.xlu0 %1284 }
 0x9f1   :  { %v1287_v9 = vadd.f32 %v1285_v7, %v1281_v26 }
 0x9f3   :  { %1883 = vtanh.f32 %v1287_v9  ;;  %v1397_v52 = vrot.slane %v1287_v9, 6 }
 0x9f7   :  { %v1306_v16 = vpop.permute.xlu1 %1305 }
 0x9f8   :  { %v1308_v57 = vadd.f32 %v1306_v16, %v1302_v55 }
 0x9f9   :  { %v1884_v22 = vpop.eup %1883 }
 0x9fa   :  { %1885 = vtanh.f32 %v1308_v57  ;;  %v1289_v23 = vmul.f32 %v1884_v22, %v1277_v5 }
 0x9fc   :  { %1312 = vrot.lane.b32.xlu2 %v1289_v23, %s1904_s2 }
 0xa00   :  { %v1886_v4 = vpop.eup %1885 }
 0xa01   :  { %v1310_v34 = vmul.f32 %v1886_v4, %v1298_v28 }
 0xa03   :  { %1707 = vst.msk [vmem:[%s2830_s4] sm:$0xc] %vm830_vm5, %v1310_v34  ;;  %v1318_v11 = vrot.slane %v1310_v34, 6 }
 0xa56   :  { %v1313_v32 = vpop.permute.xlu2 %1312 }
 0xa57   :  { %1706 = vst.msk [vmem:[%s2830_s4 + $0x8] sm:$0x30] %vm827_vm6, %v1313_v32  ;;  %v1320_v43 = vsel %vm581_vm2, %v1313_v32, %v1318_v11 }
 0xa58   :  { %v1321_v48 = vpack.c.bf16 %v1320_v43, %v1320_v43 }
 0xa5a   :  { %v1323_v41 = vrot.slane %v1321_v48, 2 }
 0xa5c   :  { %1333 = vmatmul.bf16.vlgmr.msra.gmra.mxu0 %v1323_v41  ;;  %1346 = vmatmul.bf16.vlgmr.msra.gmra.mxu1 %v1323_v41 }
 0xa5d   :  { %1359 = vmatmul.bf16.vlgmr.msra.gmra.mxu2 %v1323_v41  ;;  %1372 = vmatmul.bf16.vlgmr.msra.gmra.mxu3 %v1323_v41 }
 0xad9   :  { %v1334_v49 = vpop.f32.mrf.mxu0  ;;  %v1347_v63 = vpop.f32.mrf.mxu1 }
 0xada   :  { %v1379_v29 = vrot.slane %v1334_v49, 2  ;;  %v1380_v50 = vrot.slane %v1347_v63, 2 }
 0xadc   :  { %v1383_v3 = vadd.f32 %v1379_v29, %v2483_v31  ;;  %v1384_v27 = vadd.f32 %v1380_v50, %v2487_v35 }
 0xade   :  { %v1387_v15 = vmul.f32 0.5, %v1383_v3 }
 0xae0   :  { %1887 = vtanh.f32 %v1387_v15  ;;  %v1360_v59 = vpop.f32.mrf.mxu2  ;;  %v1373_v17 = vpop.f32.mrf.mxu3 }
 0xae1   :  { %v1385_v47 = vadd.f32 %v1360_v59, %v2485_v33  ;;  %v1336_v60 = vpop.f32.mrf.mxu0  ;;  %v1349_v19 = vpop.f32.mrf.mxu1  ;;  %1889 = vtanh.f32 %v1384_v27  ;;  %v1386_v21 = vadd.f32 %v1373_v17, %v2489_v42  ;;  %v1418_v33 = vrot.slane %v1308_v57, 2 }
 0xae2   :  { %v1392_v42 = vmul.f32 0.5, %v1384_v27 }
 0xae3   :  { %v1408_v46 = vmul.f32 0.5, %v1385_v47  ;;  %v1413_v14 = vmul.f32 0.5, %v1386_v21 }
 0xae5   :  { %1891 = vtanh.f32 %v1408_v46 }
 0xae6   :  { %v1888_v39 = vpop.eup %1887  ;;  %1893 = vtanh.f32 %v1386_v21 }
 0xae7   :  { %v1389_v40 = vadd.f32 1.0, %v1888_v39  ;;  %v1890_v54 = vpop.eup %1889  ;;  %1895 = vtanh.f32 %v1392_v42 }
 0xae8   :  { %v1362_v44 = vpop.f32.mrf.mxu2  ;;  %v1375_v31 = vpop.f32.mrf.mxu3  ;;  %1897 = vtanh.f32 %v1413_v14 }
 0xae9   :  { %v1390_v53 = vmul.f32 0.5, %v1389_v40 }
 0xaeb   :  { %v1892_v35 = vpop.eup %1891  ;;  %v1400_v58 = vmul.f32 %v1890_v54, %v1390_v53  ;;  %v1399_v0 = vmul.f32 %v1397_v52, %v1390_v53 }
 0xaec   :  { %v1410_v1 = vadd.f32 1.0, %v1892_v35  ;;  %v1894_v6 = vpop.eup %1893 }
 0xaed   :  { %1402 = vrot.lane.b32.xlu0 %v1400_v58, %s1904_s2  ;;  %v1896_v24 = vpop.eup %1895 }
 0xaee   :  { %v1411_v2 = vmul.f32 0.5, %v1410_v1  ;;  %v1394_v26 = vadd.f32 1.0, %v1896_v24  ;;  %v1898_v36 = vpop.eup %1897 }
 0xaef   :  { %v1415_v51 = vadd.f32 1.0, %v1898_v36 }
 0xaf0   :  { %v1421_v12 = vmul.f32 %v1894_v6, %v1411_v2  ;;  %v1420_v13 = vmul.f32 %v1418_v33, %v1411_v2  ;;  %v1395_v38 = vmul.f32 0.5, %v1394_v26 }
 0xaf1   :  { %v1416_v56 = vmul.f32 0.5, %v1415_v51 }
 0xaf2   :  { %1423 = vrot.lane.b32.xlu1 %v1421_v12, %s1904_s2 }
 0xb5f   :  { %v1403_v18 = vpop.permute.xlu0 %1402 }
 0xb60   :  { %v1405_v25 = vadd.f32 %v1403_v18, %v1399_v0 }
 0xb62   :  { %1899 = vtanh.f32 %v1405_v25 }
 0xb64   :  { %v1424_v30 = vpop.permute.xlu1 %1423 }
 0xb65   :  { %v1426_v37 = vadd.f32 %v1424_v30, %v1420_v13 }
 0xb67   :  { %1901 = vtanh.f32 %v1426_v37 }
 0xb68   :  { %v1900_v45 = vpop.eup %1899 }
 0xb69   :  { %v1407_v55 = vmul.f32 %v1900_v45, %v1395_v38 }
 0xb6b   :  { %1430 = vrot.lane.b32.xlu2 %v1407_v55, %s1904_s2 }
 0xb6d   :  { %v1902_v61 = vpop.eup %1901 }
 0xb6e   :  { %v1428_v7 = vmul.f32 %v1902_v61, %v1416_v56 }
 0xb70   :  { %1434 = vst.msk [vmem:[%s2830_s4] sm:$0x3] %vm952_vm7, %v1428_v7 }
 0xbc5   :  { %v1431_v8 = vpop.permute.xlu2 %1430 }
 0xbc6   :  { %1708 = vst.msk [vmem:[%s2830_s4 + $0x8] sm:$0xc0] %vm949_vm8, %v1431_v8 }

// kernel: khmer_ocr_forward.11
= control target key start
LH: loop header
LB: loop body
LE: loop exit
PB: predicated region body
PF: predicated region fallthrough
CT: control target
= control target key end

     0   :  { %v3176_v2 = vmov 0   ;;  %v224_v39 = vlaneseq  ;;  %vm358_vm0 = vcmask 1041409   ;;  %vm361_vm1 = vcmask 58368   ;;  %s3178_s21 = smov 64   ;;  %s4793_s2 = inlined_call_operand.vmem [shape: bf16[128,128], index: 2, kind: input, shape index: {}]   ;;  %s4794_s4 = inlined_call_operand.vmem [shape: bf16[64,128], index: 4, kind: input, shape index: {}]   ;;  %s4795_s5 = inlined_call_operand.vmem [shape: f32[1,128], index: 5, kind: input, shape index: {}]   ;;  %s4796_s0 = inlined_call_operand.vmem [shape: f32[2,8,128], index: 0, kind: input, shape index: {}]   ;;  %s4797_s3 = inlined_call_operand.vmem [shape: f32[1,128], index: 3, kind: input, shape index: {}]   ;;  %s4798_s6 = inlined_call_operand.vmem [shape: f32[1,128], index: 6, kind: input, shape index: {}]   ;;  %s4799_s1 = inlined_call_operand.vmem [shape: bf16[128,64], index: 1, kind: input, shape index: {}]   ;;  %s4800_s7 = inlined_call_operand.vmem [shape: bf16[256,256], index: 7, kind: input, shape index: {}]   ;;  %s4801_s8 = inlined_call_operand.vmem [shape: f32[1,256], index: 8, kind: input, shape index: {}]   ;;  %s4802_s9 = inlined_call_operand.vmem [shape: bf16[192,128], index: 9, kind: input, shape index: {}]   ;;  %s4803_s10 = inlined_call_operand.vmem [shape: f32[1,128], index: 10, kind: input, shape index: {}]   ;;  %s4804_s11 = inlined_call_operand.vmem [shape: f32[8,2,128], index: 11, kind: output, shape index: {}]  }
   0x1   :  { %v2963_v0 = vld [vmem:[%s4793_s2 + $0x38] sm:$0xff]  ;;  %2968 = vset.pattern.permute.xlu2 %v3176_v2  ;;  %2967 = vset.pattern.permute.xlu1 %v3176_v2  ;;  %v2962_v3 = vld [vmem:[%s4793_s2 + $0x30] sm:$0xff]  ;;  %v2961_v5 = vld [vmem:[%s4793_s2 + $0x28] sm:$0xff]  ;;  %vm318_vm4 = vcmask 523264   ;;  %vm780_vm6 = vcmask 1041408  }
   0x2   :  { %v3245_v1 = vld [vmem:[%s4794_s4 + $0x18] sm:$0xff]  ;;  %2969 = vset.pattern.permute.xlu0 %v3176_v2  ;;  %195 = vmatpush.bf16.msra.mxu0 %v2963_v0  ;;  %v3254_v4 = vld [vmem:[%s4794_s4 + $0x10] sm:$0xff]  ;;  %v3263_v6 = vld [vmem:[%s4794_s4 + $0x8] sm:$0xff]  ;;  %v3323_v40 = vand.u32 127, %v224_v39 }
   0x3   :  { %211 = vmatpush.bf16.msra.mxu1 %v2963_v0  ;;  %326 = vmatpush.bf16.msra.mxu3 %v3245_v1  ;;  %v2960_v7 = vld [vmem:[%s4793_s2 + $0x20] sm:$0xff]  ;;  %v2959_v9 = vld [vmem:[%s4793_s2 + $0x18] sm:$0xff]  ;;  %v2958_v10 = vld [vmem:[%s4793_s2 + $0x10] sm:$0xff] }
   0x4   :  { %v3272_v8 = vld [vmem:[%s4794_s4] sm:$0xff]  ;;  %v2957_v11 = vld [vmem:[%s4793_s2 + $0x8] sm:$0xff]  ;;  %v3336_v61 = vld [vmem:[%s4799_s1 + $0x38] sm:$0xff]  ;;  %vm226_vm2 = vcmp.eq.s32.totalorder %v3323_v40, 10 }
   0x5   :  { %v2956_v12 = vld [vmem:[%s4793_s2] sm:$0xff]  ;;  %v3295_v14 = vld [vmem:[%s4796_s0 + $0x8] sm:$0xff]  ;;  %278 = vmatpush.bf16.msra.mxu2 %v3336_v61  ;;  %v3342_v62 = vld [vmem:[%s4799_s1 + $0x30] sm:$0xff] }
   0x6   :  { %196 = vmatpush.bf16.msra.mxu0 %v2962_v3  ;;  %v3290_v13 = vld [vmem:[%s4796_s0] sm:$0xff]  ;;  %v210_v16 = vpack.c.bf16 %v3295_v14, %v3295_v14  ;;  %v3348_v63 = vld [vmem:[%s4799_s1 + $0x28] sm:$0xff]  ;;  %vm2657_vm3 = vmpackc.low %vm226_vm2, %vm226_vm2 }
   0x7   :  { %212 = vmatpush.bf16.msra.mxu1 %v2962_v3  ;;  %327 = vmatpush.bf16.msra.mxu3 %v3254_v4  ;;  %v143_v15 = vpack.c.bf16 %v3290_v13, %v3290_v13  ;;  %v3304_v17 = vld [vmem:[%s4795_s5] ss:$0 sm:$0xff]  ;;  %v3366_v3 = vld [vmem:[%s4799_s1 + $0x10] sm:$0xff]  ;;  %vm2803_vm5 = vmpackc.low %vm318_vm4, %vm318_vm4 }
   0x8   :  { %v2971_v20 = vld [vmem:[%s4797_s3] ss:$0 sm:$0xff] }
   0x9   :  { %v3319_v32 = vld [vmem:[%s4798_s6] ss:$0 sm:$0xff]  ;;  %279 = vmatpush.bf16.msra.mxu2 %v3342_v62 }
   0xa   :  { %197 = vmatpush.bf16.msra.mxu0 %v2961_v5  ;;  %v3354_v0 = vld [vmem:[%s4799_s1 + $0x20] sm:$0xff] }
   0xb   :  { %213 = vmatpush.bf16.msra.mxu1 %v2961_v5  ;;  %328 = vmatpush.bf16.msra.mxu3 %v3263_v6 }
   0xd   :  { %280 = vmatpush.bf16.msra.mxu2 %v3348_v63 }
   0xe   :  { %198 = vmatpush.bf16.msra.mxu0 %v2960_v7 }
   0xf   :  { %214 = vmatpush.bf16.msra.mxu1 %v2960_v7  ;;  %329 = vmatpush.bf16.msra.mxu3 %v3272_v8  ;;  %v3372_v7 = vld [vmem:[%s4799_s1 + $0x8] sm:$0xff] }
  0x11   :  { %281 = vmatpush.bf16.msra.mxu2 %v3354_v0 }
  0x12   :  { %330 = vmatmul.bf16.vlgmr.msra.gmra.mxu3 %v3176_v2  ;;  %199 = vmatpush.bf16.msra.mxu0 %v2959_v9  ;;  %v3360_v2 = vld [vmem:[%s4799_s1 + $0x18] sm:$0xff] }
  0x13   :  { %215 = vmatpush.bf16.msra.mxu1 %v2959_v9  ;;  %v3378_v9 = vld [vmem:[%s4799_s1] sm:$0xff] }
  0x15   :  { %282 = vmatpush.bf16.msra.mxu2 %v3360_v2 }
  0x16   :  { %200 = vmatpush.bf16.msra.mxu0 %v2958_v10 }
  0x17   :  { %216 = vmatpush.bf16.msra.mxu1 %v2958_v10 }
  0x19   :  { %283 = vmatpush.bf16.msra.mxu2 %v3366_v3 }
  0x1a   :  { %201 = vmatpush.bf16.msra.mxu0 %v2957_v11 }
  0x1b   :  { %217 = vmatpush.bf16.msra.mxu1 %v2957_v11 }
  0x1d   :  { %284 = vmatpush.bf16.msra.mxu2 %v3372_v7 }
  0x1e   :  { %202 = vmatpush.bf16.msra.mxu0 %v2956_v12 }
  0x1f   :  { %218 = vmatpush.bf16.msra.mxu1 %v2956_v12 }
  0x21   :  { %203 = vmatmul.bf16.vlgmr.msra.gmra.mxu0 %v143_v15  ;;  %285 = vmatpush.bf16.msra.mxu2 %v3378_v9 }
  0x22   :  { %219 = vmatmul.bf16.vlgmr.msra.gmra.mxu1 %v210_v16 }
  0x95   :  { %v331_v18 = vpop.f32.mrf.mxu3 }
  0x96   :  { %v332_v19 = vadd.f32 %v3304_v17, %v331_v18  ;;  %v4805_v18 = vmov 1.0|1.0  }
  0x97   :  { %2658 = vmatmul.msk.bf16.vlgmr.msra.gmra.mxu2 %vm2657_vm3, %v4805_v18 }
  0x98   :  { %v336_v21 = vrot.slane %v332_v19, 1  ;;  %v337_v22 = vperm.slane %v332_v19, 0  ;;  %v2797_v19 = vld [vmem:[%s4800_s7 + $0xf0] sm:$0xf] }
  0x9a   :  { %v338_v27 = vperm.slane %v336_v21, 0  ;;  %v2942_v21 = vld [vmem:[%s4800_s7 + $0xf4] sm:$0xf] }
  0x9d   :  { %v333_v23 = vpop.f32.mrf.mxu3 }
  0x9e   :  { %v204_v24 = vpop.f32.mrf.mxu0  ;;  %v2799_v23 = vld [vmem:[%s4800_s7 + $0xf8] sm:$0xf0] }
  0x9f   :  { %v3310_v25 = vadd.f32 %v2971_v20, %v204_v24  ;;  %v220_v26 = vpop.f32.mrf.mxu1  ;;  %v2733_v24 = vld [vmem:[%s4800_s7 + $0x70] sm:$0xf] }
  0xa0   :  { %v3312_v28 = vadd.f32 %v2971_v20, %v220_v26  ;;  %v2943_v20 = vld [vmem:[%s4800_s7 + $0xf4] sm:$0xf0] }
  0xa1   :  { %4903 = vst [vmem:[#allocation2_spill] sm:$0xff] %v3310_v25  ;;  %v341_v29 = vadd.f32 %v337_v22, %v3310_v25  ;;  %v3392_v22 = vor.u32 %v2943_v20, %v2797_v19  ;;  %v2927_v26 = vld [vmem:[%s4800_s7 + $0x74] sm:$0xf0] }
  0xa2   :  { %4904 = vst [vmem:[#allocation3_spill] sm:$0xff] %v3312_v28  ;;  %v342_v30 = vadd.f32 %v338_v27, %v3312_v28  ;;  %v3403_v27 = vor.u32 %v2942_v21, %v2799_v23  ;;  %v2765_v23 = vld [vmem:[%s4800_s7 + $0xb0] sm:$0xf] }
  0xa3   :  { %2974 = vtanh.f32 %v341_v29  ;;  %v3405_v29 = vor.u32 %v2927_v26, %v2733_v24  ;;  %611 = vmatpush.bf16.msrb.mxu0 %v3392_v22  ;;  %v2935_v24 = vld [vmem:[%s4800_s7 + $0xb4] sm:$0xf0]  ;;  %v2934_v26 = vld [vmem:[%s4800_s7 + $0xb4] sm:$0xf] }
  0xa4   :  { %2976 = vtanh.f32 %v342_v30  ;;  %v2926_v30 = vld [vmem:[%s4800_s7 + $0x74] sm:$0xf]  ;;  %637 = vmatpush.bf16.msrb.mxu2 %v3403_v27 }
  0xa5   :  { %598 = vmatpush.bf16.msrb.mxu3 %v3405_v29 }
  0xa6   :  { %v206_v31 = vpop.f32.mrf.mxu0 }
  0xa7   :  { %v222_v33 = vpop.f32.mrf.mxu1  ;;  %v2735_v31 = vld [vmem:[%s4800_s7 + $0x78] sm:$0xf0] }
  0xa8   :  { %v2789_v33 = vld [vmem:[%s4800_s7 + $0xe0] sm:$0xf] }
  0xa9   :  { %v2975_v34 = vpop.eup %2974 }
  0xaa   :  { %v348_v35 = vmul.f32 %v2975_v34, %v3319_v32  ;;  %v2977_v36 = vpop.eup %2976  ;;  %v3417_v34 = vor.u32 %v2926_v30, %v2735_v31  ;;  %v2767_v31 = vld [vmem:[%s4800_s7 + $0xb8] sm:$0xf0] }
  0xab   :  { %v349_v37 = vmul.f32 %v2977_v36, %v3319_v32  ;;  %v2940_v36 = vld [vmem:[%s4800_s7 + $0xe4] sm:$0xf] }
  0xac   :  { %350 = vadd.xlane.f32.xlu0 %v348_v35  ;;  %v2941_v35 = vld [vmem:[%s4800_s7 + $0xe4] sm:$0xf0]  ;;  %624 = vmatpush.bf16.msrb.mxu1 %v3417_v34 }
  0xb4   :  { %352 = vadd.xlane.f32.xlu0 %v349_v37  ;;  %v2791_v37 = vld [vmem:[%s4800_s7 + $0xe8] sm:$0xf0] }
  0xb5   :  { %v3432_v39 = vor.u32 %v2940_v36, %v2791_v37  ;;  %v2918_v36 = vld [vmem:[%s4800_s7 + $0x34] sm:$0xf]  ;;  %v2703_v37 = vld [vmem:[%s4800_s7 + $0x38] sm:$0xf0] }
  0xb7   :  { %638 = vmatpush.bf16.msrb.mxu2 %v3432_v39 }
 0x11f   :  { %v351_v38 = vpop.xlane.xlu0 %350 }
 0x120   :  { %v356_v42 = vperm.slane %v351_v38, %v3323_v40 }
 0x127   :  { %v353_v41 = vpop.xlane.xlu0 %352 }
 0x128   :  { %v357_v43 = vperm.slane %v353_v41, %v3323_v40 }
 0x12a   :  { %v359_v44 = vsel %vm358_vm0, %v357_v43, %v356_v42  ;;  %v2925_v42 = vld [vmem:[%s4800_s7 + $0x64] sm:$0xf0]  ;;  %v2924_v43 = vld [vmem:[%s4800_s7 + $0x64] sm:$0xf] }
 0x12b   :  { %v362_v45 = vsel %vm361_vm1, %v359_v44, -inf }
 0x12c   :  { %363 = vmax.xlane.f32.xlu1 %v362_v45  ;;  %v2727_v45 = vld [vmem:[%s4800_s7 + $0x68] sm:$0xf0] }
 0x19f   :  { %v364_v46 = vpop.xlane.xlu1 %363 }
 0x1a0   :  { %v366_v47 = vperm.slane %v364_v46, 0  ;;  %v367_v48 = vperm.slane %v364_v46, 1  ;;  %v2781_v46 = vld [vmem:[%s4800_s7 + $0xd0] sm:$0xf] }
 0x1a2   :  { %v370_v49 = vsub.f32 %v351_v38, %v366_v47  ;;  %v371_v50 = vsub.f32 %v353_v41, %v367_v48  ;;  %v3430_v38 = vor.u32 %v2941_v35, %v2789_v33  ;;  %v2725_v41 = vld [vmem:[%s4800_s7 + $0x60] sm:$0xf]  ;;  %v2939_v47 = vld [vmem:[%s4800_s7 + $0xd4] sm:$0xf0]  ;;  %v3455_v48 = vor.u32 %v2924_v43, %v2727_v45  ;;  %v2701_v33 = vld [vmem:[%s4800_s7 + $0x30] sm:$0xf] }
 0x1a3   :  { %v3444_v44 = vor.u32 %v2925_v42, %v2725_v41  ;;  %v2919_v35 = vld [vmem:[%s4800_s7 + $0x34] sm:$0xf0]  ;;  %v3548_v41 = vor.u32 %v2935_v24, %v2765_v23  ;;  %v3552_v45 = vor.u32 %v2934_v26, %v2767_v31  ;;  %v2749_v24 = vld [vmem:[%s4800_s7 + $0x90] sm:$0xf]  ;;  %v2930_v31 = vld [vmem:[%s4800_s7 + $0x94] sm:$0xf] }
 0x1a4   :  { %v372_v51 = vmul.f32 1.442695, %v370_v49  ;;  %v374_v52 = vmul.f32 1.442695, %v371_v50  ;;  %v2938_v49 = vld [vmem:[%s4800_s7 + $0xd4] sm:$0xf]  ;;  %612 = vmatpush.bf16.msrb.mxu0 %v3430_v38  ;;  %625 = vmatpush.bf16.msrb.mxu1 %v3455_v48 }
 0x1a5   :  { %v2783_v50 = vld [vmem:[%s4800_s7 + $0xd8] sm:$0xf0]  ;;  %599 = vmatpush.bf16.msrb.mxu3 %v3444_v44  ;;  %4905 = vst [vmem:[#allocation4_spill] sm:$0xff] %v3552_v45  ;;  %v2931_v26 = vld [vmem:[%s4800_s7 + $0x94] sm:$0xf0] }
 0x1a6   :  { %2978 = vpow2.f32 %v372_v51  ;;  %v2717_v51 = vld [vmem:[%s4800_s7 + $0x50] sm:$0xf] }
 0x1a7   :  { %2980 = vpow2.f32 %v374_v52  ;;  %v3467_v52 = vor.u32 %v2939_v47, %v2781_v46  ;;  %v3554_v46 = vor.u32 %v2919_v35, %v2701_v33  ;;  %v2757_v47 = vld [vmem:[%s4800_s7 + $0xa0] sm:$0xf] }
 0x1a9   :  { %613 = vmatpush.bf16.msrb.mxu0 %v3467_v52 }
 0x1ac   :  { %v2979_v53 = vpop.eup %2978 }
 0x1ad   :  { %v2981_v54 = vpop.eup %2980  ;;  %379 = vperm.xlu1 %2967, %v2979_v53  }
 0x1ae   :  { %382 = vperm.xlu2 %2968, %v2981_v54  }
 0x208   :  { %v383_v55 = vpop.permute.xlu2 %382 }
 0x209   :  { %v385_v57 = vperm.slane %v383_v55, %v3323_v40  ;;  %v2719_v55 = vld [vmem:[%s4800_s7 + $0x58] sm:$0xf0] }
 0x21f   :  { %v380_v56 = vpop.permute.xlu1 %379 }
 0x220   :  { %v384_v58 = vperm.slane %v380_v56, %v3323_v40  ;;  %v3480_v56 = vor.u32 %v2938_v49, %v2783_v50  ;;  %v2933_v49 = vld [vmem:[%s4800_s7 + $0xa4] sm:$0xf0]  ;;  %v2932_v50 = vld [vmem:[%s4800_s7 + $0xa4] sm:$0xf] }
 0x222   :  { %v386_v59 = vsel %vm358_vm0, %v385_v57, %v384_v58  ;;  %v2773_v58 = vld [vmem:[%s4800_s7 + $0xc0] sm:$0xf]  ;;  %639 = vmatpush.bf16.msrb.mxu2 %v3480_v56 }
 0x223   :  { %v388_v60 = vsel %vm361_vm1, %v386_v59, 0.0  ;;  %v2937_v59 = vld [vmem:[%s4800_s7 + $0xc4] sm:$0xf0] }
 0x224   :  { %389 = vadd.xlane.f32.xlu2 %v388_v60  ;;  %v2936_v60 = vld [vmem:[%s4800_s7 + $0xc4] sm:$0xf]  ;;  %v3512_v19 = vor.u32 %v2937_v59, %v2773_v58  ;;  %v2693_v58 = vld [vmem:[%s4800_s7 + $0x20] sm:$0xf]  ;;  %v2917_v59 = vld [vmem:[%s4800_s7 + $0x24] sm:$0xf0] }
 0x225   :  { %v3592_v23 = vor.u32 %v2917_v59, %v2693_v58  ;;  %v2741_v59 = vld [vmem:[%s4800_s7 + $0x80] sm:$0xf] }
 0x226   :  { %614 = vmatpush.bf16.msrb.mxu0 %v3512_v19 }
 0x227   :  { %4908 = vst [vmem:[#allocation7_spill] sm:$0xff] %v3592_v23 }
 0x22a   :  { %615 = vmatpush.bf16.msrb.mxu0 %v3548_v41 }
 0x297   :  { %v390_v5 = vpop.xlane.xlu2 %389 }
 0x298   :  { %2982 = vrcp.f32 %v390_v5 }
 0x29e   :  { %v2983_v10 = vpop.eup %2982 }
 0x29f   :  { %v394_v11 = vperm.slane %v2983_v10, 1  ;;  %v393_v12 = vperm.slane %v2983_v10, 0  ;;  %v2775_v10 = vld [vmem:[%s4800_s7 + $0xc8] sm:$0xf0] }
 0x2a0   :  { %v3516_v20 = vor.u32 %v2936_v60, %v2775_v10  ;;  %v2916_v60 = vld [vmem:[%s4800_s7 + $0x24] sm:$0xf]  ;;  %v2695_v10 = vld [vmem:[%s4800_s7 + $0x28] sm:$0xf0] }
 0x2a1   :  { %v398_v15 = vmul.f32 %v2981_v54, %v394_v11  ;;  %v397_v16 = vmul.f32 %v2979_v53, %v393_v12  ;;  %v2923_v53 = vld [vmem:[%s4800_s7 + $0x54] sm:$0xf0]  ;;  %v2922_v54 = vld [vmem:[%s4800_s7 + $0x54] sm:$0xf]  ;;  %v2709_v11 = vld [vmem:[%s4800_s7 + $0x40] sm:$0xf] }
 0x2a2   :  { %v3482_v57 = vor.u32 %v2923_v53, %v2717_v51  ;;  %v3494_v5 = vor.u32 %v2922_v54, %v2719_v55  ;;  %v2921_v12 = vld [vmem:[%s4800_s7 + $0x44] sm:$0xf0]  ;;  %640 = vmatpush.bf16.msrb.mxu2 %v3516_v20  ;;  %v3568_v54 = vor.u32 %v2918_v36, %v2703_v37  ;;  %v2759_v55 = vld [vmem:[%s4800_s7 + $0xa8] sm:$0xf0]  ;;  %v3604_v36 = vor.u32 %v2916_v60, %v2695_v10  ;;  %v2751_v37 = vld [vmem:[%s4800_s7 + $0x98] sm:$0xf0] }
 0x2a3   :  { %406 = vperm.xlu1 %2967, %v398_v15   ;;  %401 = vperm.xlu0 %2969, %v397_v16   ;;  %v2920_v15 = vld [vmem:[%s4800_s7 + $0x44] sm:$0xf]  ;;  %v2711_v16 = vld [vmem:[%s4800_s7 + $0x48] sm:$0xf0]  ;;  %v3518_v21 = vor.u32 %v2921_v12, %v2709_v11  ;;  %v2929_v60 = vld [vmem:[%s4800_s7 + $0x84] sm:$0xf0] }
 0x2a4   :  { %600 = vmatpush.bf16.msrb.mxu3 %v3482_v57  ;;  %626 = vmatpush.bf16.msrb.mxu1 %v3494_v5  ;;  %v3530_v30 = vor.u32 %v2920_v15, %v2711_v16  ;;  %v3586_v15 = vor.u32 %v2933_v49, %v2757_v47  ;;  %v3590_v16 = vor.u32 %v2932_v50, %v2759_v55  ;;  %v2914_v47 = vld [vmem:[%s4800_s7 + $0x14] sm:$0xf]  ;;  %v2687_v49 = vld [vmem:[%s4800_s7 + $0x18] sm:$0xf0] }
 0x2a5   :  { %v3626_v55 = vor.u32 %v2930_v31, %v2751_v37 }
 0x2a6   :  { %4906 = vst [vmem:[#allocation5_spill] sm:$0xff] %v3586_v15  ;;  %641 = vmatpush.bf16.msrb.mxu2 %v3552_v45  ;;  %616 = vmatpush.bf16.msrb.mxu0 %v3586_v15 }
 0x2a7   :  { %4907 = vst [vmem:[#allocation6_spill] sm:$0xff] %v3590_v16 }
 0x2a8   :  { %601 = vmatpush.bf16.msrb.mxu3 %v3518_v21  ;;  %627 = vmatpush.bf16.msrb.mxu1 %v3530_v30  ;;  %4910 = vst [vmem:[#allocation9_spill] sm:$0xff] %v3626_v55 }
 0x2aa   :  { %642 = vmatpush.bf16.msrb.mxu2 %v3590_v16 }
 0x2ac   :  { %602 = vmatpush.bf16.msrb.mxu3 %v3554_v46  ;;  %628 = vmatpush.bf16.msrb.mxu1 %v3568_v54 }
 0x2ae   :  { %643 = vmatpush.bf16.msrb.mxu2 %v3626_v55 }
 0x2b0   :  { %603 = vmatpush.bf16.msrb.mxu3 %v3592_v23  ;;  %629 = vmatpush.bf16.msrb.mxu1 %v3604_v36 }
 0x315   :  { %v407_v42 = vpop.permute.xlu1 %406  ;;  %v402_v43 = vpop.permute.xlu0 %401 }
 0x316   :  { %v410_v51 = vmul.f32 %v407_v42, %v3295_v14  ;;  %v409_v53 = vmul.f32 %v402_v43, %v3290_v13  ;;  %v2685_v42 = vld [vmem:[%s4800_s7 + $0x10] sm:$0xf]  ;;  %v2915_v43 = vld [vmem:[%s4800_s7 + $0x14] sm:$0xf0] }
 0x317   :  { %v3628_v58 = vor.u32 %v2915_v43, %v2685_v42  ;;  %v3646_v42 = vor.u32 %v2929_v60, %v2741_v59  ;;  %v2913_v59 = vld [vmem:[%s4800_s7 + $0x4] sm:$0xf0]  ;;  %v2912_v60 = vld [vmem:[%s4800_s7 + $0x4] sm:$0xf] }
 0x318   :  { %v417_v11 = vrot.slane %v410_v51, 4  ;;  %v411_v12 = vrot.slane %v409_v53, 4 }
 0x319   :  { %4911 = vst [vmem:[#allocation10_spill] sm:$0xff] %v3628_v58  ;;  %604 = vmatpush.bf16.msrb.mxu3 %v3628_v58 }
 0x31a   :  { %v418_v33 = vadd.f32 %v417_v11, %v410_v51  ;;  %v412_v35 = vadd.f32 %v411_v12, %v409_v53  ;;  %v3622_v53 = vor.u32 %v2931_v26, %v2749_v24  ;;  %v3637_v12 = vor.u32 %v2914_v47, %v2687_v49  ;;  %v2928_v24 = vld [vmem:[%s4800_s7 + $0x84] sm:$0xf]  ;;  %v2743_v26 = vld [vmem:[%s4800_s7 + $0x88] sm:$0xf0]  ;;  %4912 = vst [vmem:[#allocation11_spill] sm:$0xff] %v3646_v42  ;;  %v287_v49 = vpop.f32.mrf.mxu2 }
 0x31c   :  { %v419_v50 = vrot.slane %v418_v33, 2  ;;  %v413_v51 = vrot.slane %v412_v35, 2  ;;  %4909 = vst [vmem:[#allocation8_spill] sm:$0xff] %v3622_v53  ;;  %617 = vmatpush.bf16.msrb.mxu0 %v3622_v53  ;;  %630 = vmatpush.bf16.msrb.mxu1 %v3637_v12 }
 0x31e   :  { %v420_v10 = vadd.f32 %v419_v50, %v418_v33  ;;  %v414_v11 = vadd.f32 %v413_v51, %v412_v35  ;;  %v3650_v33 = vor.u32 %v2928_v24, %v2743_v26  ;;  %v2677_v51 = vld [vmem:[%s4800_s7] sm:$0xf] }
 0x320   :  { %v421_v31 = vrot.slane %v420_v10, 1  ;;  %v415_v37 = vrot.slane %v414_v11, 1  ;;  %4913 = vst [vmem:[#allocation12_spill] sm:$0xff] %v3650_v33  ;;  %618 = vmatpush.bf16.msrb.mxu0 %v3646_v42  ;;  %644 = vmatpush.bf16.msrb.mxu2 %v3650_v33 }
 0x322   :  { %v416_v35 = vadd.f32 %v415_v37, %v414_v11  ;;  %v422_v43 = vadd.f32 %v421_v31, %v420_v10  ;;  %v289_v50 = vpop.f32.mrf.mxu2  ;;  %v3677_v10 = vor.u32 %v2913_v59, %v2677_v51  ;;  %v2679_v11 = vld [vmem:[%s4800_s7 + $0x8] sm:$0xf0] }
 0x323   :  { %v3682_v24 = vor.u32 %v2912_v60, %v2679_v11 }
 0x324   :  { %v425_v47 = vsel %vm358_vm0, %v422_v43, %v416_v35  ;;  %829 = vmatpush.bf16.msra.mxu2 %v3245_v1  ;;  %931 = vmatpush.bf16.msra.mxu0 %v3405_v29  ;;  %4914 = vst [vmem:[#allocation13_spill] sm:$0xff] %v3677_v10 }
 0x325   :  { %426 = vrot.lane.b32.xlu1 %v425_v47, %s3178_s21  ;;  %605 = vmatpush.bf16.msrb.mxu3 %v3677_v10 }
 0x326   :  { %631 = vmatpush.bf16.msrb.mxu1 %v3682_v24 }
 0x328   :  { %830 = vmatpush.bf16.msra.mxu2 %v3254_v4  ;;  %932 = vmatpush.bf16.msra.mxu0 %v3444_v44 }
 0x32a   :  { %805 = vmatpush.bf16.msra.mxu1 %v3336_v61 }
 0x32c   :  { %831 = vmatpush.bf16.msra.mxu2 %v3263_v6  ;;  %933 = vmatpush.bf16.msra.mxu0 %v3482_v57 }
 0x32e   :  { %806 = vmatpush.bf16.msra.mxu1 %v3342_v62 }
 0x330   :  { %832 = vmatpush.bf16.msra.mxu2 %v3272_v8  ;;  %934 = vmatpush.bf16.msra.mxu0 %v3518_v21 }
 0x332   :  { %807 = vmatpush.bf16.msra.mxu1 %v3348_v63 }
 0x334   :  { %935 = vmatpush.bf16.msra.mxu0 %v3554_v46 }
 0x336   :  { %808 = vmatpush.bf16.msra.mxu1 %v3354_v0 }
 0x338   :  { %936 = vmatpush.bf16.msra.mxu0 %v3592_v23 }
 0x33a   :  { %809 = vmatpush.bf16.msra.mxu1 %v3360_v2 }
 0x33c   :  { %937 = vmatpush.bf16.msra.mxu0 %v3628_v58 }
 0x33e   :  { %810 = vmatpush.bf16.msra.mxu1 %v3366_v3 }
 0x340   :  { %938 = vmatpush.bf16.msra.mxu0 %v3677_v10 }
 0x342   :  { %811 = vmatpush.bf16.msra.mxu1 %v3372_v7 }
 0x346   :  { %812 = vmatpush.bf16.msra.mxu1 %v3378_v9 }
 0x397   :  { %v3694_v26 = vpop.permute.xlu1 %426 }
 0x398   :  { %v429_v31 = vsel %vm318_vm4, %v287_v49, %v3694_v26  ;;  %v3703_v37 = vpack.c.bf16 %v3694_v26, %v3694_v26  ;;  %v99_v49 = vld [vmem:[%s4801_s8] sm:$0x3] }
 0x399   :  { %v431_v35 = vpack.c.bf16 %v429_v31, %v429_v31  ;;  %v3726_v50 = vperm.slane %v99_v49, 0  ;;  %v3728_v60 = vperm.slane %v99_v49, 1  ;;  %v3736_v49 = vld [vmem:[%s4802_s9 + $0x38] sm:$0xff] }
 0x39a   :  { %2805 = vmatmul.msk.bf16.vlgmr.msrb.gmra.mxu0 %vm2803_vm5, %v3703_v37  ;;  %2808 = vmatmul.msk.bf16.vlgmr.msrb.gmra.mxu2 %vm2803_vm5, %v3703_v37 }
 0x39b   :  { %606 = vmatmul.bf16.vlgmr.msrb.gmra.mxu3 %v431_v35  ;;  %632 = vmatmul.bf16.vlgmr.msrb.gmra.mxu1 %v431_v35 }
 0x39c   :  { %944 = vmatpush.bf16.msrb.mxu2 %v3392_v22  ;;  %970 = vmatpush.bf16.msrb.mxu1 %v3403_v27 }
 0x39d   :  { %753 = vmatpush.bf16.msra.mxu3 %v3736_v49  ;;  %1011 = vmatpush.bf16.msrb.mxu0 %v3736_v49 }
 0x3a0   :  { %945 = vmatpush.bf16.msrb.mxu2 %v3430_v38  ;;  %971 = vmatpush.bf16.msrb.mxu1 %v3432_v39 }
 0x3a4   :  { %946 = vmatpush.bf16.msrb.mxu2 %v3467_v52  ;;  %972 = vmatpush.bf16.msrb.mxu1 %v3480_v56 }
 0x3a8   :  { %947 = vmatpush.bf16.msrb.mxu2 %v3512_v19  ;;  %973 = vmatpush.bf16.msrb.mxu1 %v3516_v20 }
 0x3ac   :  { %948 = vmatpush.bf16.msrb.mxu2 %v3548_v41  ;;  %974 = vmatpush.bf16.msrb.mxu1 %v3552_v45 }
 0x3b0   :  { %949 = vmatpush.bf16.msrb.mxu2 %v3586_v15  ;;  %975 = vmatpush.bf16.msrb.mxu1 %v3590_v16 }
 0x3b4   :  { %950 = vmatpush.bf16.msrb.mxu2 %v3622_v53  ;;  %976 = vmatpush.bf16.msrb.mxu1 %v3626_v55 }
 0x3b8   :  { %951 = vmatpush.bf16.msrb.mxu2 %v3646_v42  ;;  %977 = vmatpush.bf16.msrb.mxu1 %v3650_v33 }
 0x417   :  { %v620_v43 = vpop.f32.mrf.mxu0 }
 0x418   :  { %v633_v47 = vpop.f32.mrf.mxu1 }
 0x419   :  { %v634_v42 = vadd.f32 %v633_v47, %v3728_v60 }
 0x41d   :  { %v646_v51 = vpop.f32.mrf.mxu2 }
 0x41e   :  { %v607_v59 = vpop.f32.mrf.mxu3  ;;  %v647_v10 = vadd.f32 %v646_v51, %v634_v42  ;;  %v3773_v51 = vld [vmem:[%s4802_s9 + $0x18] sm:$0xff] }
 0x41f   :  { %v608_v11 = vadd.f32 %v607_v59, %v3726_v50  ;;  %v622_v31 = vpop.f32.mrf.mxu0  ;;  %4916 = vst [vmem:[#allocation15_spill] sm:$0xff] %v3773_v51  ;;  %v3780_v59 = vld [vmem:[%s4802_s9 + $0x10] sm:$0xff] }
 0x420   :  { %v635_v35 = vpop.f32.mrf.mxu1  ;;  %4917 = vst [vmem:[#allocation16_spill] sm:$0xff] %v3780_v59  ;;  %v3795_v31 = vld [vmem:[%s4802_s9] sm:$0xff] }
 0x421   :  { %v621_v18 = vadd.f32 %v620_v43, %v608_v11  ;;  %v3787_v11 = vld [vmem:[%s4802_s9 + $0x8] sm:$0xff]  ;;  %4919 = vst [vmem:[#allocation18_spill] sm:$0xff] %v3795_v31  ;;  %v3802_v35 = vld [vmem:[%s4802_s9 + $0x58] sm:$0xff] }
 0x422   :  { %4918 = vst [vmem:[#allocation17_spill] sm:$0xff] %v3787_v11 }
 0x423   :  { %v650_v33 = vmul.f32 0.5, %v621_v18  ;;  %v3742_v18 = vld [vmem:[%s4802_s9 + $0x30] sm:$0xff] }
 0x424   :  { %754 = vmatpush.bf16.msra.mxu3 %v3742_v18  ;;  %1012 = vmatpush.bf16.msrb.mxu0 %v3742_v18 }
 0x425   :  { %2984 = vtanh.f32 %v650_v33  ;;  %v648_v55 = vpop.f32.mrf.mxu2 }
 0x426   :  { %v609_v53 = vpop.f32.mrf.mxu3  ;;  %2986 = vtanh.f32 %v647_v10 }
 0x42b   :  { %v2985_v58 = vpop.eup %2984 }
 0x42c   :  { %v652_v16 = vadd.f32 1.0, %v2985_v58  ;;  %v2987_v23 = vpop.eup %2986 }
 0x42e   :  { %v653_v15 = vmul.f32 0.5, %v652_v16  ;;  %v655_v16 = vmul.f32 0.5, %v647_v10  ;;  %v3766_v10 = vld [vmem:[%s4802_s9 + $0x20] sm:$0xff] }
 0x42f   :  { %4915 = vst [vmem:[#allocation14_spill] sm:$0xff] %v3766_v10 }
 0x430   :  { %v660_v45 = vmul.f32 %v2987_v23, %v653_v15  ;;  %2988 = vtanh.f32 %v655_v16  ;;  %v3808_v16 = vld [vmem:[%s4802_s9 + $0x50] sm:$0xff] }
 0x431   :  { %4920 = vst [vmem:[#allocation19_spill] sm:$0xff] %v3808_v16 }
 0x432   :  { %662 = vrot.lane.b32.xlu1 %v660_v45, %s3178_s21  ;;  %v659_v45 = vmul.f32 0.0, %v653_v15  ;;  %v3760_v15 = vld [vmem:[%s4802_s9 + $0x28] sm:$0xff] }
 0x433   :  { %755 = vmatpush.bf16.msra.mxu3 %v3760_v15  ;;  %1013 = vmatpush.bf16.msrb.mxu0 %v3760_v15 }
 0x436   :  { %v2989_v53 = vpop.eup %2988 }
 0x437   :  { %v657_v58 = vadd.f32 1.0, %v2989_v53  ;;  %756 = vmatpush.bf16.msra.mxu3 %v3766_v10  ;;  %1014 = vmatpush.bf16.msrb.mxu0 %v3766_v10  ;;  %v3822_v53 = vld [vmem:[%s4802_s9 + $0x40] sm:$0xff] }
 0x438   :  { %4922 = vst [vmem:[#allocation21_spill] sm:$0xff] %v3822_v53 }
 0x439   :  { %v658_v42 = vmul.f32 0.5, %v657_v58 }
 0x43b   :  { %757 = vmatpush.bf16.msra.mxu3 %v3773_v51  ;;  %1015 = vmatpush.bf16.msrb.mxu0 %v3773_v51 }
 0x43f   :  { %758 = vmatpush.bf16.msra.mxu3 %v3780_v59  ;;  %1016 = vmatpush.bf16.msrb.mxu0 %v3780_v59 }
 0x443   :  { %759 = vmatpush.bf16.msra.mxu3 %v3787_v11  ;;  %1017 = vmatpush.bf16.msrb.mxu0 %v3787_v11 }
 0x447   :  { %760 = vmatpush.bf16.msra.mxu3 %v3795_v31  ;;  %1018 = vmatpush.bf16.msrb.mxu0 %v3795_v31 }
 0x44b   :  { %770 = vmatpush.bf16.msrb.mxu3 %v3802_v35 }
 0x44f   :  { %771 = vmatpush.bf16.msrb.mxu3 %v3808_v16 }
 0x4a4   :  { %v663_v23 = vpop.permute.xlu1 %662 }
 0x4a5   :  { %v3747_v55 = vadd.f32 %v663_v23, %v659_v45  ;;  %v3814_v23 = vld [vmem:[%s4802_s9 + $0x48] sm:$0xff] }
 0x4a6   :  { %4921 = vst [vmem:[#allocation20_spill] sm:$0xff] %v3814_v23  ;;  %772 = vmatpush.bf16.msrb.mxu3 %v3814_v23 }
 0x4a7   :  { %2990 = vtanh.f32 %v3747_v55 }
 0x4aa   :  { %773 = vmatpush.bf16.msrb.mxu3 %v3822_v53 }
 0x4ad   :  { %v2991_v33 = vpop.eup %2990 }
 0x4ae   :  { %v3750_v43 = vmul.f32 %v2991_v33, %v658_v42 }
 0x4b0   :  { %669 = vrot.lane.b32.xlu0 %v3750_v43, %s3178_s21  ;;  %v818_v47 = vpack.c.bf16 %v3750_v43, %v3750_v43 }
 0x4b2   :  { %820 = vrot.lane.b32.xlu2 %v818_v47, %s3178_s21 }
 0x50c   :  { %v821_v45 = vpop.permute.xlu2 %820 }
 0x50d   :  { %2861 = vmatmul.msk.bf16.vlgmr.msra.gmra.mxu2 %vm318_vm4, %v821_v45 }
 0x50e   :  { %1028 = vmatpush.bf16.msra.mxu2 %v3802_v35 }
 0x512   :  { %1029 = vmatpush.bf16.msra.mxu2 %v3808_v16 }
 0x516   :  { %1030 = vmatpush.bf16.msra.mxu2 %v3814_v23 }
 0x51a   :  { %1031 = vmatpush.bf16.msra.mxu2 %v3822_v53 }
 0x522   :  { %v670_v58 = vpop.permute.xlu0 %669 }
 0x523   :  { %v672_v42 = vsel %vm318_vm4, %v670_v58, %v3694_v26 }
 0x524   :  { %v673_v33 = vpack.c.bf16 %v672_v42, %v672_v42  ;;  %v3856_v42 = vld [vmem:[%s4803_s10] ss:$0 sm:$0xff] }
 0x525   :  { %4923 = vst [vmem:[#allocation22_spill] sm:$0xff] %v3856_v42 }
 0x526   :  { %761 = vmatmul.bf16.vlgmr.msra.gmra.mxu3 %v673_v33 }
 0x527   :  { %957 = vmatpush.bf16.msra.mxu3 %v3417_v34 }
 0x52b   :  { %958 = vmatpush.bf16.msra.mxu3 %v3455_v48 }
 0x52f   :  { %959 = vmatpush.bf16.msra.mxu3 %v3494_v5 }
 0x533   :  { %960 = vmatpush.bf16.msra.mxu3 %v3530_v30 }
 0x536   :  { %2857 = vmatmul.msk.bf16.vlgmr.msrb.gmra.mxu3 %vm318_vm4, %v3703_v37 }
 0x537   :  { %961 = vmatpush.bf16.msra.mxu3 %v3568_v54 }
 0x53b   :  { %962 = vmatpush.bf16.msra.mxu3 %v3604_v36 }
 0x53f   :  { %963 = vmatpush.bf16.msra.mxu3 %v3637_v12 }
 0x543   :  { %964 = vmatpush.bf16.msra.mxu3 %v3682_v24 }
 0x547   :  { %1063 = vmatpush.bf16.msrb.mxu3 %v3336_v61 }
 0x54b   :  { %1064 = vmatpush.bf16.msrb.mxu3 %v3342_v62 }
 0x54f   :  { %1065 = vmatpush.bf16.msrb.mxu3 %v3348_v63 }
 0x553   :  { %1066 = vmatpush.bf16.msrb.mxu3 %v3354_v0 }
 0x557   :  { %1067 = vmatpush.bf16.msrb.mxu3 %v3360_v2 }
 0x55b   :  { %1068 = vmatpush.bf16.msrb.mxu3 %v3366_v3 }
 0x55f   :  { %1069 = vmatpush.bf16.msrb.mxu3 %v3372_v7 }
 0x563   :  { %1070 = vmatpush.bf16.msrb.mxu3 %v3378_v9 }
 0x590   :  { %v834_v26 = vpop.f32.mrf.mxu2 }
 0x591   :  { %v835_v37 = vadd.f32 %v3304_v17, %v834_v26 }
 0x593   :  { %v839_v47 = vrot.slane %v835_v37, 1  ;;  %v840_v45 = vperm.slane %v835_v37, 0 }
 0x595   :  { %v841_v61 = vperm.slane %v839_v47, 0  ;;  %v844_v62 = vadd.f32 %v840_v45, %v3310_v25 }
 0x597   :  { %v845_v63 = vadd.f32 %v841_v61, %v3312_v28  ;;  %2992 = vtanh.f32 %v844_v62 }
 0x598   :  { %v836_v0 = vpop.f32.mrf.mxu2 }
 0x599   :  { %2994 = vtanh.f32 %v845_v63 }
 0x59d   :  { %v2993_v2 = vpop.eup %2992 }
 0x59e   :  { %v848_v3 = vmul.f32 %v2993_v2, %v3319_v32 }
 0x59f   :  { %v2995_v58 = vpop.eup %2994 }
 0x5a0   :  { %850 = vadd.xlane.f32.xlu1 %v848_v3  ;;  %v849_v7 = vmul.f32 %v2995_v58, %v3319_v32 }
 0x5a2   :  { %852 = vadd.xlane.f32.xlu0 %v849_v7 }
 0x5a9   :  { %v762_v9 = vpop.f32.mrf.mxu3 }
 0x5aa   :  { %v763_v33 = vadd.f32 %v3856_v42, %v762_v9 }
 0x5b1   :  { %v764_v17 = vpop.f32.mrf.mxu3 }
 0x5b9   :  { %v775_v26 = vpop.f32.mrf.mxu3 }
 0x5ba   :  { %v776_v37 = vadd.f32 %v775_v26, %v763_v33 }
 0x5bc   :  { %779 = vst [vmem:[%s4804_s11] sm:$0x3] %v776_v37  ;;  %v781_v47 = vsel %vm780_vm6, %v776_v37, -inf }
 0x5bd   :  { %782 = vmax.xlane.f32.xlu2 %v781_v47 }
 0x5c1   :  { %v777_v32 = vpop.f32.mrf.mxu3 }
 0x613   :  { %v851_v45 = vpop.xlane.xlu1 %850 }
 0x614   :  { %v856_v62 = vperm.slane %v851_v45, %v3323_v40 }
 0x615   :  { %v853_v61 = vpop.xlane.xlu0 %852 }
 0x616   :  { %v857_v63 = vperm.slane %v853_v61, %v3323_v40 }
 0x618   :  { %v858_v0 = vsel %vm358_vm0, %v857_v63, %v856_v62 }
 0x619   :  { %v860_v2 = vsel %vm361_vm1, %v858_v0, -inf }
 0x61a   :  { %861 = vmax.xlane.f32.xlu1 %v860_v2 }
 0x630   :  { %v783_v3 = vpop.xlane.xlu2 %782 }
 0x631   :  { %vm784_vm7 = vcmp.ge.f32.partialorder %v776_v37, %v783_v3 }
 0x632   :  { %v785_v58 = vsel %vm784_vm7, %v3323_v40, 128 }
 0x633   :  { %v786_v7 = vsel %vm780_vm6, %v785_v58, 2147483647 }
 0x634   :  { %v788_v9 = vshra.s32 %v786_v7, 16  ;;  %v787_v37 = vand.u32 65535, %v786_v7 }
 0x636   :  { %v790_v17 = vcvt.s32.f32 %v788_v9  ;;  %v789_v2 = vcvt.s32.f32 %v787_v37 }
 0x638   :  { %791 = vmin.xlane.f32.xlu0 %v790_v17 }
 0x68d   :  { %v862_v33 = vpop.xlane.xlu1 %861 }
 0x68e   :  { %v864_v26 = vperm.slane %v862_v33, 0  ;;  %v865_v47 = vperm.slane %v862_v33, 1 }
 0x690   :  { %v868_v32 = vsub.f32 %v851_v45, %v864_v26  ;;  %v869_v28 = vsub.f32 %v853_v61, %v865_v47 }
 0x692   :  { %v870_v25 = vmul.f32 1.442695, %v868_v32  ;;  %v872_v42 = vmul.f32 1.442695, %v869_v28 }
 0x694   :  { %2996 = vpow2.f32 %v870_v25 }
 0x695   :  { %2998 = vpow2.f32 %v872_v42 }
 0x69a   :  { %v2997_v62 = vpop.eup %2996 }
 0x69b   :  { %v2999_v63 = vpop.eup %2998  ;;  %877 = vperm.xlu1 %2967, %v2997_v62  }
 0x69c   :  { %880 = vperm.xlu0 %2969, %v2999_v63  }
 0x6ab   :  { %v792_v0 = vpop.xlane.xlu0 %791 }
 0x6ac   :  { %vm793_vm8 = vcmp.eq.f32.partialorder %v790_v17, %v792_v0  ;;  %v798_v42 = vcvt.f32.s32 %v792_v0  ;;  %v4924_v17 = vmov 1.0|1.0  }
 0x6ad   :  { %v794_v3 = vsel %vm793_vm8, %v789_v2, inf }
 0x6ae   :  { %795 = vmin.xlane.f32.xlu2 %v794_v3  ;;  %v799_v26 = vshll.u32 %v798_v42, 16 }
 0x70d   :  { %v878_v58 = vpop.permute.xlu1 %877 }
 0x70e   :  { %v882_v9 = vperm.slane %v878_v58, %v3323_v40  ;;  %v881_v33 = vpop.permute.xlu0 %880 }
 0x70f   :  { %v883_v45 = vperm.slane %v881_v33, %v3323_v40 }
 0x711   :  { %v884_v28 = vsel %vm358_vm0, %v883_v45, %v882_v9 }
 0x712   :  { %v886_v25 = vsel %vm361_vm1, %v884_v28, 0.0 }
 0x713   :  { %887 = vadd.xlane.f32.xlu2 %v886_v25 }
 0x721   :  { %v796_v61 = vpop.xlane.xlu2 %795 }
 0x722   :  { %v797_v7 = vcvt.f32.s32 %v796_v61 }
 0x724   :  { %v800_v47 = vadd.s32 %v799_v26, %v797_v7 }
 0x726   :  { %vm801_vm9 = vcmp.eq.s32.totalorder %v3323_v40, %v800_v47 }
 0x727   :  { %vm2859_vm10 = vmpackc.low %vm801_vm9, %vm801_vm9 }
 0x728   :  { %2860 = vmatmul.msk.bf16.vlgmr.msra.gmra.mxu1 %vm2859_vm10, %v4924_v17 }
 0x729   :  { %1087 = vmatpush.bf16.msra.mxu1 %v3245_v1 }
 0x72d   :  { %1088 = vmatpush.bf16.msra.mxu1 %v3254_v4 }
 0x731   :  { %1089 = vmatpush.bf16.msra.mxu1 %v3263_v6 }
 0x735   :  { %1090 = vmatpush.bf16.msra.mxu1 %v3272_v8 }
 0x786   :  { %v888_v32 = vpop.xlane.xlu2 %887 }
 0x787   :  { %3000 = vrcp.f32 %v888_v32 }
 0x78d   :  { %v3001_v37 = vpop.eup %3000 }
 0x78e   :  { %v892_v0 = vperm.slane %v3001_v37, 1  ;;  %v891_v2 = vperm.slane %v3001_v37, 0 }
 0x790   :  { %v896_v3 = vmul.f32 %v2999_v63, %v892_v0  ;;  %v895_v58 = vmul.f32 %v2997_v62, %v891_v2 }
 0x792   :  { %904 = vperm.xlu1 %2967, %v896_v3   ;;  %899 = vperm.xlu2 %2968, %v895_v58  }
 0x7a5   :  { %v814_v9 = vpop.f32.mrf.mxu1 }
 0x7ad   :  { %v816_v33 = vpop.f32.mrf.mxu1 }
 0x7ae   :  { %v4926_v33 = vld [vmem:[#allocation7_spill] sm:$0xff] }
 0x7ec   :  { %v900_v45 = vpop.permute.xlu2 %899 }
 0x7ed   :  { %v907_v1 = vmul.f32 %v900_v45, %v3290_v13  ;;  %v4927_v45 = vld [vmem:[#allocation5_spill] sm:$0xff] }
 0x7ef   :  { %v909_v28 = vrot.slane %v907_v1, 4 }
 0x7f1   :  { %v910_v4 = vadd.f32 %v909_v28, %v907_v1  ;;  %v4928_v1 = vld [vmem:[#allocation6_spill] sm:$0xff] }
 0x7f2   :  { %v4929_v28 = vld [vmem:[#allocation10_spill] sm:$0xff] }
 0x7f3   :  { %v911_v6 = vrot.slane %v910_v4, 2 }
 0x7f5   :  { %v912_v61 = vadd.f32 %v911_v6, %v910_v4  ;;  %v4930_v4 = vld [vmem:[#allocation8_spill] sm:$0xff]  ;;  %v4932_v6 = vld [vmem:[#allocation13_spill] sm:$0xff] }
 0x7f7   :  { %v913_v47 = vrot.slane %v912_v61, 1 }
 0x7f9   :  { %v914_v32 = vadd.f32 %v913_v47, %v912_v61 }
 0x804   :  { %v905_v25 = vpop.permute.xlu1 %904 }
 0x805   :  { %v908_v8 = vmul.f32 %v905_v25, %v3295_v14  ;;  %v4931_v25 = vld [vmem:[#allocation9_spill] sm:$0xff] }
 0x807   :  { %v915_v42 = vrot.slane %v908_v8, 4 }
 0x809   :  { %v916_v26 = vadd.f32 %v915_v42, %v908_v8  ;;  %v4933_v8 = vld [vmem:[#allocation11_spill] sm:$0xff]  ;;  %v4934_v42 = vld [vmem:[#allocation12_spill] sm:$0xff] }
 0x80b   :  { %v917_v7 = vrot.slane %v916_v26, 2 }
 0x80d   :  { %v918_v63 = vadd.f32 %v917_v7, %v916_v26 }
 0x80f   :  { %v919_v62 = vrot.slane %v918_v63, 1 }
 0x811   :  { %v920_v37 = vadd.f32 %v919_v62, %v918_v63 }
 0x813   :  { %v923_v0 = vsel %vm358_vm0, %v920_v37, %v914_v32 }
 0x814   :  { %924 = vrot.lane.b32.xlu0 %v923_v0, %s3178_s21 }
 0x886   :  { %v3883_v13 = vpop.permute.xlu0 %924 }
 0x887   :  { %v927_v2 = vsel %vm318_vm4, %v814_v9, %v3883_v13  ;;  %v928_v14 = vsel %vm318_vm4, %v3883_v13, %v3750_v43  ;;  %v1007_v43 = vpack.c.bf16 %v3883_v13, %v3883_v13  ;;  %v4925_v9 = vld [vmem:[#allocation4_spill] sm:$0xff] }
 0x888   :  { %v929_v3 = vpack.c.bf16 %v927_v2, %v927_v2  ;;  %v930_v58 = vpack.c.bf16 %v928_v14, %v928_v14 }
 0x88a   :  { %939 = vmatmul.bf16.vlgmr.msra.gmra.mxu0 %v929_v3  ;;  %952 = vmatmul.bf16.vlgmr.msrb.gmra.mxu2 %v930_v58 }
 0x88b   :  { %965 = vmatmul.bf16.vlgmr.msra.gmra.mxu3 %v929_v3  ;;  %978 = vmatmul.bf16.vlgmr.msrb.gmra.mxu1 %v930_v58 }
 0x88c   :  { %1189 = vmatpush.bf16.msrb.mxu2 %v3405_v29  ;;  %1202 = vmatpush.bf16.msra.mxu0 %v3392_v22 }
 0x88d   :  { %1215 = vmatpush.bf16.msrb.mxu1 %v3417_v34  ;;  %1228 = vmatpush.bf16.msra.mxu3 %v3403_v27 }
 0x890   :  { %1190 = vmatpush.bf16.msrb.mxu2 %v3444_v44  ;;  %1203 = vmatpush.bf16.msra.mxu0 %v3430_v38 }
 0x891   :  { %1216 = vmatpush.bf16.msrb.mxu1 %v3455_v48  ;;  %1229 = vmatpush.bf16.msra.mxu3 %v3432_v39 }
 0x894   :  { %1191 = vmatpush.bf16.msrb.mxu2 %v3482_v57  ;;  %1204 = vmatpush.bf16.msra.mxu0 %v3467_v52 }
 0x895   :  { %1217 = vmatpush.bf16.msrb.mxu1 %v3494_v5  ;;  %1230 = vmatpush.bf16.msra.mxu3 %v3480_v56 }
 0x898   :  { %1192 = vmatpush.bf16.msrb.mxu2 %v3518_v21  ;;  %1205 = vmatpush.bf16.msra.mxu0 %v3512_v19 }
 0x899   :  { %1218 = vmatpush.bf16.msrb.mxu1 %v3530_v30  ;;  %1231 = vmatpush.bf16.msra.mxu3 %v3516_v20 }
 0x89a   :  { %2862 = vmatmul.msk.bf16.vlgmr.msra.gmra.mxu2 %vm318_vm4, %v1007_v43 }
 0x89c   :  { %1193 = vmatpush.bf16.msrb.mxu2 %v3554_v46  ;;  %1206 = vmatpush.bf16.msra.mxu0 %v3548_v41 }
 0x89d   :  { %1219 = vmatpush.bf16.msrb.mxu1 %v3568_v54  ;;  %1232 = vmatpush.bf16.msra.mxu3 %v4925_v9 }
 0x8a0   :  { %1194 = vmatpush.bf16.msrb.mxu2 %v4926_v33  ;;  %1207 = vmatpush.bf16.msra.mxu0 %v4927_v45 }
 0x8a1   :  { %1220 = vmatpush.bf16.msrb.mxu1 %v3604_v36  ;;  %1233 = vmatpush.bf16.msra.mxu3 %v4928_v1 }
 0x8a4   :  { %1195 = vmatpush.bf16.msrb.mxu2 %v4929_v28  ;;  %1208 = vmatpush.bf16.msra.mxu0 %v4930_v4 }
 0x8a5   :  { %1221 = vmatpush.bf16.msrb.mxu1 %v3637_v12  ;;  %1234 = vmatpush.bf16.msra.mxu3 %v4931_v25 }
 0x8a8   :  { %1196 = vmatpush.bf16.msrb.mxu2 %v4932_v6  ;;  %1209 = vmatpush.bf16.msra.mxu0 %v4933_v8 }
 0x8a9   :  { %1222 = vmatpush.bf16.msrb.mxu1 %v3682_v24  ;;  %1235 = vmatpush.bf16.msra.mxu3 %v4934_v42 }
 0x8ac   :  { %1269 = vmatpush.bf16.msra.mxu2 %v3736_v49 }
 0x8b0   :  { %1270 = vmatpush.bf16.msra.mxu2 %v3742_v18 }
 0x8b4   :  { %1271 = vmatpush.bf16.msra.mxu2 %v3760_v15 }
 0x8b8   :  { %1272 = vmatpush.bf16.msra.mxu2 %v3766_v10 }
 0x8bc   :  { %1273 = vmatpush.bf16.msra.mxu2 %v3773_v51 }
 0x8c0   :  { %1274 = vmatpush.bf16.msra.mxu2 %v3780_v59 }
 0x8c4   :  { %1275 = vmatpush.bf16.msra.mxu2 %v3787_v11 }
 0x8c8   :  { %1276 = vmatpush.bf16.msra.mxu2 %v3795_v31 }
 0x907   :  { %v940_v61 = vpop.f32.mrf.mxu0 }
 0x908   :  { %v979_v26 = vpop.f32.mrf.mxu1  ;;  %v941_v7 = vadd.f32 %v940_v61, %v3726_v50 }
 0x90d   :  { %v953_v47 = vpop.f32.mrf.mxu2 }
 0x90e   :  { %v954_v63 = vadd.f32 %v953_v47, %v941_v7  ;;  %v966_v62 = vpop.f32.mrf.mxu3 }
 0x90f   :  { %v967_v32 = vadd.f32 %v966_v62, %v3728_v60  ;;  %v942_v37 = vpop.f32.mrf.mxu0 }
 0x910   :  { %v983_v0 = vmul.f32 0.5, %v954_v63  ;;  %v981_v2 = vpop.f32.mrf.mxu1 }
 0x911   :  { %v980_v14 = vadd.f32 %v979_v26, %v967_v32 }
 0x912   :  { %3002 = vtanh.f32 %v983_v0 }
 0x913   :  { %3004 = vtanh.f32 %v980_v14  ;;  %v988_v7 = vmul.f32 0.5, %v980_v14  ;;  %v3953_v14 = vld [vmem:[%s4799_s1 + $0x38] sm:$0xff] }
 0x915   :  { %v955_v3 = vpop.f32.mrf.mxu2  ;;  %3006 = vtanh.f32 %v988_v7  ;;  %v3993_v7 = vld [vmem:[%s4799_s1 + $0x8] sm:$0xff] }
 0x916   :  { %v968_v58 = vpop.f32.mrf.mxu3  ;;  %v3960_v3 = vld [vmem:[%s4799_s1 + $0x30] sm:$0xff]  ;;  %4939 = vst [vmem:[#allocation10_spill] sm:$0xff] %v3993_v7 }
 0x917   :  { %v3974_v58 = vld [vmem:[%s4799_s1 + $0x20] sm:$0xff] }
 0x918   :  { %v3003_v43 = vpop.eup %3002  ;;  %4936 = vst [vmem:[#allocation7_spill] sm:$0xff] %v3974_v58 }
 0x919   :  { %v985_v11 = vadd.f32 1.0, %v3003_v43  ;;  %v3005_v59 = vpop.eup %3004  ;;  %v3981_v43 = vld [vmem:[%s4799_s1 + $0x18] sm:$0xff] }
 0x91a   :  { %4937 = vst [vmem:[#allocation5_spill] sm:$0xff] %v3981_v43 }
 0x91b   :  { %v986_v31 = vmul.f32 0.5, %v985_v11  ;;  %v3007_v62 = vpop.eup %3006 }
 0x91c   :  { %v990_v26 = vadd.f32 1.0, %v3007_v62  ;;  %v4005_v62 = vld [vmem:[%s4795_s5] ss:$0 sm:$0xff] }
 0x91d   :  { %v1033_v51 = vpop.f32.mrf.mxu2  ;;  %v993_v10 = vmul.f32 %v3005_v59, %v986_v31  ;;  %v992_v47 = vmul.f32 %v986_v31, %v3747_v55  ;;  %4941 = vst [vmem:[#allocation9_spill] sm:$0xff] %v4005_v62 }
 0x91e   :  { %v991_v32 = vmul.f32 0.5, %v990_v26 }
 0x91f   :  { %995 = vrot.lane.b32.xlu1 %v993_v10, %s3178_s21 }
 0x925   :  { %v1035_v61 = vpop.f32.mrf.mxu2 }
 0x926   :  { %v3987_v61 = vld [vmem:[%s4799_s1 + $0x10] sm:$0xff] }
 0x927   :  { %4938 = vst [vmem:[#allocation6_spill] sm:$0xff] %v3987_v61 }
 0x991   :  { %v996_v63 = vpop.permute.xlu1 %995 }
 0x992   :  { %v3937_v37 = vadd.f32 %v996_v63, %v992_v47  ;;  %v3999_v47 = vld [vmem:[%s4799_s1] sm:$0xff] }
 0x993   :  { %4940 = vst [vmem:[#allocation8_spill] sm:$0xff] %v3999_v47 }
 0x994   :  { %3008 = vtanh.f32 %v3937_v37 }
 0x99a   :  { %v3009_v0 = vpop.eup %3008 }
 0x99b   :  { %v3940_v11 = vmul.f32 %v3009_v0, %v991_v32  ;;  %v4942_v0 = vld [vmem:[#allocation22_spill] sm:$0xff] }
 0x99d   :  { %1002 = vrot.lane.b32.xlu1 %v3940_v11, %s3178_s21  ;;  %v1076_v10 = vpack.c.bf16 %v3940_v11, %v3940_v11 }
 0x99f   :  { %1078 = vrot.lane.b32.xlu0 %v1076_v10, %s3178_s21 }
 0xa0f   :  { %v1003_v55 = vpop.permute.xlu1 %1002 }
 0xa10   :  { %v1005_v59 = vsel %vm318_vm4, %v1003_v55, %v3883_v13  ;;  %v3967_v13 = vld [vmem:[%s4799_s1 + $0x28] sm:$0xff] }
 0xa11   :  { %v1006_v31 = vpack.c.bf16 %v1005_v59, %v1005_v59  ;;  %v1079_v2 = vpop.permute.xlu0 %1078  ;;  %4935 = vst [vmem:[#allocation4_spill] sm:$0xff] %v3967_v13 }
 0xa12   :  { %2867 = vmatmul.msk.bf16.vlgmr.msra.gmra.mxu1 %vm318_vm4, %v1079_v2 }
 0xa13   :  { %1019 = vmatmul.bf16.vlgmr.msrb.gmra.mxu0 %v1006_v31  ;;  %1321 = vmatpush.bf16.msra.mxu1 %v3953_v14 }
 0xa14   :  { %1286 = vmatpush.bf16.msrb.mxu0 %v3802_v35 }
 0xa17   :  { %1322 = vmatpush.bf16.msra.mxu1 %v3960_v3 }
 0xa18   :  { %1287 = vmatpush.bf16.msrb.mxu0 %v3808_v16 }
 0xa1b   :  { %1323 = vmatpush.bf16.msra.mxu1 %v3967_v13 }
 0xa1c   :  { %1288 = vmatpush.bf16.msrb.mxu0 %v3814_v23 }
 0xa1f   :  { %1324 = vmatpush.bf16.msra.mxu1 %v3974_v58 }
 0xa20   :  { %1289 = vmatpush.bf16.msrb.mxu0 %v3822_v53 }
 0xa23   :  { %1325 = vmatpush.bf16.msra.mxu1 %v3981_v43  ;;  %v4944_v43 = vld [vmem:[#allocation3_spill] sm:$0xff] }
 0xa27   :  { %1326 = vmatpush.bf16.msra.mxu1 %v3987_v61 }
 0xa2b   :  { %1327 = vmatpush.bf16.msra.mxu1 %v3993_v7  ;;  %v4943_v7 = vld [vmem:[#allocation2_spill] sm:$0xff] }
 0xa2f   :  { %1328 = vmatpush.bf16.msra.mxu1 %v3999_v47 }
 0xa8f   :  { %v1092_v63 = vpop.f32.mrf.mxu1 }
 0xa90   :  { %v1093_v26 = vadd.f32 %v4005_v62, %v1092_v63  ;;  %v1020_v32 = vpop.f32.mrf.mxu0 }
 0xa91   :  { %v1021_v10 = vadd.f32 %v4942_v0, %v1020_v32 }
 0xa92   :  { %v1097_v55 = vrot.slane %v1093_v26, 1  ;;  %v1098_v59 = vperm.slane %v1093_v26, 0 }
 0xa93   :  { %v1034_v31 = vadd.f32 %v1033_v51, %v1021_v10  ;;  %v4018_v51 = vld [vmem:[%s4798_s6] ss:$0 sm:$0xff] }
 0xa94   :  { %v1099_v2 = vperm.slane %v1097_v55, 0  ;;  %v1102_v61 = vadd.f32 %v1098_v59, %v4943_v7  ;;  %4945 = vst [vmem:[#allocation13_spill] sm:$0xff] %v4018_v51 }
 0xa95   :  { %2863 = vst [vmem:[%s4804_s11 + $0x2] sm:$0x3] %v1034_v31  ;;  %v1039_v47 = vsel %vm780_vm6, %v1034_v31, -inf }
 0xa96   :  { %v1103_v53 = vadd.f32 %v1099_v2, %v4944_v43  ;;  %3010 = vtanh.f32 %v1102_v61  ;;  %1040 = vmax.xlane.f32.xlu1 %v1039_v47 }
 0xa97   :  { %v1094_v63 = vpop.f32.mrf.mxu1 }
 0xa98   :  { %3012 = vtanh.f32 %v1103_v53  ;;  %v1022_v62 = vpop.f32.mrf.mxu0 }
 0xa9c   :  { %v3011_v32 = vpop.eup %3010 }
 0xa9d   :  { %v1106_v26 = vmul.f32 %v4018_v51, %v3011_v32 }
 0xa9e   :  { %v3013_v10 = vpop.eup %3012 }
 0xa9f   :  { %1108 = vadd.xlane.f32.xlu0 %v1106_v26  ;;  %v1107_v55 = vmul.f32 %v4018_v51, %v3013_v10 }
 0xaa1   :  { %1110 = vadd.xlane.f32.xlu2 %v1107_v55 }
 0xb09   :  { %v1041_v59 = vpop.xlane.xlu1 %1040 }
 0xb0a   :  { %vm1042_vm11 = vcmp.ge.f32.partialorder %v1034_v31, %v1041_v59 }
 0xb0b   :  { %v1043_v61 = vsel %vm1042_vm11, %v3323_v40, 128 }
 0xb0c   :  { %v1044_v53 = vsel %vm780_vm6, %v1043_v61, 2147483647 }
 0xb0d   :  { %v1046_v47 = vshra.s32 %v1044_v53, 16  ;;  %v1045_v55 = vand.u32 65535, %v1044_v53 }
 0xb0f   :  { %v1048_v62 = vcvt.s32.f32 %v1046_v47  ;;  %v1047_v59 = vcvt.s32.f32 %v1045_v55 }
 0xb11   :  { %1049 = vmin.xlane.f32.xlu2 %v1048_v62 }
 0xb12   :  { %v1109_v2 = vpop.xlane.xlu0 %1108 }
 0xb13   :  { %v1114_v43 = vperm.slane %v1109_v2, %v3323_v40 }
 0xb14   :  { %v1111_v63 = vpop.xlane.xlu2 %1110 }
 0xb15   :  { %v1115_v32 = vperm.slane %v1111_v63, %v3323_v40 }
 0xb17   :  { %v1116_v26 = vsel %vm358_vm0, %v1115_v32, %v1114_v43 }
 0xb18   :  { %v1118_v10 = vsel %vm361_vm1, %v1116_v26, -inf }
 0xb19   :  { %1119 = vmax.xlane.f32.xlu0 %v1118_v10 }
 0xb84   :  { %v1050_v31 = vpop.xlane.xlu2 %1049 }
 0xb85   :  { %vm1051_vm12 = vcmp.eq.f32.partialorder %v1048_v62, %v1050_v31  ;;  %v1056_v32 = vcvt.f32.s32 %v1050_v31 }
 0xb86   :  { %v1052_v51 = vsel %vm1051_vm12, %v1047_v59, inf }
 0xb87   :  { %1053 = vmin.xlane.f32.xlu2 %v1052_v51  ;;  %v1057_v26 = vshll.u32 %v1056_v32, 16 }
 0xb8c   :  { %v1120_v61 = vpop.xlane.xlu0 %1119 }
 0xb8d   :  { %v1122_v47 = vperm.slane %v1120_v61, 0  ;;  %v1123_v7 = vperm.slane %v1120_v61, 1 }
 0xb8f   :  { %v1126_v0 = vsub.f32 %v1109_v2, %v1122_v47  ;;  %v1127_v58 = vsub.f32 %v1111_v63, %v1123_v7  ;;  %v4053_v63 = vld [vmem:[%s4794_s4] sm:$0xff] }
 0xb90   :  { %4949 = vst [vmem:[#allocation24_spill] sm:$0xff] %v4053_v63 }
 0xb91   :  { %v1128_v23 = vmul.f32 1.442695, %v1126_v0  ;;  %v1130_v13 = vmul.f32 1.442695, %v1127_v58  ;;  %v4033_v58 = vld [vmem:[%s4794_s4 + $0x18] sm:$0xff] }
 0xb92   :  { %4946 = vst [vmem:[#allocation11_spill] sm:$0xff] %v4033_v58 }
 0xb93   :  { %3014 = vpow2.f32 %v1128_v23  ;;  %v4039_v23 = vld [vmem:[%s4794_s4 + $0x10] sm:$0xff] }
 0xb94   :  { %3016 = vpow2.f32 %v1130_v13  ;;  %4947 = vst [vmem:[#allocation12_spill] sm:$0xff] %v4039_v23  ;;  %v4045_v13 = vld [vmem:[%s4794_s4 + $0x8] sm:$0xff] }
 0xb95   :  { %4948 = vst [vmem:[#allocation23_spill] sm:$0xff] %v4045_v13 }
 0xb99   :  { %v3015_v16 = vpop.eup %3014 }
 0xb9a   :  { %v3017_v43 = vpop.eup %3016  ;;  %1135 = vperm.xlu1 %2967, %v3015_v16  }
 0xb9b   :  { %1138 = vperm.xlu0 %2969, %v3017_v43  }
 0xbfa   :  { %v1054_v53 = vpop.xlane.xlu2 %1053 }
 0xbfb   :  { %v1055_v10 = vcvt.f32.s32 %v1054_v53 }
 0xbfd   :  { %v1058_v62 = vadd.s32 %v1057_v26, %v1055_v10 }
 0xbff   :  { %vm1059_vm13 = vcmp.eq.s32.totalorder %v3323_v40, %v1058_v62 }
 0xc00   :  { %vm2865_vm14 = vmpackc.low %vm1059_vm13, %vm1059_vm13 }
 0xc01   :  { %2866 = vmatmul.msk.bf16.vlgmr.msrb.gmra.mxu3 %vm2865_vm14, %v4924_v17 }
 0xc02   :  { %1345 = vmatpush.bf16.msrb.mxu3 %v4033_v58 }
 0xc06   :  { %1346 = vmatpush.bf16.msrb.mxu3 %v4039_v23 }
 0xc0a   :  { %1347 = vmatpush.bf16.msrb.mxu3 %v4045_v13 }
 0xc0c   :  { %v1136_v7 = vpop.permute.xlu1 %1135 }
 0xc0d   :  { %v1139_v0 = vpop.permute.xlu0 %1138  ;;  %v1140_v51 = vperm.slane %v1136_v7, %v3323_v40 }
 0xc0e   :  { %v1141_v2 = vperm.slane %v1139_v0, %v3323_v40  ;;  %1348 = vmatpush.bf16.msrb.mxu3 %v4053_v63  ;;  %v4061_v0 = vld [vmem:[%s4796_s0] sm:$0xff] }
 0xc0f   :  { %4950 = vst [vmem:[#allocation25_spill] sm:$0xff] %v4061_v0 }
 0xc10   :  { %v1142_v55 = vsel %vm358_vm0, %v1141_v2, %v1140_v51 }
 0xc11   :  { %v1144_v31 = vsel %vm361_vm1, %v1142_v55, 0.0 }
 0xc12   :  { %1145 = vadd.xlane.f32.xlu2 %v1144_v31 }
 0xc84   :  { %v1072_v59 = vpop.f32.mrf.mxu3 }
 0xc85   :  { %v1146_v61 = vpop.xlane.xlu2 %1145 }
 0xc86   :  { %3018 = vrcp.f32 %v1146_v61 }
 0xc8c   :  { %v3019_v47 = vpop.eup %3018  ;;  %v1074_v32 = vpop.f32.mrf.mxu3 }
 0xc8d   :  { %v1150_v53 = vperm.slane %v3019_v47, 1  ;;  %v1149_v26 = vperm.slane %v3019_v47, 0  ;;  %v4067_v47 = vld [vmem:[%s4796_s0 + $0x8] sm:$0xff] }
 0xc8f   :  { %v1154_v10 = vmul.f32 %v3017_v43, %v1150_v53  ;;  %v1153_v62 = vmul.f32 %v3015_v16, %v1149_v26 }
 0xc91   :  { %1162 = vperm.xlu0 %2969, %v1154_v10   ;;  %1157 = vperm.xlu2 %2968, %v1153_v62  }
 0xceb   :  { %v1158_v7 = vpop.permute.xlu2 %1157 }
 0xcec   :  { %v1165_v51 = vmul.f32 %v4061_v0, %v1158_v7 }
 0xcee   :  { %v1167_v2 = vrot.slane %v1165_v51, 4 }
 0xcf0   :  { %v1168_v55 = vadd.f32 %v1167_v2, %v1165_v51 }
 0xcf2   :  { %v1169_v61 = vrot.slane %v1168_v55, 2 }
 0xcf4   :  { %v1170_v32 = vadd.f32 %v1169_v61, %v1168_v55 }
 0xcf6   :  { %v1171_v10 = vrot.slane %v1170_v32, 1 }
 0xcf8   :  { %v1172_v13 = vadd.f32 %v1171_v10, %v1170_v32 }
 0xd03   :  { %v1163_v31 = vpop.permute.xlu0 %1162 }
 0xd04   :  { %v1166_v16 = vmul.f32 %v4067_v47, %v1163_v31 }
 0xd06   :  { %v1173_v43 = vrot.slane %v1166_v16, 4 }
 0xd08   :  { %v1174_v53 = vadd.f32 %v1173_v43, %v1166_v16  ;;  %v4955_v16 = vld [vmem:[#allocation18_spill] sm:$0xff] }
 0xd0a   :  { %v1175_v26 = vrot.slane %v1174_v53, 2 }
 0xd0c   :  { %v1176_v62 = vadd.f32 %v1175_v26, %v1174_v53 }
 0xd0e   :  { %v1177_v63 = vrot.slane %v1176_v62, 1 }
 0xd10   :  { %v1178_v7 = vadd.f32 %v1177_v63, %v1176_v62  ;;  %v4952_v63 = vld [vmem:[#allocation15_spill] sm:$0xff] }
 0xd12   :  { %v1181_v51 = vsel %vm358_vm0, %v1178_v7, %v1172_v13  ;;  %v4951_v13 = vld [vmem:[#allocation14_spill] sm:$0xff] }
 0xd13   :  { %1182 = vrot.lane.b32.xlu1 %v1181_v51, %s3178_s21 }
 0xd85   :  { %v4072_v2 = vpop.permute.xlu1 %1182 }
 0xd86   :  { %v1185_v0 = vsel %vm318_vm4, %v1072_v59, %v4072_v2  ;;  %v1186_v55 = vsel %vm318_vm4, %v4072_v2, %v3940_v11  ;;  %v1265_v11 = vpack.c.bf16 %v4072_v2, %v4072_v2  ;;  %v4953_v59 = vld [vmem:[#allocation16_spill] sm:$0xff] }
 0xd87   :  { %v1187_v31 = vpack.c.bf16 %v1185_v0, %v1185_v0  ;;  %v1188_v61 = vpack.c.bf16 %v1186_v55, %v1186_v55  ;;  %v4954_v0 = vld [vmem:[#allocation17_spill] sm:$0xff] }
 0xd89   :  { %1197 = vmatmul.bf16.vlgmr.msrb.gmra.mxu2 %v1187_v31  ;;  %1210 = vmatmul.bf16.vlgmr.msra.gmra.mxu0 %v1188_v61 }
 0xd8a   :  { %1223 = vmatmul.bf16.vlgmr.msrb.gmra.mxu1 %v1187_v31  ;;  %1236 = vmatmul.bf16.vlgmr.msra.gmra.mxu3 %v1188_v61 }
 0xd8b   :  { %1447 = vmatpush.bf16.msra.mxu0 %v3405_v29  ;;  %1460 = vmatpush.bf16.msrb.mxu2 %v3392_v22 }
 0xd8c   :  { %1473 = vmatpush.bf16.msra.mxu3 %v3417_v34  ;;  %1486 = vmatpush.bf16.msrb.mxu1 %v3403_v27 }
 0xd8f   :  { %1448 = vmatpush.bf16.msra.mxu0 %v3444_v44  ;;  %1461 = vmatpush.bf16.msrb.mxu2 %v3430_v38 }
 0xd90   :  { %1474 = vmatpush.bf16.msra.mxu3 %v3455_v48  ;;  %1487 = vmatpush.bf16.msrb.mxu1 %v3432_v39 }
 0xd93   :  { %1449 = vmatpush.bf16.msra.mxu0 %v3482_v57  ;;  %1462 = vmatpush.bf16.msrb.mxu2 %v3467_v52 }
 0xd94   :  { %1475 = vmatpush.bf16.msra.mxu3 %v3494_v5  ;;  %1488 = vmatpush.bf16.msrb.mxu1 %v3480_v56 }
 0xd97   :  { %1450 = vmatpush.bf16.msra.mxu0 %v3518_v21  ;;  %1463 = vmatpush.bf16.msrb.mxu2 %v3512_v19 }
 0xd98   :  { %1476 = vmatpush.bf16.msra.mxu3 %v3530_v30  ;;  %1489 = vmatpush.bf16.msrb.mxu1 %v3516_v20 }
 0xd99   :  { %2868 = vmatmul.msk.bf16.vlgmr.msrb.gmra.mxu0 %vm318_vm4, %v1265_v11 }
 0xd9b   :  { %1451 = vmatpush.bf16.msra.mxu0 %v3554_v46  ;;  %1464 = vmatpush.bf16.msrb.mxu2 %v3548_v41 }
 0xd9c   :  { %1477 = vmatpush.bf16.msra.mxu3 %v3568_v54  ;;  %1490 = vmatpush.bf16.msrb.mxu1 %v4925_v9 }
 0xd9f   :  { %1452 = vmatpush.bf16.msra.mxu0 %v4926_v33  ;;  %1465 = vmatpush.bf16.msrb.mxu2 %v4927_v45 }
 0xda0   :  { %1478 = vmatpush.bf16.msra.mxu3 %v3604_v36  ;;  %1491 = vmatpush.bf16.msrb.mxu1 %v4928_v1 }
 0xda3   :  { %1453 = vmatpush.bf16.msra.mxu0 %v4929_v28  ;;  %1466 = vmatpush.bf16.msrb.mxu2 %v4930_v4 }
 0xda4   :  { %1479 = vmatpush.bf16.msra.mxu3 %v3637_v12  ;;  %1492 = vmatpush.bf16.msrb.mxu1 %v4931_v25 }
 0xda7   :  { %1454 = vmatpush.bf16.msra.mxu0 %v4932_v6  ;;  %1467 = vmatpush.bf16.msrb.mxu2 %v4933_v8 }
 0xda8   :  { %1480 = vmatpush.bf16.msra.mxu3 %v3682_v24  ;;  %1493 = vmatpush.bf16.msrb.mxu1 %v4934_v42 }
 0xdab   :  { %1527 = vmatpush.bf16.msrb.mxu0 %v3736_v49 }
 0xdaf   :  { %1528 = vmatpush.bf16.msrb.mxu0 %v3742_v18 }
 0xdb3   :  { %1529 = vmatpush.bf16.msrb.mxu0 %v3760_v15 }
 0xdb7   :  { %1530 = vmatpush.bf16.msrb.mxu0 %v4951_v13 }
 0xdbb   :  { %1531 = vmatpush.bf16.msrb.mxu0 %v4952_v63 }
 0xdbf   :  { %1532 = vmatpush.bf16.msrb.mxu0 %v4953_v59 }
 0xdc3   :  { %1533 = vmatpush.bf16.msrb.mxu0 %v4954_v0 }
 0xdc7   :  { %1534 = vmatpush.bf16.msrb.mxu0 %v4955_v16 }
 0xe06   :  { %v1211_v43 = vpop.f32.mrf.mxu0 }
 0xe07   :  { %v1224_v32 = vpop.f32.mrf.mxu1 }
 0xe08   :  { %v1225_v15 = vadd.f32 %v1224_v32, %v3728_v60 }
 0xe0c   :  { %v1198_v53 = vpop.f32.mrf.mxu2 }
 0xe0d   :  { %v1199_v26 = vadd.f32 %v1198_v53, %v3726_v50  ;;  %v1237_v49 = vpop.f32.mrf.mxu3 }
 0xe0e   :  { %v1213_v10 = vpop.f32.mrf.mxu0  ;;  %v1238_v51 = vadd.f32 %v1237_v49, %v1225_v15 }
 0xe0f   :  { %v1212_v18 = vadd.f32 %v1211_v43, %v1199_v26  ;;  %v1226_v62 = vpop.f32.mrf.mxu1 }
 0xe10   :  { %v1246_v53 = vmul.f32 0.5, %v1238_v51 }
 0xe11   :  { %v1241_v7 = vmul.f32 0.5, %v1212_v18 }
 0xe13   :  { %3020 = vtanh.f32 %v1241_v7 }
 0xe14   :  { %v1200_v55 = vpop.f32.mrf.mxu2  ;;  %3022 = vtanh.f32 %v1238_v51 }
 0xe15   :  { %v1239_v31 = vpop.f32.mrf.mxu3  ;;  %3024 = vtanh.f32 %v1246_v53  ;;  %v4963_v53 = vld [vmem:[#allocation10_spill] sm:$0xff] }
 0xe16   :  { %v1291_v61 = vpop.f32.mrf.mxu0 }
 0xe19   :  { %v3021_v11 = vpop.eup %3020 }
 0xe1a   :  { %v1243_v13 = vadd.f32 1.0, %v3021_v11  ;;  %v3023_v59 = vpop.eup %3022  ;;  %v4956_v11 = vld [vmem:[#allocation19_spill] sm:$0xff] }
 0xe1b   :  { %v3025_v26 = vpop.eup %3024 }
 0xe1c   :  { %v1244_v63 = vmul.f32 0.5, %v1243_v13  ;;  %v1248_v49 = vadd.f32 1.0, %v3025_v26  ;;  %v4957_v13 = vld [vmem:[#allocation4_spill] sm:$0xff] }
 0xe1e   :  { %v1293_v0 = vpop.f32.mrf.mxu0  ;;  %v1251_v16 = vmul.f32 %v3023_v59, %v1244_v63  ;;  %v1250_v43 = vmul.f32 %v1244_v63, %v3937_v37  ;;  %v1249_v18 = vmul.f32 0.5, %v1248_v49  ;;  %v4958_v63 = vld [vmem:[#allocation20_spill] sm:$0xff]  ;;  %v4959_v59 = vld [vmem:[#allocation7_spill] sm:$0xff] }
 0xe1f   :  { %v4961_v0 = vld [vmem:[#allocation5_spill] sm:$0xff] }
 0xe20   :  { %1253 = vrot.lane.b32.xlu0 %v1251_v16, %s3178_s21  ;;  %v4962_v16 = vld [vmem:[#allocation6_spill] sm:$0xff] }
 0xe92   :  { %v1254_v32 = vpop.permute.xlu0 %1253 }
 0xe93   :  { %v4126_v10 = vadd.f32 %v1254_v32, %v1250_v43  ;;  %v4964_v43 = vld [vmem:[#allocation8_spill] sm:$0xff]  ;;  %v4965_v32 = vld [vmem:[#allocation9_spill] sm:$0xff] }
 0xe95   :  { %3026 = vtanh.f32 %v4126_v10 }
 0xe9b   :  { %v3027_v62 = vpop.eup %3026 }
 0xe9c   :  { %v4129_v15 = vmul.f32 %v3027_v62, %v1249_v18  ;;  %v4966_v18 = vld [vmem:[#allocation22_spill] sm:$0xff] }
 0xe9e   :  { %1260 = vrot.lane.b32.xlu0 %v4129_v15, %s3178_s21  ;;  %v1334_v7 = vpack.c.bf16 %v4129_v15, %v4129_v15 }
 0xea0   :  { %1336 = vrot.lane.b32.xlu1 %v1334_v7, %s3178_s21 }
 0xf10   :  { %v1261_v37 = vpop.permute.xlu0 %1260 }
 0xf11   :  { %v1263_v51 = vsel %vm318_vm4, %v1261_v37, %v4072_v2  ;;  %v4960_v2 = vld [vmem:[#allocation21_spill] sm:$0xff] }
 0xf12   :  { %v1264_v55 = vpack.c.bf16 %v1263_v51, %v1263_v51  ;;  %v1337_v31 = vpop.permute.xlu1 %1336 }
 0xf13   :  { %2873 = vmatmul.msk.bf16.vlgmr.msrb.gmra.mxu3 %vm318_vm4, %v1337_v31  ;;  %v4967_v31 = vld [vmem:[#allocation2_spill] sm:$0xff] }
 0xf14   :  { %1277 = vmatmul.bf16.vlgmr.msra.gmra.mxu2 %v1264_v55  ;;  %1579 = vmatpush.bf16.msrb.mxu3 %v3953_v14 }
 0xf15   :  { %1544 = vmatpush.bf16.msra.mxu2 %v3802_v35 }
 0xf18   :  { %1580 = vmatpush.bf16.msrb.mxu3 %v3960_v3 }
 0xf19   :  { %1545 = vmatpush.bf16.msra.mxu2 %v4956_v11 }
 0xf1c   :  { %1581 = vmatpush.bf16.msrb.mxu3 %v4957_v13 }
 0xf1d   :  { %1546 = vmatpush.bf16.msra.mxu2 %v4958_v63 }
 0xf20   :  { %1582 = vmatpush.bf16.msrb.mxu3 %v4959_v59 }
 0xf21   :  { %1547 = vmatpush.bf16.msra.mxu2 %v4960_v2  ;;  %v4968_v2 = vld [vmem:[#allocation3_spill] sm:$0xff] }
 0xf24   :  { %1583 = vmatpush.bf16.msrb.mxu3 %v4961_v0 }
 0xf28   :  { %1584 = vmatpush.bf16.msrb.mxu3 %v4962_v16 }
 0xf2c   :  { %1585 = vmatpush.bf16.msrb.mxu3 %v4963_v53 }
 0xf30   :  { %1586 = vmatpush.bf16.msrb.mxu3 %v4964_v43 }
 0xf96   :  { %v1350_v35 = vpop.f32.mrf.mxu3 }
 0xf97   :  { %v1351_v26 = vadd.f32 %v4965_v32, %v1350_v35  ;;  %v1278_v49 = vpop.f32.mrf.mxu2 }
 0xf98   :  { %v1279_v62 = vadd.f32 %v4966_v18, %v1278_v49  ;;  %v4969_v18 = vld [vmem:[#allocation13_spill] sm:$0xff] }
 0xf99   :  { %v1355_v7 = vrot.slane %v1351_v26, 1  ;;  %v1356_v37 = vperm.slane %v1351_v26, 0 }
 0xf9a   :  { %v1292_v51 = vadd.f32 %v1291_v61, %v1279_v62 }
 0xf9b   :  { %v1357_v55 = vperm.slane %v1355_v7, 0  ;;  %v1360_v11 = vadd.f32 %v1356_v37, %v4967_v31 }
 0xf9c   :  { %2869 = vst [vmem:[%s4804_s11 + $0x4] sm:$0x3] %v1292_v51  ;;  %v1297_v63 = vsel %vm780_vm6, %v1292_v51, -inf }
 0xf9d   :  { %v1361_v43 = vadd.f32 %v1357_v55, %v4968_v2  ;;  %3028 = vtanh.f32 %v1360_v11  ;;  %1298 = vmax.xlane.f32.xlu0 %v1297_v63 }
 0xf9e   :  { %v1352_v35 = vpop.f32.mrf.mxu3 }
 0xf9f   :  { %3030 = vtanh.f32 %v1361_v43  ;;  %v1280_v32 = vpop.f32.mrf.mxu2 }
 0xfa3   :  { %v3029_v49 = vpop.eup %3028 }
 0xfa4   :  { %v1364_v26 = vmul.f32 %v4969_v18, %v3029_v49 }
 0xfa5   :  { %v3031_v61 = vpop.eup %3030 }
 0xfa6   :  { %1366 = vadd.xlane.f32.xlu1 %v1364_v26  ;;  %v1365_v62 = vmul.f32 %v4969_v18, %v3031_v61 }
 0xfa8   :  { %1368 = vadd.xlane.f32.xlu2 %v1365_v62 }
0x1010   :  { %v1299_v7 = vpop.xlane.xlu0 %1298 }
0x1011   :  { %vm1300_vm15 = vcmp.ge.f32.partialorder %v1292_v51, %v1299_v7 }
0x1012   :  { %v1301_v37 = vsel %vm1300_vm15, %v3323_v40, 128 }
0x1013   :  { %v1302_v31 = vsel %vm780_vm6, %v1301_v37, 2147483647 }
0x1014   :  { %v1304_v55 = vshra.s32 %v1302_v31, 16  ;;  %v1303_v61 = vand.u32 65535, %v1302_v31 }
0x1016   :  { %v1306_v11 = vcvt.s32.f32 %v1304_v55  ;;  %v1305_v62 = vcvt.s32.f32 %v1303_v61 }
0x1018   :  { %1307 = vmin.xlane.f32.xlu2 %v1306_v11 }
0x1019   :  { %v1367_v63 = vpop.xlane.xlu1 %1366 }
0x101a   :  { %v1372_v32 = vperm.slane %v1367_v63, %v3323_v40 }
0x101b   :  { %v1369_v43 = vpop.xlane.xlu2 %1368 }
0x101c   :  { %v1373_v35 = vperm.slane %v1369_v43, %v3323_v40 }
0x101e   :  { %v1374_v49 = vsel %vm358_vm0, %v1373_v35, %v1372_v32 }
0x101f   :  { %v1376_v26 = vsel %vm361_vm1, %v1374_v49, -inf }
0x1020   :  { %1377 = vmax.xlane.f32.xlu1 %v1376_v26 }
0x108b   :  { %v1308_v51 = vpop.xlane.xlu2 %1307 }
0x108c   :  { %vm1309_vm2 = vcmp.eq.f32.partialorder %v1306_v11, %v1308_v51  ;;  %v1314_v35 = vcvt.f32.s32 %v1308_v51 }
0x108d   :  { %v1310_v7 = vsel %vm1309_vm2, %v1305_v62, inf }
0x108e   :  { %1311 = vmin.xlane.f32.xlu2 %v1310_v7  ;;  %v1315_v49 = vshll.u32 %v1314_v35, 16 }
0x1093   :  { %v1378_v37 = vpop.xlane.xlu1 %1377 }
0x1094   :  { %v1380_v55 = vperm.slane %v1378_v37, 0  ;;  %v1381_v18 = vperm.slane %v1378_v37, 1 }
0x1096   :  { %v1384_v2 = vsub.f32 %v1367_v63, %v1380_v55  ;;  %v1385_v53 = vsub.f32 %v1369_v43, %v1381_v18  ;;  %v4971_v63 = vld [vmem:[#allocation24_spill] sm:$0xff] }
0x1098   :  { %v1386_v16 = vmul.f32 1.442695, %v1384_v2  ;;  %v1388_v0 = vmul.f32 1.442695, %v1385_v53 }
0x109a   :  { %3032 = vpow2.f32 %v1386_v16  ;;  %v4970_v16 = vld [vmem:[#allocation23_spill] sm:$0xff] }
0x109b   :  { %3034 = vpow2.f32 %v1388_v0 }
0x10a0   :  { %v3033_v59 = vpop.eup %3032 }
0x10a1   :  { %v3035_v32 = vpop.eup %3034  ;;  %1393 = vperm.xlu0 %2969, %v3033_v59  }
0x10a2   :  { %1396 = vperm.xlu1 %2967, %v3035_v32  }
0x1101   :  { %v1312_v31 = vpop.xlane.xlu2 %1311 }
0x1102   :  { %v1313_v26 = vcvt.f32.s32 %v1312_v31 }
0x1104   :  { %v1316_v11 = vadd.s32 %v1315_v49, %v1313_v26 }
0x1106   :  { %vm1317_vm3 = vcmp.eq.s32.totalorder %v3323_v40, %v1316_v11 }
0x1107   :  { %vm2871_vm5 = vmpackc.low %vm1317_vm3, %vm1317_vm3 }
0x1108   :  { %2872 = vmatmul.msk.bf16.vlgmr.msra.gmra.mxu1 %vm2871_vm5, %v4924_v17 }
0x1109   :  { %1603 = vmatpush.bf16.msra.mxu1 %v4033_v58 }
0x110d   :  { %1604 = vmatpush.bf16.msra.mxu1 %v4039_v23 }
0x1111   :  { %1605 = vmatpush.bf16.msra.mxu1 %v4970_v16 }
0x1113   :  { %v1394_v0 = vpop.permute.xlu0 %1393 }
0x1114   :  { %v1397_v53 = vpop.permute.xlu1 %1396  ;;  %v1398_v2 = vperm.slane %v1394_v0, %v3323_v40 }
0x1115   :  { %v1399_v18 = vperm.slane %v1397_v53, %v3323_v40  ;;  %1606 = vmatpush.bf16.msra.mxu1 %v4971_v63 }
0x1117   :  { %v1400_v43 = vsel %vm358_vm0, %v1399_v18, %v1398_v2 }
0x1118   :  { %v1402_v61 = vsel %vm361_vm1, %v1400_v43, 0.0  ;;  %v4972_v43 = vld [vmem:[#allocation25_spill] sm:$0xff] }
0x1119   :  { %1403 = vadd.xlane.f32.xlu2 %v1402_v61 }
0x1185   :  { %v1330_v51 = vpop.f32.mrf.mxu1 }
0x118c   :  { %v1404_v62 = vpop.xlane.xlu2 %1403 }
0x118d   :  { %3036 = vrcp.f32 %v1404_v62  ;;  %v1332_v7 = vpop.f32.mrf.mxu1 }
0x1193   :  { %v3037_v37 = vpop.eup %3036 }
0x1194   :  { %v1408_v55 = vperm.slane %v3037_v37, 1  ;;  %v1407_v35 = vperm.slane %v3037_v37, 0 }
0x1196   :  { %v1412_v31 = vmul.f32 %v3035_v32, %v1408_v55  ;;  %v1411_v49 = vmul.f32 %v3033_v59, %v1407_v35 }
0x1198   :  { %1420 = vperm.xlu2 %2968, %v1412_v31   ;;  %1415 = vperm.xlu0 %2969, %v1411_v49  }
0x11f2   :  { %v1421_v26 = vpop.permute.xlu2 %1420 }
0x11f3   :  { %v1424_v11 = vmul.f32 %v4067_v47, %v1421_v26 }
0x11f5   :  { %v1431_v0 = vrot.slane %v1424_v11, 4 }
0x11f7   :  { %v1432_v53 = vadd.f32 %v1431_v0, %v1424_v11  ;;  %v4250_v11 = vld [vmem:[%s4802_s9 + $0x18] sm:$0xff]  ;;  %v4256_v0 = vld [vmem:[%s4802_s9 + $0x10] sm:$0xff] }
0x11f8   :  { %4975 = vst [vmem:[#allocation16_spill] sm:$0xff] %v4250_v11 }
0x11f9   :  { %v1433_v18 = vrot.slane %v1432_v53, 2  ;;  %4976 = vst [vmem:[#allocation17_spill] sm:$0xff] %v4256_v0 }
0x11fb   :  { %v1434_v16 = vadd.f32 %v1433_v18, %v1432_v53  ;;  %v4262_v53 = vld [vmem:[%s4802_s9 + $0x8] sm:$0xff] }
0x11fc   :  { %4977 = vst [vmem:[#allocation18_spill] sm:$0xff] %v4262_v53 }
0x11fd   :  { %v1435_v23 = vrot.slane %v1434_v16, 1 }
0x11ff   :  { %v1436_v59 = vadd.f32 %v1435_v23, %v1434_v16  ;;  %v4226_v23 = vld [vmem:[%s4802_s9 + $0x38] sm:$0xff]  ;;  %v4238_v16 = vld [vmem:[%s4802_s9 + $0x28] sm:$0xff] }
0x1200   :  { %4973 = vst [vmem:[#allocation14_spill] sm:$0xff] %v4238_v16 }
0x120a   :  { %v1416_v2 = vpop.permute.xlu0 %1415 }
0x120b   :  { %v1423_v61 = vmul.f32 %v4972_v43, %v1416_v2  ;;  %v4268_v2 = vld [vmem:[%s4802_s9] sm:$0xff] }
0x120c   :  { %4978 = vst [vmem:[#allocation19_spill] sm:$0xff] %v4268_v2 }
0x120d   :  { %v1425_v63 = vrot.slane %v1423_v61, 4 }
0x120f   :  { %v1426_v62 = vadd.f32 %v1425_v63, %v1423_v61 }
0x1211   :  { %v1427_v7 = vrot.slane %v1426_v62, 2 }
0x1213   :  { %v1428_v58 = vadd.f32 %v1427_v7, %v1426_v62 }
0x1215   :  { %v1429_v37 = vrot.slane %v1428_v58, 1 }
0x1217   :  { %v1430_v32 = vadd.f32 %v1429_v37, %v1428_v58 }
0x1219   :  { %v1439_v55 = vsel %vm358_vm0, %v1436_v59, %v1430_v32 }
0x121a   :  { %1440 = vrot.lane.b32.xlu0 %v1439_v55, %s3178_s21 }
0x128c   :  { %v4181_v35 = vpop.permute.xlu0 %1440 }
0x128d   :  { %v1443_v31 = vsel %vm318_vm4, %v1330_v51, %v4181_v35  ;;  %v1444_v49 = vsel %vm318_vm4, %v4181_v35, %v4129_v15  ;;  %v1523_v58 = vpack.c.bf16 %v4181_v35, %v4181_v35  ;;  %v4232_v15 = vld [vmem:[%s4802_s9 + $0x30] sm:$0xff]  ;;  %v4244_v51 = vld [vmem:[%s4802_s9 + $0x20] sm:$0xff] }
0x128e   :  { %v1445_v63 = vpack.c.bf16 %v1443_v31, %v1443_v31  ;;  %v1446_v26 = vpack.c.bf16 %v1444_v49, %v1444_v49  ;;  %4974 = vst [vmem:[#allocation15_spill] sm:$0xff] %v4244_v51 }
0x1290   :  { %1455 = vmatmul.bf16.vlgmr.msra.gmra.mxu0 %v1445_v63  ;;  %1468 = vmatmul.bf16.vlgmr.msrb.gmra.mxu2 %v1446_v26 }
0x1291   :  { %1481 = vmatmul.bf16.vlgmr.msra.gmra.mxu3 %v1445_v63  ;;  %1494 = vmatmul.bf16.vlgmr.msrb.gmra.mxu1 %v1446_v26 }
0x1292   :  { %1705 = vmatpush.bf16.msrb.mxu2 %v3405_v29  ;;  %1718 = vmatpush.bf16.msra.mxu0 %v3392_v22 }
0x1293   :  { %1731 = vmatpush.bf16.msrb.mxu1 %v3417_v34  ;;  %1744 = vmatpush.bf16.msra.mxu3 %v3403_v27 }
0x1296   :  { %1706 = vmatpush.bf16.msrb.mxu2 %v3444_v44  ;;  %1719 = vmatpush.bf16.msra.mxu0 %v3430_v38 }
0x1297   :  { %1732 = vmatpush.bf16.msrb.mxu1 %v3455_v48  ;;  %1745 = vmatpush.bf16.msra.mxu3 %v3432_v39 }
0x129a   :  { %1707 = vmatpush.bf16.msrb.mxu2 %v3482_v57  ;;  %1720 = vmatpush.bf16.msra.mxu0 %v3467_v52 }
0x129b   :  { %1733 = vmatpush.bf16.msrb.mxu1 %v3494_v5  ;;  %1746 = vmatpush.bf16.msra.mxu3 %v3480_v56 }
0x129e   :  { %1708 = vmatpush.bf16.msrb.mxu2 %v3518_v21  ;;  %1721 = vmatpush.bf16.msra.mxu0 %v3512_v19 }
0x129f   :  { %1734 = vmatpush.bf16.msrb.mxu1 %v3530_v30  ;;  %1747 = vmatpush.bf16.msra.mxu3 %v3516_v20 }
0x12a0   :  { %2874 = vmatmul.msk.bf16.vlgmr.msra.gmra.mxu2 %vm318_vm4, %v1523_v58 }
0x12a2   :  { %1709 = vmatpush.bf16.msrb.mxu2 %v3554_v46  ;;  %1722 = vmatpush.bf16.msra.mxu0 %v3548_v41 }
0x12a3   :  { %1735 = vmatpush.bf16.msrb.mxu1 %v3568_v54  ;;  %1748 = vmatpush.bf16.msra.mxu3 %v4925_v9 }
0x12a6   :  { %1710 = vmatpush.bf16.msrb.mxu2 %v4926_v33  ;;  %1723 = vmatpush.bf16.msra.mxu0 %v4927_v45 }
0x12a7   :  { %1736 = vmatpush.bf16.msrb.mxu1 %v3604_v36  ;;  %1749 = vmatpush.bf16.msra.mxu3 %v4928_v1 }
0x12aa   :  { %1711 = vmatpush.bf16.msrb.mxu2 %v4929_v28  ;;  %1724 = vmatpush.bf16.msra.mxu0 %v4930_v4 }
0x12ab   :  { %1737 = vmatpush.bf16.msrb.mxu1 %v3637_v12  ;;  %1750 = vmatpush.bf16.msra.mxu3 %v4931_v25 }
0x12ae   :  { %1712 = vmatpush.bf16.msrb.mxu2 %v4932_v6  ;;  %1725 = vmatpush.bf16.msra.mxu0 %v4933_v8 }
0x12af   :  { %1738 = vmatpush.bf16.msrb.mxu1 %v3682_v24  ;;  %1751 = vmatpush.bf16.msra.mxu3 %v4934_v42 }
0x12b2   :  { %1785 = vmatpush.bf16.msra.mxu2 %v4226_v23 }
0x12b6   :  { %1786 = vmatpush.bf16.msra.mxu2 %v4232_v15 }
0x12ba   :  { %1787 = vmatpush.bf16.msra.mxu2 %v4238_v16 }
0x12be   :  { %1788 = vmatpush.bf16.msra.mxu2 %v4244_v51 }
0x12c2   :  { %1789 = vmatpush.bf16.msra.mxu2 %v4250_v11 }
0x12c6   :  { %1790 = vmatpush.bf16.msra.mxu2 %v4256_v0 }
0x12ca   :  { %1791 = vmatpush.bf16.msra.mxu2 %v4262_v53 }
0x12ce   :  { %1792 = vmatpush.bf16.msra.mxu2 %v4268_v2 }
0x130d   :  { %v1456_v18 = vpop.f32.mrf.mxu0 }
0x130e   :  { %v1495_v61 = vpop.f32.mrf.mxu1  ;;  %v1457_v62 = vadd.f32 %v1456_v18, %v3726_v50 }
0x1313   :  { %v1469_v7 = vpop.f32.mrf.mxu2 }
0x1314   :  { %v1470_v37 = vadd.f32 %v1469_v7, %v1457_v62  ;;  %v1482_v32 = vpop.f32.mrf.mxu3 }
0x1315   :  { %v1483_v59 = vadd.f32 %v1482_v32, %v3728_v60  ;;  %v1458_v55 = vpop.f32.mrf.mxu0 }
0x1316   :  { %v1499_v31 = vmul.f32 0.5, %v1470_v37  ;;  %v1497_v49 = vpop.f32.mrf.mxu1 }
0x1317   :  { %v1496_v63 = vadd.f32 %v1495_v61, %v1483_v59  ;;  %v4292_v49 = vld [vmem:[%s4802_s9 + $0x58] sm:$0xff] }
0x1318   :  { %3038 = vtanh.f32 %v1499_v31 }
0x1319   :  { %3040 = vtanh.f32 %v1496_v63  ;;  %v1504_v62 = vmul.f32 0.5, %v1496_v63  ;;  %v4981_v63 = vld [vmem:[#allocation7_spill] sm:$0xff] }
0x131b   :  { %v1471_v26 = vpop.f32.mrf.mxu2  ;;  %3042 = vtanh.f32 %v1504_v62 }
0x131c   :  { %v1484_v58 = vpop.f32.mrf.mxu3  ;;  %v4983_v26 = vld [vmem:[#allocation5_spill] sm:$0xff] }
0x131d   :  { %v4984_v58 = vld [vmem:[#allocation6_spill] sm:$0xff] }
0x131e   :  { %v3039_v53 = vpop.eup %3038 }
0x131f   :  { %v1501_v0 = vadd.f32 1.0, %v3039_v53  ;;  %v3041_v11 = vpop.eup %3040 }
0x1321   :  { %v1502_v2 = vmul.f32 0.5, %v1501_v0  ;;  %v3043_v32 = vpop.eup %3042 }
0x1322   :  { %v1506_v61 = vadd.f32 1.0, %v3043_v32 }
0x1323   :  { %v1549_v51 = vpop.f32.mrf.mxu2  ;;  %v1509_v16 = vmul.f32 %v3041_v11, %v1502_v2  ;;  %v1508_v7 = vmul.f32 %v1502_v2, %v4126_v10 }
0x1324   :  { %v1507_v59 = vmul.f32 0.5, %v1506_v61  ;;  %v4324_v61 = vld [vmem:[%s4803_s10] ss:$0 sm:$0xff] }
0x1325   :  { %1511 = vrot.lane.b32.xlu1 %v1509_v16, %s3178_s21  ;;  %4988 = vst [vmem:[#allocation22_spill] sm:$0xff] %v4324_v61 }
0x132b   :  { %v1551_v18 = vpop.f32.mrf.mxu2 }
0x132c   :  { %v4986_v18 = vld [vmem:[#allocation8_spill] sm:$0xff] }
0x1397   :  { %v1512_v37 = vpop.permute.xlu1 %1511 }
0x1398   :  { %v4275_v55 = vadd.f32 %v1512_v37, %v1508_v7  ;;  %v4987_v7 = vld [vmem:[#allocation9_spill] sm:$0xff] }
0x139a   :  { %3044 = vtanh.f32 %v4275_v55 }
0x13a0   :  { %v3045_v53 = vpop.eup %3044 }
0x13a1   :  { %v4278_v0 = vmul.f32 %v3045_v53, %v1507_v59 }
0x13a3   :  { %1518 = vrot.lane.b32.xlu1 %v4278_v0, %s3178_s21  ;;  %v1592_v16 = vpack.c.bf16 %v4278_v0, %v4278_v0 }
0x13a5   :  { %1594 = vrot.lane.b32.xlu0 %v1592_v16, %s3178_s21 }
0x1415   :  { %v1519_v10 = vpop.permute.xlu1 %1518 }
0x1416   :  { %v1521_v11 = vsel %vm318_vm4, %v1519_v10, %v4181_v35  ;;  %v4299_v35 = vld [vmem:[%s4802_s9 + $0x50] sm:$0xff] }
0x1417   :  { %v1522_v2 = vpack.c.bf16 %v1521_v11, %v1521_v11  ;;  %v1595_v31 = vpop.permute.xlu0 %1594  ;;  %4979 = vst [vmem:[#allocation4_spill] sm:$0xff] %v4299_v35 }
0x1418   :  { %2879 = vmatmul.msk.bf16.vlgmr.msra.gmra.mxu1 %vm318_vm4, %v1595_v31 }
0x1419   :  { %1535 = vmatmul.bf16.vlgmr.msrb.gmra.mxu0 %v1522_v2  ;;  %1837 = vmatpush.bf16.msra.mxu1 %v3953_v14  ;;  %v4306_v14 = vld [vmem:[%s4802_s9 + $0x48] sm:$0xff]  ;;  %v4989_v2 = vld [vmem:[#allocation2_spill] sm:$0xff] }
0x141a   :  { %1802 = vmatpush.bf16.msrb.mxu0 %v4292_v49  ;;  %4980 = vst [vmem:[#allocation20_spill] sm:$0xff] %v4306_v14 }
0x141d   :  { %1838 = vmatpush.bf16.msra.mxu1 %v3960_v3  ;;  %v4313_v3 = vld [vmem:[%s4802_s9 + $0x40] sm:$0xff] }
0x141e   :  { %1803 = vmatpush.bf16.msrb.mxu0 %v4299_v35  ;;  %4982 = vst [vmem:[#allocation21_spill] sm:$0xff] %v4313_v3 }
0x1421   :  { %1839 = vmatpush.bf16.msra.mxu1 %v4957_v13  ;;  %v4985_v13 = vld [vmem:[#allocation10_spill] sm:$0xff] }
0x1422   :  { %1804 = vmatpush.bf16.msrb.mxu0 %v4306_v14 }
0x1425   :  { %1840 = vmatpush.bf16.msra.mxu1 %v4981_v63 }
0x1426   :  { %1805 = vmatpush.bf16.msrb.mxu0 %v4313_v3 }
0x1429   :  { %1841 = vmatpush.bf16.msra.mxu1 %v4983_v26  ;;  %v4990_v26 = vld [vmem:[#allocation3_spill] sm:$0xff] }
0x142d   :  { %1842 = vmatpush.bf16.msra.mxu1 %v4984_v58 }
0x1431   :  { %1843 = vmatpush.bf16.msra.mxu1 %v4985_v13 }
0x1435   :  { %1844 = vmatpush.bf16.msra.mxu1 %v4986_v18 }
0x1495   :  { %v1608_v62 = vpop.f32.mrf.mxu1 }
0x1496   :  { %v1609_v37 = vadd.f32 %v4987_v7, %v1608_v62  ;;  %v1536_v32 = vpop.f32.mrf.mxu0  ;;  %v4991_v7 = vld [vmem:[#allocation13_spill] sm:$0xff] }
0x1497   :  { %v1537_v59 = vadd.f32 %v4324_v61, %v1536_v32 }
0x1498   :  { %v1613_v53 = vrot.slane %v1609_v37, 1  ;;  %v1614_v16 = vperm.slane %v1609_v37, 0 }
0x1499   :  { %v1550_v10 = vadd.f32 %v1549_v51, %v1537_v59 }
0x149a   :  { %v1615_v11 = vperm.slane %v1613_v53, 0  ;;  %v1618_v31 = vadd.f32 %v1614_v16, %v4989_v2 }
0x149b   :  { %2875 = vst [vmem:[%s4804_s11 + $0x6] sm:$0x3] %v1550_v10  ;;  %v1555_v63 = vsel %vm780_vm6, %v1550_v10, -inf }
0x149c   :  { %v1619_v58 = vadd.f32 %v1615_v11, %v4990_v26  ;;  %3046 = vtanh.f32 %v1618_v31  ;;  %1556 = vmax.xlane.f32.xlu2 %v1555_v63 }
0x149d   :  { %v1610_v13 = vpop.f32.mrf.mxu1 }
0x149e   :  { %3048 = vtanh.f32 %v1619_v58  ;;  %v1538_v18 = vpop.f32.mrf.mxu0 }
0x14a2   :  { %v3047_v62 = vpop.eup %3046 }
0x14a3   :  { %v1622_v37 = vmul.f32 %v4991_v7, %v3047_v62 }
0x14a4   :  { %v3049_v51 = vpop.eup %3048 }
0x14a5   :  { %1624 = vadd.xlane.f32.xlu0 %v1622_v37  ;;  %v1623_v32 = vmul.f32 %v4991_v7, %v3049_v51 }
0x14a7   :  { %1626 = vadd.xlane.f32.xlu1 %v1623_v32 }
0x150f   :  { %v1557_v59 = vpop.xlane.xlu2 %1556 }
0x1510   :  { %vm1558_vm7 = vcmp.ge.f32.partialorder %v1550_v10, %v1557_v59 }
0x1511   :  { %v1559_v53 = vsel %vm1558_vm7, %v3323_v40, 128 }
0x1512   :  { %v1560_v16 = vsel %vm780_vm6, %v1559_v53, 2147483647 }
0x1513   :  { %v1562_v11 = vshra.s32 %v1560_v16, 16  ;;  %v1561_v37 = vand.u32 65535, %v1560_v16 }
0x1515   :  { %v1564_v31 = vcvt.s32.f32 %v1562_v11  ;;  %v1563_v51 = vcvt.s32.f32 %v1561_v37 }
0x1517   :  { %1565 = vmin.xlane.f32.xlu1 %v1564_v31 }
0x1518   :  { %v1625_v63 = vpop.xlane.xlu0 %1624 }
0x1519   :  { %v1630_v13 = vperm.slane %v1625_v63, %v3323_v40 }
0x151a   :  { %v1627_v58 = vpop.xlane.xlu1 %1626 }
0x151b   :  { %v1631_v18 = vperm.slane %v1627_v58, %v3323_v40 }
0x151d   :  { %v1632_v62 = vsel %vm358_vm0, %v1631_v18, %v1630_v13 }
0x151e   :  { %v1634_v7 = vsel %vm361_vm1, %v1632_v62, -inf }
0x151f   :  { %1635 = vmax.xlane.f32.xlu0 %v1634_v7 }
0x158a   :  { %v1566_v10 = vpop.xlane.xlu1 %1565 }
0x158b   :  { %vm1567_vm8 = vcmp.eq.f32.partialorder %v1564_v31, %v1566_v10  ;;  %v1572_v18 = vcvt.f32.s32 %v1566_v10  ;;  %v4995_v10 = vld [vmem:[#allocation24_spill] sm:$0xff] }
0x158c   :  { %v1568_v32 = vsel %vm1567_vm8, %v1563_v51, inf }
0x158d   :  { %1569 = vmin.xlane.f32.xlu1 %v1568_v32  ;;  %v1573_v62 = vshll.u32 %v1572_v18, 16 }
0x1592   :  { %v1636_v59 = vpop.xlane.xlu0 %1635 }
0x1593   :  { %v1638_v53 = vperm.slane %v1636_v59, 0  ;;  %v1639_v11 = vperm.slane %v1636_v59, 1 }
0x1595   :  { %v1642_v26 = vsub.f32 %v1625_v63, %v1638_v53  ;;  %v1643_v2 = vsub.f32 %v1627_v58, %v1639_v11  ;;  %v4992_v63 = vld [vmem:[#allocation11_spill] sm:$0xff] }
0x1597   :  { %v1644_v61 = vmul.f32 1.442695, %v1642_v26  ;;  %v1646_v3 = vmul.f32 1.442695, %v1643_v2  ;;  %v4993_v26 = vld [vmem:[#allocation12_spill] sm:$0xff] }
0x1599   :  { %3050 = vpow2.f32 %v1644_v61  ;;  %v4994_v61 = vld [vmem:[#allocation23_spill] sm:$0xff] }
0x159a   :  { %3052 = vpow2.f32 %v1646_v3 }
0x159f   :  { %v3051_v14 = vpop.eup %3050 }
0x15a0   :  { %v3053_v13 = vpop.eup %3052  ;;  %1651 = vperm.xlu2 %2968, %v3051_v14  }
0x15a1   :  { %1654 = vperm.xlu0 %2969, %v3053_v13  }
0x15fa   :  { %v1652_v3 = vpop.permute.xlu2 %1651 }
0x15fb   :  { %v1656_v58 = vperm.slane %v1652_v3, %v3323_v40 }
0x1600   :  { %v1570_v16 = vpop.xlane.xlu1 %1569 }
0x1601   :  { %v1571_v7 = vcvt.f32.s32 %v1570_v16 }
0x1603   :  { %v1574_v31 = vadd.s32 %v1573_v62, %v1571_v7 }
0x1605   :  { %vm1575_vm9 = vcmp.eq.s32.totalorder %v3323_v40, %v1574_v31 }
0x1606   :  { %vm2877_vm10 = vmpackc.low %vm1575_vm9, %vm1575_vm9 }
0x1607   :  { %2878 = vmatmul.msk.bf16.vlgmr.msrb.gmra.mxu3 %vm2877_vm10, %v4924_v17 }
0x1608   :  { %1861 = vmatpush.bf16.msrb.mxu3 %v4992_v63 }
0x160c   :  { %1862 = vmatpush.bf16.msrb.mxu3 %v4993_v26 }
0x1610   :  { %1863 = vmatpush.bf16.msrb.mxu3 %v4994_v61 }
0x1613   :  { %v1655_v2 = vpop.permute.xlu0 %1654 }
0x1614   :  { %v1657_v37 = vperm.slane %v1655_v2, %v3323_v40  ;;  %1864 = vmatpush.bf16.msrb.mxu3 %v4995_v10 }
0x1616   :  { %v1658_v51 = vsel %vm358_vm0, %v1657_v37, %v1656_v58 }
0x1617   :  { %v1660_v32 = vsel %vm361_vm1, %v1658_v51, 0.0 }
0x1618   :  { %1661 = vadd.xlane.f32.xlu1 %v1660_v32 }
0x168a   :  { %v1588_v59 = vpop.f32.mrf.mxu3 }
0x168b   :  { %v1662_v53 = vpop.xlane.xlu1 %1661 }
0x168c   :  { %3054 = vrcp.f32 %v1662_v53 }
0x1692   :  { %v3055_v11 = vpop.eup %3054  ;;  %v1590_v18 = vpop.f32.mrf.mxu3 }
0x1693   :  { %v1666_v16 = vperm.slane %v3055_v11, 1  ;;  %v1665_v62 = vperm.slane %v3055_v11, 0 }
0x1695   :  { %v1670_v7 = vmul.f32 %v3053_v13, %v1666_v16  ;;  %v1669_v31 = vmul.f32 %v3051_v14, %v1665_v62 }
0x1697   :  { %1678 = vperm.xlu2 %2968, %v1670_v7   ;;  %1673 = vperm.xlu1 %2967, %v1669_v31  }
0x16f1   :  { %v1679_v63 = vpop.permute.xlu2 %1678 }
0x16f2   :  { %v1682_v26 = vmul.f32 %v4067_v47, %v1679_v63  ;;  %v4998_v63 = vld [vmem:[#allocation16_spill] sm:$0xff] }
0x16f4   :  { %v1689_v61 = vrot.slane %v1682_v26, 4 }
0x16f6   :  { %v1690_v3 = vadd.f32 %v1689_v61, %v1682_v26  ;;  %v4999_v26 = vld [vmem:[#allocation17_spill] sm:$0xff]  ;;  %v5000_v61 = vld [vmem:[#allocation18_spill] sm:$0xff] }
0x16f8   :  { %v1691_v58 = vrot.slane %v1690_v3, 2 }
0x16fa   :  { %v1692_v51 = vadd.f32 %v1691_v58, %v1690_v3  ;;  %v5001_v3 = vld [vmem:[#allocation19_spill] sm:$0xff] }
0x16fc   :  { %v1693_v18 = vrot.slane %v1692_v51, 1 }
0x16fe   :  { %v1694_v14 = vadd.f32 %v1693_v18, %v1692_v51 }
0x1709   :  { %v1674_v2 = vpop.permute.xlu1 %1673 }
0x170a   :  { %v1681_v37 = vmul.f32 %v4972_v43, %v1674_v2 }
0x170c   :  { %v1683_v10 = vrot.slane %v1681_v37, 4 }
0x170e   :  { %v1684_v32 = vadd.f32 %v1683_v10, %v1681_v37 }
0x1710   :  { %v1685_v53 = vrot.slane %v1684_v32, 2 }
0x1712   :  { %v1686_v17 = vadd.f32 %v1685_v53, %v1684_v32 }
0x1714   :  { %v1687_v11 = vrot.slane %v1686_v17, 1 }
0x1716   :  { %v1688_v13 = vadd.f32 %v1687_v11, %v1686_v17 }
0x1718   :  { %v1697_v16 = vsel %vm358_vm0, %v1694_v14, %v1688_v13 }
0x1719   :  { %1698 = vrot.lane.b32.xlu0 %v1697_v16, %s3178_s21 }
0x178b   :  { %v4355_v47 = vpop.permute.xlu0 %1698 }
0x178c   :  { %v1701_v62 = vsel %vm318_vm4, %v1588_v59, %v4355_v47  ;;  %v1702_v43 = vsel %vm318_vm4, %v4355_v47, %v4278_v0  ;;  %v1781_v17 = vpack.c.bf16 %v4355_v47, %v4355_v47  ;;  %v4996_v0 = vld [vmem:[#allocation14_spill] sm:$0xff]  ;;  %v4997_v59 = vld [vmem:[#allocation15_spill] sm:$0xff] }
0x178d   :  { %v1703_v7 = vpack.c.bf16 %v1701_v62, %v1701_v62  ;;  %v1704_v31 = vpack.c.bf16 %v1702_v43, %v1702_v43 }
0x178f   :  { %1713 = vmatmul.bf16.vlgmr.msrb.gmra.mxu2 %v1703_v7  ;;  %1726 = vmatmul.bf16.vlgmr.msra.gmra.mxu0 %v1704_v31 }
0x1790   :  { %1739 = vmatmul.bf16.vlgmr.msrb.gmra.mxu1 %v1703_v7  ;;  %1752 = vmatmul.bf16.vlgmr.msra.gmra.mxu3 %v1704_v31 }
0x1791   :  { %1963 = vmatpush.bf16.msra.mxu0 %v3405_v29  ;;  %1976 = vmatpush.bf16.msrb.mxu2 %v3392_v22 }
0x1792   :  { %1989 = vmatpush.bf16.msra.mxu3 %v3417_v34  ;;  %2002 = vmatpush.bf16.msrb.mxu1 %v3403_v27 }
0x1795   :  { %1964 = vmatpush.bf16.msra.mxu0 %v3444_v44  ;;  %1977 = vmatpush.bf16.msrb.mxu2 %v3430_v38 }
0x1796   :  { %1990 = vmatpush.bf16.msra.mxu3 %v3455_v48  ;;  %2003 = vmatpush.bf16.msrb.mxu1 %v3432_v39 }
0x1799   :  { %1965 = vmatpush.bf16.msra.mxu0 %v3482_v57  ;;  %1978 = vmatpush.bf16.msrb.mxu2 %v3467_v52 }
0x179a   :  { %1991 = vmatpush.bf16.msra.mxu3 %v3494_v5  ;;  %2004 = vmatpush.bf16.msrb.mxu1 %v3480_v56 }
0x179d   :  { %1966 = vmatpush.bf16.msra.mxu0 %v3518_v21  ;;  %1979 = vmatpush.bf16.msrb.mxu2 %v3512_v19 }
0x179e   :  { %1992 = vmatpush.bf16.msra.mxu3 %v3530_v30  ;;  %2005 = vmatpush.bf16.msrb.mxu1 %v3516_v20 }
0x179f   :  { %2880 = vmatmul.msk.bf16.vlgmr.msrb.gmra.mxu0 %vm318_vm4, %v1781_v17 }
0x17a1   :  { %1967 = vmatpush.bf16.msra.mxu0 %v3554_v46  ;;  %1980 = vmatpush.bf16.msrb.mxu2 %v3548_v41 }
0x17a2   :  { %1993 = vmatpush.bf16.msra.mxu3 %v3568_v54  ;;  %2006 = vmatpush.bf16.msrb.mxu1 %v4925_v9 }
0x17a5   :  { %1968 = vmatpush.bf16.msra.mxu0 %v4926_v33  ;;  %1981 = vmatpush.bf16.msrb.mxu2 %v4927_v45 }
0x17a6   :  { %1994 = vmatpush.bf16.msra.mxu3 %v3604_v36  ;;  %2007 = vmatpush.bf16.msrb.mxu1 %v4928_v1 }
0x17a9   :  { %1969 = vmatpush.bf16.msra.mxu0 %v4929_v28  ;;  %1982 = vmatpush.bf16.msrb.mxu2 %v4930_v4 }
0x17aa   :  { %1995 = vmatpush.bf16.msra.mxu3 %v3637_v12  ;;  %2008 = vmatpush.bf16.msrb.mxu1 %v4931_v25 }
0x17ad   :  { %1970 = vmatpush.bf16.msra.mxu0 %v4932_v6  ;;  %1983 = vmatpush.bf16.msrb.mxu2 %v4933_v8 }
0x17ae   :  { %1996 = vmatpush.bf16.msra.mxu3 %v3682_v24  ;;  %2009 = vmatpush.bf16.msrb.mxu1 %v4934_v42 }
0x17b1   :  { %2043 = vmatpush.bf16.msrb.mxu0 %v4226_v23 }
0x17b5   :  { %2044 = vmatpush.bf16.msrb.mxu0 %v4232_v15 }
0x17b9   :  { %2045 = vmatpush.bf16.msrb.mxu0 %v4996_v0 }
0x17bd   :  { %2046 = vmatpush.bf16.msrb.mxu0 %v4997_v59 }
0x17c1   :  { %2047 = vmatpush.bf16.msrb.mxu0 %v4998_v63 }
0x17c5   :  { %2048 = vmatpush.bf16.msrb.mxu0 %v4999_v26 }
0x17c9   :  { %2049 = vmatpush.bf16.msrb.mxu0 %v5000_v61 }
0x17cd   :  { %2050 = vmatpush.bf16.msrb.mxu0 %v5001_v3 }
0x180c   :  { %v1727_v2 = vpop.f32.mrf.mxu0 }
0x180d   :  { %v1740_v58 = vpop.f32.mrf.mxu1 }
0x180e   :  { %v1741_v11 = vadd.f32 %v1740_v58, %v3728_v60 }
0x1812   :  { %v1714_v37 = vpop.f32.mrf.mxu2 }
0x1813   :  { %v1715_v10 = vadd.f32 %v1714_v37, %v3726_v50  ;;  %v1753_v51 = vpop.f32.mrf.mxu3 }
0x1814   :  { %v1729_v32 = vpop.f32.mrf.mxu0  ;;  %v1754_v14 = vadd.f32 %v1753_v51, %v1741_v11 }
0x1815   :  { %v1728_v53 = vadd.f32 %v1727_v2, %v1715_v10  ;;  %v1742_v18 = vpop.f32.mrf.mxu1 }
0x1816   :  { %v1762_v37 = vmul.f32 0.5, %v1754_v14 }
0x1817   :  { %v1757_v13 = vmul.f32 0.5, %v1728_v53 }
0x1819   :  { %3056 = vtanh.f32 %v1757_v13  ;;  %v5002_v13 = vld [vmem:[#allocation20_spill] sm:$0xff] }
0x181a   :  { %v1716_v16 = vpop.f32.mrf.mxu2  ;;  %3058 = vtanh.f32 %v1754_v14  ;;  %v5003_v14 = vld [vmem:[#allocation21_spill] sm:$0xff] }
0x181b   :  { %v1755_v62 = vpop.f32.mrf.mxu3  ;;  %3060 = vtanh.f32 %v1762_v37  ;;  %v4459_v37 = vld [vmem:[%s4799_s1 + $0x10] sm:$0xff] }
0x181c   :  { %v1807_v43 = vpop.f32.mrf.mxu0  ;;  %v4429_v62 = vld [vmem:[%s4799_s1 + $0x38] sm:$0xff]  ;;  %5008 = vst [vmem:[#allocation10_spill] sm:$0xff] %v4459_v37 }
0x181f   :  { %v3057_v7 = vpop.eup %3056 }
0x1820   :  { %v1759_v31 = vadd.f32 1.0, %v3057_v7  ;;  %v3059_v3 = vpop.eup %3058  ;;  %v4441_v7 = vld [vmem:[%s4799_s1 + $0x28] sm:$0xff] }
0x1821   :  { %v3061_v10 = vpop.eup %3060  ;;  %5005 = vst [vmem:[#allocation7_spill] sm:$0xff] %v4441_v7 }
0x1822   :  { %v1760_v17 = vmul.f32 0.5, %v1759_v31  ;;  %v1764_v51 = vadd.f32 1.0, %v3061_v10  ;;  %v4447_v31 = vld [vmem:[%s4799_s1 + $0x20] sm:$0xff] }
0x1823   :  { %5006 = vst [vmem:[#allocation5_spill] sm:$0xff] %v4447_v31 }
0x1824   :  { %v1809_v61 = vpop.f32.mrf.mxu0  ;;  %v1767_v26 = vmul.f32 %v3059_v3, %v1760_v17  ;;  %v1766_v2 = vmul.f32 %v1760_v17, %v4275_v55  ;;  %v1765_v53 = vmul.f32 0.5, %v1764_v51  ;;  %v4453_v17 = vld [vmem:[%s4799_s1 + $0x18] sm:$0xff]  ;;  %v5011_v51 = vld [vmem:[#allocation22_spill] sm:$0xff] }
0x1825   :  { %5007 = vst [vmem:[#allocation6_spill] sm:$0xff] %v4453_v17 }
0x1826   :  { %1769 = vrot.lane.b32.xlu2 %v1767_v26, %s3178_s21 }
0x1880   :  { %v1770_v58 = vpop.permute.xlu2 %1769 }
0x1881   :  { %v4409_v32 = vadd.f32 %v1770_v58, %v1766_v2  ;;  %v4465_v2 = vld [vmem:[%s4799_s1 + $0x8] sm:$0xff]  ;;  %v4471_v58 = vld [vmem:[%s4799_s1] sm:$0xff] }
0x1882   :  { %5009 = vst [vmem:[#allocation8_spill] sm:$0xff] %v4465_v2 }
0x1883   :  { %3062 = vtanh.f32 %v4409_v32  ;;  %5010 = vst [vmem:[#allocation9_spill] sm:$0xff] %v4471_v58 }
0x1889   :  { %v3063_v18 = vpop.eup %3062 }
0x188a   :  { %v4412_v11 = vmul.f32 %v3063_v18, %v1765_v53 }
0x188c   :  { %1776 = vrot.lane.b32.xlu2 %v4412_v11, %s3178_s21  ;;  %v1850_v26 = vpack.c.bf16 %v4412_v11, %v4412_v11 }
0x188e   :  { %1852 = vrot.lane.b32.xlu0 %v1850_v26, %s3178_s21 }
0x18e6   :  { %v1777_v55 = vpop.permute.xlu2 %1776 }
0x18e7   :  { %v1779_v61 = vsel %vm318_vm4, %v1777_v55, %v4355_v47  ;;  %v4435_v47 = vld [vmem:[%s4799_s1 + $0x30] sm:$0xff] }
0x18e8   :  { %v1780_v3 = vpack.c.bf16 %v1779_v61, %v1779_v61  ;;  %5004 = vst [vmem:[#allocation25_spill] sm:$0xff] %v4435_v47 }
0x18ea   :  { %1793 = vmatmul.bf16.vlgmr.msra.gmra.mxu2 %v1780_v3  ;;  %v4482_v3 = vld [vmem:[%s4795_s5] ss:$0 sm:$0xff] }
0x18eb   :  { %2060 = vmatpush.bf16.msra.mxu2 %v4292_v49  ;;  %5012 = vst [vmem:[#allocation13_spill] sm:$0xff] %v4482_v3 }
0x18ef   :  { %2061 = vmatpush.bf16.msra.mxu2 %v4299_v35 }
0x18f3   :  { %2062 = vmatpush.bf16.msra.mxu2 %v5002_v13 }
0x18f7   :  { %2063 = vmatpush.bf16.msra.mxu2 %v5003_v14 }
0x1900   :  { %v1853_v16 = vpop.permute.xlu0 %1852 }
0x1901   :  { %2885 = vmatmul.msk.bf16.vlgmr.msrb.gmra.mxu3 %vm318_vm4, %v1853_v16 }
0x1902   :  { %2095 = vmatpush.bf16.msrb.mxu3 %v4429_v62 }
0x1906   :  { %2096 = vmatpush.bf16.msrb.mxu3 %v4435_v47 }
0x190a   :  { %2097 = vmatpush.bf16.msrb.mxu3 %v4441_v7 }
0x190e   :  { %2098 = vmatpush.bf16.msrb.mxu3 %v4447_v31 }
0x1912   :  { %2099 = vmatpush.bf16.msrb.mxu3 %v4453_v17 }
0x1916   :  { %2100 = vmatpush.bf16.msrb.mxu3 %v4459_v37 }
0x191a   :  { %2101 = vmatpush.bf16.msrb.mxu3 %v4465_v2 }
0x191e   :  { %2102 = vmatpush.bf16.msrb.mxu3 %v4471_v58 }
0x196d   :  { %v1794_v10 = vpop.f32.mrf.mxu2 }
0x196e   :  { %v1795_v53 = vadd.f32 %v5011_v51, %v1794_v10  ;;  %v5014_v51 = vld [vmem:[#allocation3_spill] sm:$0xff] }
0x1970   :  { %v1808_v18 = vadd.f32 %v1807_v43, %v1795_v53  ;;  %v5013_v43 = vld [vmem:[#allocation2_spill] sm:$0xff] }
0x1972   :  { %2881 = vst [vmem:[%s4804_s11 + $0x8] sm:$0x3] %v1808_v18  ;;  %v1813_v26 = vsel %vm780_vm6, %v1808_v18, -inf }
0x1973   :  { %1814 = vmax.xlane.f32.xlu2 %v1813_v26 }
0x1975   :  { %v1796_v55 = vpop.f32.mrf.mxu2 }
0x1976   :  { %v4490_v55 = vld [vmem:[%s4798_s6] ss:$0 sm:$0xff] }
0x1977   :  { %5015 = vst [vmem:[#allocation11_spill] sm:$0xff] %v4490_v55 }
0x1984   :  { %v1866_v61 = vpop.f32.mrf.mxu3 }
0x1985   :  { %v1867_v16 = vadd.f32 %v4482_v3, %v1866_v61 }
0x1987   :  { %v1871_v58 = vrot.slane %v1867_v16, 1  ;;  %v1872_v2 = vperm.slane %v1867_v16, 0 }
0x1989   :  { %v1873_v10 = vperm.slane %v1871_v58, 0  ;;  %v1876_v53 = vadd.f32 %v1872_v2, %v5013_v43 }
0x198b   :  { %v1877_v37 = vadd.f32 %v1873_v10, %v5014_v51  ;;  %3064 = vtanh.f32 %v1876_v53 }
0x198c   :  { %v1868_v17 = vpop.f32.mrf.mxu3 }
0x198d   :  { %3066 = vtanh.f32 %v1877_v37 }
0x1991   :  { %v3065_v26 = vpop.eup %3064 }
0x1992   :  { %v1880_v14 = vmul.f32 %v4490_v55, %v3065_v26 }
0x1993   :  { %v3067_v31 = vpop.eup %3066 }
0x1994   :  { %1882 = vadd.xlane.f32.xlu0 %v1880_v14  ;;  %v1881_v61 = vmul.f32 %v4490_v55, %v3067_v31 }
0x1996   :  { %1884 = vadd.xlane.f32.xlu1 %v1881_v61 }
0x19e6   :  { %v1815_v58 = vpop.xlane.xlu2 %1814 }
0x19e7   :  { %vm1816_vm11 = vcmp.ge.f32.partialorder %v1808_v18, %v1815_v58 }
0x19e8   :  { %v1817_v2 = vsel %vm1816_vm11, %v3323_v40, 128 }
0x19e9   :  { %v1818_v17 = vsel %vm780_vm6, %v1817_v2, 2147483647 }
0x19ea   :  { %v1820_v37 = vshra.s32 %v1818_v17, 16  ;;  %v1819_v61 = vand.u32 65535, %v1818_v17 }
0x19ec   :  { %v1822_v16 = vcvt.s32.f32 %v1820_v37  ;;  %v1821_v58 = vcvt.s32.f32 %v1819_v61 }
0x19ee   :  { %1823 = vmin.xlane.f32.xlu2 %v1822_v16 }
0x1a07   :  { %v1883_v10 = vpop.xlane.xlu0 %1882 }
0x1a08   :  { %v1888_v51 = vperm.slane %v1883_v10, %v3323_v40 }
0x1a09   :  { %v1885_v53 = vpop.xlane.xlu1 %1884 }
0x1a0a   :  { %v1889_v26 = vperm.slane %v1885_v53, %v3323_v40 }
0x1a0c   :  { %v1890_v14 = vsel %vm358_vm0, %v1889_v26, %v1888_v51 }
0x1a0d   :  { %v1892_v31 = vsel %vm361_vm1, %v1890_v14, -inf }
0x1a0e   :  { %1893 = vmax.xlane.f32.xlu0 %v1892_v31 }
0x1a61   :  { %v1824_v18 = vpop.xlane.xlu2 %1823 }
0x1a62   :  { %vm1825_vm12 = vcmp.eq.f32.partialorder %v1822_v16, %v1824_v18  ;;  %v1830_v26 = vcvt.f32.s32 %v1824_v18 }
0x1a63   :  { %v1826_v55 = vsel %vm1825_vm12, %v1821_v58, inf }
0x1a64   :  { %1827 = vmin.xlane.f32.xlu2 %v1826_v55  ;;  %v1831_v14 = vshll.u32 %v1830_v26, 16  ;;  %v5016_v55 = vmov 1.0|1.0  }
0x1a81   :  { %v1894_v2 = vpop.xlane.xlu0 %1893 }
0x1a82   :  { %v1896_v37 = vperm.slane %v1894_v2, 0  ;;  %v1897_v43 = vperm.slane %v1894_v2, 1 }
0x1a84   :  { %v1900_v3 = vsub.f32 %v1883_v10, %v1896_v37  ;;  %v1901_v13 = vsub.f32 %v1885_v53, %v1897_v43 }
0x1a86   :  { %v1902_v7 = vmul.f32 1.442695, %v1900_v3  ;;  %v1904_v35 = vmul.f32 1.442695, %v1901_v13  ;;  %v4505_v13 = vld [vmem:[%s4794_s4 + $0x18] sm:$0xff]  ;;  %v4523_v3 = vld [vmem:[%s4794_s4] sm:$0xff] }
0x1a87   :  { %5019 = vst [vmem:[#allocation24_spill] sm:$0xff] %v4523_v3 }
0x1a88   :  { %3068 = vpow2.f32 %v1902_v7  ;;  %v4517_v7 = vld [vmem:[%s4794_s4 + $0x8] sm:$0xff] }
0x1a89   :  { %3070 = vpow2.f32 %v1904_v35  ;;  %v4511_v35 = vld [vmem:[%s4794_s4 + $0x10] sm:$0xff]  ;;  %5018 = vst [vmem:[#allocation23_spill] sm:$0xff] %v4517_v7 }
0x1a8a   :  { %5017 = vst [vmem:[#allocation12_spill] sm:$0xff] %v4511_v35 }
0x1a8e   :  { %v3069_v47 = vpop.eup %3068 }
0x1a8f   :  { %v3071_v51 = vpop.eup %3070  ;;  %1909 = vperm.xlu1 %2967, %v3069_v47  }
0x1a90   :  { %1912 = vperm.xlu0 %2969, %v3071_v51  }
0x1ad7   :  { %v1828_v17 = vpop.xlane.xlu2 %1827 }
0x1ad8   :  { %v1829_v31 = vcvt.f32.s32 %v1828_v17 }
0x1ada   :  { %v1832_v16 = vadd.s32 %v1831_v14, %v1829_v31 }
0x1adc   :  { %vm1833_vm13 = vcmp.eq.s32.totalorder %v3323_v40, %v1832_v16 }
0x1add   :  { %vm2883_vm14 = vmpackc.low %vm1833_vm13, %vm1833_vm13 }
0x1ade   :  { %2884 = vmatmul.msk.bf16.vlgmr.msra.gmra.mxu1 %vm2883_vm14, %v5016_v55 }
0x1adf   :  { %2119 = vmatpush.bf16.msra.mxu1 %v4505_v13 }
0x1ae3   :  { %2120 = vmatpush.bf16.msra.mxu1 %v4511_v35 }
0x1ae7   :  { %2121 = vmatpush.bf16.msra.mxu1 %v4517_v7 }
0x1aeb   :  { %2122 = vmatpush.bf16.msra.mxu1 %v4523_v3 }
0x1b01   :  { %v1910_v43 = vpop.permute.xlu1 %1909 }
0x1b02   :  { %v1913_v10 = vpop.permute.xlu0 %1912  ;;  %v1914_v53 = vperm.slane %v1910_v43, %v3323_v40  ;;  %v4533_v43 = vld [vmem:[%s4796_s0 + $0x8] sm:$0xff] }
0x1b03   :  { %v1915_v61 = vperm.slane %v1913_v10, %v3323_v40  ;;  %5020 = vst [vmem:[#allocation14_spill] sm:$0xff] %v4533_v43 }
0x1b05   :  { %v1916_v18 = vsel %vm358_vm0, %v1915_v61, %v1914_v53 }
0x1b06   :  { %v1918_v58 = vsel %vm361_vm1, %v1916_v18, 0.0 }
0x1b07   :  { %1919 = vadd.xlane.f32.xlu2 %v1918_v58 }
0x1b5b   :  { %v1846_v2 = vpop.f32.mrf.mxu1 }
0x1b63   :  { %v1848_v37 = vpop.f32.mrf.mxu1 }
0x1b64   :  { %v4539_v37 = vld [vmem:[%s4796_s0] sm:$0xff] }
0x1b7a   :  { %v1920_v26 = vpop.xlane.xlu2 %1919 }
0x1b7b   :  { %3072 = vrcp.f32 %v1920_v26 }
0x1b81   :  { %v3073_v17 = vpop.eup %3072 }
0x1b82   :  { %v1924_v14 = vperm.slane %v3073_v17, 1  ;;  %v1923_v31 = vperm.slane %v3073_v17, 0 }
0x1b84   :  { %v1928_v16 = vmul.f32 %v3071_v51, %v1924_v14  ;;  %v1927_v3 = vmul.f32 %v3069_v47, %v1923_v31 }
0x1b86   :  { %1936 = vperm.xlu2 %2968, %v1928_v16   ;;  %1931 = vperm.xlu0 %2969, %v1927_v3  }
0x1be0   :  { %v1937_v7 = vpop.permute.xlu2 %1936 }
0x1be1   :  { %v1940_v10 = vmul.f32 %v4533_v43, %v1937_v7 }
0x1be3   :  { %v1947_v53 = vrot.slane %v1940_v10, 4 }
0x1be5   :  { %v1948_v61 = vadd.f32 %v1947_v53, %v1940_v10 }
0x1be7   :  { %v1949_v58 = vrot.slane %v1948_v61, 2 }
0x1be9   :  { %v1950_v3 = vadd.f32 %v1949_v58, %v1948_v61 }
0x1beb   :  { %v1951_v14 = vrot.slane %v1950_v3, 1 }
0x1bed   :  { %v1952_v7 = vadd.f32 %v1951_v14, %v1950_v3 }
0x1bf8   :  { %v1932_v18 = vpop.permute.xlu0 %1931 }
0x1bf9   :  { %v1939_v47 = vmul.f32 %v4539_v37, %v1932_v18 }
0x1bfb   :  { %v1941_v51 = vrot.slane %v1939_v47, 4 }
0x1bfd   :  { %v1942_v26 = vadd.f32 %v1941_v51, %v1939_v47 }
0x1bff   :  { %v1943_v17 = vrot.slane %v1942_v26, 2 }
0x1c01   :  { %v1944_v31 = vadd.f32 %v1943_v17, %v1942_v26 }
0x1c03   :  { %v1945_v16 = vrot.slane %v1944_v31, 1 }
0x1c05   :  { %v1946_v35 = vadd.f32 %v1945_v16, %v1944_v31 }
0x1c07   :  { %v1955_v10 = vsel %vm358_vm0, %v1952_v7, %v1946_v35  ;;  %v5021_v35 = vld [vmem:[#allocation17_spill] sm:$0xff] }
0x1c08   :  { %1956 = vrot.lane.b32.xlu1 %v1955_v10, %s3178_s21 }
0x1c7a   :  { %v4544_v53 = vpop.permute.xlu1 %1956 }
0x1c7b   :  { %v1959_v43 = vsel %vm318_vm4, %v1846_v2, %v4544_v53  ;;  %v1960_v61 = vsel %vm318_vm4, %v4544_v53, %v4412_v11  ;;  %v2039_v11 = vpack.c.bf16 %v4544_v53, %v4544_v53  ;;  %v5022_v2 = vld [vmem:[#allocation18_spill] sm:$0xff] }
0x1c7c   :  { %v1961_v18 = vpack.c.bf16 %v1959_v43, %v1959_v43  ;;  %v1962_v58 = vpack.c.bf16 %v1960_v61, %v1960_v61  ;;  %v5023_v43 = vld [vmem:[#allocation19_spill] sm:$0xff] }
0x1c7e   :  { %1971 = vmatmul.bf16.vlgmr.msra.gmra.mxu0 %v1961_v18  ;;  %1984 = vmatmul.bf16.vlgmr.msrb.gmra.mxu2 %v1962_v58 }
0x1c7f   :  { %1997 = vmatmul.bf16.vlgmr.msra.gmra.mxu3 %v1961_v18  ;;  %2010 = vmatmul.bf16.vlgmr.msrb.gmra.mxu1 %v1962_v58 }
0x1c80   :  { %2221 = vmatpush.bf16.msrb.mxu2 %v3405_v29  ;;  %2234 = vmatpush.bf16.msra.mxu0 %v3392_v22 }
0x1c81   :  { %2247 = vmatpush.bf16.msrb.mxu1 %v3417_v34  ;;  %2260 = vmatpush.bf16.msra.mxu3 %v3403_v27 }
0x1c84   :  { %2222 = vmatpush.bf16.msrb.mxu2 %v3444_v44  ;;  %2235 = vmatpush.bf16.msra.mxu0 %v3430_v38 }
0x1c85   :  { %2248 = vmatpush.bf16.msrb.mxu1 %v3455_v48  ;;  %2261 = vmatpush.bf16.msra.mxu3 %v3432_v39 }
0x1c88   :  { %2223 = vmatpush.bf16.msrb.mxu2 %v3482_v57  ;;  %2236 = vmatpush.bf16.msra.mxu0 %v3467_v52 }
0x1c89   :  { %2249 = vmatpush.bf16.msrb.mxu1 %v3494_v5  ;;  %2262 = vmatpush.bf16.msra.mxu3 %v3480_v56 }
0x1c8c   :  { %2224 = vmatpush.bf16.msrb.mxu2 %v3518_v21  ;;  %2237 = vmatpush.bf16.msra.mxu0 %v3512_v19 }
0x1c8d   :  { %2250 = vmatpush.bf16.msrb.mxu1 %v3530_v30  ;;  %2263 = vmatpush.bf16.msra.mxu3 %v3516_v20 }
0x1c8e   :  { %2886 = vmatmul.msk.bf16.vlgmr.msra.gmra.mxu2 %vm318_vm4, %v2039_v11 }
0x1c90   :  { %2225 = vmatpush.bf16.msrb.mxu2 %v3554_v46  ;;  %2238 = vmatpush.bf16.msra.mxu0 %v3548_v41 }
0x1c91   :  { %2251 = vmatpush.bf16.msrb.mxu1 %v3568_v54  ;;  %2264 = vmatpush.bf16.msra.mxu3 %v4925_v9 }
0x1c94   :  { %2226 = vmatpush.bf16.msrb.mxu2 %v4926_v33  ;;  %2239 = vmatpush.bf16.msra.mxu0 %v4927_v45 }
0x1c95   :  { %2252 = vmatpush.bf16.msrb.mxu1 %v3604_v36  ;;  %2265 = vmatpush.bf16.msra.mxu3 %v4928_v1 }
0x1c98   :  { %2227 = vmatpush.bf16.msrb.mxu2 %v4929_v28  ;;  %2240 = vmatpush.bf16.msra.mxu0 %v4930_v4 }
0x1c99   :  { %2253 = vmatpush.bf16.msrb.mxu1 %v3637_v12  ;;  %2266 = vmatpush.bf16.msra.mxu3 %v4931_v25 }
0x1c9c   :  { %2228 = vmatpush.bf16.msrb.mxu2 %v4932_v6  ;;  %2241 = vmatpush.bf16.msra.mxu0 %v4933_v8 }
0x1c9d   :  { %2254 = vmatpush.bf16.msrb.mxu1 %v3682_v24  ;;  %2267 = vmatpush.bf16.msra.mxu3 %v4934_v42 }
0x1ca0   :  { %2301 = vmatpush.bf16.msra.mxu2 %v4226_v23 }
0x1ca4   :  { %2302 = vmatpush.bf16.msra.mxu2 %v4232_v15 }
0x1ca8   :  { %2303 = vmatpush.bf16.msra.mxu2 %v4996_v0 }
0x1cac   :  { %2304 = vmatpush.bf16.msra.mxu2 %v4997_v59 }
0x1cb0   :  { %2305 = vmatpush.bf16.msra.mxu2 %v4998_v63 }
0x1cb4   :  { %2306 = vmatpush.bf16.msra.mxu2 %v5021_v35 }
0x1cb8   :  { %2307 = vmatpush.bf16.msra.mxu2 %v5022_v2 }
0x1cbc   :  { %2308 = vmatpush.bf16.msra.mxu2 %v5023_v43 }
0x1cfb   :  { %v1972_v47 = vpop.f32.mrf.mxu0 }
0x1cfc   :  { %v2011_v51 = vpop.f32.mrf.mxu1  ;;  %v1973_v3 = vadd.f32 %v1972_v47, %v3726_v50 }
0x1d01   :  { %v1985_v26 = vpop.f32.mrf.mxu2 }
0x1d02   :  { %v1986_v23 = vadd.f32 %v1985_v26, %v1973_v3  ;;  %v1998_v17 = vpop.f32.mrf.mxu3 }
0x1d03   :  { %v1999_v15 = vadd.f32 %v1998_v17, %v3728_v60  ;;  %v1974_v0 = vpop.f32.mrf.mxu0 }
0x1d04   :  { %v2015_v14 = vmul.f32 0.5, %v1986_v23  ;;  %v2013_v59 = vpop.f32.mrf.mxu1 }
0x1d05   :  { %v2012_v63 = vadd.f32 %v2011_v51, %v1999_v15 }
0x1d06   :  { %3074 = vtanh.f32 %v2015_v14 }
0x1d07   :  { %3076 = vtanh.f32 %v2012_v63  ;;  %v2020_v2 = vmul.f32 0.5, %v2012_v63 }
0x1d09   :  { %v1987_v31 = vpop.f32.mrf.mxu2  ;;  %3078 = vtanh.f32 %v2020_v2  ;;  %v5034_v2 = vld [vmem:[#allocation13_spill] sm:$0xff] }
0x1d0a   :  { %v2000_v16 = vpop.f32.mrf.mxu3  ;;  %v5024_v31 = vld [vmem:[#allocation25_spill] sm:$0xff] }
0x1d0b   :  { %v5025_v16 = vld [vmem:[#allocation4_spill] sm:$0xff] }
0x1d0c   :  { %v3075_v7 = vpop.eup %3074 }
0x1d0d   :  { %v2017_v10 = vadd.f32 1.0, %v3075_v7  ;;  %v3077_v18 = vpop.eup %3076  ;;  %v5026_v7 = vld [vmem:[#allocation7_spill] sm:$0xff] }
0x1d0f   :  { %v2018_v61 = vmul.f32 0.5, %v2017_v10  ;;  %v3079_v3 = vpop.eup %3078  ;;  %v5027_v10 = vld [vmem:[#allocation20_spill] sm:$0xff] }
0x1d10   :  { %v2022_v51 = vadd.f32 1.0, %v3079_v3  ;;  %v5035_v3 = vld [vmem:[#allocation22_spill] sm:$0xff] }
0x1d11   :  { %v2065_v58 = vpop.f32.mrf.mxu2  ;;  %v2025_v11 = vmul.f32 %v3077_v18, %v2018_v61  ;;  %v2024_v43 = vmul.f32 %v2018_v61, %v4409_v32  ;;  %v5028_v61 = vld [vmem:[#allocation5_spill] sm:$0xff]  ;;  %v5030_v18 = vld [vmem:[#allocation6_spill] sm:$0xff] }
0x1d12   :  { %v2023_v23 = vmul.f32 0.5, %v2022_v51 }
0x1d13   :  { %2027 = vrot.lane.b32.xlu0 %v2025_v11, %s3178_s21  ;;  %v5031_v11 = vld [vmem:[#allocation10_spill] sm:$0xff] }
0x1d19   :  { %v2067_v35 = vpop.f32.mrf.mxu2 }
0x1d1a   :  { %v5032_v35 = vld [vmem:[#allocation8_spill] sm:$0xff] }
0x1d85   :  { %v2028_v47 = vpop.permute.xlu0 %2027 }
0x1d86   :  { %v4598_v26 = vadd.f32 %v2028_v47, %v2024_v43 }
0x1d88   :  { %3080 = vtanh.f32 %v4598_v26 }
0x1d8e   :  { %v3081_v17 = vpop.eup %3080 }
0x1d8f   :  { %v4601_v15 = vmul.f32 %v3081_v17, %v2023_v23 }
0x1d91   :  { %2034 = vrot.lane.b32.xlu0 %v4601_v15, %s3178_s21  ;;  %v2108_v0 = vpack.c.bf16 %v4601_v15, %v4601_v15 }
0x1d93   :  { %2110 = vrot.lane.b32.xlu1 %v2108_v0, %s3178_s21 }
0x1e03   :  { %v2035_v32 = vpop.permute.xlu0 %2034 }
0x1e04   :  { %v2037_v14 = vsel %vm318_vm4, %v2035_v32, %v4544_v53  ;;  %v5029_v53 = vld [vmem:[#allocation21_spill] sm:$0xff] }
0x1e05   :  { %v2038_v59 = vpack.c.bf16 %v2037_v14, %v2037_v14  ;;  %v2111_v63 = vpop.permute.xlu1 %2110  ;;  %v5036_v14 = vld [vmem:[#allocation2_spill] sm:$0xff] }
0x1e06   :  { %2891 = vmatmul.msk.bf16.vlgmr.msra.gmra.mxu1 %vm318_vm4, %v2111_v63 }
0x1e07   :  { %2051 = vmatmul.bf16.vlgmr.msrb.gmra.mxu0 %v2038_v59  ;;  %2353 = vmatpush.bf16.msra.mxu1 %v4429_v62  ;;  %v5033_v62 = vld [vmem:[#allocation9_spill] sm:$0xff] }
0x1e08   :  { %2318 = vmatpush.bf16.msrb.mxu0 %v4292_v49 }
0x1e0b   :  { %2354 = vmatpush.bf16.msra.mxu1 %v5024_v31  ;;  %v5037_v31 = vld [vmem:[#allocation3_spill] sm:$0xff] }
0x1e0c   :  { %2319 = vmatpush.bf16.msrb.mxu0 %v5025_v16 }
0x1e0f   :  { %2355 = vmatpush.bf16.msra.mxu1 %v5026_v7 }
0x1e10   :  { %2320 = vmatpush.bf16.msrb.mxu0 %v5027_v10 }
0x1e13   :  { %2356 = vmatpush.bf16.msra.mxu1 %v5028_v61 }
0x1e14   :  { %2321 = vmatpush.bf16.msrb.mxu0 %v5029_v53  ;;  %v5038_v53 = vld [vmem:[#allocation11_spill] sm:$0xff] }
0x1e17   :  { %2357 = vmatpush.bf16.msra.mxu1 %v5030_v18 }
0x1e1b   :  { %2358 = vmatpush.bf16.msra.mxu1 %v5031_v11 }
0x1e1f   :  { %2359 = vmatpush.bf16.msra.mxu1 %v5032_v35 }
0x1e23   :  { %2360 = vmatpush.bf16.msra.mxu1 %v5033_v62 }
0x1e83   :  { %v2124_v49 = vpop.f32.mrf.mxu1 }
0x1e84   :  { %v2125_v43 = vadd.f32 %v5034_v2, %v2124_v49  ;;  %v2052_v47 = vpop.f32.mrf.mxu0 }
0x1e85   :  { %v2053_v51 = vadd.f32 %v5035_v3, %v2052_v47 }
0x1e86   :  { %v2129_v23 = vrot.slane %v2125_v43, 1  ;;  %v2130_v17 = vperm.slane %v2125_v43, 0 }
0x1e87   :  { %v2066_v0 = vadd.f32 %v2065_v58, %v2053_v51 }
0x1e88   :  { %v2131_v32 = vperm.slane %v2129_v23, 0  ;;  %v2134_v59 = vadd.f32 %v2130_v17, %v5036_v14 }
0x1e89   :  { %2887 = vst [vmem:[%s4804_s11 + $0xa] sm:$0x3] %v2066_v0  ;;  %v2071_v63 = vsel %vm780_vm6, %v2066_v0, -inf }
0x1e8a   :  { %v2135_v16 = vadd.f32 %v2131_v32, %v5037_v31  ;;  %3082 = vtanh.f32 %v2134_v59  ;;  %2072 = vmax.xlane.f32.xlu2 %v2071_v63 }
0x1e8b   :  { %v2126_v7 = vpop.f32.mrf.mxu1 }
0x1e8c   :  { %3084 = vtanh.f32 %v2135_v16  ;;  %v2054_v10 = vpop.f32.mrf.mxu0 }
0x1e90   :  { %v3083_v61 = vpop.eup %3082 }
0x1e91   :  { %v2138_v18 = vmul.f32 %v5038_v53, %v3083_v61 }
0x1e92   :  { %v3085_v58 = vpop.eup %3084 }
0x1e93   :  { %2140 = vadd.xlane.f32.xlu1 %v2138_v18  ;;  %v2139_v11 = vmul.f32 %v5038_v53, %v3085_v58 }
0x1e95   :  { %2142 = vadd.xlane.f32.xlu0 %v2139_v11 }
0x1efd   :  { %v2073_v35 = vpop.xlane.xlu2 %2072 }
0x1efe   :  { %vm2074_vm15 = vcmp.ge.f32.partialorder %v2066_v0, %v2073_v35 }
0x1eff   :  { %v2075_v62 = vsel %vm2074_vm15, %v3323_v40, 128 }
0x1f00   :  { %v2076_v49 = vsel %vm780_vm6, %v2075_v62, 2147483647 }
0x1f01   :  { %v2078_v43 = vshra.s32 %v2076_v49, 16  ;;  %v2077_v63 = vand.u32 65535, %v2076_v49 }
0x1f03   :  { %v2080_v47 = vcvt.s32.f32 %v2078_v43  ;;  %v2079_v16 = vcvt.s32.f32 %v2077_v63 }
0x1f05   :  { %2081 = vmin.xlane.f32.xlu2 %v2080_v47 }
0x1f06   :  { %v2141_v3 = vpop.xlane.xlu1 %2140 }
0x1f07   :  { %v2146_v23 = vperm.slane %v2141_v3, %v3323_v40 }
0x1f08   :  { %v2143_v51 = vpop.xlane.xlu0 %2142 }
0x1f09   :  { %v2147_v17 = vperm.slane %v2143_v51, %v3323_v40 }
0x1f0b   :  { %v2148_v32 = vsel %vm358_vm0, %v2147_v17, %v2146_v23 }
0x1f0c   :  { %v2150_v59 = vsel %vm361_vm1, %v2148_v32, -inf }
0x1f0d   :  { %2151 = vmax.xlane.f32.xlu1 %v2150_v59 }
0x1f78   :  { %v2082_v0 = vpop.xlane.xlu2 %2081 }
0x1f79   :  { %vm2083_vm2 = vcmp.eq.f32.partialorder %v2080_v47, %v2082_v0  ;;  %v2088_v17 = vcvt.f32.s32 %v2082_v0 }
0x1f7a   :  { %v2084_v7 = vsel %vm2083_vm2, %v2079_v16, inf }
0x1f7b   :  { %2085 = vmin.xlane.f32.xlu2 %v2084_v7  ;;  %v2089_v32 = vshll.u32 %v2088_v17, 16 }
0x1f80   :  { %v2152_v10 = vpop.xlane.xlu1 %2151 }
0x1f81   :  { %v2154_v61 = vperm.slane %v2152_v10, 0  ;;  %v2155_v18 = vperm.slane %v2152_v10, 1  ;;  %v5041_v10 = vld [vmem:[#allocation24_spill] sm:$0xff] }
0x1f83   :  { %v2158_v58 = vsub.f32 %v2141_v3, %v2154_v61  ;;  %v2159_v11 = vsub.f32 %v2143_v51, %v2155_v18  ;;  %v5039_v3 = vld [vmem:[#allocation12_spill] sm:$0xff]  ;;  %v5040_v51 = vld [vmem:[#allocation23_spill] sm:$0xff] }
0x1f85   :  { %v2160_v35 = vmul.f32 1.442695, %v2158_v58  ;;  %v2162_v62 = vmul.f32 1.442695, %v2159_v11 }
0x1f87   :  { %3086 = vpow2.f32 %v2160_v35 }
0x1f88   :  { %3088 = vpow2.f32 %v2162_v62 }
0x1f8d   :  { %v3087_v43 = vpop.eup %3086 }
0x1f8e   :  { %v3089_v23 = vpop.eup %3088  ;;  %2167 = vperm.xlu0 %2969, %v3087_v43  }
0x1f8f   :  { %2170 = vperm.xlu1 %2967, %v3089_v23  }
0x1fee   :  { %v2086_v49 = vpop.xlane.xlu2 %2085 }
0x1fef   :  { %v2087_v59 = vcvt.f32.s32 %v2086_v49 }
0x1ff1   :  { %v2090_v47 = vadd.s32 %v2089_v32, %v2087_v59 }
0x1ff3   :  { %vm2091_vm3 = vcmp.eq.s32.totalorder %v3323_v40, %v2090_v47  ;;  %v5042_v47 = vld [vmem:[#allocation14_spill] sm:$0xff] }
0x1ff4   :  { %vm2889_vm5 = vmpackc.low %vm2091_vm3, %vm2091_vm3 }
0x1ff5   :  { %2890 = vmatmul.msk.bf16.vlgmr.msrb.gmra.mxu3 %vm2889_vm5, %v5016_v55 }
0x1ff6   :  { %2377 = vmatpush.bf16.msrb.mxu3 %v4505_v13 }
0x1ffa   :  { %2378 = vmatpush.bf16.msrb.mxu3 %v5039_v3 }
0x1ffe   :  { %2379 = vmatpush.bf16.msrb.mxu3 %v5040_v51 }
0x2000   :  { %v2168_v63 = vpop.permute.xlu0 %2167 }
0x2001   :  { %v2171_v16 = vpop.permute.xlu1 %2170  ;;  %v2172_v7 = vperm.slane %v2168_v63, %v3323_v40 }
0x2002   :  { %v2173_v0 = vperm.slane %v2171_v16, %v3323_v40  ;;  %2380 = vmatpush.bf16.msrb.mxu3 %v5041_v10 }
0x2004   :  { %v2174_v61 = vsel %vm358_vm0, %v2173_v0, %v2172_v7 }
0x2005   :  { %v2176_v18 = vsel %vm361_vm1, %v2174_v61, 0.0 }
0x2006   :  { %2177 = vadd.xlane.f32.xlu2 %v2176_v18 }
0x2078   :  { %v2104_v58 = vpop.f32.mrf.mxu3 }
0x2079   :  { %v2178_v11 = vpop.xlane.xlu2 %2177 }
0x207a   :  { %3090 = vrcp.f32 %v2178_v11 }
0x2080   :  { %v3091_v13 = vpop.eup %3090  ;;  %v2106_v35 = vpop.f32.mrf.mxu3 }
0x2081   :  { %v2182_v62 = vperm.slane %v3091_v13, 1  ;;  %v2181_v17 = vperm.slane %v3091_v13, 0 }
0x2083   :  { %v2186_v49 = vmul.f32 %v3089_v23, %v2182_v62  ;;  %v2185_v32 = vmul.f32 %v3087_v43, %v2181_v17 }
0x2085   :  { %2194 = vperm.xlu2 %2968, %v2186_v49   ;;  %2189 = vperm.xlu0 %2969, %v2185_v32  }
0x20df   :  { %v2195_v59 = vpop.permute.xlu2 %2194 }
0x20e0   :  { %v2198_v3 = vmul.f32 %v5042_v47, %v2195_v59 }
0x20e2   :  { %v2205_v51 = vrot.slane %v2198_v3, 4 }
0x20e4   :  { %v2206_v63 = vadd.f32 %v2205_v51, %v2198_v3 }
0x20e6   :  { %v2207_v7 = vrot.slane %v2206_v63, 2 }
0x20e8   :  { %v2208_v61 = vadd.f32 %v2207_v7, %v2206_v63 }
0x20ea   :  { %v2209_v35 = vrot.slane %v2208_v61, 1 }
0x20ec   :  { %v2210_v43 = vadd.f32 %v2209_v35, %v2208_v61  ;;  %v3173_v35 = vld [vmem:[%s4802_s9 + $0x48] sm:$0xff] }
0x20f7   :  { %v2190_v16 = vpop.permute.xlu0 %2189 }
0x20f8   :  { %v2197_v0 = vmul.f32 %v4539_v37, %v2190_v16 }
0x20fa   :  { %v2199_v10 = vrot.slane %v2197_v0, 4 }
0x20fc   :  { %v2200_v18 = vadd.f32 %v2199_v10, %v2197_v0 }
0x20fe   :  { %v2201_v11 = vrot.slane %v2200_v18, 2 }
0x2100   :  { %v2202_v55 = vadd.f32 %v2201_v11, %v2200_v18  ;;  %v3171_v18 = vld [vmem:[%s4802_s9 + $0x58] sm:$0xff]  ;;  %v3172_v11 = vld [vmem:[%s4802_s9 + $0x50] sm:$0xff] }
0x2102   :  { %v2203_v13 = vrot.slane %v2202_v55, 1 }
0x2104   :  { %v2204_v23 = vadd.f32 %v2203_v13, %v2202_v55  ;;  %v3174_v13 = vld [vmem:[%s4802_s9 + $0x40] sm:$0xff] }
0x2106   :  { %v2213_v62 = vsel %vm358_vm0, %v2210_v43, %v2204_v23 }
0x2107   :  { %2214 = vrot.lane.b32.xlu1 %v2213_v62, %s3178_s21 }
0x2179   :  { %v4653_v17 = vpop.permute.xlu1 %2214 }
0x217a   :  { %v2217_v49 = vsel %vm318_vm4, %v2104_v58, %v4653_v17  ;;  %v2218_v32 = vsel %vm318_vm4, %v4653_v17, %v4601_v15 }
0x217b   :  { %v2219_v59 = vpack.c.bf16 %v2217_v49, %v2217_v49  ;;  %v2220_v3 = vpack.c.bf16 %v2218_v32, %v2218_v32 }
0x217d   :  { %2229 = vmatmul.bf16.vlgmr.msrb.gmra.mxu2 %v2219_v59  ;;  %2242 = vmatmul.bf16.vlgmr.msra.gmra.mxu0 %v2220_v3 }
0x217e   :  { %2255 = vmatmul.bf16.vlgmr.msrb.gmra.mxu1 %v2219_v59  ;;  %2268 = vmatmul.bf16.vlgmr.msra.gmra.mxu3 %v2220_v3 }
0x217f   :  { %2479 = vmatpush.bf16.msra.mxu0 %v3405_v29  ;;  %2492 = vmatpush.bf16.msrb.mxu2 %v3392_v22  ;;  %v2297_v22 = vpack.c.bf16 %v4653_v17, %v4653_v17  ;;  %v3164_v29 = vld [vmem:[%s4802_s9 + $0x30] sm:$0xff] }
0x2180   :  { %2505 = vmatpush.bf16.msra.mxu3 %v3417_v34  ;;  %2518 = vmatpush.bf16.msrb.mxu1 %v3403_v27  ;;  %v3163_v27 = vld [vmem:[%s4802_s9 + $0x38] sm:$0xff]  ;;  %v3165_v34 = vld [vmem:[%s4802_s9 + $0x28] sm:$0xff] }
0x2183   :  { %2480 = vmatpush.bf16.msra.mxu0 %v3444_v44  ;;  %2493 = vmatpush.bf16.msrb.mxu2 %v3430_v38  ;;  %v3166_v38 = vld [vmem:[%s4802_s9 + $0x20] sm:$0xff]  ;;  %v3168_v44 = vld [vmem:[%s4802_s9 + $0x10] sm:$0xff] }
0x2184   :  { %2506 = vmatpush.bf16.msra.mxu3 %v3455_v48  ;;  %2519 = vmatpush.bf16.msrb.mxu1 %v3432_v39  ;;  %v3167_v39 = vld [vmem:[%s4802_s9 + $0x18] sm:$0xff]  ;;  %v3169_v48 = vld [vmem:[%s4802_s9 + $0x8] sm:$0xff] }
0x2187   :  { %2481 = vmatpush.bf16.msra.mxu0 %v3482_v57  ;;  %2494 = vmatpush.bf16.msrb.mxu2 %v3467_v52  ;;  %v3170_v52 = vld [vmem:[%s4802_s9] sm:$0xff] }
0x2188   :  { %2507 = vmatpush.bf16.msra.mxu3 %v3494_v5  ;;  %2520 = vmatpush.bf16.msrb.mxu1 %v3480_v56 }
0x218b   :  { %2482 = vmatpush.bf16.msra.mxu0 %v3518_v21  ;;  %2495 = vmatpush.bf16.msrb.mxu2 %v3512_v19 }
0x218c   :  { %2508 = vmatpush.bf16.msra.mxu3 %v3530_v30  ;;  %2521 = vmatpush.bf16.msrb.mxu1 %v3516_v20 }
0x218d   :  { %2892 = vmatmul.msk.bf16.vlgmr.msrb.gmra.mxu0 %vm318_vm4, %v2297_v22 }
0x218f   :  { %2483 = vmatpush.bf16.msra.mxu0 %v3554_v46  ;;  %2496 = vmatpush.bf16.msrb.mxu2 %v3548_v41 }
0x2190   :  { %2509 = vmatpush.bf16.msra.mxu3 %v3568_v54  ;;  %2522 = vmatpush.bf16.msrb.mxu1 %v4925_v9 }
0x2193   :  { %2484 = vmatpush.bf16.msra.mxu0 %v4926_v33  ;;  %2497 = vmatpush.bf16.msrb.mxu2 %v4927_v45 }
0x2194   :  { %2510 = vmatpush.bf16.msra.mxu3 %v3604_v36  ;;  %2523 = vmatpush.bf16.msrb.mxu1 %v4928_v1 }
0x2197   :  { %2485 = vmatpush.bf16.msra.mxu0 %v4929_v28  ;;  %2498 = vmatpush.bf16.msrb.mxu2 %v4930_v4 }
0x2198   :  { %2511 = vmatpush.bf16.msra.mxu3 %v3637_v12  ;;  %2524 = vmatpush.bf16.msrb.mxu1 %v4931_v25 }
0x219b   :  { %2486 = vmatpush.bf16.msra.mxu0 %v4932_v6  ;;  %2499 = vmatpush.bf16.msrb.mxu2 %v4933_v8 }
0x219c   :  { %2512 = vmatpush.bf16.msra.mxu3 %v3682_v24  ;;  %2525 = vmatpush.bf16.msrb.mxu1 %v4934_v42 }
0x219f   :  { %2559 = vmatpush.bf16.msrb.mxu0 %v3163_v27 }
0x21a3   :  { %2560 = vmatpush.bf16.msrb.mxu0 %v3164_v29 }
0x21a7   :  { %2561 = vmatpush.bf16.msrb.mxu0 %v3165_v34 }
0x21ab   :  { %2562 = vmatpush.bf16.msrb.mxu0 %v3166_v38 }
0x21af   :  { %2563 = vmatpush.bf16.msrb.mxu0 %v3167_v39 }
0x21b3   :  { %2564 = vmatpush.bf16.msrb.mxu0 %v3168_v44 }
0x21b7   :  { %2565 = vmatpush.bf16.msrb.mxu0 %v3169_v48 }
0x21bb   :  { %2566 = vmatpush.bf16.msrb.mxu0 %v3170_v52 }
0x21fa   :  { %v2243_v56 = vpop.f32.mrf.mxu0 }
0x21fb   :  { %v2256_v57 = vpop.f32.mrf.mxu1 }
0x21fc   :  { %v2257_v46 = vadd.f32 %v2256_v57, %v3728_v60 }
0x2200   :  { %v2230_v5 = vpop.f32.mrf.mxu2 }
0x2201   :  { %v2231_v19 = vadd.f32 %v2230_v5, %v3726_v50  ;;  %v2269_v20 = vpop.f32.mrf.mxu3 }
0x2202   :  { %v2245_v21 = vpop.f32.mrf.mxu0  ;;  %v2270_v36 = vadd.f32 %v2269_v20, %v2257_v46 }
0x2203   :  { %v2244_v30 = vadd.f32 %v2243_v56, %v2231_v19  ;;  %v2258_v41 = vpop.f32.mrf.mxu1 }
0x2204   :  { %v2278_v6 = vmul.f32 0.5, %v2270_v36 }
0x2205   :  { %v2273_v54 = vmul.f32 0.5, %v2244_v30 }
0x2207   :  { %3092 = vtanh.f32 %v2273_v54 }
0x2208   :  { %v2232_v12 = vpop.f32.mrf.mxu2  ;;  %3094 = vtanh.f32 %v2270_v36 }
0x2209   :  { %v2271_v24 = vpop.f32.mrf.mxu3  ;;  %3096 = vtanh.f32 %v2278_v6 }
0x220a   :  { %v2323_v9 = vpop.f32.mrf.mxu0 }
0x220d   :  { %v3093_v33 = vpop.eup %3092 }
0x220e   :  { %v2275_v45 = vadd.f32 1.0, %v3093_v33  ;;  %v3095_v28 = vpop.eup %3094 }
0x220f   :  { %v3097_v55 = vpop.eup %3096 }
0x2210   :  { %v2276_v1 = vmul.f32 0.5, %v2275_v45  ;;  %v2280_v58 = vadd.f32 1.0, %v3097_v55 }
0x2212   :  { %v2325_v4 = vpop.f32.mrf.mxu0  ;;  %v2283_v25 = vmul.f32 %v3095_v28, %v2276_v1  ;;  %v2282_v8 = vmul.f32 %v2276_v1, %v4598_v26  ;;  %v2281_v51 = vmul.f32 0.5, %v2280_v58 }
0x2214   :  { %2285 = vrot.lane.b32.xlu0 %v2283_v25, %s3178_s21 }
0x2286   :  { %v2286_v42 = vpop.permute.xlu0 %2285 }
0x2287   :  { %v4723_v15 = vadd.f32 %v2286_v42, %v2282_v8 }
0x2289   :  { %3098 = vtanh.f32 %v4723_v15 }
0x228f   :  { %v3099_v63 = vpop.eup %3098 }
0x2290   :  { %v4726_v16 = vmul.f32 %v3099_v63, %v2281_v51  ;;  %v5043_v63 = vmov 1.0|1.0  }
0x2292   :  { %2292 = vrot.lane.b32.xlu0 %v4726_v16, %s3178_s21  ;;  %v2366_v7 = vpack.c.bf16 %v4726_v16, %v4726_v16 }
0x2294   :  { %2368 = vrot.lane.b32.xlu1 %v2366_v7, %s3178_s21 }
0x2304   :  { %v2293_v26 = vpop.permute.xlu0 %2292 }
0x2305   :  { %v2295_v0 = vsel %vm318_vm4, %v2293_v26, %v4653_v17  ;;  %v4752_v17 = vld [vmem:[%s4803_s10] ss:$0 sm:$0xff] }
0x2306   :  { %v2296_v10 = vpack.c.bf16 %v2295_v0, %v2295_v0  ;;  %v2369_v61 = vpop.permute.xlu1 %2368 }
0x2307   :  { %2897 = vmatmul.msk.bf16.vlgmr.msrb.gmra.mxu3 %vm318_vm4, %v2369_v61 }
0x2308   :  { %2309 = vmatmul.bf16.vlgmr.msra.gmra.mxu2 %v2296_v10 }
0x2309   :  { %2576 = vmatpush.bf16.msra.mxu2 %v3171_v18 }
0x230d   :  { %2577 = vmatpush.bf16.msra.mxu2 %v3172_v11 }
0x2311   :  { %2578 = vmatpush.bf16.msra.mxu2 %v3173_v35 }
0x2315   :  { %2579 = vmatpush.bf16.msra.mxu2 %v3174_v13 }
0x238a   :  { %v2382_v23 = vpop.f32.mrf.mxu3 }
0x238b   :  { %v2383_v43 = vadd.f32 %v5034_v2, %v2382_v23  ;;  %v2310_v62 = vpop.f32.mrf.mxu2 }
0x238c   :  { %v2311_v49 = vadd.f32 %v4752_v17, %v2310_v62 }
0x238d   :  { %v2387_v32 = vrot.slane %v2383_v43, 1  ;;  %v2388_v59 = vperm.slane %v2383_v43, 0 }
0x238e   :  { %v2324_v3 = vadd.f32 %v2323_v9, %v2311_v49 }
0x238f   :  { %v2389_v22 = vperm.slane %v2387_v32, 0  ;;  %v2392_v27 = vadd.f32 %v2388_v59, %v5036_v14 }
0x2390   :  { %2893 = vst [vmem:[%s4804_s11 + $0xc] sm:$0x3] %v2324_v3  ;;  %v2329_v2 = vsel %vm780_vm6, %v2324_v3, -inf }
0x2391   :  { %v2393_v29 = vadd.f32 %v2389_v22, %v5037_v31  ;;  %3100 = vtanh.f32 %v2392_v27  ;;  %2330 = vmax.xlane.f32.xlu2 %v2329_v2 }
0x2392   :  { %v2384_v34 = vpop.f32.mrf.mxu3 }
0x2393   :  { %3102 = vtanh.f32 %v2393_v29  ;;  %v2312_v38 = vpop.f32.mrf.mxu2 }
0x2397   :  { %v3101_v39 = vpop.eup %3100 }
0x2398   :  { %v2396_v44 = vmul.f32 %v5038_v53, %v3101_v39 }
0x2399   :  { %v3103_v48 = vpop.eup %3102 }
0x239a   :  { %2398 = vadd.xlane.f32.xlu1 %v2396_v44  ;;  %v2397_v14 = vmul.f32 %v5038_v53, %v3103_v48 }
0x239c   :  { %2400 = vadd.xlane.f32.xlu0 %v2397_v14 }
0x2404   :  { %v2331_v52 = vpop.xlane.xlu2 %2330 }
0x2405   :  { %vm2332_vm7 = vcmp.ge.f32.partialorder %v2324_v3, %v2331_v52 }
0x2406   :  { %v2333_v56 = vsel %vm2332_vm7, %v3323_v40, 128 }
0x2407   :  { %v2334_v57 = vsel %vm780_vm6, %v2333_v56, 2147483647 }
0x2408   :  { %v2336_v31 = vshra.s32 %v2334_v57, 16  ;;  %v2335_v46 = vand.u32 65535, %v2334_v57 }
0x240a   :  { %v2338_v5 = vcvt.s32.f32 %v2336_v31  ;;  %v2337_v36 = vcvt.s32.f32 %v2335_v46 }
0x240c   :  { %2339 = vmin.xlane.f32.xlu0 %v2338_v5 }
0x240d   :  { %v2399_v19 = vpop.xlane.xlu1 %2398 }
0x240e   :  { %v2404_v21 = vperm.slane %v2399_v19, %v3323_v40 }
0x240f   :  { %v2401_v20 = vpop.xlane.xlu0 %2400 }
0x2410   :  { %v2405_v30 = vperm.slane %v2401_v20, %v3323_v40 }
0x2412   :  { %v2406_v41 = vsel %vm358_vm0, %v2405_v30, %v2404_v21 }
0x2413   :  { %v2408_v53 = vsel %vm361_vm1, %v2406_v41, -inf }
0x2414   :  { %2409 = vmax.xlane.f32.xlu1 %v2408_v53 }
0x247f   :  { %v2340_v54 = vpop.xlane.xlu0 %2339 }
0x2480   :  { %vm2341_vm8 = vcmp.eq.f32.partialorder %v2338_v5, %v2340_v54  ;;  %v2346_v8 = vcvt.f32.s32 %v2340_v54 }
0x2481   :  { %v2342_v12 = vsel %vm2341_vm8, %v2337_v36, inf }
0x2482   :  { %2343 = vmin.xlane.f32.xlu0 %v2342_v12  ;;  %v2347_v55 = vshll.u32 %v2346_v8, 16 }
0x2487   :  { %v2410_v24 = vpop.xlane.xlu1 %2409 }
0x2488   :  { %v2412_v9 = vperm.slane %v2410_v24, 0  ;;  %v2413_v33 = vperm.slane %v2410_v24, 1 }
0x248a   :  { %v2416_v45 = vsub.f32 %v2399_v19, %v2412_v9  ;;  %v2417_v1 = vsub.f32 %v2401_v20, %v2413_v33 }
0x248c   :  { %v2418_v28 = vmul.f32 1.442695, %v2416_v45  ;;  %v2420_v4 = vmul.f32 1.442695, %v2417_v1 }
0x248e   :  { %3104 = vpow2.f32 %v2418_v28 }
0x248f   :  { %3106 = vpow2.f32 %v2420_v4 }
0x2494   :  { %v3105_v25 = vpop.eup %3104 }
0x2495   :  { %v3107_v6 = vpop.eup %3106  ;;  %2425 = vperm.xlu2 %2968, %v3105_v25  }
0x2496   :  { %2428 = vperm.xlu1 %2967, %v3107_v6  }
0x24ef   :  { %v2426_v7 = vpop.permute.xlu2 %2425 }
0x24f0   :  { %v2430_v0 = vperm.slane %v2426_v7, %v3323_v40 }
0x24f5   :  { %v2344_v42 = vpop.xlane.xlu0 %2343 }
0x24f6   :  { %v2345_v58 = vcvt.f32.s32 %v2344_v42 }
0x24f8   :  { %v2348_v51 = vadd.s32 %v2347_v55, %v2345_v58 }
0x24fa   :  { %vm2349_vm6 = vcmp.eq.s32.totalorder %v3323_v40, %v2348_v51 }
0x24fb   :  { %vm2895_vm9 = vmpackc.low %vm2349_vm6, %vm2349_vm6 }
0x24fc   :  { %2896 = vmatmul.msk.bf16.vlgmr.msra.gmra.mxu1 %vm2895_vm9, %v5043_v63 }
0x2508   :  { %v2429_v26 = vpop.permute.xlu1 %2428 }
0x2509   :  { %v2431_v10 = vperm.slane %v2429_v26, %v3323_v40 }
0x250b   :  { %v2432_v61 = vsel %vm358_vm0, %v2431_v10, %v2430_v0 }
0x250c   :  { %v2434_v18 = vsel %vm361_vm1, %v2432_v61, 0.0 }
0x250d   :  { %2435 = vadd.xlane.f32.xlu0 %v2434_v18 }
0x2579   :  { %v2362_v11 = vpop.f32.mrf.mxu1 }
0x2580   :  { %v2436_v35 = vpop.xlane.xlu0 %2435 }
0x2581   :  { %3108 = vrcp.f32 %v2436_v35  ;;  %v2364_v13 = vpop.f32.mrf.mxu1 }
0x2587   :  { %v3109_v23 = vpop.eup %3108 }
0x2588   :  { %v2440_v43 = vperm.slane %v3109_v23, 1  ;;  %v2439_v62 = vperm.slane %v3109_v23, 0 }
0x258a   :  { %v2444_v49 = vmul.f32 %v3107_v6, %v2440_v43  ;;  %v2443_v32 = vmul.f32 %v3105_v25, %v2439_v62 }
0x258c   :  { %2452 = vperm.xlu2 %2968, %v2444_v49   ;;  %2447 = vperm.xlu0 %2969, %v2443_v32  }
0x25e6   :  { %v2453_v59 = vpop.permute.xlu2 %2452 }
0x25e7   :  { %v2456_v3 = vmul.f32 %v5042_v47, %v2453_v59 }
0x25e9   :  { %v2463_v40 = vrot.slane %v2456_v3, 4 }
0x25eb   :  { %v2464_v22 = vadd.f32 %v2463_v40, %v2456_v3 }
0x25ed   :  { %v2465_v2 = vrot.slane %v2464_v22, 2 }
0x25ef   :  { %v2466_v38 = vadd.f32 %v2465_v2, %v2464_v22 }
0x25f1   :  { %v2467_v48 = vrot.slane %v2466_v38, 1 }
0x25f3   :  { %v2468_v57 = vadd.f32 %v2467_v48, %v2466_v38 }
0x25fe   :  { %v2448_v27 = vpop.permute.xlu0 %2447 }
0x25ff   :  { %v2455_v29 = vmul.f32 %v4539_v37, %v2448_v27 }
0x2601   :  { %v2457_v34 = vrot.slane %v2455_v29, 4 }
0x2603   :  { %v2458_v39 = vadd.f32 %v2457_v34, %v2455_v29 }
0x2605   :  { %v2459_v44 = vrot.slane %v2458_v39, 2 }
0x2607   :  { %v2460_v14 = vadd.f32 %v2459_v44, %v2458_v39 }
0x2609   :  { %v2461_v52 = vrot.slane %v2460_v14, 1 }
0x260b   :  { %v2462_v56 = vadd.f32 %v2461_v52, %v2460_v14 }
0x260d   :  { %v2471_v31 = vsel %vm358_vm0, %v2468_v57, %v2462_v56 }
0x260e   :  { %2472 = vrot.lane.b32.xlu1 %v2471_v31, %s3178_s21 }
0x2680   :  { %v2473_v47 = vpop.permute.xlu1 %2472 }
0x2681   :  { %v2475_v5 = vsel %vm318_vm4, %v2362_v11, %v2473_v47  ;;  %v2476_v19 = vsel %vm318_vm4, %v2473_v47, %v4726_v16  ;;  %v2555_v21 = vpack.c.bf16 %v2473_v47, %v2473_v47 }
0x2682   :  { %v2477_v37 = vpack.c.bf16 %v2475_v5, %v2475_v5  ;;  %v2478_v20 = vpack.c.bf16 %v2476_v19, %v2476_v19 }
0x2684   :  { %2487 = vmatmul.bf16.vlgmr.msra.gmra.mxu0 %v2477_v37  ;;  %2500 = vmatmul.bf16.vlgmr.msrb.gmra.mxu2 %v2478_v20 }
0x2685   :  { %2513 = vmatmul.bf16.vlgmr.msra.gmra.mxu3 %v2477_v37  ;;  %2526 = vmatmul.bf16.vlgmr.msrb.gmra.mxu1 %v2478_v20 }
0x2694   :  { %2898 = vmatmul.msk.bf16.vlgmr.msra.gmra.mxu2 %vm318_vm4, %v2555_v21 }
0x2701   :  { %v2488_v30 = vpop.f32.mrf.mxu0 }
0x2702   :  { %v2527_v41 = vpop.f32.mrf.mxu1  ;;  %v2489_v53 = vadd.f32 %v2488_v30, %v3726_v50 }
0x2707   :  { %v2501_v46 = vpop.f32.mrf.mxu2 }
0x2708   :  { %v2502_v54 = vadd.f32 %v2501_v46, %v2489_v53  ;;  %v2514_v36 = vpop.f32.mrf.mxu3 }
0x2709   :  { %v2515_v12 = vadd.f32 %v2514_v36, %v3728_v60  ;;  %v2490_v24 = vpop.f32.mrf.mxu0 }
0x270a   :  { %v2531_v16 = vmul.f32 0.5, %v2502_v54  ;;  %v2529_v9 = vpop.f32.mrf.mxu1 }
0x270b   :  { %v2528_v33 = vadd.f32 %v2527_v41, %v2515_v12 }
0x270c   :  { %3110 = vtanh.f32 %v2531_v16 }
0x270d   :  { %3112 = vtanh.f32 %v2528_v33  ;;  %v2536_v55 = vmul.f32 0.5, %v2528_v33 }
0x270f   :  { %v2503_v45 = vpop.f32.mrf.mxu2  ;;  %3114 = vtanh.f32 %v2536_v55 }
0x2710   :  { %v2516_v1 = vpop.f32.mrf.mxu3 }
0x2712   :  { %v3111_v28 = vpop.eup %3110 }
0x2713   :  { %v2533_v4 = vadd.f32 1.0, %v3111_v28  ;;  %v3113_v6 = vpop.eup %3112 }
0x2715   :  { %v2534_v25 = vmul.f32 0.5, %v2533_v4  ;;  %v3115_v51 = vpop.eup %3114 }
0x2716   :  { %v2538_v7 = vadd.f32 1.0, %v3115_v51 }
0x2717   :  { %v2581_v8 = vpop.f32.mrf.mxu2  ;;  %v2541_v42 = vmul.f32 %v3113_v6, %v2534_v25  ;;  %v2540_v60 = vmul.f32 %v2534_v25, %v4723_v15 }
0x2718   :  { %v2539_v26 = vmul.f32 0.5, %v2538_v7 }
0x2719   :  { %2543 = vrot.lane.b32.xlu2 %v2541_v42, %s3178_s21 }
0x271f   :  { %v2583_v50 = vpop.f32.mrf.mxu2 }
0x2773   :  { %v2544_v58 = vpop.permute.xlu2 %2543 }
0x2774   :  { %v2546_v63 = vadd.f32 %v2544_v58, %v2540_v60 }
0x2776   :  { %3116 = vtanh.f32 %v2546_v63 }
0x277c   :  { %v3117_v0 = vpop.eup %3116 }
0x277d   :  { %v2548_v10 = vmul.f32 %v3117_v0, %v2539_v26 }
0x277f   :  { %2550 = vrot.lane.b32.xlu1 %v2548_v10, %s3178_s21 }
0x27f1   :  { %v2551_v61 = vpop.permute.xlu1 %2550 }
0x27f2   :  { %v2553_v18 = vsel %vm318_vm4, %v2551_v61, %v2473_v47 }
0x27f3   :  { %v2554_v11 = vpack.c.bf16 %v2553_v18, %v2553_v18 }
0x27f5   :  { %2567 = vmatmul.bf16.vlgmr.msrb.gmra.mxu0 %v2554_v11 }
0x2872   :  { %v2568_v35 = vpop.f32.mrf.mxu0 }
0x2873   :  { %v2569_v13 = vadd.f32 %v4752_v17, %v2568_v35 }
0x2875   :  { %v2582_v23 = vadd.f32 %v2581_v8, %v2569_v13 }
0x2877   :  { %2899 = vst [vmem:[%s4804_s11 + $0xe] sm:$0x3] %v2582_v23 }
0x287a   :  { %v2570_v15 = vpop.f32.mrf.mxu0 }

</bundles_post_ra>
